<compile_context>
chip_gen: v7x
topology: tpu7x:2x2x1
jax: 0.10.0
libtpu: 0.0.40
codegen_flags: <defaults>
</compile_context>

<pallas_src>
import numpy as np
import jax
import jax.numpy as jnp
from jax.experimental import pallas as pl
from jax.experimental.pallas import tpu as pltpu

_BLOCK_BATCH = 128   # images per grid step (tunable per TPU generation)


# ------------------------------ Pallas kernel ------------------------------

def _lenet_kernel(x_ref, w1_ref, b1_ref, w2_ref, b2_ref, a1_ref, bf1_ref,
                  wf2_ref, bf2_ref, wf3_ref, bf3_ref, out_ref,
                  p1_ref, p2_ref):
    f32, bf16 = jnp.float32, jnp.bfloat16
    b1 = b1_ref[...]                         # (1, 128) f32
    b2 = b2_ref[...]                         # (1, 128) f32

    # ---- conv1 (1->6, 5x5) + ReLU + 2x2 maxpool ---------------------------
    # Row block u covers image rows 4u..4u+7 == lanes [128u, 128u+256).
    # The shared Toeplitz RHS emits, per pooled-row offset e, four aligned
    # 128-lane slabs (conv row m in {0,1} x column parity p in {0,1});
    # pooling = elementwise max over the slabs (max commutes with +bias/ReLU).
    for u in range(7):
        r = jnp.dot(x_ref[:, 128 * u:128 * u + 256], w1_ref[...],
                    preferred_element_type=f32)               # (BT, 1024) f32
        for e in range(2):
            base = 512 * e
            pooled = jnp.maximum(
                jnp.maximum(r[:, base:base + 128], r[:, base + 128:base + 256]),
                jnp.maximum(r[:, base + 256:base + 384],
                            r[:, base + 384:base + 512]))
            pooled = jnp.maximum(pooled + b1, 0.0)            # f32 epilogue
            row = 2 * u + e                                   # pooled1 row
            p1_ref[:, 128 * row:128 * row + 128] = pooled.astype(bf16)

    # ---- conv2 (6->16, 5x5) + ReLU + 2x2 maxpool --------------------------
    # Pooled-output row t needs pooled1 rows 2t..2t+5 == lanes [256t, 256t+768).
    for t in range(5):
        r = jnp.dot(p1_ref[:, 256 * t:256 * t + 768], w2_ref[...],
                    preferred_element_type=f32)               # (BT, 512) f32
        pooled = jnp.maximum(jnp.maximum(r[:, 0:128], r[:, 128:256]),
                             jnp.maximum(r[:, 256:384], r[:, 384:512]))
        pooled = jnp.maximum(pooled + b2, 0.0)
        p2_ref[:, 128 * t:128 * t + 128] = pooled.astype(bf16)

    # ---- fc1 (400->120) + ReLU, fc2 (120->84) + ReLU, fc3 (84->10 pad 128) -
    h = jnp.dot(p2_ref[...], a1_ref[...], preferred_element_type=f32)
    h = jnp.maximum(h + bf1_ref[...], 0.0).astype(bf16)       # (BT, 120)
    h = jnp.dot(h, wf2_ref[...], preferred_element_type=f32)
    h = jnp.maximum(h + bf2_ref[...], 0.0).astype(bf16)       # (BT, 84)
    out_ref[...] = (jnp.dot(h, wf3_ref[...], preferred_element_type=f32)
                    + bf3_ref[...])                           # (BT, 128) f32


# ------------------- init-time weight re-layout (runs once) ----------------

def prepare_params(params):
    """Re-layout PyTorch-style params into the kernel's Toeplitz operands."""
    w1 = np.asarray(params['conv1_w'], np.float32)    # (6,1,5,5)  OIHW
    w2 = np.asarray(params['conv2_w'], np.float32)    # (16,6,5,5) OIHW
    fc1_w = np.asarray(params['fc1_w'], np.float32)   # (120, 400)

    # conv1 Toeplitz: K = (relative row rr in 0..7)*32 + col c;
    # N = e*512 + m*256 + p*128 + j*6 + ch  (lanes 84..127 of each slab zero).
    W1 = np.zeros((256, 1024), np.float32)
    for e in range(2):
        for m in range(2):
            d = 2 * e + m                              # conv row offset in block
            for p in range(2):
                nbase = e * 512 + m * 256 + p * 128
                for j in range(14):                    # pooled output column
                    col = 2 * j + p                    # conv output column
                    for ki in range(5):
                        for kj in range(5):
                            W1[(d + ki) * 32 + col + kj,
                               nbase + j * 6:nbase + j * 6 + 6] = w1[:, 0, ki, kj]

    # conv2 Toeplitz: K = (relative pooled1 row rr)*128 + cj*6 + ci;
    # N = (m*2+p)*128 + j*16 + co  (lanes 80..127 of each slab zero).
    W2 = np.zeros((768, 512), np.float32)
    for m in range(2):
        for p in range(2):
            nbase = (m * 2 + p) * 128
            for j in range(5):
                col = 2 * j + p
                for ki in range(5):
                    for kj in range(5):
                        kbase = (m + ki) * 128 + (col + kj) * 6
                        W2[kbase:kbase + 6,
                           nbase + j * 16:nbase + j * 16 + 16] = w2[:, :, ki, kj].T

    # fc1: pooled2 lane (h*128 + w*16 + co) -> PyTorch NCHW flat (co*25+h*5+w).
    A1 = np.zeros((640, 120), np.float32)
    for h in range(5):
        for w in range(5):
            for co in range(16):
                A1[h * 128 + w * 16 + co, :] = fc1_w[:, co * 25 + h * 5 + w]

    b1r = np.zeros((1, 128), np.float32)
    b1r[0, :84] = np.tile(np.asarray(params['conv1_b'], np.float32), 14)
    b2r = np.zeros((1, 128), np.float32)
    b2r[0, :80] = np.tile(np.asarray(params['conv2_b'], np.float32), 5)
    wf3 = np.zeros((84, 128), np.float32)
    wf3[:, :10] = np.asarray(params['fc3_w'], np.float32).T
    bf3 = np.zeros((1, 128), np.float32)
    bf3[0, :10] = np.asarray(params['fc3_b'], np.float32)

    bf16, f32 = jnp.bfloat16, jnp.float32
    return {
        'w1': jnp.asarray(W1, bf16), 'b1': jnp.asarray(b1r, f32),
        'w2': jnp.asarray(W2, bf16), 'b2': jnp.asarray(b2r, f32),
        'a1': jnp.asarray(A1, bf16),
        'bf1': jnp.asarray(np.asarray(params['fc1_b'], np.float32)[None, :], f32),
        'wf2': jnp.asarray(np.asarray(params['fc2_w'], np.float32).T, bf16),
        'bf2': jnp.asarray(np.asarray(params['fc2_b'], np.float32)[None, :], f32),
        'wf3': jnp.asarray(wf3, bf16), 'bf3': jnp.asarray(bf3, f32),
    }


# ------------------------------- forward -----------------------------------

_MACS_PER_IMAGE = (7 * 256 * 1024      # conv1 (Toeplitz, incl. lane padding)
                   + 5 * 768 * 512     # conv2
                   + 640 * 120 + 120 * 84 + 84 * 128)


@jax.jit
def net_forward(prepped, x_nchw):
    B = x_nchw.shape[0]
    BT = min(_BLOCK_BATCH, max(8, -(-B // 8) * 8))
    Bp = -(-B // BT) * BT
    x = x_nchw.reshape(B, 32 * 32).astype(jnp.bfloat16)
    if Bp != B:
        x = jnp.pad(x, ((0, Bp - B), (0, 0)))   # tail images: garbage, never read

    def const(rank):
        return lambda i: (0,) * rank

    weight_bytes = sum(int(v.size) * v.dtype.itemsize for v in prepped.values())
    cost = pl.CostEstimate(
        flops=2 * _MACS_PER_IMAGE * Bp,
        transcendentals=0,
        bytes_accessed=2 * Bp * 1024 + 4 * Bp * 128 + weight_bytes)

    out = pl.pallas_call(
        _lenet_kernel,
        out_shape=jax.ShapeDtypeStruct((Bp, 128), jnp.float32),
        grid=(Bp // BT,),
        in_specs=[
            pl.BlockSpec((BT, 1024), lambda i: (i, 0)),   # images (bf16)
            pl.BlockSpec((256, 1024), const(2)),          # conv1 Toeplitz (shared)
            pl.BlockSpec((1, 128), const(2)),             # conv1 bias row
            pl.BlockSpec((768, 512), const(2)),           # conv2 Toeplitz (shared)
            pl.BlockSpec((1, 128), const(2)),             # conv2 bias row
            pl.BlockSpec((640, 120), const(2)),           # fc1 weight
            pl.BlockSpec((1, 120), const(2)),             # fc1 bias
            pl.BlockSpec((120, 84), const(2)),            # fc2 weight
            pl.BlockSpec((1, 84), const(2)),              # fc2 bias
            pl.BlockSpec((84, 128), const(2)),            # fc3 weight (padded)
            pl.BlockSpec((1, 128), const(2)),             # fc3 bias (padded)
        ],
        out_specs=pl.BlockSpec((BT, 128), lambda i: (i, 0)),
        scratch_shapes=[pltpu.VMEM((BT, 14 * 128), jnp.bfloat16),   # pooled1
                        pltpu.VMEM((BT, 5 * 128), jnp.bfloat16)],   # pooled2
        compiler_params=pltpu.CompilerParams(
            dimension_semantics=("parallel",)),
        cost_estimate=cost,
    )(x, prepped['w1'], prepped['b1'], prepped['w2'], prepped['b2'],
      prepped['a1'], prepped['bf1'], prepped['wf2'], prepped['bf2'],
      prepped['wf3'], prepped['bf3'])
    return out[:B, :10]


# --------------------------- params & reference ----------------------------

def init_params(key):
    ks = jax.random.split(key, 10)

    def u(k, shape, fan_in):
        bound = 1.0 / jnp.sqrt(jnp.float32(fan_in))
        return jax.random.uniform(k, shape, jnp.float32, -bound, bound)

    return {
        'conv1_w': u(ks[0], (6, 1, 5, 5), 1 * 5 * 5),
        'conv1_b': u(ks[1], (6,), 1 * 5 * 5),
        'conv2_w': u(ks[2], (16, 6, 5, 5), 6 * 5 * 5),
        'conv2_b': u(ks[3], (16,), 6 * 5 * 5),
        'fc1_w': u(ks[4], (120, 400), 400),
        'fc1_b': u(ks[5], (120,), 400),
        'fc2_w': u(ks[6], (84, 120), 120),
        'fc2_b': u(ks[7], (84,), 120),
        'fc3_w': u(ks[8], (10, 84), 84),
        'fc3_b': u(ks[9], (10,), 84),
    }


def reference_forward(params, x):
    """Pure-JAX f32 reference of the PyTorch forward (NCHW)."""
    def conv(x, w, b):
        y = jax.lax.conv_general_dilated(
            x, w, (1, 1), 'VALID',
            dimension_numbers=('NCHW', 'OIHW', 'NCHW'))
        return jax.nn.relu(y + b[None, :, None, None])

    def pool(x):
        B, C, H, W = x.shape
        return x.reshape(B, C, H // 2, 2, W // 2, 2).max(axis=(3, 5))

    x = pool(conv(x, params['conv1_w'], params['conv1_b']))
    x = pool(conv(x, params['conv2_w'], params['conv2_b']))
    x = x.reshape(x.shape[0], -1)
    x = jax.nn.relu(x @ params['fc1_w'].T + params['fc1_b'])
    x = jax.nn.relu(x @ params['fc2_w'].T + params['fc2_b'])
    return x @ params['fc3_w'].T + params['fc3_b']


if __name__ == "__main__":
    key = jax.random.PRNGKey(0)
    pkey, xkey = jax.random.split(key)
    params = init_params(pkey)
    prepped = prepare_params(params)          # one-time weight re-layout
    # LeNet geometry requires 32x32 single-channel input for 16*5*5 features.
    x = jax.random.normal(xkey, (4, 1, 32, 32), jnp.float32)

    out = jax.block_until_ready(net_forward(prepped, x))
    ref = jax.block_until_ready(reference_forward(params, x))

    assert out.shape == (4, 10), out.shape
    err = float(jnp.max(jnp.abs(out - ref)))
    # bf16 matmul operands (f32 accumulation) -> relaxed tolerance vs f32 ref.
    assert jnp.allclose(out, ref, atol=5e-2, rtol=5e-2), err
    print("KERNEL_OK")
</pallas_src>

<mosaic_0001>
module attributes {stable_mosaic.version = 11 : i64} {
  func.func @_lenet_kernel(%arg0: i32, %arg1: memref<8x1024xbf16, #tpu.memory_space<vmem>>, %arg2: memref<256x1024xbf16, #tpu.memory_space<vmem>>, %arg3: memref<1x128xf32, #tpu.memory_space<vmem>>, %arg4: memref<768x512xbf16, #tpu.memory_space<vmem>>, %arg5: memref<1x128xf32, #tpu.memory_space<vmem>>, %arg6: memref<640x120xbf16, #tpu.memory_space<vmem>>, %arg7: memref<1x120xf32, #tpu.memory_space<vmem>>, %arg8: memref<120x84xbf16, #tpu.memory_space<vmem>>, %arg9: memref<1x84xf32, #tpu.memory_space<vmem>>, %arg10: memref<84x128xbf16, #tpu.memory_space<vmem>>, %arg11: memref<1x128xf32, #tpu.memory_space<vmem>>, %arg12: memref<8x128xf32, #tpu.memory_space<vmem>>, %arg13: memref<8x1792xbf16, #tpu.memory_space<vmem>>, %arg14: memref<8x640xbf16, #tpu.memory_space<vmem>>) attributes {dimension_semantics = [#tpu.dimension_semantics<parallel>], iteration_bounds = array<i64: 1>, scalar_prefetch = 0 : i64, scratch_operands = 2 : i64, tpu.core_type = #tpu.core_type<tc>, window_params = [{transform_indices = @transform_0, window_bounds = array<i64: 8, 1024>}, {pipeline_mode = #tpu.pipeline_mode<synchronous>, transform_indices = @transform_1, window_bounds = array<i64: 256, 1024>}, {pipeline_mode = #tpu.pipeline_mode<synchronous>, transform_indices = @transform_2, window_bounds = array<i64: 1, 128>}, {pipeline_mode = #tpu.pipeline_mode<synchronous>, transform_indices = @transform_3, window_bounds = array<i64: 768, 512>}, {pipeline_mode = #tpu.pipeline_mode<synchronous>, transform_indices = @transform_4, window_bounds = array<i64: 1, 128>}, {pipeline_mode = #tpu.pipeline_mode<synchronous>, transform_indices = @transform_5, window_bounds = array<i64: 640, 120>}, {pipeline_mode = #tpu.pipeline_mode<synchronous>, transform_indices = @transform_6, window_bounds = array<i64: 1, 120>}, {pipeline_mode = #tpu.pipeline_mode<synchronous>, transform_indices = @transform_7, window_bounds = array<i64: 120, 84>}, {pipeline_mode = #tpu.pipeline_mode<synchronous>, transform_indices = @transform_8, window_bounds = array<i64: 1, 84>}, {pipeline_mode = #tpu.pipeline_mode<synchronous>, transform_indices = @transform_9, window_bounds = array<i64: 84, 128>}, {pipeline_mode = #tpu.pipeline_mode<synchronous>, transform_indices = @transform_10, window_bounds = array<i64: 1, 128>}, {transform_indices = @transform_11, window_bounds = array<i64: 8, 128>}]} {
    %c0 = arith.constant 0 : index
    %c0_0 = arith.constant 0 : index
    %0 = vector.load %arg3[%c0, %c0_0] : memref<1x128xf32, #tpu.memory_space<vmem>>, vector<1x128xf32>
    %c0_1 = arith.constant 0 : index
    %c0_2 = arith.constant 0 : index
    %1 = vector.load %arg5[%c0_1, %c0_2] : memref<1x128xf32, #tpu.memory_space<vmem>>, vector<1x128xf32>
    %c0_3 = arith.constant 0 : index
    %c0_4 = arith.constant 0 : index
    %2 = vector.load %arg1[%c0_3, %c0_4] : memref<8x1024xbf16, #tpu.memory_space<vmem>>, vector<8x256xbf16>
    %c0_5 = arith.constant 0 : index
    %c0_6 = arith.constant 0 : index
    %3 = vector.load %arg2[%c0_5, %c0_6] : memref<256x1024xbf16, #tpu.memory_space<vmem>>, vector<256x1024xbf16>
    %cst = arith.constant dense<0.000000e+00> : vector<8x1024xf32>
    %4 = tpu.matmul %2, %3, %cst {dimension_numbers = #tpu.dot_dimension_numbers<[1], [0], [0], [1], [0, 0, 1, 1], [], []>} : vector<8x256xbf16>, vector<256x1024xbf16>, vector<8x1024xf32> -> vector<8x1024xf32>
    %5 = vector.extract_strided_slice %4 {offsets = [0, 0], sizes = [8, 128], strides = [1, 1]} : vector<8x1024xf32> to vector<8x128xf32>
    %6 = vector.extract_strided_slice %4 {offsets = [0, 128], sizes = [8, 128], strides = [1, 1]} : vector<8x1024xf32> to vector<8x128xf32>
    %7 = arith.maximumf %5, %6 : vector<8x128xf32>
    %8 = vector.extract_strided_slice %4 {offsets = [0, 256], sizes = [8, 128], strides = [1, 1]} : vector<8x1024xf32> to vector<8x128xf32>
    %9 = vector.extract_strided_slice %4 {offsets = [0, 384], sizes = [8, 128], strides = [1, 1]} : vector<8x1024xf32> to vector<8x128xf32>
    %10 = arith.maximumf %8, %9 : vector<8x128xf32>
    %11 = arith.maximumf %7, %10 : vector<8x128xf32>
    %12 = vector.broadcast %0 : vector<1x128xf32> to vector<8x128xf32>
    %13 = arith.addf %11, %12 : vector<8x128xf32>
    %cst_7 = arith.constant 0.000000e+00 : f32
    %14 = vector.broadcast %cst_7 : f32 to vector<8x128xf32>
    %15 = arith.maximumf %13, %14 : vector<8x128xf32>
    %16 = arith.truncf %15 : vector<8x128xf32> to vector<8x128xbf16>
    %c0_8 = arith.constant 0 : index
    %c0_9 = arith.constant 0 : index
    %17 = vector.load %arg13[%c0_8, %c0_9] : memref<8x1792xbf16, #tpu.memory_space<vmem>>, vector<8x128xbf16>
    tpu.vector_store %arg13[%c0_8, %c0_9], %16 {strides = array<i32>} : memref<8x1792xbf16, #tpu.memory_space<vmem>>, vector<8x128xbf16>,
    %18 = vector.extract_strided_slice %4 {offsets = [0, 512], sizes = [8, 128], strides = [1, 1]} : vector<8x1024xf32> to vector<8x128xf32>
    %19 = vector.extract_strided_slice %4 {offsets = [0, 640], sizes = [8, 128], strides = [1, 1]} : vector<8x1024xf32> to vector<8x128xf32>
    %20 = arith.maximumf %18, %19 : vector<8x128xf32>
    %21 = vector.extract_strided_slice %4 {offsets = [0, 768], sizes = [8, 128], strides = [1, 1]} : vector<8x1024xf32> to vector<8x128xf32>
    %22 = vector.extract_strided_slice %4 {offsets = [0, 896], sizes = [8, 128], strides = [1, 1]} : vector<8x1024xf32> to vector<8x128xf32>
    %23 = arith.maximumf %21, %22 : vector<8x128xf32>
    %24 = arith.maximumf %20, %23 : vector<8x128xf32>
    %25 = vector.broadcast %0 : vector<1x128xf32> to vector<8x128xf32>
    %26 = arith.addf %24, %25 : vector<8x128xf32>
    %cst_10 = arith.constant 0.000000e+00 : f32
    %27 = vector.broadcast %cst_10 : f32 to vector<8x128xf32>
    %28 = arith.maximumf %26, %27 : vector<8x128xf32>
    %29 = arith.truncf %28 : vector<8x128xf32> to vector<8x128xbf16>
    %c0_11 = arith.constant 0 : index
    %c128 = arith.constant 128 : index
    %30 = vector.load %arg13[%c0_11, %c128] : memref<8x1792xbf16, #tpu.memory_space<vmem>>, vector<8x128xbf16>
    tpu.vector_store %arg13[%c0_11, %c128], %29 {strides = array<i32>} : memref<8x1792xbf16, #tpu.memory_space<vmem>>, vector<8x128xbf16>,
    %c0_12 = arith.constant 0 : index
    %c128_13 = arith.constant 128 : index
    %31 = vector.load %arg1[%c0_12, %c128_13] : memref<8x1024xbf16, #tpu.memory_space<vmem>>, vector<8x256xbf16>
    %c0_14 = arith.constant 0 : index
    %c0_15 = arith.constant 0 : index
    %32 = vector.load %arg2[%c0_14, %c0_15] : memref<256x1024xbf16, #tpu.memory_space<vmem>>, vector<256x1024xbf16>
    %cst_16 = arith.constant dense<0.000000e+00> : vector<8x1024xf32>
    %33 = tpu.matmul %31, %32, %cst_16 {dimension_numbers = #tpu.dot_dimension_numbers<[1], [0], [0], [1], [0, 0, 1, 1], [], []>} : vector<8x256xbf16>, vector<256x1024xbf16>, vector<8x1024xf32> -> vector<8x1024xf32>
    %34 = vector.extract_strided_slice %33 {offsets = [0, 0], sizes = [8, 128], strides = [1, 1]} : vector<8x1024xf32> to vector<8x128xf32>
    %35 = vector.extract_strided_slice %33 {offsets = [0, 128], sizes = [8, 128], strides = [1, 1]} : vector<8x1024xf32> to vector<8x128xf32>
    %36 = arith.maximumf %34, %35 : vector<8x128xf32>
    %37 = vector.extract_strided_slice %33 {offsets = [0, 256], sizes = [8, 128], strides = [1, 1]} : vector<8x1024xf32> to vector<8x128xf32>
    %38 = vector.extract_strided_slice %33 {offsets = [0, 384], sizes = [8, 128], strides = [1, 1]} : vector<8x1024xf32> to vector<8x128xf32>
    %39 = arith.maximumf %37, %38 : vector<8x128xf32>
    %40 = arith.maximumf %36, %39 : vector<8x128xf32>
    %41 = vector.broadcast %0 : vector<1x128xf32> to vector<8x128xf32>
    %42 = arith.addf %40, %41 : vector<8x128xf32>
    %cst_17 = arith.constant 0.000000e+00 : f32
    %43 = vector.broadcast %cst_17 : f32 to vector<8x128xf32>
    %44 = arith.maximumf %42, %43 : vector<8x128xf32>
    %45 = arith.truncf %44 : vector<8x128xf32> to vector<8x128xbf16>
    %c0_18 = arith.constant 0 : index
    %c256 = arith.constant 256 : index
    %46 = vector.load %arg13[%c0_18, %c256] : memref<8x1792xbf16, #tpu.memory_space<vmem>>, vector<8x128xbf16>
    tpu.vector_store %arg13[%c0_18, %c256], %45 {strides = array<i32>} : memref<8x1792xbf16, #tpu.memory_space<vmem>>, vector<8x128xbf16>,
    %47 = vector.extract_strided_slice %33 {offsets = [0, 512], sizes = [8, 128], strides = [1, 1]} : vector<8x1024xf32> to vector<8x128xf32>
    %48 = vector.extract_strided_slice %33 {offsets = [0, 640], sizes = [8, 128], strides = [1, 1]} : vector<8x1024xf32> to vector<8x128xf32>
    %49 = arith.maximumf %47, %48 : vector<8x128xf32>
    %50 = vector.extract_strided_slice %33 {offsets = [0, 768], sizes = [8, 128], strides = [1, 1]} : vector<8x1024xf32> to vector<8x128xf32>
    %51 = vector.extract_strided_slice %33 {offsets = [0, 896], sizes = [8, 128], strides = [1, 1]} : vector<8x1024xf32> to vector<8x128xf32>
    %52 = arith.maximumf %50, %51 : vector<8x128xf32>
    %53 = arith.maximumf %49, %52 : vector<8x128xf32>
    %54 = vector.broadcast %0 : vector<1x128xf32> to vector<8x128xf32>
    %55 = arith.addf %53, %54 : vector<8x128xf32>
    %cst_19 = arith.constant 0.000000e+00 : f32
    %56 = vector.broadcast %cst_19 : f32 to vector<8x128xf32>
    %57 = arith.maximumf %55, %56 : vector<8x128xf32>
    %58 = arith.truncf %57 : vector<8x128xf32> to vector<8x128xbf16>
    %c0_20 = arith.constant 0 : index
    %c384 = arith.constant 384 : index
    %59 = vector.load %arg13[%c0_20, %c384] : memref<8x1792xbf16, #tpu.memory_space<vmem>>, vector<8x128xbf16>
    tpu.vector_store %arg13[%c0_20, %c384], %58 {strides = array<i32>} : memref<8x1792xbf16, #tpu.memory_space<vmem>>, vector<8x128xbf16>,
    %c0_21 = arith.constant 0 : index
    %c256_22 = arith.constant 256 : index
    %60 = vector.load %arg1[%c0_21, %c256_22] : memref<8x1024xbf16, #tpu.memory_space<vmem>>, vector<8x256xbf16>
    %c0_23 = arith.constant 0 : index
    %c0_24 = arith.constant 0 : index
    %61 = vector.load %arg2[%c0_23, %c0_24] : memref<256x1024xbf16, #tpu.memory_space<vmem>>, vector<256x1024xbf16>
    %cst_25 = arith.constant dense<0.000000e+00> : vector<8x1024xf32>
    %62 = tpu.matmul %60, %61, %cst_25 {dimension_numbers = #tpu.dot_dimension_numbers<[1], [0], [0], [1], [0, 0, 1, 1], [], []>} : vector<8x256xbf16>, vector<256x1024xbf16>, vector<8x1024xf32> -> vector<8x1024xf32>
    %63 = vector.extract_strided_slice %62 {offsets = [0, 0], sizes = [8, 128], strides = [1, 1]} : vector<8x1024xf32> to vector<8x128xf32>
    %64 = vector.extract_strided_slice %62 {offsets = [0, 128], sizes = [8, 128], strides = [1, 1]} : vector<8x1024xf32> to vector<8x128xf32>
    %65 = arith.maximumf %63, %64 : vector<8x128xf32>
    %66 = vector.extract_strided_slice %62 {offsets = [0, 256], sizes = [8, 128], strides = [1, 1]} : vector<8x1024xf32> to vector<8x128xf32>
    %67 = vector.extract_strided_slice %62 {offsets = [0, 384], sizes = [8, 128], strides = [1, 1]} : vector<8x1024xf32> to vector<8x128xf32>
    %68 = arith.maximumf %66, %67 : vector<8x128xf32>
    %69 = arith.maximumf %65, %68 : vector<8x128xf32>
    %70 = vector.broadcast %0 : vector<1x128xf32> to vector<8x128xf32>
    %71 = arith.addf %69, %70 : vector<8x128xf32>
    %cst_26 = arith.constant 0.000000e+00 : f32
    %72 = vector.broadcast %cst_26 : f32 to vector<8x128xf32>
    %73 = arith.maximumf %71, %72 : vector<8x128xf32>
    %74 = arith.truncf %73 : vector<8x128xf32> to vector<8x128xbf16>
    %c0_27 = arith.constant 0 : index
    %c512 = arith.constant 512 : index
    %75 = vector.load %arg13[%c0_27, %c512] : memref<8x1792xbf16, #tpu.memory_space<vmem>>, vector<8x128xbf16>
    tpu.vector_store %arg13[%c0_27, %c512], %74 {strides = array<i32>} : memref<8x1792xbf16, #tpu.memory_space<vmem>>, vector<8x128xbf16>,
    %76 = vector.extract_strided_slice %62 {offsets = [0, 512], sizes = [8, 128], strides = [1, 1]} : vector<8x1024xf32> to vector<8x128xf32>
    %77 = vector.extract_strided_slice %62 {offsets = [0, 640], sizes = [8, 128], strides = [1, 1]} : vector<8x1024xf32> to vector<8x128xf32>
    %78 = arith.maximumf %76, %77 : vector<8x128xf32>
    %79 = vector.extract_strided_slice %62 {offsets = [0, 768], sizes = [8, 128], strides = [1, 1]} : vector<8x1024xf32> to vector<8x128xf32>
    %80 = vector.extract_strided_slice %62 {offsets = [0, 896], sizes = [8, 128], strides = [1, 1]} : vector<8x1024xf32> to vector<8x128xf32>
    %81 = arith.maximumf %79, %80 : vector<8x128xf32>
    %82 = arith.maximumf %78, %81 : vector<8x128xf32>
    %83 = vector.broadcast %0 : vector<1x128xf32> to vector<8x128xf32>
    %84 = arith.addf %82, %83 : vector<8x128xf32>
    %cst_28 = arith.constant 0.000000e+00 : f32
    %85 = vector.broadcast %cst_28 : f32 to vector<8x128xf32>
    %86 = arith.maximumf %84, %85 : vector<8x128xf32>
    %87 = arith.truncf %86 : vector<8x128xf32> to vector<8x128xbf16>
    %c0_29 = arith.constant 0 : index
    %c640 = arith.constant 640 : index
    %88 = vector.load %arg13[%c0_29, %c640] : memref<8x1792xbf16, #tpu.memory_space<vmem>>, vector<8x128xbf16>
    tpu.vector_store %arg13[%c0_29, %c640], %87 {strides = array<i32>} : memref<8x1792xbf16, #tpu.memory_space<vmem>>, vector<8x128xbf16>,
    %c0_30 = arith.constant 0 : index
    %c384_31 = arith.constant 384 : index
    %89 = vector.load %arg1[%c0_30, %c384_31] : memref<8x1024xbf16, #tpu.memory_space<vmem>>, vector<8x256xbf16>
    %c0_32 = arith.constant 0 : index
    %c0_33 = arith.constant 0 : index
    %90 = vector.load %arg2[%c0_32, %c0_33] : memref<256x1024xbf16, #tpu.memory_space<vmem>>, vector<256x1024xbf16>
    %cst_34 = arith.constant dense<0.000000e+00> : vector<8x1024xf32>
    %91 = tpu.matmul %89, %90, %cst_34 {dimension_numbers = #tpu.dot_dimension_numbers<[1], [0], [0], [1], [0, 0, 1, 1], [], []>} : vector<8x256xbf16>, vector<256x1024xbf16>, vector<8x1024xf32> -> vector<8x1024xf32>
    %92 = vector.extract_strided_slice %91 {offsets = [0, 0], sizes = [8, 128], strides = [1, 1]} : vector<8x1024xf32> to vector<8x128xf32>
    %93 = vector.extract_strided_slice %91 {offsets = [0, 128], sizes = [8, 128], strides = [1, 1]} : vector<8x1024xf32> to vector<8x128xf32>
    %94 = arith.maximumf %92, %93 : vector<8x128xf32>
    %95 = vector.extract_strided_slice %91 {offsets = [0, 256], sizes = [8, 128], strides = [1, 1]} : vector<8x1024xf32> to vector<8x128xf32>
    %96 = vector.extract_strided_slice %91 {offsets = [0, 384], sizes = [8, 128], strides = [1, 1]} : vector<8x1024xf32> to vector<8x128xf32>
    %97 = arith.maximumf %95, %96 : vector<8x128xf32>
    %98 = arith.maximumf %94, %97 : vector<8x128xf32>
    %99 = vector.broadcast %0 : vector<1x128xf32> to vector<8x128xf32>
    %100 = arith.addf %98, %99 : vector<8x128xf32>
    %cst_35 = arith.constant 0.000000e+00 : f32
    %101 = vector.broadcast %cst_35 : f32 to vector<8x128xf32>
    %102 = arith.maximumf %100, %101 : vector<8x128xf32>
    %103 = arith.truncf %102 : vector<8x128xf32> to vector<8x128xbf16>
    %c0_36 = arith.constant 0 : index
    %c768 = arith.constant 768 : index
    %104 = vector.load %arg13[%c0_36, %c768] : memref<8x1792xbf16, #tpu.memory_space<vmem>>, vector<8x128xbf16>
    tpu.vector_store %arg13[%c0_36, %c768], %103 {strides = array<i32>} : memref<8x1792xbf16, #tpu.memory_space<vmem>>, vector<8x128xbf16>,
    %105 = vector.extract_strided_slice %91 {offsets = [0, 512], sizes = [8, 128], strides = [1, 1]} : vector<8x1024xf32> to vector<8x128xf32>
    %106 = vector.extract_strided_slice %91 {offsets = [0, 640], sizes = [8, 128], strides = [1, 1]} : vector<8x1024xf32> to vector<8x128xf32>
    %107 = arith.maximumf %105, %106 : vector<8x128xf32>
    %108 = vector.extract_strided_slice %91 {offsets = [0, 768], sizes = [8, 128], strides = [1, 1]} : vector<8x1024xf32> to vector<8x128xf32>
    %109 = vector.extract_strided_slice %91 {offsets = [0, 896], sizes = [8, 128], strides = [1, 1]} : vector<8x1024xf32> to vector<8x128xf32>
    %110 = arith.maximumf %108, %109 : vector<8x128xf32>
    %111 = arith.maximumf %107, %110 : vector<8x128xf32>
    %112 = vector.broadcast %0 : vector<1x128xf32> to vector<8x128xf32>
    %113 = arith.addf %111, %112 : vector<8x128xf32>
    %cst_37 = arith.constant 0.000000e+00 : f32
    %114 = vector.broadcast %cst_37 : f32 to vector<8x128xf32>
    %115 = arith.maximumf %113, %114 : vector<8x128xf32>
    %116 = arith.truncf %115 : vector<8x128xf32> to vector<8x128xbf16>
    %c0_38 = arith.constant 0 : index
    %c896 = arith.constant 896 : index
    %117 = vector.load %arg13[%c0_38, %c896] : memref<8x1792xbf16, #tpu.memory_space<vmem>>, vector<8x128xbf16>
    tpu.vector_store %arg13[%c0_38, %c896], %116 {strides = array<i32>} : memref<8x1792xbf16, #tpu.memory_space<vmem>>, vector<8x128xbf16>,
    %c0_39 = arith.constant 0 : index
    %c512_40 = arith.constant 512 : index
    %118 = vector.load %arg1[%c0_39, %c512_40] : memref<8x1024xbf16, #tpu.memory_space<vmem>>, vector<8x256xbf16>
    %c0_41 = arith.constant 0 : index
    %c0_42 = arith.constant 0 : index
    %119 = vector.load %arg2[%c0_41, %c0_42] : memref<256x1024xbf16, #tpu.memory_space<vmem>>, vector<256x1024xbf16>
    %cst_43 = arith.constant dense<0.000000e+00> : vector<8x1024xf32>
    %120 = tpu.matmul %118, %119, %cst_43 {dimension_numbers = #tpu.dot_dimension_numbers<[1], [0], [0], [1], [0, 0, 1, 1], [], []>} : vector<8x256xbf16>, vector<256x1024xbf16>, vector<8x1024xf32> -> vector<8x1024xf32>
    %121 = vector.extract_strided_slice %120 {offsets = [0, 0], sizes = [8, 128], strides = [1, 1]} : vector<8x1024xf32> to vector<8x128xf32>
    %122 = vector.extract_strided_slice %120 {offsets = [0, 128], sizes = [8, 128], strides = [1, 1]} : vector<8x1024xf32> to vector<8x128xf32>
    %123 = arith.maximumf %121, %122 : vector<8x128xf32>
    %124 = vector.extract_strided_slice %120 {offsets = [0, 256], sizes = [8, 128], strides = [1, 1]} : vector<8x1024xf32> to vector<8x128xf32>
    %125 = vector.extract_strided_slice %120 {offsets = [0, 384], sizes = [8, 128], strides = [1, 1]} : vector<8x1024xf32> to vector<8x128xf32>
    %126 = arith.maximumf %124, %125 : vector<8x128xf32>
    %127 = arith.maximumf %123, %126 : vector<8x128xf32>
    %128 = vector.broadcast %0 : vector<1x128xf32> to vector<8x128xf32>
    %129 = arith.addf %127, %128 : vector<8x128xf32>
    %cst_44 = arith.constant 0.000000e+00 : f32
    %130 = vector.broadcast %cst_44 : f32 to vector<8x128xf32>
    %131 = arith.maximumf %129, %130 : vector<8x128xf32>
    %132 = arith.truncf %131 : vector<8x128xf32> to vector<8x128xbf16>
    %c0_45 = arith.constant 0 : index
    %c1024 = arith.constant 1024 : index
    %133 = vector.load %arg13[%c0_45, %c1024] : memref<8x1792xbf16, #tpu.memory_space<vmem>>, vector<8x128xbf16>
    tpu.vector_store %arg13[%c0_45, %c1024], %132 {strides = array<i32>} : memref<8x1792xbf16, #tpu.memory_space<vmem>>, vector<8x128xbf16>,
    %134 = vector.extract_strided_slice %120 {offsets = [0, 512], sizes = [8, 128], strides = [1, 1]} : vector<8x1024xf32> to vector<8x128xf32>
    %135 = vector.extract_strided_slice %120 {offsets = [0, 640], sizes = [8, 128], strides = [1, 1]} : vector<8x1024xf32> to vector<8x128xf32>
    %136 = arith.maximumf %134, %135 : vector<8x128xf32>
    %137 = vector.extract_strided_slice %120 {offsets = [0, 768], sizes = [8, 128], strides = [1, 1]} : vector<8x1024xf32> to vector<8x128xf32>
    %138 = vector.extract_strided_slice %120 {offsets = [0, 896], sizes = [8, 128], strides = [1, 1]} : vector<8x1024xf32> to vector<8x128xf32>
    %139 = arith.maximumf %137, %138 : vector<8x128xf32>
    %140 = arith.maximumf %136, %139 : vector<8x128xf32>
    %141 = vector.broadcast %0 : vector<1x128xf32> to vector<8x128xf32>
    %142 = arith.addf %140, %141 : vector<8x128xf32>
    %cst_46 = arith.constant 0.000000e+00 : f32
    %143 = vector.broadcast %cst_46 : f32 to vector<8x128xf32>
    %144 = arith.maximumf %142, %143 : vector<8x128xf32>
    %145 = arith.truncf %144 : vector<8x128xf32> to vector<8x128xbf16>
    %c0_47 = arith.constant 0 : index
    %c1152 = arith.constant 1152 : index
    %146 = vector.load %arg13[%c0_47, %c1152] : memref<8x1792xbf16, #tpu.memory_space<vmem>>, vector<8x128xbf16>
    tpu.vector_store %arg13[%c0_47, %c1152], %145 {strides = array<i32>} : memref<8x1792xbf16, #tpu.memory_space<vmem>>, vector<8x128xbf16>,
    %c0_48 = arith.constant 0 : index
    %c640_49 = arith.constant 640 : index
    %147 = vector.load %arg1[%c0_48, %c640_49] : memref<8x1024xbf16, #tpu.memory_space<vmem>>, vector<8x256xbf16>
    %c0_50 = arith.constant 0 : index
    %c0_51 = arith.constant 0 : index
    %148 = vector.load %arg2[%c0_50, %c0_51] : memref<256x1024xbf16, #tpu.memory_space<vmem>>, vector<256x1024xbf16>
    %cst_52 = arith.constant dense<0.000000e+00> : vector<8x1024xf32>
    %149 = tpu.matmul %147, %148, %cst_52 {dimension_numbers = #tpu.dot_dimension_numbers<[1], [0], [0], [1], [0, 0, 1, 1], [], []>} : vector<8x256xbf16>, vector<256x1024xbf16>, vector<8x1024xf32> -> vector<8x1024xf32>
    %150 = vector.extract_strided_slice %149 {offsets = [0, 0], sizes = [8, 128], strides = [1, 1]} : vector<8x1024xf32> to vector<8x128xf32>
    %151 = vector.extract_strided_slice %149 {offsets = [0, 128], sizes = [8, 128], strides = [1, 1]} : vector<8x1024xf32> to vector<8x128xf32>
    %152 = arith.maximumf %150, %151 : vector<8x128xf32>
    %153 = vector.extract_strided_slice %149 {offsets = [0, 256], sizes = [8, 128], strides = [1, 1]} : vector<8x1024xf32> to vector<8x128xf32>
    %154 = vector.extract_strided_slice %149 {offsets = [0, 384], sizes = [8, 128], strides = [1, 1]} : vector<8x1024xf32> to vector<8x128xf32>
    %155 = arith.maximumf %153, %154 : vector<8x128xf32>
    %156 = arith.maximumf %152, %155 : vector<8x128xf32>
    %157 = vector.broadcast %0 : vector<1x128xf32> to vector<8x128xf32>
    %158 = arith.addf %156, %157 : vector<8x128xf32>
    %cst_53 = arith.constant 0.000000e+00 : f32
    %159 = vector.broadcast %cst_53 : f32 to vector<8x128xf32>
    %160 = arith.maximumf %158, %159 : vector<8x128xf32>
    %161 = arith.truncf %160 : vector<8x128xf32> to vector<8x128xbf16>
    %c0_54 = arith.constant 0 : index
    %c1280 = arith.constant 1280 : index
    %162 = vector.load %arg13[%c0_54, %c1280] : memref<8x1792xbf16, #tpu.memory_space<vmem>>, vector<8x128xbf16>
    tpu.vector_store %arg13[%c0_54, %c1280], %161 {strides = array<i32>} : memref<8x1792xbf16, #tpu.memory_space<vmem>>, vector<8x128xbf16>,
    %163 = vector.extract_strided_slice %149 {offsets = [0, 512], sizes = [8, 128], strides = [1, 1]} : vector<8x1024xf32> to vector<8x128xf32>
    %164 = vector.extract_strided_slice %149 {offsets = [0, 640], sizes = [8, 128], strides = [1, 1]} : vector<8x1024xf32> to vector<8x128xf32>
    %165 = arith.maximumf %163, %164 : vector<8x128xf32>
    %166 = vector.extract_strided_slice %149 {offsets = [0, 768], sizes = [8, 128], strides = [1, 1]} : vector<8x1024xf32> to vector<8x128xf32>
    %167 = vector.extract_strided_slice %149 {offsets = [0, 896], sizes = [8, 128], strides = [1, 1]} : vector<8x1024xf32> to vector<8x128xf32>
    %168 = arith.maximumf %166, %167 : vector<8x128xf32>
    %169 = arith.maximumf %165, %168 : vector<8x128xf32>
    %170 = vector.broadcast %0 : vector<1x128xf32> to vector<8x128xf32>
    %171 = arith.addf %169, %170 : vector<8x128xf32>
    %cst_55 = arith.constant 0.000000e+00 : f32
    %172 = vector.broadcast %cst_55 : f32 to vector<8x128xf32>
    %173 = arith.maximumf %171, %172 : vector<8x128xf32>
    %174 = arith.truncf %173 : vector<8x128xf32> to vector<8x128xbf16>
    %c0_56 = arith.constant 0 : index
    %c1408 = arith.constant 1408 : index
    %175 = vector.load %arg13[%c0_56, %c1408] : memref<8x1792xbf16, #tpu.memory_space<vmem>>, vector<8x128xbf16>
    tpu.vector_store %arg13[%c0_56, %c1408], %174 {strides = array<i32>} : memref<8x1792xbf16, #tpu.memory_space<vmem>>, vector<8x128xbf16>,
    %c0_57 = arith.constant 0 : index
    %c768_58 = arith.constant 768 : index
    %176 = vector.load %arg1[%c0_57, %c768_58] : memref<8x1024xbf16, #tpu.memory_space<vmem>>, vector<8x256xbf16>
    %c0_59 = arith.constant 0 : index
    %c0_60 = arith.constant 0 : index
    %177 = vector.load %arg2[%c0_59, %c0_60] : memref<256x1024xbf16, #tpu.memory_space<vmem>>, vector<256x1024xbf16>
    %cst_61 = arith.constant dense<0.000000e+00> : vector<8x1024xf32>
    %178 = tpu.matmul %176, %177, %cst_61 {dimension_numbers = #tpu.dot_dimension_numbers<[1], [0], [0], [1], [0, 0, 1, 1], [], []>} : vector<8x256xbf16>, vector<256x1024xbf16>, vector<8x1024xf32> -> vector<8x1024xf32>
    %179 = vector.extract_strided_slice %178 {offsets = [0, 0], sizes = [8, 128], strides = [1, 1]} : vector<8x1024xf32> to vector<8x128xf32>
    %180 = vector.extract_strided_slice %178 {offsets = [0, 128], sizes = [8, 128], strides = [1, 1]} : vector<8x1024xf32> to vector<8x128xf32>
    %181 = arith.maximumf %179, %180 : vector<8x128xf32>
    %182 = vector.extract_strided_slice %178 {offsets = [0, 256], sizes = [8, 128], strides = [1, 1]} : vector<8x1024xf32> to vector<8x128xf32>
    %183 = vector.extract_strided_slice %178 {offsets = [0, 384], sizes = [8, 128], strides = [1, 1]} : vector<8x1024xf32> to vector<8x128xf32>
    %184 = arith.maximumf %182, %183 : vector<8x128xf32>
    %185 = arith.maximumf %181, %184 : vector<8x128xf32>
    %186 = vector.broadcast %0 : vector<1x128xf32> to vector<8x128xf32>
    %187 = arith.addf %185, %186 : vector<8x128xf32>
    %cst_62 = arith.constant 0.000000e+00 : f32
    %188 = vector.broadcast %cst_62 : f32 to vector<8x128xf32>
    %189 = arith.maximumf %187, %188 : vector<8x128xf32>
    %190 = arith.truncf %189 : vector<8x128xf32> to vector<8x128xbf16>
    %c0_63 = arith.constant 0 : index
    %c1536 = arith.constant 1536 : index
    %191 = vector.load %arg13[%c0_63, %c1536] : memref<8x1792xbf16, #tpu.memory_space<vmem>>, vector<8x128xbf16>
    tpu.vector_store %arg13[%c0_63, %c1536], %190 {strides = array<i32>} : memref<8x1792xbf16, #tpu.memory_space<vmem>>, vector<8x128xbf16>,
    %192 = vector.extract_strided_slice %178 {offsets = [0, 512], sizes = [8, 128], strides = [1, 1]} : vector<8x1024xf32> to vector<8x128xf32>
    %193 = vector.extract_strided_slice %178 {offsets = [0, 640], sizes = [8, 128], strides = [1, 1]} : vector<8x1024xf32> to vector<8x128xf32>
    %194 = arith.maximumf %192, %193 : vector<8x128xf32>
    %195 = vector.extract_strided_slice %178 {offsets = [0, 768], sizes = [8, 128], strides = [1, 1]} : vector<8x1024xf32> to vector<8x128xf32>
    %196 = vector.extract_strided_slice %178 {offsets = [0, 896], sizes = [8, 128], strides = [1, 1]} : vector<8x1024xf32> to vector<8x128xf32>
    %197 = arith.maximumf %195, %196 : vector<8x128xf32>
    %198 = arith.maximumf %194, %197 : vector<8x128xf32>
    %199 = vector.broadcast %0 : vector<1x128xf32> to vector<8x128xf32>
    %200 = arith.addf %198, %199 : vector<8x128xf32>
    %cst_64 = arith.constant 0.000000e+00 : f32
    %201 = vector.broadcast %cst_64 : f32 to vector<8x128xf32>
    %202 = arith.maximumf %200, %201 : vector<8x128xf32>
    %203 = arith.truncf %202 : vector<8x128xf32> to vector<8x128xbf16>
    %c0_65 = arith.constant 0 : index
    %c1664 = arith.constant 1664 : index
    %204 = vector.load %arg13[%c0_65, %c1664] : memref<8x1792xbf16, #tpu.memory_space<vmem>>, vector<8x128xbf16>
    tpu.vector_store %arg13[%c0_65, %c1664], %203 {strides = array<i32>} : memref<8x1792xbf16, #tpu.memory_space<vmem>>, vector<8x128xbf16>,
    %c0_66 = arith.constant 0 : index
    %c0_67 = arith.constant 0 : index
    %205 = vector.load %arg13[%c0_66, %c0_67] : memref<8x1792xbf16, #tpu.memory_space<vmem>>, vector<8x768xbf16>
    %c0_68 = arith.constant 0 : index
    %c0_69 = arith.constant 0 : index
    %206 = vector.load %arg4[%c0_68, %c0_69] : memref<768x512xbf16, #tpu.memory_space<vmem>>, vector<768x512xbf16>
    %cst_70 = arith.constant dense<0.000000e+00> : vector<8x512xf32>
    %207 = tpu.matmul %205, %206, %cst_70 {dimension_numbers = #tpu.dot_dimension_numbers<[1], [0], [0], [1], [0, 0, 1, 1], [], []>} : vector<8x768xbf16>, vector<768x512xbf16>, vector<8x512xf32> -> vector<8x512xf32>
    %208 = vector.extract_strided_slice %207 {offsets = [0, 0], sizes = [8, 128], strides = [1, 1]} : vector<8x512xf32> to vector<8x128xf32>
    %209 = vector.extract_strided_slice %207 {offsets = [0, 128], sizes = [8, 128], strides = [1, 1]} : vector<8x512xf32> to vector<8x128xf32>
    %210 = arith.maximumf %208, %209 : vector<8x128xf32>
    %211 = vector.extract_strided_slice %207 {offsets = [0, 256], sizes = [8, 128], strides = [1, 1]} : vector<8x512xf32> to vector<8x128xf32>
    %212 = vector.extract_strided_slice %207 {offsets = [0, 384], sizes = [8, 128], strides = [1, 1]} : vector<8x512xf32> to vector<8x128xf32>
    %213 = arith.maximumf %211, %212 : vector<8x128xf32>
    %214 = arith.maximumf %210, %213 : vector<8x128xf32>
    %215 = vector.broadcast %1 : vector<1x128xf32> to vector<8x128xf32>
    %216 = arith.addf %214, %215 : vector<8x128xf32>
    %cst_71 = arith.constant 0.000000e+00 : f32
    %217 = vector.broadcast %cst_71 : f32 to vector<8x128xf32>
    %218 = arith.maximumf %216, %217 : vector<8x128xf32>
    %219 = arith.truncf %218 : vector<8x128xf32> to vector<8x128xbf16>
    %c0_72 = arith.constant 0 : index
    %c0_73 = arith.constant 0 : index
    %220 = vector.load %arg14[%c0_72, %c0_73] : memref<8x640xbf16, #tpu.memory_space<vmem>>, vector<8x128xbf16>
    tpu.vector_store %arg14[%c0_72, %c0_73], %219 {strides = array<i32>} : memref<8x640xbf16, #tpu.memory_space<vmem>>, vector<8x128xbf16>,
    %c0_74 = arith.constant 0 : index
    %c256_75 = arith.constant 256 : index
    %221 = vector.load %arg13[%c0_74, %c256_75] : memref<8x1792xbf16, #tpu.memory_space<vmem>>, vector<8x768xbf16>
    %c0_76 = arith.constant 0 : index
    %c0_77 = arith.constant 0 : index
    %222 = vector.load %arg4[%c0_76, %c0_77] : memref<768x512xbf16, #tpu.memory_space<vmem>>, vector<768x512xbf16>
    %cst_78 = arith.constant dense<0.000000e+00> : vector<8x512xf32>
    %223 = tpu.matmul %221, %222, %cst_78 {dimension_numbers = #tpu.dot_dimension_numbers<[1], [0], [0], [1], [0, 0, 1, 1], [], []>} : vector<8x768xbf16>, vector<768x512xbf16>, vector<8x512xf32> -> vector<8x512xf32>
    %224 = vector.extract_strided_slice %223 {offsets = [0, 0], sizes = [8, 128], strides = [1, 1]} : vector<8x512xf32> to vector<8x128xf32>
    %225 = vector.extract_strided_slice %223 {offsets = [0, 128], sizes = [8, 128], strides = [1, 1]} : vector<8x512xf32> to vector<8x128xf32>
    %226 = arith.maximumf %224, %225 : vector<8x128xf32>
    %227 = vector.extract_strided_slice %223 {offsets = [0, 256], sizes = [8, 128], strides = [1, 1]} : vector<8x512xf32> to vector<8x128xf32>
    %228 = vector.extract_strided_slice %223 {offsets = [0, 384], sizes = [8, 128], strides = [1, 1]} : vector<8x512xf32> to vector<8x128xf32>
    %229 = arith.maximumf %227, %228 : vector<8x128xf32>
    %230 = arith.maximumf %226, %229 : vector<8x128xf32>
    %231 = vector.broadcast %1 : vector<1x128xf32> to vector<8x128xf32>
    %232 = arith.addf %230, %231 : vector<8x128xf32>
    %cst_79 = arith.constant 0.000000e+00 : f32
    %233 = vector.broadcast %cst_79 : f32 to vector<8x128xf32>
    %234 = arith.maximumf %232, %233 : vector<8x128xf32>
    %235 = arith.truncf %234 : vector<8x128xf32> to vector<8x128xbf16>
    %c0_80 = arith.constant 0 : index
    %c128_81 = arith.constant 128 : index
    %236 = vector.load %arg14[%c0_80, %c128_81] : memref<8x640xbf16, #tpu.memory_space<vmem>>, vector<8x128xbf16>
    tpu.vector_store %arg14[%c0_80, %c128_81], %235 {strides = array<i32>} : memref<8x640xbf16, #tpu.memory_space<vmem>>, vector<8x128xbf16>,
    %c0_82 = arith.constant 0 : index
    %c512_83 = arith.constant 512 : index
    %237 = vector.load %arg13[%c0_82, %c512_83] : memref<8x1792xbf16, #tpu.memory_space<vmem>>, vector<8x768xbf16>
    %c0_84 = arith.constant 0 : index
    %c0_85 = arith.constant 0 : index
    %238 = vector.load %arg4[%c0_84, %c0_85] : memref<768x512xbf16, #tpu.memory_space<vmem>>, vector<768x512xbf16>
    %cst_86 = arith.constant dense<0.000000e+00> : vector<8x512xf32>
    %239 = tpu.matmul %237, %238, %cst_86 {dimension_numbers = #tpu.dot_dimension_numbers<[1], [0], [0], [1], [0, 0, 1, 1], [], []>} : vector<8x768xbf16>, vector<768x512xbf16>, vector<8x512xf32> -> vector<8x512xf32>
    %240 = vector.extract_strided_slice %239 {offsets = [0, 0], sizes = [8, 128], strides = [1, 1]} : vector<8x512xf32> to vector<8x128xf32>
    %241 = vector.extract_strided_slice %239 {offsets = [0, 128], sizes = [8, 128], strides = [1, 1]} : vector<8x512xf32> to vector<8x128xf32>
    %242 = arith.maximumf %240, %241 : vector<8x128xf32>
    %243 = vector.extract_strided_slice %239 {offsets = [0, 256], sizes = [8, 128], strides = [1, 1]} : vector<8x512xf32> to vector<8x128xf32>
    %244 = vector.extract_strided_slice %239 {offsets = [0, 384], sizes = [8, 128], strides = [1, 1]} : vector<8x512xf32> to vector<8x128xf32>
    %245 = arith.maximumf %243, %244 : vector<8x128xf32>
    %246 = arith.maximumf %242, %245 : vector<8x128xf32>
    %247 = vector.broadcast %1 : vector<1x128xf32> to vector<8x128xf32>
    %248 = arith.addf %246, %247 : vector<8x128xf32>
    %cst_87 = arith.constant 0.000000e+00 : f32
    %249 = vector.broadcast %cst_87 : f32 to vector<8x128xf32>
    %250 = arith.maximumf %248, %249 : vector<8x128xf32>
    %251 = arith.truncf %250 : vector<8x128xf32> to vector<8x128xbf16>
    %c0_88 = arith.constant 0 : index
    %c256_89 = arith.constant 256 : index
    %252 = vector.load %arg14[%c0_88, %c256_89] : memref<8x640xbf16, #tpu.memory_space<vmem>>, vector<8x128xbf16>
    tpu.vector_store %arg14[%c0_88, %c256_89], %251 {strides = array<i32>} : memref<8x640xbf16, #tpu.memory_space<vmem>>, vector<8x128xbf16>,
    %c0_90 = arith.constant 0 : index
    %c768_91 = arith.constant 768 : index
    %253 = vector.load %arg13[%c0_90, %c768_91] : memref<8x1792xbf16, #tpu.memory_space<vmem>>, vector<8x768xbf16>
    %c0_92 = arith.constant 0 : index
    %c0_93 = arith.constant 0 : index
    %254 = vector.load %arg4[%c0_92, %c0_93] : memref<768x512xbf16, #tpu.memory_space<vmem>>, vector<768x512xbf16>
    %cst_94 = arith.constant dense<0.000000e+00> : vector<8x512xf32>
    %255 = tpu.matmul %253, %254, %cst_94 {dimension_numbers = #tpu.dot_dimension_numbers<[1], [0], [0], [1], [0, 0, 1, 1], [], []>} : vector<8x768xbf16>, vector<768x512xbf16>, vector<8x512xf32> -> vector<8x512xf32>
    %256 = vector.extract_strided_slice %255 {offsets = [0, 0], sizes = [8, 128], strides = [1, 1]} : vector<8x512xf32> to vector<8x128xf32>
    %257 = vector.extract_strided_slice %255 {offsets = [0, 128], sizes = [8, 128], strides = [1, 1]} : vector<8x512xf32> to vector<8x128xf32>
    %258 = arith.maximumf %256, %257 : vector<8x128xf32>
    %259 = vector.extract_strided_slice %255 {offsets = [0, 256], sizes = [8, 128], strides = [1, 1]} : vector<8x512xf32> to vector<8x128xf32>
    %260 = vector.extract_strided_slice %255 {offsets = [0, 384], sizes = [8, 128], strides = [1, 1]} : vector<8x512xf32> to vector<8x128xf32>
    %261 = arith.maximumf %259, %260 : vector<8x128xf32>
    %262 = arith.maximumf %258, %261 : vector<8x128xf32>
    %263 = vector.broadcast %1 : vector<1x128xf32> to vector<8x128xf32>
    %264 = arith.addf %262, %263 : vector<8x128xf32>
    %cst_95 = arith.constant 0.000000e+00 : f32
    %265 = vector.broadcast %cst_95 : f32 to vector<8x128xf32>
    %266 = arith.maximumf %264, %265 : vector<8x128xf32>
    %267 = arith.truncf %266 : vector<8x128xf32> to vector<8x128xbf16>
    %c0_96 = arith.constant 0 : index
    %c384_97 = arith.constant 384 : index
    %268 = vector.load %arg14[%c0_96, %c384_97] : memref<8x640xbf16, #tpu.memory_space<vmem>>, vector<8x128xbf16>
    tpu.vector_store %arg14[%c0_96, %c384_97], %267 {strides = array<i32>} : memref<8x640xbf16, #tpu.memory_space<vmem>>, vector<8x128xbf16>,
    %c0_98 = arith.constant 0 : index
    %c1024_99 = arith.constant 1024 : index
    %269 = vector.load %arg13[%c0_98, %c1024_99] : memref<8x1792xbf16, #tpu.memory_space<vmem>>, vector<8x768xbf16>
    %c0_100 = arith.constant 0 : index
    %c0_101 = arith.constant 0 : index
    %270 = vector.load %arg4[%c0_100, %c0_101] : memref<768x512xbf16, #tpu.memory_space<vmem>>, vector<768x512xbf16>
    %cst_102 = arith.constant dense<0.000000e+00> : vector<8x512xf32>
    %271 = tpu.matmul %269, %270, %cst_102 {dimension_numbers = #tpu.dot_dimension_numbers<[1], [0], [0], [1], [0, 0, 1, 1], [], []>} : vector<8x768xbf16>, vector<768x512xbf16>, vector<8x512xf32> -> vector<8x512xf32>
    %272 = vector.extract_strided_slice %271 {offsets = [0, 0], sizes = [8, 128], strides = [1, 1]} : vector<8x512xf32> to vector<8x128xf32>
    %273 = vector.extract_strided_slice %271 {offsets = [0, 128], sizes = [8, 128], strides = [1, 1]} : vector<8x512xf32> to vector<8x128xf32>
    %274 = arith.maximumf %272, %273 : vector<8x128xf32>
    %275 = vector.extract_strided_slice %271 {offsets = [0, 256], sizes = [8, 128], strides = [1, 1]} : vector<8x512xf32> to vector<8x128xf32>
    %276 = vector.extract_strided_slice %271 {offsets = [0, 384], sizes = [8, 128], strides = [1, 1]} : vector<8x512xf32> to vector<8x128xf32>
    %277 = arith.maximumf %275, %276 : vector<8x128xf32>
    %278 = arith.maximumf %274, %277 : vector<8x128xf32>
    %279 = vector.broadcast %1 : vector<1x128xf32> to vector<8x128xf32>
    %280 = arith.addf %278, %279 : vector<8x128xf32>
    %cst_103 = arith.constant 0.000000e+00 : f32
    %281 = vector.broadcast %cst_103 : f32 to vector<8x128xf32>
    %282 = arith.maximumf %280, %281 : vector<8x128xf32>
    %283 = arith.truncf %282 : vector<8x128xf32> to vector<8x128xbf16>
    %c0_104 = arith.constant 0 : index
    %c512_105 = arith.constant 512 : index
    %284 = vector.load %arg14[%c0_104, %c512_105] : memref<8x640xbf16, #tpu.memory_space<vmem>>, vector<8x128xbf16>
    tpu.vector_store %arg14[%c0_104, %c512_105], %283 {strides = array<i32>} : memref<8x640xbf16, #tpu.memory_space<vmem>>, vector<8x128xbf16>,
    %c0_106 = arith.constant 0 : index
    %c0_107 = arith.constant 0 : index
    %285 = vector.load %arg14[%c0_106, %c0_107] : memref<8x640xbf16, #tpu.memory_space<vmem>>, vector<8x640xbf16>
    %c0_108 = arith.constant 0 : index
    %c0_109 = arith.constant 0 : index
    %286 = vector.load %arg6[%c0_108, %c0_109] : memref<640x120xbf16, #tpu.memory_space<vmem>>, vector<640x120xbf16>
    %cst_110 = arith.constant dense<0.000000e+00> : vector<8x120xf32>
    %287 = tpu.matmul %285, %286, %cst_110 {dimension_numbers = #tpu.dot_dimension_numbers<[1], [0], [0], [1], [0, 0, 1, 1], [], []>} : vector<8x640xbf16>, vector<640x120xbf16>, vector<8x120xf32> -> vector<8x120xf32>
    %c0_111 = arith.constant 0 : index
    %c0_112 = arith.constant 0 : index
    %288 = vector.load %arg7[%c0_111, %c0_112] : memref<1x120xf32, #tpu.memory_space<vmem>>, vector<1x120xf32>
    %289 = vector.broadcast %288 : vector<1x120xf32> to vector<8x120xf32>
    %290 = arith.addf %287, %289 : vector<8x120xf32>
    %cst_113 = arith.constant 0.000000e+00 : f32
    %291 = vector.broadcast %cst_113 : f32 to vector<8x120xf32>
    %292 = arith.maximumf %290, %291 : vector<8x120xf32>
    %293 = arith.truncf %292 : vector<8x120xf32> to vector<8x120xbf16>
    %c0_114 = arith.constant 0 : index
    %c0_115 = arith.constant 0 : index
    %294 = vector.load %arg8[%c0_114, %c0_115] : memref<120x84xbf16, #tpu.memory_space<vmem>>, vector<120x84xbf16>
    %cst_116 = arith.constant dense<0.000000e+00> : vector<8x84xf32>
    %295 = tpu.matmul %293, %294, %cst_116 {dimension_numbers = #tpu.dot_dimension_numbers<[1], [0], [0], [1], [0, 0, 1, 1], [], []>} : vector<8x120xbf16>, vector<120x84xbf16>, vector<8x84xf32> -> vector<8x84xf32>
    %c0_117 = arith.constant 0 : index
    %c0_118 = arith.constant 0 : index
    %296 = vector.load %arg9[%c0_117, %c0_118] : memref<1x84xf32, #tpu.memory_space<vmem>>, vector<1x84xf32>
    %297 = vector.broadcast %296 : vector<1x84xf32> to vector<8x84xf32>
    %298 = arith.addf %295, %297 : vector<8x84xf32>
    %cst_119 = arith.constant 0.000000e+00 : f32
    %299 = vector.broadcast %cst_119 : f32 to vector<8x84xf32>
    %300 = arith.maximumf %298, %299 : vector<8x84xf32>
    %301 = arith.truncf %300 : vector<8x84xf32> to vector<8x84xbf16>
    %c0_120 = arith.constant 0 : index
    %c0_121 = arith.constant 0 : index
    %302 = vector.load %arg10[%c0_120, %c0_121] : memref<84x128xbf16, #tpu.memory_space<vmem>>, vector<84x128xbf16>
    %cst_122 = arith.constant dense<0.000000e+00> : vector<8x128xf32>
    %303 = tpu.matmul %301, %302, %cst_122 {dimension_numbers = #tpu.dot_dimension_numbers<[1], [0], [0], [1], [0, 0, 1, 1], [], []>} : vector<8x84xbf16>, vector<84x128xbf16>, vector<8x128xf32> -> vector<8x128xf32>
    %c0_123 = arith.constant 0 : index
    %c0_124 = arith.constant 0 : index
    %304 = vector.load %arg11[%c0_123, %c0_124] : memref<1x128xf32, #tpu.memory_space<vmem>>, vector<1x128xf32>
    %305 = vector.broadcast %304 : vector<1x128xf32> to vector<8x128xf32>
    %306 = arith.addf %303, %305 : vector<8x128xf32>
    %c0_125 = arith.constant 0 : index
    %c0_126 = arith.constant 0 : index
    %307 = vector.load %arg12[%c0_125, %c0_126] : memref<8x128xf32, #tpu.memory_space<vmem>>, vector<8x128xf32>
    tpu.vector_store %arg12[%c0_125, %c0_126], %306 {strides = array<i32>} : memref<8x128xf32, #tpu.memory_space<vmem>>, vector<8x128xf32>,
    return
  }
  func.func @transform_0(%arg0: i32) -> (i32, i32) {
    %c0_i32 = arith.constant 0 : i32
    %c0_i32_0 = arith.constant 0 : i32
    return %arg0, %c0_i32 : i32, i32
  }
  func.func @transform_1(%arg0: i32) -> (i32, i32) {
    %c0_i32 = arith.constant 0 : i32
    %c0_i32_0 = arith.constant 0 : i32
    %c0_i32_1 = arith.constant 0 : i32
    return %c0_i32, %c0_i32_0 : i32, i32
  }
  func.func @transform_2(%arg0: i32) -> (i32, i32) {
    %c0_i32 = arith.constant 0 : i32
    %c0_i32_0 = arith.constant 0 : i32
    %c0_i32_1 = arith.constant 0 : i32
    return %c0_i32, %c0_i32_0 : i32, i32
  }
  func.func @transform_3(%arg0: i32) -> (i32, i32) {
    %c0_i32 = arith.constant 0 : i32
    %c0_i32_0 = arith.constant 0 : i32
    %c0_i32_1 = arith.constant 0 : i32
    return %c0_i32, %c0_i32_0 : i32, i32
  }
  func.func @transform_4(%arg0: i32) -> (i32, i32) {
    %c0_i32 = arith.constant 0 : i32
    %c0_i32_0 = arith.constant 0 : i32
    %c0_i32_1 = arith.constant 0 : i32
    return %c0_i32, %c0_i32_0 : i32, i32
  }
  func.func @transform_5(%arg0: i32) -> (i32, i32) {
    %c0_i32 = arith.constant 0 : i32
    %c0_i32_0 = arith.constant 0 : i32
    %c0_i32_1 = arith.constant 0 : i32
    return %c0_i32, %c0_i32_0 : i32, i32
  }
  func.func @transform_6(%arg0: i32) -> (i32, i32) {
    %c0_i32 = arith.constant 0 : i32
    %c0_i32_0 = arith.constant 0 : i32
    %c0_i32_1 = arith.constant 0 : i32
    return %c0_i32, %c0_i32_0 : i32, i32
  }
  func.func @transform_7(%arg0: i32) -> (i32, i32) {
    %c0_i32 = arith.constant 0 : i32
    %c0_i32_0 = arith.constant 0 : i32
    %c0_i32_1 = arith.constant 0 : i32
    return %c0_i32, %c0_i32_0 : i32, i32
  }
  func.func @transform_8(%arg0: i32) -> (i32, i32) {
    %c0_i32 = arith.constant 0 : i32
    %c0_i32_0 = arith.constant 0 : i32
    %c0_i32_1 = arith.constant 0 : i32
    return %c0_i32, %c0_i32_0 : i32, i32
  }
  func.func @transform_9(%arg0: i32) -> (i32, i32) {
    %c0_i32 = arith.constant 0 : i32
    %c0_i32_0 = arith.constant 0 : i32
    %c0_i32_1 = arith.constant 0 : i32
    return %c0_i32, %c0_i32_0 : i32, i32
  }
  func.func @transform_10(%arg0: i32) -> (i32, i32) {
    %c0_i32 = arith.constant 0 : i32
    %c0_i32_0 = arith.constant 0 : i32
    %c0_i32_1 = arith.constant 0 : i32
    return %c0_i32, %c0_i32_0 : i32, i32
  }
  func.func @transform_11(%arg0: i32) -> (i32, i32) {
    %c0_i32 = arith.constant 0 : i32
    %c0_i32_0 = arith.constant 0 : i32
    return %arg0, %c0_i32 : i32, i32
  }
}

</mosaic_0001>

<bundles_post_ra>
// kernel: net_forward.1
= control target key start
LH: loop header
LB: loop body
LE: loop exit
PB: predicated region body
PF: predicated region fallthrough
CT: control target
= control target key end

     0   :  { %16 = vsyncpa [#allocation5], 0  ;;  %s18320_s17 = smov [#allocation4]   ;;  %s21995_s0 = inlined_call_operand.vmem [shape: bf16[8,1024], index: 0, kind: input, shape index: {}]   ;;  %s21996_s1 = inlined_call_operand.vmem [shape: bf16[256,1024], index: 1, kind: input, shape index: {}]   ;;  %s21997_s2 = inlined_call_operand.vmem [shape: f32[1,128], index: 2, kind: input, shape index: {}]   ;;  %s21998_s3 = inlined_call_operand.hbm [shape: bf16[768,512], index: 3, kind: input, shape index: {}]   ;;  %s21999_s4 = inlined_call_operand.vmem [shape: f32[1,128], index: 4, kind: input, shape index: {}]   ;;  %s22000_s5 = inlined_call_operand.vmem [shape: bf16[640,120], index: 5, kind: input, shape index: {}]   ;;  %s22001_s6 = inlined_call_operand.vmem [shape: f32[1,120], index: 6, kind: input, shape index: {}]   ;;  %s22002_s7 = inlined_call_operand.vmem [shape: bf16[120,84], index: 7, kind: input, shape index: {}]   ;;  %s22003_s8 = inlined_call_operand.vmem [shape: f32[1,84], index: 8, kind: input, shape index: {}]   ;;  %s22004_s9 = inlined_call_operand.vmem [shape: bf16[84,128], index: 9, kind: input, shape index: {}]   ;;  %s22005_s10 = inlined_call_operand.vmem [shape: f32[1,128], index: 10, kind: input, shape index: {}]   ;;  %s22006_s11 = inlined_call_operand.vmem [shape: f32[8,128], index: 11, kind: output, shape index: {}]  }
   0x1   :  { %s28_s18 = sshll.u32 %s18320_s17, 4  ;;  %s18296_s21 = scalar_lea.hbm %s21998_s3, 24576  ;;  %s29_s18 = int_to_ptr.vmem [resolvable:$true] %s28_s18 }
   0x2   :  { %p18297_p0 = scmp.ne.s32.totalorder %s21998_s3, %s18296_s21  ;;  %p18300_p1 = scmp.lt.u32.totalorder %s18296_s21, %s21998_s3 }
   0x4   :  { %p18302_p2 = pnand %p18300_p1, %p18297_p0 }
   0x6   :  { %18305 = shalt.err (!%p18302_p2)
}
   0x7   :  { %s18306_s26 = scalar_lea.vmem %s29_s18, 24576  ;;  %p18311_p4 = scmp.lt.s32.totalorder %s29_s18, %s29_s18 }
   0x8   :  { %p18307_p3 = scmp.ne.s32.totalorder %s29_s18, %s18306_s26  ;;  %p18312_p5 = scmp.lt.s32.totalorder %s18306_s26, %s18306_s26 }
   0xa   :  { %p18313_p6 = por %p18312_p5, %p18311_p4 }
   0xc   :  { %p18314_p7 = pnand %p18313_p6, %p18307_p3 }
   0xe   :  { %18317 = shalt.err (!%p18314_p7)
}
   0xf   :  { %s18321_s27 = smov 256   ;;  %s18322_s28 = smov 16  }
  0x10   :  { %34 = dma.hbm_to_vmem [thread:$0]  %s21998_s3, 24576, %s29_s18, [#allocation5], %s18321_s27, %s18321_s27, %s18322_s28  }
  0x11   :  { %18318 = dma.done.wait [#allocation5], 24576  }
  0x12   :  { %18319 = vsyncadd [#allocation5], 4294942720  ;;  %v56_v0 = vld [vmem:[%s21996_s1] sm:$0xff]  ;;  %v57_v2 = vld [vmem:[%s21996_s1 + $0x8] sm:$0xff]  ;;  %vm18324_vm0 = vmmov 0   ;;  %vm14431_vm1 = vcmask 1043456  }
  0x13   :  { %v60_v1 = vld [vmem:[%s21996_s1 + $0x20] sm:$0xff]  ;;  %v61_v4 = vld [vmem:[%s21996_s1 + $0x28] sm:$0xff]  ;;  %vm14427_vm2 = vcmask 982016   ;;  %vm14532_vm3 = vcmask 1041408   ;;  %vm14528_vm4 = vcmask 687104  }
  0x14   :  { %v18406_v3 = vcombine.high %v56_v0, %v60_v1  ;;  %v18411_v5 = vcombine.low %v56_v0, %v60_v1  ;;  %v64_v6 = vld [vmem:[%s21996_s1 + $0x40] sm:$0xff]  ;;  %v18419_v8 = vcombine.high %v57_v2, %v61_v4  ;;  %v18421_v9 = vcombine.low %v57_v2, %v61_v4  ;;  %v65_v11 = vld [vmem:[%s21996_s1 + $0x48] sm:$0xff] }
  0x15   :  { %v68_v7 = vld [vmem:[%s21996_s1 + $0x60] sm:$0xff]  ;;  %v69_v12 = vld [vmem:[%s21996_s1 + $0x68] sm:$0xff] }
  0x16   :  { %v18423_v10 = vcombine.high %v64_v6, %v68_v7  ;;  %v72_v13 = vld [vmem:[%s21996_s1 + $0x80] sm:$0xff]  ;;  %831 = vmatprep.subr.bf16.mxu0 %v18406_v3  ;;  %v18435_v14 = vcombine.high %v65_v11, %v69_v12  ;;  %v73_v16 = vld [vmem:[%s21996_s1 + $0x88] sm:$0xff]  ;;  %872 = vmatprep.subr.bf16.mxu1 %v18419_v8  ;;  %v18448_v18 = vcombine.low %v64_v6, %v68_v7 }
  0x17   :  { %v76_v15 = vld [vmem:[%s21996_s1 + $0xa0] sm:$0xff]  ;;  %v77_v17 = vld [vmem:[%s21996_s1 + $0xa8] sm:$0xff]  ;;  %832 = vmatpush1.bf16.msra.mxu0 %v18411_v5  ;;  %873 = vmatpush1.bf16.msra.mxu1 %v18421_v9  ;;  %v18452_v19 = vcombine.low %v65_v11, %v69_v12 }
  0x18   :  { %833 = vmatprep.subr.bf16.mxu0 %v18423_v10  ;;  %v18454_v20 = vcombine.high %v72_v13, %v76_v15  ;;  %874 = vmatprep.subr.bf16.mxu1 %v18435_v14  ;;  %v18457_v21 = vcombine.high %v73_v16, %v77_v17  ;;  %v80_v22 = vld [vmem:[%s21996_s1 + $0xc0] sm:$0xff]  ;;  %v81_v24 = vld [vmem:[%s21996_s1 + $0xc8] sm:$0xff]  ;;  %v18472_v26 = vcombine.low %v72_v13, %v76_v15 }
  0x19   :  { %v84_v23 = vld [vmem:[%s21996_s1 + $0xe0] sm:$0xff]  ;;  %v85_v25 = vld [vmem:[%s21996_s1 + $0xe8] sm:$0xff]  ;;  %v18476_v27 = vcombine.low %v73_v16, %v77_v17 }
  0x1a   :  { %v18478_v28 = vcombine.high %v80_v22, %v84_v23  ;;  %v18481_v29 = vcombine.high %v81_v24, %v85_v25  ;;  %v88_v30 = vld [vmem:[%s21996_s1 + $0x100] sm:$0xff]  ;;  %v89_v32 = vld [vmem:[%s21996_s1 + $0x108] sm:$0xff]  ;;  %v18496_v34 = vcombine.low %v80_v22, %v84_v23  ;;  %v18500_v35 = vcombine.low %v81_v24, %v85_v25 }
  0x1b   :  { %834 = vmatpush1.bf16.msra.mxu0 %v18448_v18  ;;  %875 = vmatpush1.bf16.msra.mxu1 %v18452_v19  ;;  %v92_v31 = vld [vmem:[%s21996_s1 + $0x120] sm:$0xff]  ;;  %v93_v33 = vld [vmem:[%s21996_s1 + $0x128] sm:$0xff] }
  0x1c   :  { %835 = vmatprep.subr.bf16.mxu0 %v18454_v20  ;;  %876 = vmatprep.subr.bf16.mxu1 %v18457_v21  ;;  %v18502_v36 = vcombine.high %v88_v30, %v92_v31  ;;  %v18505_v37 = vcombine.high %v89_v32, %v93_v33  ;;  %v96_v38 = vld [vmem:[%s21996_s1 + $0x140] sm:$0xff]  ;;  %v97_v40 = vld [vmem:[%s21996_s1 + $0x148] sm:$0xff]  ;;  %v18520_v42 = vcombine.low %v88_v30, %v92_v31 }
  0x1d   :  { %v100_v39 = vld [vmem:[%s21996_s1 + $0x160] sm:$0xff]  ;;  %v101_v41 = vld [vmem:[%s21996_s1 + $0x168] sm:$0xff]  ;;  %v18524_v43 = vcombine.low %v89_v32, %v93_v33 }
  0x1e   :  { %v18526_v44 = vcombine.high %v96_v38, %v100_v39  ;;  %v18529_v45 = vcombine.high %v97_v40, %v101_v41  ;;  %v104_v46 = vld [vmem:[%s21996_s1 + $0x180] sm:$0xff]  ;;  %v105_v48 = vld [vmem:[%s21996_s1 + $0x188] sm:$0xff]  ;;  %v18544_v50 = vcombine.low %v96_v38, %v100_v39  ;;  %v18548_v51 = vcombine.low %v97_v40, %v101_v41 }
  0x1f   :  { %836 = vmatpush1.bf16.msra.mxu0 %v18472_v26  ;;  %877 = vmatpush1.bf16.msra.mxu1 %v18476_v27  ;;  %v108_v47 = vld [vmem:[%s21996_s1 + $0x1a0] sm:$0xff]  ;;  %v109_v49 = vld [vmem:[%s21996_s1 + $0x1a8] sm:$0xff] }
  0x20   :  { %837 = vmatprep.subr.bf16.mxu0 %v18478_v28  ;;  %878 = vmatprep.subr.bf16.mxu1 %v18481_v29  ;;  %v18550_v52 = vcombine.high %v104_v46, %v108_v47  ;;  %v18555_v53 = vld [vmem:[%s21995_s0] sm:$0xff]  ;;  %v18558_v54 = vcombine.high %v105_v48, %v109_v49  ;;  %v113_v58 = vld [vmem:[%s21996_s1 + $0x1c8] sm:$0xff]  ;;  %v18577_v60 = vcombine.low %v104_v46, %v108_v47 }
  0x21   :  { %v112_v55 = vld [vmem:[%s21996_s1 + $0x1c0] sm:$0xff]  ;;  %v18568_v57 = vcombine.high %v18555_v53, %v18555_v53  ;;  %v117_v59 = vld [vmem:[%s21996_s1 + $0x1e8] sm:$0xff]  ;;  %v18582_v61 = vcombine.low %v105_v48, %v109_v49 }
  0x22   :  { %v116_v56 = vld [vmem:[%s21996_s1 + $0x1e0] sm:$0xff]  ;;  %v18587_v63 = vcombine.high %v113_v58, %v117_v59  ;;  %v121_v2 = vld [vmem:[%s21996_s1 + $0x208] sm:$0xff]  ;;  %v18607_v7 = vcombine.low %v113_v58, %v117_v59 }
  0x23   :  { %838 = vmatpush1.bf16.msra.mxu0 %v18496_v34  ;;  %879 = vmatpush1.bf16.msra.mxu1 %v18500_v35  ;;  %v18584_v62 = vcombine.high %v112_v55, %v116_v56  ;;  %v120_v0 = vld [vmem:[%s21996_s1 + $0x200] sm:$0xff]  ;;  %v125_v4 = vld [vmem:[%s21996_s1 + $0x228] sm:$0xff]  ;;  %v18603_v6 = vcombine.low %v112_v55, %v116_v56 }
  0x24   :  { %839 = vmatprep.subr.bf16.mxu0 %v18502_v36  ;;  %880 = vmatprep.subr.bf16.mxu1 %v18505_v37  ;;  %v124_v1 = vld [vmem:[%s21996_s1 + $0x220] sm:$0xff]  ;;  %v18612_v12 = vcombine.high %v121_v2, %v125_v4  ;;  %v129_v16 = vld [vmem:[%s21996_s1 + $0x248] sm:$0xff]  ;;  %v18631_v23 = vcombine.low %v121_v2, %v125_v4 }
  0x25   :  { %863 = vmatprep.mubr.bf16.mxu0 %v18568_v57  ;;  %904 = vmatprep.mubr.bf16.mxu1 %v18568_v57  ;;  %v18609_v11 = vcombine.high %v120_v0, %v124_v1  ;;  %v128_v13 = vld [vmem:[%s21996_s1 + $0x240] sm:$0xff]  ;;  %v133_v17 = vld [vmem:[%s21996_s1 + $0x268] sm:$0xff]  ;;  %v18627_v22 = vcombine.low %v120_v0, %v124_v1 }
  0x26   :  { %v132_v15 = vld [vmem:[%s21996_s1 + $0x260] sm:$0xff]  ;;  %v18636_v25 = vcombine.high %v129_v16, %v133_v17  ;;  %v137_v32 = vld [vmem:[%s21996_s1 + $0x288] sm:$0xff]  ;;  %v18655_v39 = vcombine.low %v129_v16, %v133_v17 }
  0x27   :  { %840 = vmatpush1.bf16.msra.mxu0 %v18520_v42  ;;  %881 = vmatpush1.bf16.msra.mxu1 %v18524_v43  ;;  %v18633_v24 = vcombine.high %v128_v13, %v132_v15  ;;  %v136_v30 = vld [vmem:[%s21996_s1 + $0x280] sm:$0xff]  ;;  %v141_v33 = vld [vmem:[%s21996_s1 + $0x2a8] sm:$0xff]  ;;  %v18651_v38 = vcombine.low %v128_v13, %v132_v15 }
  0x28   :  { %841 = vmatprep.subr.bf16.mxu0 %v18526_v44  ;;  %882 = vmatprep.subr.bf16.mxu1 %v18529_v45  ;;  %v140_v31 = vld [vmem:[%s21996_s1 + $0x2a0] sm:$0xff]  ;;  %v18660_v41 = vcombine.high %v137_v32, %v141_v33  ;;  %v145_v48 = vld [vmem:[%s21996_s1 + $0x2c8] sm:$0xff]  ;;  %v18679_v56 = vcombine.low %v137_v32, %v141_v33 }
  0x29   :  { %v18657_v40 = vcombine.high %v136_v30, %v140_v31  ;;  %v144_v46 = vld [vmem:[%s21996_s1 + $0x2c0] sm:$0xff]  ;;  %v149_v49 = vld [vmem:[%s21996_s1 + $0x2e8] sm:$0xff]  ;;  %v18675_v55 = vcombine.low %v136_v30, %v140_v31 }
  0x2a   :  { %v148_v47 = vld [vmem:[%s21996_s1 + $0x2e0] sm:$0xff]  ;;  %v18687_v0 = vcombine.high %v145_v48, %v149_v49  ;;  %v153_v2 = vld [vmem:[%s21996_s1 + $0x308] sm:$0xff]  ;;  %v18709_v17 = vcombine.low %v145_v48, %v149_v49 }
  0x2b   :  { %842 = vmatpush1.bf16.msra.mxu0 %v18544_v50  ;;  %883 = vmatpush1.bf16.msra.mxu1 %v18548_v51  ;;  %v18681_v58 = vcombine.high %v144_v46, %v148_v47  ;;  %v152_v59 = vld [vmem:[%s21996_s1 + $0x300] sm:$0xff]  ;;  %v157_v4 = vld [vmem:[%s21996_s1 + $0x328] sm:$0xff]  ;;  %v18699_v13 = vcombine.low %v144_v46, %v148_v47 }
  0x2c   :  { %843 = vmatprep.subr.bf16.mxu0 %v18550_v52  ;;  %884 = vmatprep.subr.bf16.mxu1 %v18558_v54  ;;  %22224 = vst [vmem:[#allocation7_spill] sm:$0xff] %v18687_v0  ;;  %v156_v1 = vld [vmem:[%s21996_s1 + $0x320] sm:$0xff]  ;;  %22226 = vst [vmem:[#allocation9_spill] sm:$0xff] %v18709_v17  ;;  %v161_v31 = vld [vmem:[%s21996_s1 + $0x348] sm:$0xff]  ;;  %v18720_v33 = vcombine.high %v153_v2, %v157_v4  ;;  %v18733_v49 = vcombine.low %v153_v2, %v157_v4 }
  0x2d   :  { %22225 = vst [vmem:[#allocation8_spill] sm:$0xff] %v18699_v13  ;;  %v160_v15 = vld [vmem:[%s21996_s1 + $0x340] sm:$0xff]  ;;  %v18711_v30 = vcombine.high %v152_v59, %v156_v1  ;;  %v165_v32 = vld [vmem:[%s21996_s1 + $0x368] sm:$0xff]  ;;  %v18723_v46 = vcombine.low %v152_v59, %v156_v1 }
  0x2e   :  { %v164_v16 = vld [vmem:[%s21996_s1 + $0x360] sm:$0xff]  ;;  %22228 = vst [vmem:[#allocation11_spill] sm:$0xff] %v18720_v33  ;;  %22230 = vst [vmem:[#allocation13_spill] sm:$0xff] %v18733_v49  ;;  %v169_v59 = vld [vmem:[%s21996_s1 + $0x388] sm:$0xff] }
  0x2f   :  { %844 = vmatpush1.bf16.msra.mxu0 %v18577_v60  ;;  %885 = vmatpush1.bf16.msra.mxu1 %v18582_v61  ;;  %22227 = vst [vmem:[#allocation10_spill] sm:$0xff] %v18711_v30  ;;  %22229 = vst [vmem:[#allocation12_spill] sm:$0xff] %v18723_v46  ;;  %v168_v47 = vld [vmem:[%s21996_s1 + $0x380] sm:$0xff]  ;;  %v173_v1 = vld [vmem:[%s21996_s1 + $0x3a8] sm:$0xff] }
  0x30   :  { %845 = vmatprep.subr.bf16.mxu0 %v18584_v62  ;;  %886 = vmatprep.subr.bf16.mxu1 %v18587_v63  ;;  %v172_v48 = vld [vmem:[%s21996_s1 + $0x3a0] sm:$0xff] }
  0x31   :  { %v176_v2 = vld [vmem:[%s21996_s1 + $0x3c0] sm:$0xff] }
  0x32   :  { %v180_v4 = vld [vmem:[%s21996_s1 + $0x3e0] sm:$0xff] }
  0x33   :  { %846 = vmatpush1.bf16.msra.mxu0 %v18603_v6  ;;  %887 = vmatpush1.bf16.msra.mxu1 %v18607_v7 }
  0x34   :  { %847 = vmatprep.subr.bf16.mxu0 %v18609_v11  ;;  %888 = vmatprep.subr.bf16.mxu1 %v18612_v12 }
  0x37   :  { %848 = vmatpush1.bf16.msra.mxu0 %v18627_v22  ;;  %889 = vmatpush1.bf16.msra.mxu1 %v18631_v23 }
  0x38   :  { %849 = vmatprep.subr.bf16.mxu0 %v18633_v24  ;;  %890 = vmatprep.subr.bf16.mxu1 %v18636_v25 }
  0x3b   :  { %850 = vmatpush1.bf16.msra.mxu0 %v18651_v38  ;;  %891 = vmatpush1.bf16.msra.mxu1 %v18655_v39 }
  0x3c   :  { %851 = vmatprep.subr.bf16.mxu0 %v18657_v40  ;;  %892 = vmatprep.subr.bf16.mxu1 %v18660_v41 }
  0x3f   :  { %852 = vmatpush1.bf16.msra.mxu0 %v18675_v55  ;;  %893 = vmatpush1.bf16.msra.mxu1 %v18679_v56 }
  0x40   :  { %853 = vmatprep.subr.bf16.mxu0 %v18681_v58  ;;  %894 = vmatprep.subr.bf16.mxu1 %v18687_v0  ;;  %v18735_v0 = vcombine.high %v160_v15, %v164_v16 }
  0x42   :  { %22231 = vst [vmem:[#allocation14_spill] sm:$0xff] %v18735_v0 }
  0x43   :  { %854 = vmatpush1.bf16.msra.mxu0 %v18699_v13  ;;  %895 = vmatpush1.bf16.msra.mxu1 %v18709_v17  ;;  %v18744_v13 = vcombine.high %v161_v31, %v165_v32  ;;  %v18747_v17 = vcombine.low %v160_v15, %v164_v16  ;;  %v177_v15 = vld [vmem:[%s21996_s1 + $0x3c8] sm:$0xff] }
  0x44   :  { %855 = vmatprep.subr.bf16.mxu0 %v18711_v30  ;;  %896 = vmatprep.subr.bf16.mxu1 %v18720_v33  ;;  %v18757_v30 = vcombine.low %v161_v31, %v165_v32  ;;  %v18759_v33 = vcombine.high %v168_v47, %v172_v48  ;;  %v181_v16 = vld [vmem:[%s21996_s1 + $0x3e8] sm:$0xff]  ;;  %v58_v31 = vld [vmem:[%s21996_s1 + $0x10] sm:$0xff] }
  0x45   :  { %22232 = vst [vmem:[#allocation15_spill] sm:$0xff] %v18744_v13  ;;  %22233 = vst [vmem:[#allocation16_spill] sm:$0xff] %v18747_v17  ;;  %v62_v32 = vld [vmem:[%s21996_s1 + $0x30] sm:$0xff] }
  0x46   :  { %22234 = vst [vmem:[#allocation17_spill] sm:$0xff] %v18757_v30  ;;  %22235 = vst [vmem:[#allocation18_spill] sm:$0xff] %v18759_v33 }
  0x47   :  { %856 = vmatpush1.bf16.msra.mxu0 %v18723_v46  ;;  %897 = vmatpush1.bf16.msra.mxu1 %v18733_v49  ;;  %v18768_v46 = vcombine.high %v169_v59, %v173_v1  ;;  %v18771_v49 = vcombine.low %v168_v47, %v172_v48  ;;  %v59_v47 = vld [vmem:[%s21996_s1 + $0x18] sm:$0xff] }
  0x48   :  { %857 = vmatprep.subr.bf16.mxu0 %v18735_v0  ;;  %898 = vmatprep.subr.bf16.mxu1 %v18744_v13  ;;  %v18781_v0 = vcombine.low %v169_v59, %v173_v1  ;;  %v18783_v13 = vcombine.high %v176_v2, %v180_v4  ;;  %v63_v48 = vld [vmem:[%s21996_s1 + $0x38] sm:$0xff]  ;;  %v66_v59 = vld [vmem:[%s21996_s1 + $0x50] sm:$0xff] }
  0x49   :  { %22236 = vst [vmem:[#allocation19_spill] sm:$0xff] %v18768_v46  ;;  %22237 = vst [vmem:[#allocation20_spill] sm:$0xff] %v18771_v49  ;;  %v70_v1 = vld [vmem:[%s21996_s1 + $0x70] sm:$0xff] }
  0x4a   :  { %22238 = vst [vmem:[#allocation21_spill] sm:$0xff] %v18781_v0  ;;  %22239 = vst [vmem:[#allocation22_spill] sm:$0xff] %v18783_v13 }
  0x4b   :  { %858 = vmatpush1.bf16.msra.mxu0 %v18747_v17  ;;  %899 = vmatpush1.bf16.msra.mxu1 %v18757_v30  ;;  %v18792_v17 = vcombine.high %v177_v15, %v181_v16  ;;  %v18795_v30 = vcombine.low %v176_v2, %v180_v4  ;;  %v67_v2 = vld [vmem:[%s21996_s1 + $0x58] sm:$0xff] }
  0x4c   :  { %859 = vmatprep.subr.bf16.mxu0 %v18759_v33  ;;  %900 = vmatprep.subr.bf16.mxu1 %v18768_v46  ;;  %v18805_v33 = vcombine.low %v177_v15, %v181_v16  ;;  %v18807_v46 = vcombine.high %v58_v31, %v62_v32  ;;  %v71_v4 = vld [vmem:[%s21996_s1 + $0x78] sm:$0xff]  ;;  %v18823_v15 = vcombine.low %v58_v31, %v62_v32  ;;  %v74_v16 = vld [vmem:[%s21996_s1 + $0x90] sm:$0xff] }
  0x4d   :  { %22240 = vst [vmem:[#allocation23_spill] sm:$0xff] %v18792_v17  ;;  %22241 = vst [vmem:[#allocation24_spill] sm:$0xff] %v18795_v30  ;;  %v75_v31 = vld [vmem:[%s21996_s1 + $0x98] sm:$0xff] }
  0x4e   :  { %22242 = vst [vmem:[#allocation25_spill] sm:$0xff] %v18805_v33  ;;  %22243 = vst [vmem:[#allocation26_spill] sm:$0xff] %v18807_v46  ;;  %v79_v32 = vld [vmem:[%s21996_s1 + $0xb8] sm:$0xff] }
  0x4f   :  { %860 = vmatpush1.bf16.msra.mxu0 %v18771_v49  ;;  %901 = vmatpush1.bf16.msra.mxu1 %v18781_v0  ;;  %v18816_v49 = vcombine.high %v59_v47, %v63_v48  ;;  %v18820_v0 = vcombine.low %v18555_v53, %v18555_v53  ;;  %22245 = vst [vmem:[#allocation28_spill] sm:$0xff] %v18823_v15 }
  0x50   :  { %861 = vmatprep.subr.bf16.mxu0 %v18783_v13  ;;  %902 = vmatprep.subr.bf16.mxu1 %v18792_v17  ;;  %v78_v13 = vld [vmem:[%s21996_s1 + $0xb0] sm:$0xff]  ;;  %v18833_v17 = vcombine.low %v59_v47, %v63_v48  ;;  %v18835_v53 = vcombine.high %v66_v59, %v70_v1  ;;  %v18849_v47 = vcombine.low %v66_v59, %v70_v1  ;;  %v83_v59 = vld [vmem:[%s21996_s1 + $0xd8] sm:$0xff] }
  0x51   :  { %22244 = vst [vmem:[#allocation27_spill] sm:$0xff] %v18816_v49  ;;  %v82_v48 = vld [vmem:[%s21996_s1 + $0xd0] sm:$0xff]  ;;  %v87_v1 = vld [vmem:[%s21996_s1 + $0xf8] sm:$0xff] }
  0x52   :  { %22246 = vst [vmem:[#allocation29_spill] sm:$0xff] %v18833_v17  ;;  %22247 = vst [vmem:[#allocation30_spill] sm:$0xff] %v18835_v53 }
  0x53   :  { %862 = vmatpush1.bf16.msra.mxu0 %v18795_v30  ;;  %903 = vmatpush1.bf16.msra.mxu1 %v18805_v33  ;;  %v18844_v30 = vcombine.high %v67_v2, %v71_v4  ;;  %v18861_v33 = vcombine.high %v74_v16, %v78_v13 }
  0x54   :  { %913 = vmatprep.subr.bf16.mxu0 %v18807_v46  ;;  %954 = vmatprep.subr.bf16.mxu1 %v18816_v49  ;;  %v86_v46 = vld [vmem:[%s21996_s1 + $0xf0] sm:$0xff]  ;;  %v18859_v49 = vcombine.low %v67_v2, %v71_v4  ;;  %v18875_v2 = vcombine.low %v74_v16, %v78_v13  ;;  %v95_v13 = vld [vmem:[%s21996_s1 + $0x138] sm:$0xff]  ;;  %v18896_v16 = vcombine.high %v83_v59, %v87_v1 }
  0x55   :  { %22248 = vst [vmem:[#allocation31_spill] sm:$0xff] %v18844_v30  ;;  %22250 = vst [vmem:[#allocation33_spill] sm:$0xff] %v18861_v33  ;;  %v90_v4 = vld [vmem:[%s21996_s1 + $0x110] sm:$0xff] }
  0x56   :  { %864 = vmatmul.mubr.bf16.vlgmr.msra.gmra.mrb[0].mxu0 %v18820_v0  ;;  %905 = vmatmul.mubr.bf16.vlgmr.msra.gmra.mrb[0].mxu1 %v18820_v0  ;;  %22249 = vst [vmem:[#allocation32_spill] sm:$0xff] %v18859_v49  ;;  %22252 = vst [vmem:[#allocation35_spill] sm:$0xff] %v18875_v2 }
  0x57   :  { %914 = vmatpush1.bf16.msra.mxu0 %v18823_v15  ;;  %955 = vmatpush1.bf16.msra.mxu1 %v18833_v17  ;;  %v18870_v15 = vcombine.high %v75_v31, %v79_v32  ;;  %v18887_v17 = vcombine.high %v82_v48, %v86_v46  ;;  %22255 = vst [vmem:[#allocation38_spill] sm:$0xff] %v18896_v16 }
  0x58   :  { %915 = vmatprep.subr.bf16.mxu0 %v18835_v53  ;;  %956 = vmatprep.subr.bf16.mxu1 %v18844_v30  ;;  %v94_v53 = vld [vmem:[%s21996_s1 + $0x130] sm:$0xff]  ;;  %v18885_v30 = vcombine.low %v75_v31, %v79_v32 }
  0x59   :  { %22251 = vst [vmem:[#allocation34_spill] sm:$0xff] %v18870_v15  ;;  %945 = vmatprep.mubr.bf16.mxu0 %v18568_v57  ;;  %986 = vmatprep.mubr.bf16.mxu1 %v18568_v57  ;;  %22254 = vst [vmem:[#allocation37_spill] sm:$0xff] %v18887_v17  ;;  %v91_v57 = vld [vmem:[%s21996_s1 + $0x118] sm:$0xff]  ;;  %v98_v31 = vld [vmem:[%s21996_s1 + $0x150] sm:$0xff] }
  0x5a   :  { %22253 = vst [vmem:[#allocation36_spill] sm:$0xff] %v18885_v30  ;;  %v102_v32 = vld [vmem:[%s21996_s1 + $0x170] sm:$0xff] }
  0x5b   :  { %916 = vmatpush1.bf16.msra.mxu0 %v18849_v47  ;;  %957 = vmatpush1.bf16.msra.mxu1 %v18859_v49  ;;  %v18899_v49 = vcombine.low %v82_v48, %v86_v46  ;;  %v99_v46 = vld [vmem:[%s21996_s1 + $0x158] sm:$0xff] }
  0x5c   :  { %917 = vmatprep.subr.bf16.mxu0 %v18861_v33  ;;  %958 = vmatprep.subr.bf16.mxu1 %v18870_v15  ;;  %v18909_v33 = vcombine.low %v83_v59, %v87_v1  ;;  %v18911_v15 = vcombine.high %v90_v4, %v94_v53  ;;  %v103_v48 = vld [vmem:[%s21996_s1 + $0x178] sm:$0xff]  ;;  %v106_v59 = vld [vmem:[%s21996_s1 + $0x190] sm:$0xff] }
  0x5d   :  { %22256 = vst [vmem:[#allocation39_spill] sm:$0xff] %v18899_v49  ;;  %v110_v1 = vld [vmem:[%s21996_s1 + $0x1b0] sm:$0xff] }
  0x5e   :  { %22257 = vst [vmem:[#allocation40_spill] sm:$0xff] %v18909_v33  ;;  %22258 = vst [vmem:[#allocation41_spill] sm:$0xff] %v18911_v15 }
  0x5f   :  { %918 = vmatpush1.bf16.msra.mxu0 %v18875_v2  ;;  %959 = vmatpush1.bf16.msra.mxu1 %v18885_v30  ;;  %v18920_v2 = vcombine.high %v91_v57, %v95_v13  ;;  %v18923_v30 = vcombine.low %v90_v4, %v94_v53  ;;  %v107_v53 = vld [vmem:[%s21996_s1 + $0x198] sm:$0xff] }
  0x60   :  { %919 = vmatprep.subr.bf16.mxu0 %v18887_v17  ;;  %960 = vmatprep.subr.bf16.mxu1 %v18896_v16  ;;  %v18933_v17 = vcombine.low %v91_v57, %v95_v13  ;;  %v18935_v16 = vcombine.high %v98_v31, %v102_v32  ;;  %v111_v4 = vld [vmem:[%s21996_s1 + $0x1b8] sm:$0xff]  ;;  %v114_v57 = vld [vmem:[%s21996_s1 + $0x1d0] sm:$0xff] }
  0x61   :  { %22259 = vst [vmem:[#allocation42_spill] sm:$0xff] %v18920_v2  ;;  %22260 = vst [vmem:[#allocation43_spill] sm:$0xff] %v18923_v30  ;;  %v118_v13 = vld [vmem:[%s21996_s1 + $0x1f0] sm:$0xff] }
  0x62   :  { %22261 = vst [vmem:[#allocation44_spill] sm:$0xff] %v18933_v17  ;;  %22262 = vst [vmem:[#allocation45_spill] sm:$0xff] %v18935_v16 }
  0x63   :  { %920 = vmatpush1.bf16.msra.mxu0 %v18899_v49  ;;  %961 = vmatpush1.bf16.msra.mxu1 %v18909_v33  ;;  %v18944_v49 = vcombine.high %v99_v46, %v103_v48  ;;  %v18947_v33 = vcombine.low %v98_v31, %v102_v32  ;;  %v115_v31 = vld [vmem:[%s21996_s1 + $0x1d8] sm:$0xff] }
  0x64   :  { %921 = vmatprep.subr.bf16.mxu0 %v18911_v15  ;;  %962 = vmatprep.subr.bf16.mxu1 %v18920_v2  ;;  %v18957_v15 = vcombine.low %v99_v46, %v103_v48  ;;  %v18959_v2 = vcombine.high %v106_v59, %v110_v1  ;;  %v119_v32 = vld [vmem:[%s21996_s1 + $0x1f8] sm:$0xff]  ;;  %v122_v46 = vld [vmem:[%s21996_s1 + $0x210] sm:$0xff] }
  0x65   :  { %22263 = vst [vmem:[#allocation46_spill] sm:$0xff] %v18944_v49  ;;  %22264 = vst [vmem:[#allocation47_spill] sm:$0xff] %v18947_v33  ;;  %v126_v48 = vld [vmem:[%s21996_s1 + $0x230] sm:$0xff] }
  0x66   :  { %22265 = vst [vmem:[#allocation48_spill] sm:$0xff] %v18957_v15  ;;  %22266 = vst [vmem:[#allocation49_spill] sm:$0xff] %v18959_v2 }
  0x67   :  { %922 = vmatpush1.bf16.msra.mxu0 %v18923_v30  ;;  %963 = vmatpush1.bf16.msra.mxu1 %v18933_v17  ;;  %v18968_v30 = vcombine.high %v107_v53, %v111_v4  ;;  %v18971_v17 = vcombine.low %v106_v59, %v110_v1  ;;  %v123_v59 = vld [vmem:[%s21996_s1 + $0x218] sm:$0xff] }
  0x68   :  { %923 = vmatprep.subr.bf16.mxu0 %v18935_v16  ;;  %964 = vmatprep.subr.bf16.mxu1 %v18944_v49  ;;  %v18981_v16 = vcombine.low %v107_v53, %v111_v4  ;;  %v18983_v49 = vcombine.high %v114_v57, %v118_v13  ;;  %v127_v1 = vld [vmem:[%s21996_s1 + $0x238] sm:$0xff]  ;;  %v130_v53 = vld [vmem:[%s21996_s1 + $0x250] sm:$0xff] }
  0x69   :  { %22267 = vst [vmem:[#allocation50_spill] sm:$0xff] %v18968_v30  ;;  %22268 = vst [vmem:[#allocation51_spill] sm:$0xff] %v18971_v17  ;;  %v134_v4 = vld [vmem:[%s21996_s1 + $0x270] sm:$0xff] }
  0x6a   :  { %22269 = vst [vmem:[#allocation52_spill] sm:$0xff] %v18981_v16  ;;  %22270 = vst [vmem:[#allocation53_spill] sm:$0xff] %v18983_v49 }
  0x6b   :  { %924 = vmatpush1.bf16.msra.mxu0 %v18947_v33  ;;  %965 = vmatpush1.bf16.msra.mxu1 %v18957_v15  ;;  %v18992_v33 = vcombine.high %v115_v31, %v119_v32  ;;  %v18995_v15 = vcombine.low %v114_v57, %v118_v13  ;;  %v131_v57 = vld [vmem:[%s21996_s1 + $0x258] sm:$0xff] }
  0x6c   :  { %925 = vmatprep.subr.bf16.mxu0 %v18959_v2  ;;  %966 = vmatprep.subr.bf16.mxu1 %v18968_v30  ;;  %v19005_v2 = vcombine.low %v115_v31, %v119_v32  ;;  %v19007_v30 = vcombine.high %v122_v46, %v126_v48  ;;  %v135_v13 = vld [vmem:[%s21996_s1 + $0x278] sm:$0xff]  ;;  %v138_v31 = vld [vmem:[%s21996_s1 + $0x290] sm:$0xff] }
  0x6d   :  { %22271 = vst [vmem:[#allocation54_spill] sm:$0xff] %v18992_v33  ;;  %22272 = vst [vmem:[#allocation55_spill] sm:$0xff] %v18995_v15  ;;  %v142_v32 = vld [vmem:[%s21996_s1 + $0x2b0] sm:$0xff] }
  0x6e   :  { %22273 = vst [vmem:[#allocation56_spill] sm:$0xff] %v19005_v2  ;;  %22274 = vst [vmem:[#allocation57_spill] sm:$0xff] %v19007_v30 }
  0x6f   :  { %926 = vmatpush1.bf16.msra.mxu0 %v18971_v17  ;;  %967 = vmatpush1.bf16.msra.mxu1 %v18981_v16  ;;  %v19016_v17 = vcombine.high %v123_v59, %v127_v1  ;;  %v19019_v16 = vcombine.low %v122_v46, %v126_v48  ;;  %v139_v46 = vld [vmem:[%s21996_s1 + $0x298] sm:$0xff] }
  0x70   :  { %927 = vmatprep.subr.bf16.mxu0 %v18983_v49  ;;  %968 = vmatprep.subr.bf16.mxu1 %v18992_v33  ;;  %v19029_v49 = vcombine.low %v123_v59, %v127_v1  ;;  %v19031_v33 = vcombine.high %v130_v53, %v134_v4  ;;  %v143_v48 = vld [vmem:[%s21996_s1 + $0x2b8] sm:$0xff]  ;;  %v146_v59 = vld [vmem:[%s21996_s1 + $0x2d0] sm:$0xff] }
  0x71   :  { %22275 = vst [vmem:[#allocation58_spill] sm:$0xff] %v19016_v17  ;;  %22276 = vst [vmem:[#allocation59_spill] sm:$0xff] %v19019_v16  ;;  %v150_v1 = vld [vmem:[%s21996_s1 + $0x2f0] sm:$0xff] }
  0x72   :  { %22277 = vst [vmem:[#allocation60_spill] sm:$0xff] %v19029_v49  ;;  %22278 = vst [vmem:[#allocation61_spill] sm:$0xff] %v19031_v33 }
  0x73   :  { %928 = vmatpush1.bf16.msra.mxu0 %v18995_v15  ;;  %969 = vmatpush1.bf16.msra.mxu1 %v19005_v2  ;;  %v19040_v15 = vcombine.high %v131_v57, %v135_v13  ;;  %v19043_v2 = vcombine.low %v130_v53, %v134_v4  ;;  %v147_v53 = vld [vmem:[%s21996_s1 + $0x2d8] sm:$0xff] }
  0x74   :  { %929 = vmatprep.subr.bf16.mxu0 %v19007_v30  ;;  %970 = vmatprep.subr.bf16.mxu1 %v19016_v17  ;;  %v19053_v30 = vcombine.low %v131_v57, %v135_v13  ;;  %v19055_v17 = vcombine.high %v138_v31, %v142_v32  ;;  %v151_v4 = vld [vmem:[%s21996_s1 + $0x2f8] sm:$0xff]  ;;  %v154_v57 = vld [vmem:[%s21996_s1 + $0x310] sm:$0xff] }
  0x75   :  { %22279 = vst [vmem:[#allocation62_spill] sm:$0xff] %v19040_v15  ;;  %22280 = vst [vmem:[#allocation63_spill] sm:$0xff] %v19043_v2  ;;  %v158_v13 = vld [vmem:[%s21996_s1 + $0x330] sm:$0xff] }
  0x76   :  { %22281 = vst [vmem:[#allocation64_spill] sm:$0xff] %v19053_v30  ;;  %22282 = vst [vmem:[#allocation65_spill] sm:$0xff] %v19055_v17 }
  0x77   :  { %930 = vmatpush1.bf16.msra.mxu0 %v19019_v16  ;;  %971 = vmatpush1.bf16.msra.mxu1 %v19029_v49  ;;  %v19064_v16 = vcombine.high %v139_v46, %v143_v48  ;;  %v19067_v49 = vcombine.low %v138_v31, %v142_v32  ;;  %v155_v31 = vld [vmem:[%s21996_s1 + $0x318] sm:$0xff] }
  0x78   :  { %931 = vmatprep.subr.bf16.mxu0 %v19031_v33  ;;  %972 = vmatprep.subr.bf16.mxu1 %v19040_v15  ;;  %v19077_v33 = vcombine.low %v139_v46, %v143_v48  ;;  %v19079_v15 = vcombine.high %v146_v59, %v150_v1  ;;  %v159_v32 = vld [vmem:[%s21996_s1 + $0x338] sm:$0xff]  ;;  %v162_v46 = vld [vmem:[%s21996_s1 + $0x350] sm:$0xff] }
  0x79   :  { %22283 = vst [vmem:[#allocation66_spill] sm:$0xff] %v19064_v16  ;;  %22284 = vst [vmem:[#allocation67_spill] sm:$0xff] %v19067_v49  ;;  %v166_v48 = vld [vmem:[%s21996_s1 + $0x370] sm:$0xff] }
  0x7a   :  { %22285 = vst [vmem:[#allocation68_spill] sm:$0xff] %v19077_v33  ;;  %22286 = vst [vmem:[#allocation69_spill] sm:$0xff] %v19079_v15 }
  0x7b   :  { %932 = vmatpush1.bf16.msra.mxu0 %v19043_v2  ;;  %973 = vmatpush1.bf16.msra.mxu1 %v19053_v30  ;;  %v19088_v2 = vcombine.high %v147_v53, %v151_v4  ;;  %v19091_v30 = vcombine.low %v146_v59, %v150_v1  ;;  %v163_v59 = vld [vmem:[%s21996_s1 + $0x358] sm:$0xff] }
  0x7c   :  { %933 = vmatprep.subr.bf16.mxu0 %v19055_v17  ;;  %974 = vmatprep.subr.bf16.mxu1 %v19064_v16  ;;  %v19101_v17 = vcombine.low %v147_v53, %v151_v4  ;;  %v19103_v16 = vcombine.high %v154_v57, %v158_v13  ;;  %v167_v1 = vld [vmem:[%s21996_s1 + $0x378] sm:$0xff]  ;;  %v170_v53 = vld [vmem:[%s21996_s1 + $0x390] sm:$0xff] }
  0x7d   :  { %22287 = vst [vmem:[#allocation70_spill] sm:$0xff] %v19088_v2  ;;  %22288 = vst [vmem:[#allocation71_spill] sm:$0xff] %v19091_v30  ;;  %v174_v4 = vld [vmem:[%s21996_s1 + $0x3b0] sm:$0xff] }
  0x7e   :  { %22289 = vst [vmem:[#allocation72_spill] sm:$0xff] %v19101_v17  ;;  %22290 = vst [vmem:[#allocation73_spill] sm:$0xff] %v19103_v16 }
  0x7f   :  { %934 = vmatpush1.bf16.msra.mxu0 %v19067_v49  ;;  %975 = vmatpush1.bf16.msra.mxu1 %v19077_v33  ;;  %v19112_v49 = vcombine.high %v155_v31, %v159_v32  ;;  %v19115_v33 = vcombine.low %v154_v57, %v158_v13  ;;  %v171_v57 = vld [vmem:[%s21996_s1 + $0x398] sm:$0xff] }
  0x80   :  { %935 = vmatprep.subr.bf16.mxu0 %v19079_v15  ;;  %976 = vmatprep.subr.bf16.mxu1 %v19088_v2  ;;  %v19125_v15 = vcombine.low %v155_v31, %v159_v32  ;;  %v19127_v2 = vcombine.high %v162_v46, %v166_v48  ;;  %v175_v13 = vld [vmem:[%s21996_s1 + $0x3b8] sm:$0xff]  ;;  %v178_v31 = vld [vmem:[%s21996_s1 + $0x3d0] sm:$0xff] }
  0x81   :  { %22291 = vst [vmem:[#allocation74_spill] sm:$0xff] %v19112_v49  ;;  %22292 = vst [vmem:[#allocation75_spill] sm:$0xff] %v19115_v33  ;;  %v182_v32 = vld [vmem:[%s21996_s1 + $0x3f0] sm:$0xff] }
  0x82   :  { %22293 = vst [vmem:[#allocation76_spill] sm:$0xff] %v19125_v15  ;;  %22294 = vst [vmem:[#allocation77_spill] sm:$0xff] %v19127_v2 }
  0x83   :  { %936 = vmatpush1.bf16.msra.mxu0 %v19091_v30  ;;  %977 = vmatpush1.bf16.msra.mxu1 %v19101_v17  ;;  %v19136_v30 = vcombine.high %v163_v59, %v167_v1  ;;  %v19139_v17 = vcombine.low %v162_v46, %v166_v48  ;;  %v179_v46 = vld [vmem:[%s21996_s1 + $0x3d8] sm:$0xff] }
  0x84   :  { %937 = vmatprep.subr.bf16.mxu0 %v19103_v16  ;;  %978 = vmatprep.subr.bf16.mxu1 %v19112_v49  ;;  %v19149_v16 = vcombine.low %v163_v59, %v167_v1  ;;  %v19151_v49 = vcombine.high %v170_v53, %v174_v4  ;;  %v183_v48 = vld [vmem:[%s21996_s1 + $0x3f8] sm:$0xff]  ;;  %v19167_v59 = vcombine.low %v171_v57, %v175_v13 }
  0x85   :  { %22295 = vst [vmem:[#allocation78_spill] sm:$0xff] %v19136_v30  ;;  %v19169_v1 = vcombine.high %v178_v31, %v182_v32 }
  0x87   :  { %938 = vmatpush1.bf16.msra.mxu0 %v19115_v33  ;;  %979 = vmatpush1.bf16.msra.mxu1 %v19125_v15  ;;  %v19160_v33 = vcombine.high %v171_v57, %v175_v13  ;;  %v19163_v15 = vcombine.low %v170_v53, %v174_v4  ;;  %v19179_v53 = vcombine.low %v179_v46, %v183_v48  ;;  %v19184_v4 = vld [vmem:[%s21995_s0 + $0x4] sm:$0xff]  ;;  %v22342_v13 = vld [vmem:[#allocation53_spill] sm:$0xff] }
  0x88   :  { %939 = vmatprep.subr.bf16.mxu0 %v19127_v2  ;;  %980 = vmatprep.subr.bf16.mxu1 %v19136_v30  ;;  %v19172_v2 = vcombine.high %v179_v46, %v183_v48  ;;  %v19175_v30 = vcombine.low %v178_v31, %v182_v32  ;;  %v19193_v57 = vcombine.high %v19184_v4, %v19184_v4  ;;  %v22343_v31 = vld [vmem:[#allocation54_spill] sm:$0xff]  ;;  %v22344_v32 = vld [vmem:[#allocation55_spill] sm:$0xff]  ;;  %v22345_v46 = vld [vmem:[#allocation56_spill] sm:$0xff] }
  0x89   :  { %v22346_v48 = vld [vmem:[#allocation57_spill] sm:$0xff] }
  0x8b   :  { %940 = vmatpush1.bf16.msra.mxu0 %v19139_v17  ;;  %981 = vmatpush1.bf16.msra.mxu1 %v19149_v16 }
  0x8c   :  { %941 = vmatprep.subr.bf16.mxu0 %v19151_v49  ;;  %982 = vmatprep.subr.bf16.mxu1 %v19160_v33 }
  0x8f   :  { %942 = vmatpush1.bf16.msra.mxu0 %v19163_v15  ;;  %983 = vmatpush1.bf16.msra.mxu1 %v19167_v59 }
  0x90   :  { %943 = vmatprep.subr.bf16.mxu0 %v19169_v1  ;;  %984 = vmatprep.subr.bf16.mxu1 %v19172_v2 }
  0x93   :  { %944 = vmatpush1.bf16.msra.mxu0 %v19175_v30  ;;  %985 = vmatpush1.bf16.msra.mxu1 %v19179_v53 }
  0x94   :  { %1791 = vmatprep.subr.bf16.mxu0 %v18406_v3  ;;  %1832 = vmatprep.subr.bf16.mxu1 %v18419_v8  ;;  %v22296_v3 = vld [vmem:[#allocation7_spill] sm:$0xff]  ;;  %v22298_v8 = vld [vmem:[#allocation9_spill] sm:$0xff] }
  0x96   :  { %946 = vmatmul.mubr.bf16.vlgmr.msra.gmra.mrb[4].mxu0 %v18820_v0  ;;  %987 = vmatmul.mubr.bf16.vlgmr.msra.gmra.mrb[4].mxu1 %v18820_v0  ;;  %v22340_v0 = vld [vmem:[#allocation51_spill] sm:$0xff] }
  0x97   :  { %1792 = vmatpush1.bf16.msra.mxu0 %v18411_v5  ;;  %1833 = vmatpush1.bf16.msra.mxu1 %v18421_v9  ;;  %v22297_v5 = vld [vmem:[#allocation8_spill] sm:$0xff]  ;;  %v22299_v9 = vld [vmem:[#allocation10_spill] sm:$0xff] }
  0x98   :  { %1793 = vmatprep.subr.bf16.mxu0 %v18423_v10  ;;  %1834 = vmatprep.subr.bf16.mxu1 %v18435_v14  ;;  %v22300_v10 = vld [vmem:[#allocation11_spill] sm:$0xff]  ;;  %v22301_v14 = vld [vmem:[#allocation12_spill] sm:$0xff] }
  0x99   :  { %1823 = vmatprep.mubr.bf16.mxu0 %v19193_v57  ;;  %1864 = vmatprep.mubr.bf16.mxu1 %v19193_v57 }
  0x9b   :  { %1794 = vmatpush1.bf16.msra.mxu0 %v18448_v18  ;;  %1835 = vmatpush1.bf16.msra.mxu1 %v18452_v19  ;;  %v22302_v18 = vld [vmem:[#allocation13_spill] sm:$0xff]  ;;  %v22303_v19 = vld [vmem:[#allocation14_spill] sm:$0xff] }
  0x9c   :  { %1795 = vmatprep.subr.bf16.mxu0 %v18454_v20  ;;  %1836 = vmatprep.subr.bf16.mxu1 %v18457_v21  ;;  %v22304_v20 = vld [vmem:[#allocation15_spill] sm:$0xff]  ;;  %v22305_v21 = vld [vmem:[#allocation16_spill] sm:$0xff] }
  0x9f   :  { %1796 = vmatpush1.bf16.msra.mxu0 %v18472_v26  ;;  %1837 = vmatpush1.bf16.msra.mxu1 %v18476_v27  ;;  %v22306_v26 = vld [vmem:[#allocation17_spill] sm:$0xff]  ;;  %v22307_v27 = vld [vmem:[#allocation18_spill] sm:$0xff] }
  0xa0   :  { %1797 = vmatprep.subr.bf16.mxu0 %v18478_v28  ;;  %1838 = vmatprep.subr.bf16.mxu1 %v18481_v29  ;;  %v22308_v28 = vld [vmem:[#allocation19_spill] sm:$0xff]  ;;  %v22309_v29 = vld [vmem:[#allocation20_spill] sm:$0xff] }
  0xa3   :  { %1798 = vmatpush1.bf16.msra.mxu0 %v18496_v34  ;;  %1839 = vmatpush1.bf16.msra.mxu1 %v18500_v35  ;;  %v22310_v34 = vld [vmem:[#allocation21_spill] sm:$0xff]  ;;  %v22311_v35 = vld [vmem:[#allocation22_spill] sm:$0xff] }
  0xa4   :  { %1799 = vmatprep.subr.bf16.mxu0 %v18502_v36  ;;  %1840 = vmatprep.subr.bf16.mxu1 %v18505_v37  ;;  %v22312_v36 = vld [vmem:[#allocation23_spill] sm:$0xff]  ;;  %v19261_v37 = vcombine.low %v19184_v4, %v19184_v4  ;;  %v22347_v4 = vld [vmem:[#allocation58_spill] sm:$0xff] }
  0xa7   :  { %1800 = vmatpush1.bf16.msra.mxu0 %v18520_v42  ;;  %1841 = vmatpush1.bf16.msra.mxu1 %v18524_v43  ;;  %v22313_v42 = vld [vmem:[#allocation24_spill] sm:$0xff]  ;;  %v22314_v43 = vld [vmem:[#allocation25_spill] sm:$0xff] }
  0xa8   :  { %1801 = vmatprep.subr.bf16.mxu0 %v18526_v44  ;;  %1842 = vmatprep.subr.bf16.mxu1 %v18529_v45  ;;  %v22315_v44 = vld [vmem:[#allocation26_spill] sm:$0xff]  ;;  %v22316_v45 = vld [vmem:[#allocation27_spill] sm:$0xff] }
  0xab   :  { %1802 = vmatpush1.bf16.msra.mxu0 %v18544_v50  ;;  %1843 = vmatpush1.bf16.msra.mxu1 %v18548_v51  ;;  %v22317_v50 = vld [vmem:[#allocation28_spill] sm:$0xff]  ;;  %v22318_v51 = vld [vmem:[#allocation29_spill] sm:$0xff] }
  0xac   :  { %1803 = vmatprep.subr.bf16.mxu0 %v18550_v52  ;;  %1844 = vmatprep.subr.bf16.mxu1 %v18558_v54  ;;  %v22319_v52 = vld [vmem:[#allocation30_spill] sm:$0xff]  ;;  %v22320_v54 = vld [vmem:[#allocation31_spill] sm:$0xff] }
  0xaf   :  { %1804 = vmatpush1.bf16.msra.mxu0 %v18577_v60  ;;  %1845 = vmatpush1.bf16.msra.mxu1 %v18582_v61  ;;  %v22321_v60 = vld [vmem:[#allocation32_spill] sm:$0xff]  ;;  %v22322_v61 = vld [vmem:[#allocation33_spill] sm:$0xff] }
  0xb0   :  { %1805 = vmatprep.subr.bf16.mxu0 %v18584_v62  ;;  %1846 = vmatprep.subr.bf16.mxu1 %v18587_v63  ;;  %v22323_v62 = vld [vmem:[#allocation34_spill] sm:$0xff]  ;;  %v22324_v63 = vld [vmem:[#allocation35_spill] sm:$0xff] }
  0xb3   :  { %1806 = vmatpush1.bf16.msra.mxu0 %v18603_v6  ;;  %1847 = vmatpush1.bf16.msra.mxu1 %v18607_v7  ;;  %v22325_v6 = vld [vmem:[#allocation36_spill] sm:$0xff]  ;;  %v22326_v7 = vld [vmem:[#allocation37_spill] sm:$0xff] }
  0xb4   :  { %1807 = vmatprep.subr.bf16.mxu0 %v18609_v11  ;;  %1848 = vmatprep.subr.bf16.mxu1 %v18612_v12  ;;  %v22327_v11 = vld [vmem:[#allocation38_spill] sm:$0xff]  ;;  %v22328_v12 = vld [vmem:[#allocation39_spill] sm:$0xff] }
  0xb7   :  { %1808 = vmatpush1.bf16.msra.mxu0 %v18627_v22  ;;  %1849 = vmatpush1.bf16.msra.mxu1 %v18631_v23  ;;  %v22329_v22 = vld [vmem:[#allocation40_spill] sm:$0xff]  ;;  %v22330_v23 = vld [vmem:[#allocation41_spill] sm:$0xff] }
  0xb8   :  { %1809 = vmatprep.subr.bf16.mxu0 %v18633_v24  ;;  %1850 = vmatprep.subr.bf16.mxu1 %v18636_v25  ;;  %v22331_v24 = vld [vmem:[#allocation42_spill] sm:$0xff]  ;;  %v22332_v25 = vld [vmem:[#allocation43_spill] sm:$0xff] }
  0xbb   :  { %1810 = vmatpush1.bf16.msra.mxu0 %v18651_v38  ;;  %1851 = vmatpush1.bf16.msra.mxu1 %v18655_v39  ;;  %v22333_v38 = vld [vmem:[#allocation44_spill] sm:$0xff]  ;;  %v22334_v39 = vld [vmem:[#allocation45_spill] sm:$0xff] }
  0xbc   :  { %1811 = vmatprep.subr.bf16.mxu0 %v18657_v40  ;;  %1852 = vmatprep.subr.bf16.mxu1 %v18660_v41  ;;  %v22335_v40 = vld [vmem:[#allocation46_spill] sm:$0xff]  ;;  %v22336_v41 = vld [vmem:[#allocation47_spill] sm:$0xff] }
  0xbf   :  { %1812 = vmatpush1.bf16.msra.mxu0 %v18675_v55  ;;  %1853 = vmatpush1.bf16.msra.mxu1 %v18679_v56  ;;  %v22337_v55 = vld [vmem:[#allocation48_spill] sm:$0xff]  ;;  %v22338_v56 = vld [vmem:[#allocation49_spill] sm:$0xff] }
  0xc0   :  { %1813 = vmatprep.subr.bf16.mxu0 %v18681_v58  ;;  %1854 = vmatprep.subr.bf16.mxu1 %v22296_v3  ;;  %v22339_v58 = vld [vmem:[#allocation50_spill] sm:$0xff]  ;;  %v22349_v3 = vld [vmem:[#allocation60_spill] sm:$0xff] }
  0xc3   :  { %1814 = vmatpush1.bf16.msra.mxu0 %v22297_v5  ;;  %1855 = vmatpush1.bf16.msra.mxu1 %v22298_v8  ;;  %v22350_v5 = vld [vmem:[#allocation61_spill] sm:$0xff]  ;;  %v22351_v8 = vld [vmem:[#allocation62_spill] sm:$0xff] }
  0xc4   :  { %1815 = vmatprep.subr.bf16.mxu0 %v22299_v9  ;;  %1856 = vmatprep.subr.bf16.mxu1 %v22300_v10  ;;  %v22352_v9 = vld [vmem:[#allocation63_spill] sm:$0xff]  ;;  %v22353_v10 = vld [vmem:[#allocation64_spill] sm:$0xff] }
  0xc7   :  { %1816 = vmatpush1.bf16.msra.mxu0 %v22301_v14  ;;  %1857 = vmatpush1.bf16.msra.mxu1 %v22302_v18  ;;  %v22354_v14 = vld [vmem:[#allocation65_spill] sm:$0xff]  ;;  %v22355_v18 = vld [vmem:[#allocation66_spill] sm:$0xff] }
  0xc8   :  { %1817 = vmatprep.subr.bf16.mxu0 %v22303_v19  ;;  %1858 = vmatprep.subr.bf16.mxu1 %v22304_v20  ;;  %v22356_v19 = vld [vmem:[#allocation67_spill] sm:$0xff]  ;;  %v22357_v20 = vld [vmem:[#allocation68_spill] sm:$0xff] }
  0xcb   :  { %1818 = vmatpush1.bf16.msra.mxu0 %v22305_v21  ;;  %1859 = vmatpush1.bf16.msra.mxu1 %v22306_v26  ;;  %v22358_v21 = vld [vmem:[#allocation69_spill] sm:$0xff]  ;;  %v22359_v26 = vld [vmem:[#allocation70_spill] sm:$0xff] }
  0xcc   :  { %1819 = vmatprep.subr.bf16.mxu0 %v22307_v27  ;;  %1860 = vmatprep.subr.bf16.mxu1 %v22308_v28  ;;  %v22360_v27 = vld [vmem:[#allocation71_spill] sm:$0xff]  ;;  %v22361_v28 = vld [vmem:[#allocation72_spill] sm:$0xff] }
  0xcf   :  { %1820 = vmatpush1.bf16.msra.mxu0 %v22309_v29  ;;  %1861 = vmatpush1.bf16.msra.mxu1 %v22310_v34  ;;  %v22362_v29 = vld [vmem:[#allocation73_spill] sm:$0xff]  ;;  %v22363_v34 = vld [vmem:[#allocation74_spill] sm:$0xff] }
  0xd0   :  { %1821 = vmatprep.subr.bf16.mxu0 %v22311_v35  ;;  %1862 = vmatprep.subr.bf16.mxu1 %v22312_v36  ;;  %v22364_v35 = vld [vmem:[#allocation75_spill] sm:$0xff]  ;;  %v22365_v36 = vld [vmem:[#allocation76_spill] sm:$0xff] }
  0xd3   :  { %1822 = vmatpush1.bf16.msra.mxu0 %v22313_v42  ;;  %1863 = vmatpush1.bf16.msra.mxu1 %v22314_v43  ;;  %v22366_v42 = vld [vmem:[#allocation77_spill] sm:$0xff]  ;;  %v22367_v43 = vld [vmem:[#allocation78_spill] sm:$0xff] }
  0xd4   :  { %1873 = vmatprep.subr.bf16.mxu0 %v22315_v44  ;;  %1914 = vmatprep.subr.bf16.mxu1 %v22316_v45  ;;  %v1970_v44 = vld [vmem:[%s21996_s1] sm:$0xff] }
  0xd5   :  { %v1974_v45 = vld [vmem:[%s21996_s1 + $0x20] sm:$0xff] }
  0xd6   :  { %1824 = vmatmul.mubr.bf16.vlgmr.msra.gmra.mrb[8].mxu0 %v19261_v37  ;;  %1865 = vmatmul.mubr.bf16.vlgmr.msra.gmra.mrb[8].mxu1 %v19261_v37 }
  0xd7   :  { %1874 = vmatpush1.bf16.msra.mxu0 %v22317_v50  ;;  %1915 = vmatpush1.bf16.msra.mxu1 %v22318_v51  ;;  %v1971_v50 = vld [vmem:[%s21996_s1 + $0x8] sm:$0xff] }
  0xd8   :  { %1875 = vmatprep.subr.bf16.mxu0 %v22319_v52  ;;  %1916 = vmatprep.subr.bf16.mxu1 %v22320_v54  ;;  %v1979_v51 = vld [vmem:[%s21996_s1 + $0x48] sm:$0xff]  ;;  %v1986_v54 = vld [vmem:[%s21996_s1 + $0x80] sm:$0xff] }
  0xd9   :  { %1905 = vmatprep.mubr.bf16.mxu0 %v19193_v57  ;;  %1946 = vmatprep.mubr.bf16.mxu1 %v19193_v57  ;;  %v22348_v57 = vld [vmem:[#allocation59_spill] sm:$0xff] }
  0xdb   :  { %1876 = vmatpush1.bf16.msra.mxu0 %v18849_v47  ;;  %1917 = vmatpush1.bf16.msra.mxu1 %v22321_v60  ;;  %v22341_v47 = vld [vmem:[#allocation52_spill] sm:$0xff]  ;;  %v1990_v60 = vld [vmem:[%s21996_s1 + $0xa0] sm:$0xff] }
  0xdc   :  { %1877 = vmatprep.subr.bf16.mxu0 %v22322_v61  ;;  %1918 = vmatprep.subr.bf16.mxu1 %v22323_v62  ;;  %v1991_v62 = vld [vmem:[%s21996_s1 + $0xa8] sm:$0xff] }
  0xdf   :  { %1878 = vmatpush1.bf16.msra.mxu0 %v22324_v63  ;;  %1919 = vmatpush1.bf16.msra.mxu1 %v22325_v6 }
  0xe0   :  { %1879 = vmatprep.subr.bf16.mxu0 %v22326_v7  ;;  %1920 = vmatprep.subr.bf16.mxu1 %v22327_v11  ;;  %v1994_v7 = vld [vmem:[%s21996_s1 + $0xc0] sm:$0xff] }
  0xe1   :  { %v1998_v11 = vld [vmem:[%s21996_s1 + $0xe0] sm:$0xff] }
  0xe3   :  { %1880 = vmatpush1.bf16.msra.mxu0 %v22328_v12  ;;  %1921 = vmatpush1.bf16.msra.mxu1 %v22329_v22  ;;  %v19407_v22 = vcombine.high %v1986_v54, %v1990_v60 }
  0xe4   :  { %1881 = vmatprep.subr.bf16.mxu0 %v22330_v23  ;;  %1922 = vmatprep.subr.bf16.mxu1 %v22331_v24  ;;  %v1999_v23 = vld [vmem:[%s21996_s1 + $0xe8] sm:$0xff] }
  0xe7   :  { %1882 = vmatpush1.bf16.msra.mxu0 %v22332_v25  ;;  %1923 = vmatpush1.bf16.msra.mxu1 %v22333_v38  ;;  %v19421_v25 = vcombine.low %v1986_v54, %v1990_v60  ;;  %v2002_v38 = vld [vmem:[%s21996_s1 + $0x100] sm:$0xff] }
  0xe8   :  { %1883 = vmatprep.subr.bf16.mxu0 %v22334_v39  ;;  %1924 = vmatprep.subr.bf16.mxu1 %v22335_v40  ;;  %v2006_v39 = vld [vmem:[%s21996_s1 + $0x120] sm:$0xff] }
  0xeb   :  { %1884 = vmatpush1.bf16.msra.mxu0 %v22336_v41  ;;  %1925 = vmatpush1.bf16.msra.mxu1 %v22337_v55  ;;  %v19433_v41 = vcombine.high %v1994_v7, %v1998_v11  ;;  %v2003_v55 = vld [vmem:[%s21996_s1 + $0x108] sm:$0xff] }
  0xec   :  { %1885 = vmatprep.subr.bf16.mxu0 %v22338_v56  ;;  %1926 = vmatprep.subr.bf16.mxu1 %v22339_v58  ;;  %v2007_v56 = vld [vmem:[%s21996_s1 + $0x128] sm:$0xff] }
  0xef   :  { %1886 = vmatpush1.bf16.msra.mxu0 %v22340_v0  ;;  %1927 = vmatpush1.bf16.msra.mxu1 %v22341_v47  ;;  %v19445_v0 = vcombine.low %v1994_v7, %v1998_v11  ;;  %v2010_v47 = vld [vmem:[%s21996_s1 + $0x140] sm:$0xff]  ;;  %v2039_v7 = vld [vmem:[%s21996_s1 + $0x228] sm:$0xff] }
  0xf0   :  { %1887 = vmatprep.subr.bf16.mxu0 %v22342_v13  ;;  %1928 = vmatprep.subr.bf16.mxu1 %v22343_v31  ;;  %v2014_v13 = vld [vmem:[%s21996_s1 + $0x160] sm:$0xff] }
  0xf3   :  { %1888 = vmatpush1.bf16.msra.mxu0 %v22344_v32  ;;  %1929 = vmatpush1.bf16.msra.mxu1 %v22345_v46  ;;  %v19457_v32 = vcombine.high %v2002_v38, %v2006_v39  ;;  %v2011_v46 = vld [vmem:[%s21996_s1 + $0x148] sm:$0xff] }
  0xf4   :  { %1889 = vmatprep.subr.bf16.mxu0 %v22346_v48  ;;  %1930 = vmatprep.subr.bf16.mxu1 %v22347_v4  ;;  %v2015_v48 = vld [vmem:[%s21996_s1 + $0x168] sm:$0xff]  ;;  %v19466_v4 = vcombine.high %v2003_v55, %v2007_v56 }
  0xf7   :  { %1890 = vmatpush1.bf16.msra.mxu0 %v22348_v57  ;;  %1931 = vmatpush1.bf16.msra.mxu1 %v22349_v3  ;;  %v19469_v57 = vcombine.low %v2002_v38, %v2006_v39  ;;  %v2018_v3 = vld [vmem:[%s21996_s1 + $0x180] sm:$0xff] }
  0xf8   :  { %1891 = vmatprep.subr.bf16.mxu0 %v22350_v5  ;;  %1932 = vmatprep.subr.bf16.mxu1 %v22351_v8  ;;  %v2022_v5 = vld [vmem:[%s21996_s1 + $0x1a0] sm:$0xff]  ;;  %v19479_v8 = vcombine.low %v2003_v55, %v2007_v56 }
  0xf9   :  { %v2042_v39 = vld [vmem:[%s21996_s1 + $0x240] sm:$0xff] }
  0xfa   :  { %v2046_v55 = vld [vmem:[%s21996_s1 + $0x260] sm:$0xff] }
  0xfb   :  { %1892 = vmatpush1.bf16.msra.mxu0 %v22352_v9  ;;  %1933 = vmatpush1.bf16.msra.mxu1 %v22353_v10  ;;  %v19481_v9 = vcombine.high %v2010_v47, %v2014_v13  ;;  %v2019_v10 = vld [vmem:[%s21996_s1 + $0x188] sm:$0xff] }
  0xfc   :  { %1893 = vmatprep.subr.bf16.mxu0 %v22354_v14  ;;  %1934 = vmatprep.subr.bf16.mxu1 %v22355_v18  ;;  %v2023_v14 = vld [vmem:[%s21996_s1 + $0x1a8] sm:$0xff]  ;;  %v19490_v18 = vcombine.high %v2011_v46, %v2015_v48 }
  0xfd   :  { %v19532_v60 = vcombine.low %v2019_v10, %v2023_v14 }
  0xff   :  { %1894 = vmatpush1.bf16.msra.mxu0 %v22356_v19  ;;  %1935 = vmatpush1.bf16.msra.mxu1 %v22357_v20  ;;  %v19493_v19 = vcombine.low %v2010_v47, %v2014_v13  ;;  %v2026_v20 = vld [vmem:[%s21996_s1 + $0x1c0] sm:$0xff] }
 0x100   :  { %1895 = vmatprep.subr.bf16.mxu0 %v22358_v21  ;;  %1936 = vmatprep.subr.bf16.mxu1 %v22359_v26  ;;  %v2030_v21 = vld [vmem:[%s21996_s1 + $0x1e0] sm:$0xff]  ;;  %v19503_v26 = vcombine.low %v2011_v46, %v2015_v48  ;;  %v2043_v46 = vld [vmem:[%s21996_s1 + $0x248] sm:$0xff] }
 0x101   :  { %v19546_v38 = vcombine.low %v2026_v20, %v2030_v21  ;;  %v2047_v48 = vld [vmem:[%s21996_s1 + $0x268] sm:$0xff] }
 0x103   :  { %1896 = vmatpush1.bf16.msra.mxu0 %v22360_v27  ;;  %1937 = vmatpush1.bf16.msra.mxu1 %v22361_v28  ;;  %v19505_v27 = vcombine.high %v2018_v3, %v2022_v5  ;;  %v2027_v28 = vld [vmem:[%s21996_s1 + $0x1c8] sm:$0xff] }
 0x104   :  { %1897 = vmatprep.subr.bf16.mxu0 %v22362_v29  ;;  %1938 = vmatprep.subr.bf16.mxu1 %v22363_v34  ;;  %v2031_v29 = vld [vmem:[%s21996_s1 + $0x1e8] sm:$0xff] }
 0x105   :  { %v19557_v47 = vcombine.low %v2027_v28, %v2031_v29 }
 0x107   :  { %1898 = vmatpush1.bf16.msra.mxu0 %v22364_v35  ;;  %1939 = vmatpush1.bf16.msra.mxu1 %v22365_v36  ;;  %v19514_v35 = vcombine.high %v2019_v10, %v2023_v14  ;;  %v2050_v14 = vld [vmem:[%s21996_s1 + $0x280] sm:$0xff] }
 0x108   :  { %1899 = vmatprep.subr.bf16.mxu0 %v22366_v42  ;;  %1940 = vmatprep.subr.bf16.mxu1 %v22367_v43 }
 0x10b   :  { %1900 = vmatpush1.bf16.msra.mxu0 %v19139_v17  ;;  %1941 = vmatpush1.bf16.msra.mxu1 %v19149_v16  ;;  %v1975_v17 = vld [vmem:[%s21996_s1 + $0x28] sm:$0xff]  ;;  %v19345_v16 = vcombine.high %v1970_v44, %v1974_v45 }
 0x10c   :  { %1901 = vmatprep.subr.bf16.mxu0 %v19151_v49  ;;  %1942 = vmatprep.subr.bf16.mxu1 %v19160_v33  ;;  %v1978_v49 = vld [vmem:[%s21996_s1 + $0x40] sm:$0xff]  ;;  %v19357_v52 = vcombine.high %v1971_v50, %v1975_v17 }
 0x10d   :  { %v1982_v33 = vld [vmem:[%s21996_s1 + $0x60] sm:$0xff] }
 0x10e   :  { %v19377_v61 = vcombine.high %v1978_v49, %v1982_v33  ;;  %v19395_v6 = vcombine.low %v1978_v49, %v1982_v33  ;;  %v2034_v49 = vld [vmem:[%s21996_s1 + $0x200] sm:$0xff] }
 0x10f   :  { %1902 = vmatpush1.bf16.msra.mxu0 %v19163_v15  ;;  %1943 = vmatpush1.bf16.msra.mxu1 %v19167_v59  ;;  %v1983_v15 = vld [vmem:[%s21996_s1 + $0x68] sm:$0xff]  ;;  %v2038_v33 = vld [vmem:[%s21996_s1 + $0x220] sm:$0xff] }
 0x110   :  { %1903 = vmatprep.subr.bf16.mxu0 %v19169_v1  ;;  %1944 = vmatprep.subr.bf16.mxu1 %v19172_v2  ;;  %v19362_v59 = vld [vmem:[%s21995_s0 + $0x8] sm:$0xff]  ;;  %v19365_v1 = vcombine.low %v1970_v44, %v1974_v45  ;;  %v19375_v2 = vcombine.low %v1971_v50, %v1975_v17  ;;  %v19386_v63 = vcombine.high %v1979_v51, %v1983_v15  ;;  %v19519_v44 = vld [vmem:[%s21997_s2] ss:$0 sm:$0xff] }
 0x111   :  { %v19405_v12 = vcombine.low %v1979_v51, %v1983_v15  ;;  %v19522_v17 = vcombine.low %v2018_v3, %v2022_v5  ;;  %v19559_v13 = vcombine.high %v2034_v49, %v2038_v33  ;;  %v19571_v10 = vcombine.low %v2034_v49, %v2038_v33 }
 0x112   :  { %v19605_v49 = vcombine.low %v2043_v46, %v2047_v48 }
 0x113   :  { %1904 = vmatpush1.bf16.msra.mxu0 %v19175_v30  ;;  %1945 = vmatpush1.bf16.msra.mxu1 %v19179_v53  ;;  %v1987_v30 = vld [vmem:[%s21996_s1 + $0x88] sm:$0xff]  ;;  %v19390_v53 = vcombine.high %v19362_v59, %v19362_v59 }
 0x114   :  { %2745 = vmatprep.subr.bf16.mxu0 %v19345_v16  ;;  %2786 = vmatprep.subr.bf16.mxu1 %v19357_v52  ;;  %v19416_v24 = vcombine.high %v1987_v30, %v1991_v62  ;;  %v19431_v40 = vcombine.low %v1987_v30, %v1991_v62  ;;  %v19534_v30 = vcombine.high %v2026_v20, %v2030_v21  ;;  %v2035_v62 = vld [vmem:[%s21996_s1 + $0x208] sm:$0xff]  ;;  %v2054_v20 = vld [vmem:[%s21996_s1 + $0x2a0] sm:$0xff] }
 0x115   :  { %v19568_v3 = vcombine.high %v2035_v62, %v2039_v7  ;;  %22369 = vst [vmem:[#allocation8_spill] sm:$0xff] %v19605_v49  ;;  %v19607_v33 = vcombine.high %v2050_v14, %v2054_v20 }
 0x116   :  { %1906 = vmatmul.mubr.bf16.vlgmr.msra.gmra.mrb[12].mxu0 %v19261_v37  ;;  %1947 = vmatmul.mubr.bf16.vlgmr.msra.gmra.mrb[12].mxu1 %v19261_v37  ;;  %v1995_v37 = vld [vmem:[%s21996_s1 + $0xc8] sm:$0xff] }
 0x117   :  { %2746 = vmatpush1.bf16.msra.mxu0 %v19365_v1  ;;  %2787 = vmatpush1.bf16.msra.mxu1 %v19375_v2  ;;  %v19442_v58 = vcombine.high %v1995_v37, %v1999_v23  ;;  %v19455_v31 = vcombine.low %v1995_v37, %v1999_v23  ;;  %v19543_v37 = vcombine.high %v2027_v28, %v2031_v29 }
 0x118   :  { %2747 = vmatprep.subr.bf16.mxu0 %v19377_v61  ;;  %2788 = vmatprep.subr.bf16.mxu1 %v19386_v63  ;;  %v19581_v28 = vcombine.low %v2035_v62, %v2039_v7  ;;  %v19583_v29 = vcombine.high %v2042_v39, %v2046_v55  ;;  %22370 = vst [vmem:[#allocation9_spill] sm:$0xff] %v19607_v33  ;;  %v2066_v7 = vld [vmem:[%s21996_s1 + $0x300] sm:$0xff] }
 0x119   :  { %2777 = vmatprep.mubr.bf16.mxu0 %v19390_v53  ;;  %2818 = vmatprep.mubr.bf16.mxu1 %v19390_v53  ;;  %v19619_v62 = vcombine.low %v2050_v14, %v2054_v20  ;;  %v2078_v14 = vld [vmem:[%s21996_s1 + $0x360] sm:$0xff] }
 0x11b   :  { %2748 = vmatpush1.bf16.msra.mxu0 %v19395_v6  ;;  %2789 = vmatpush1.bf16.msra.mxu1 %v19405_v12  ;;  %22372 = vst [vmem:[#allocation11_spill] sm:$0xff] %v19619_v62 }
 0x11c   :  { %2749 = vmatprep.subr.bf16.mxu0 %v19407_v22  ;;  %2790 = vmatprep.subr.bf16.mxu1 %v19416_v24 }
 0x11f   :  { %2750 = vmatpush1.bf16.msra.mxu0 %v19421_v25  ;;  %2791 = vmatpush1.bf16.msra.mxu1 %v19431_v40 }
 0x120   :  { %2751 = vmatprep.subr.bf16.mxu0 %v19433_v41  ;;  %2792 = vmatprep.subr.bf16.mxu1 %v19442_v58 }
 0x123   :  { %2752 = vmatpush1.bf16.msra.mxu0 %v19445_v0  ;;  %2793 = vmatpush1.bf16.msra.mxu1 %v19455_v31 }
 0x124   :  { %2753 = vmatprep.subr.bf16.mxu0 %v19457_v32  ;;  %2794 = vmatprep.subr.bf16.mxu1 %v19466_v4 }
 0x127   :  { %2754 = vmatpush1.bf16.msra.mxu0 %v19469_v57  ;;  %2795 = vmatpush1.bf16.msra.mxu1 %v19479_v8 }
 0x128   :  { %2755 = vmatprep.subr.bf16.mxu0 %v19481_v9  ;;  %2796 = vmatprep.subr.bf16.mxu1 %v19490_v18 }
 0x129   :  { %v865_v34 = vpop.f32.mrb[0].mxu0  ;;  %v906_v36 = vpop.f32.mrb[0].mxu1 }
 0x12a   :  { %v867_v42 = vpop.f32.mrb[1].mxu0  ;;  %v908_v45 = vpop.f32.mrb[1].mxu1 }
 0x12b   :  { %v995_v43 = vmax.f32 %v865_v34, %v867_v42  ;;  %v869_v50 = vpop.f32.mrb[2].mxu0  ;;  %2756 = vmatpush1.bf16.msra.mxu0 %v19493_v19  ;;  %v996_v51 = vmax.f32 %v906_v36, %v908_v45  ;;  %v910_v15 = vpop.f32.mrb[2].mxu1  ;;  %2797 = vmatpush1.bf16.msra.mxu1 %v19503_v26  ;;  %v2051_v34 = vld [vmem:[%s21996_s1 + $0x288] sm:$0xff]  ;;  %v19592_v42 = vcombine.high %v2043_v46, %v2047_v48  ;;  %v2058_v45 = vld [vmem:[%s21996_s1 + $0x2c0] sm:$0xff] }
 0x12c   :  { %v870_v54 = vpop.f32.mrb[3].mxu0  ;;  %2757 = vmatprep.subr.bf16.mxu0 %v19505_v27  ;;  %v911_v11 = vpop.f32.mrb[3].mxu1  ;;  %2798 = vmatprep.subr.bf16.mxu1 %v19514_v35  ;;  %v2055_v36 = vld [vmem:[%s21996_s1 + $0x2a8] sm:$0xff]  ;;  %v2062_v50 = vld [vmem:[%s21996_s1 + $0x2e0] sm:$0xff] }
 0x12d   :  { %v997_v23 = vmax.f32 %v995_v43, %v996_v51  ;;  %v19595_v43 = vcombine.low %v2042_v39, %v2046_v55  ;;  %v2059_v51 = vld [vmem:[%s21996_s1 + $0x2c8] sm:$0xff]  ;;  %v19616_v54 = vcombine.high %v2051_v34, %v2055_v36  ;;  %v2070_v11 = vld [vmem:[%s21996_s1 + $0x320] sm:$0xff]  ;;  %v19631_v39 = vcombine.high %v2058_v45, %v2062_v50 }
 0x12e   :  { %v2063_v15 = vld [vmem:[%s21996_s1 + $0x2e8] sm:$0xff]  ;;  %v19643_v48 = vcombine.low %v2058_v45, %v2062_v50  ;;  %v19667_v50 = vcombine.low %v2066_v7, %v2070_v11 }
 0x12f   :  { %2758 = vmatpush1.bf16.msra.mxu0 %v19522_v17  ;;  %v1004_v56 = vadd.f32 %v19519_v44, %v997_v23  ;;  %2799 = vmatpush1.bf16.msra.mxu1 %v19532_v60  ;;  %22368 = vst [vmem:[#allocation7_spill] sm:$0xff] %v19595_v43  ;;  %22371 = vst [vmem:[#allocation10_spill] sm:$0xff] %v19616_v54  ;;  %v19629_v23 = vcombine.low %v2051_v34, %v2055_v36  ;;  %v2067_v55 = vld [vmem:[%s21996_s1 + $0x308] sm:$0xff] }
 0x130   :  { %2759 = vmatprep.subr.bf16.mxu0 %v19534_v30  ;;  %2800 = vmatprep.subr.bf16.mxu1 %v19543_v37  ;;  %22374 = vst [vmem:[#allocation13_spill] sm:$0xff] %v19631_v39  ;;  %v19640_v46 = vcombine.high %v2059_v51, %v2063_v15  ;;  %22376 = vst [vmem:[#allocation15_spill] sm:$0xff] %v19643_v48  ;;  %v19653_v20 = vcombine.low %v2059_v51, %v2063_v15  ;;  %v2075_v34 = vld [vmem:[%s21996_s1 + $0x348] sm:$0xff]  ;;  %v2082_v51 = vld [vmem:[%s21996_s1 + $0x380] sm:$0xff] }
 0x131   :  { %v1005_v5 = vmax.f32 %v1004_v56, 0.0  ;;  %22373 = vst [vmem:[#allocation12_spill] sm:$0xff] %v19629_v23  ;;  %v2071_v56 = vld [vmem:[%s21996_s1 + $0x328] sm:$0xff]  ;;  %22380 = vst [vmem:[#allocation19_spill] sm:$0xff] %v19667_v50  ;;  %v2086_v15 = vld [vmem:[%s21996_s1 + $0x3a0] sm:$0xff] }
 0x132   :  { %22375 = vst [vmem:[#allocation14_spill] sm:$0xff] %v19640_v46  ;;  %22377 = vst [vmem:[#allocation16_spill] sm:$0xff] %v19653_v20  ;;  %v2079_v36 = vld [vmem:[%s21996_s1 + $0x368] sm:$0xff]  ;;  %v19664_v45 = vcombine.high %v2067_v55, %v2071_v56 }
 0x133   :  { %2760 = vmatpush1.bf16.msra.mxu0 %v19546_v38  ;;  %v1006_v21 = vpack.c.bf16 %v1005_v5, %v1005_v5  ;;  %2801 = vmatpush1.bf16.msra.mxu1 %v19557_v47  ;;  %v2074_v5 = vld [vmem:[%s21996_s1 + $0x340] sm:$0xff] }
 0x134   :  { %2761 = vmatprep.subr.bf16.mxu0 %v19559_v13  ;;  %2802 = vmatprep.subr.bf16.mxu1 %v19568_v3  ;;  %22379 = vst [vmem:[#allocation18_spill] sm:$0xff] %v19664_v45 }
 0x135   :  { %1007 = vst [vmem:[#allocation2] sm:$0xf] %v1006_v21  ;;  %v19655_v21 = vcombine.high %v2066_v7, %v2070_v11  ;;  %v2083_v7 = vld [vmem:[%s21996_s1 + $0x388] sm:$0xff] }
 0x136   :  { %v2087_v11 = vld [vmem:[%s21996_s1 + $0x3a8] sm:$0xff] }
 0x137   :  { %2762 = vmatpush1.bf16.msra.mxu0 %v19571_v10  ;;  %2803 = vmatpush1.bf16.msra.mxu1 %v19581_v28  ;;  %22378 = vst [vmem:[#allocation17_spill] sm:$0xff] %v19655_v21 }
 0x138   :  { %2763 = vmatprep.subr.bf16.mxu0 %v19583_v29  ;;  %2804 = vmatprep.subr.bf16.mxu1 %v19592_v42 }
 0x13b   :  { %2764 = vmatpush1.bf16.msra.mxu0 %v19595_v43  ;;  %2805 = vmatpush1.bf16.msra.mxu1 %v19605_v49 }
 0x13c   :  { %2765 = vmatprep.subr.bf16.mxu0 %v19607_v33  ;;  %2806 = vmatprep.subr.bf16.mxu1 %v19616_v54  ;;  %v2036_v54 = vld [vmem:[%s21996_s1 + $0x210] sm:$0xff] }
 0x13d   :  { %v2040_v33 = vld [vmem:[%s21996_s1 + $0x230] sm:$0xff] }
 0x13f   :  { %2766 = vmatpush1.bf16.msra.mxu0 %v19619_v62  ;;  %2807 = vmatpush1.bf16.msra.mxu1 %v19629_v23 }
 0x140   :  { %2767 = vmatprep.subr.bf16.mxu0 %v19631_v39  ;;  %2808 = vmatprep.subr.bf16.mxu1 %v19640_v46  ;;  %v19677_v39 = vcombine.low %v2067_v55, %v2071_v56  ;;  %v19679_v46 = vcombine.high %v2074_v5, %v2078_v14  ;;  %v2090_v55 = vld [vmem:[%s21996_s1 + $0x3c0] sm:$0xff] }
 0x141   :  { %v2094_v56 = vld [vmem:[%s21996_s1 + $0x3e0] sm:$0xff] }
 0x142   :  { %22381 = vst [vmem:[#allocation20_spill] sm:$0xff] %v19677_v39  ;;  %22382 = vst [vmem:[#allocation21_spill] sm:$0xff] %v19679_v46 }
 0x143   :  { %2768 = vmatpush1.bf16.msra.mxu0 %v19643_v48  ;;  %2809 = vmatpush1.bf16.msra.mxu1 %v19653_v20  ;;  %v19688_v48 = vcombine.high %v2075_v34, %v2079_v36  ;;  %v19691_v20 = vcombine.low %v2074_v5, %v2078_v14  ;;  %v2091_v5 = vld [vmem:[%s21996_s1 + $0x3c8] sm:$0xff] }
 0x144   :  { %2769 = vmatprep.subr.bf16.mxu0 %v19655_v21  ;;  %2810 = vmatprep.subr.bf16.mxu1 %v19664_v45  ;;  %v19701_v21 = vcombine.low %v2075_v34, %v2079_v36  ;;  %v19703_v45 = vcombine.high %v2082_v51, %v2086_v15  ;;  %v2095_v14 = vld [vmem:[%s21996_s1 + $0x3e8] sm:$0xff]  ;;  %v1972_v34 = vld [vmem:[%s21996_s1 + $0x10] sm:$0xff] }
 0x145   :  { %22383 = vst [vmem:[#allocation22_spill] sm:$0xff] %v19688_v48  ;;  %22384 = vst [vmem:[#allocation23_spill] sm:$0xff] %v19691_v20  ;;  %v1976_v36 = vld [vmem:[%s21996_s1 + $0x30] sm:$0xff] }
 0x146   :  { %22385 = vst [vmem:[#allocation24_spill] sm:$0xff] %v19701_v21  ;;  %22386 = vst [vmem:[#allocation25_spill] sm:$0xff] %v19703_v45 }
 0x147   :  { %2770 = vmatpush1.bf16.msra.mxu0 %v19667_v50  ;;  %2811 = vmatpush1.bf16.msra.mxu1 %v19677_v39  ;;  %v19712_v50 = vcombine.high %v2083_v7, %v2087_v11  ;;  %v19715_v39 = vcombine.low %v2082_v51, %v2086_v15  ;;  %v1973_v51 = vld [vmem:[%s21996_s1 + $0x18] sm:$0xff] }
 0x148   :  { %2771 = vmatprep.subr.bf16.mxu0 %v19679_v46  ;;  %2812 = vmatprep.subr.bf16.mxu1 %v19688_v48  ;;  %v19725_v46 = vcombine.low %v2083_v7, %v2087_v11  ;;  %v19727_v48 = vcombine.high %v2090_v55, %v2094_v56  ;;  %v1977_v15 = vld [vmem:[%s21996_s1 + $0x38] sm:$0xff]  ;;  %v1980_v7 = vld [vmem:[%s21996_s1 + $0x50] sm:$0xff] }
 0x149   :  { %22387 = vst [vmem:[#allocation26_spill] sm:$0xff] %v19712_v50  ;;  %22388 = vst [vmem:[#allocation27_spill] sm:$0xff] %v19715_v39  ;;  %v1984_v11 = vld [vmem:[%s21996_s1 + $0x70] sm:$0xff] }
 0x14a   :  { %22389 = vst [vmem:[#allocation28_spill] sm:$0xff] %v19725_v46  ;;  %22390 = vst [vmem:[#allocation29_spill] sm:$0xff] %v19727_v48 }
 0x14b   :  { %2772 = vmatpush1.bf16.msra.mxu0 %v19691_v20  ;;  %2813 = vmatpush1.bf16.msra.mxu1 %v19701_v21  ;;  %v19736_v20 = vcombine.high %v2091_v5, %v2095_v14  ;;  %v19739_v21 = vcombine.low %v2090_v55, %v2094_v56  ;;  %v1981_v55 = vld [vmem:[%s21996_s1 + $0x58] sm:$0xff] }
 0x14c   :  { %2773 = vmatprep.subr.bf16.mxu0 %v19703_v45  ;;  %2814 = vmatprep.subr.bf16.mxu1 %v19712_v50  ;;  %v19749_v45 = vcombine.low %v2091_v5, %v2095_v14  ;;  %v19751_v50 = vcombine.high %v1972_v34, %v1976_v36  ;;  %v1985_v56 = vld [vmem:[%s21996_s1 + $0x78] sm:$0xff]  ;;  %v19767_v5 = vcombine.low %v1972_v34, %v1976_v36  ;;  %v1988_v14 = vld [vmem:[%s21996_s1 + $0x90] sm:$0xff] }
 0x14d   :  { %22391 = vst [vmem:[#allocation30_spill] sm:$0xff] %v19736_v20  ;;  %22392 = vst [vmem:[#allocation31_spill] sm:$0xff] %v19739_v21  ;;  %v1989_v34 = vld [vmem:[%s21996_s1 + $0x98] sm:$0xff] }
 0x14e   :  { %22393 = vst [vmem:[#allocation32_spill] sm:$0xff] %v19749_v45  ;;  %22394 = vst [vmem:[#allocation33_spill] sm:$0xff] %v19751_v50  ;;  %v1993_v36 = vld [vmem:[%s21996_s1 + $0xb8] sm:$0xff] }
 0x14f   :  { %2774 = vmatpush1.bf16.msra.mxu0 %v19715_v39  ;;  %2815 = vmatpush1.bf16.msra.mxu1 %v19725_v46  ;;  %v19760_v39 = vcombine.high %v1973_v51, %v1977_v15  ;;  %v19764_v46 = vcombine.low %v19362_v59, %v19362_v59  ;;  %22396 = vst [vmem:[#allocation35_spill] sm:$0xff] %v19767_v5 }
 0x150   :  { %2775 = vmatprep.subr.bf16.mxu0 %v19727_v48  ;;  %2816 = vmatprep.subr.bf16.mxu1 %v19736_v20  ;;  %v1992_v48 = vld [vmem:[%s21996_s1 + $0xb0] sm:$0xff]  ;;  %v19777_v20 = vcombine.low %v1973_v51, %v1977_v15  ;;  %v19779_v59 = vcombine.high %v1980_v7, %v1984_v11  ;;  %v19793_v51 = vcombine.low %v1980_v7, %v1984_v11  ;;  %v1997_v7 = vld [vmem:[%s21996_s1 + $0xd8] sm:$0xff] }
 0x151   :  { %22395 = vst [vmem:[#allocation34_spill] sm:$0xff] %v19760_v39  ;;  %v1996_v15 = vld [vmem:[%s21996_s1 + $0xd0] sm:$0xff]  ;;  %v2001_v11 = vld [vmem:[%s21996_s1 + $0xf8] sm:$0xff] }
 0x152   :  { %22397 = vst [vmem:[#allocation36_spill] sm:$0xff] %v19777_v20  ;;  %22398 = vst [vmem:[#allocation37_spill] sm:$0xff] %v19779_v59 }
 0x153   :  { %2776 = vmatpush1.bf16.msra.mxu0 %v19739_v21  ;;  %2817 = vmatpush1.bf16.msra.mxu1 %v19749_v45  ;;  %v19788_v21 = vcombine.high %v1981_v55, %v1985_v56  ;;  %22400 = vst [vmem:[#allocation39_spill] sm:$0xff] %v19793_v51  ;;  %v19805_v45 = vcombine.high %v1988_v14, %v1992_v48 }
 0x154   :  { %2827 = vmatprep.subr.bf16.mxu0 %v19751_v50  ;;  %2868 = vmatprep.subr.bf16.mxu1 %v19760_v39  ;;  %v2000_v50 = vld [vmem:[%s21996_s1 + $0xf0] sm:$0xff]  ;;  %v19803_v39 = vcombine.low %v1981_v55, %v1985_v56  ;;  %v19819_v55 = vcombine.low %v1988_v14, %v1992_v48  ;;  %v2009_v48 = vld [vmem:[%s21996_s1 + $0x138] sm:$0xff]  ;;  %v19840_v14 = vcombine.high %v1997_v7, %v2001_v11 }
 0x155   :  { %22399 = vst [vmem:[#allocation38_spill] sm:$0xff] %v19788_v21  ;;  %22402 = vst [vmem:[#allocation41_spill] sm:$0xff] %v19805_v45  ;;  %v2004_v56 = vld [vmem:[%s21996_s1 + $0x110] sm:$0xff] }
 0x156   :  { %2778 = vmatmul.mubr.bf16.vlgmr.msra.gmra.mrb[16].mxu0 %v19764_v46  ;;  %2819 = vmatmul.mubr.bf16.vlgmr.msra.gmra.mrb[16].mxu1 %v19764_v46  ;;  %22401 = vst [vmem:[#allocation40_spill] sm:$0xff] %v19803_v39  ;;  %22404 = vst [vmem:[#allocation43_spill] sm:$0xff] %v19819_v55 }
 0x157   :  { %2828 = vmatpush1.bf16.msra.mxu0 %v19767_v5  ;;  %2869 = vmatpush1.bf16.msra.mxu1 %v19777_v20  ;;  %v19814_v5 = vcombine.high %v1989_v34, %v1993_v36  ;;  %v19831_v20 = vcombine.high %v1996_v15, %v2000_v50  ;;  %22407 = vst [vmem:[#allocation46_spill] sm:$0xff] %v19840_v14 }
 0x158   :  { %2829 = vmatprep.subr.bf16.mxu0 %v19779_v59  ;;  %2870 = vmatprep.subr.bf16.mxu1 %v19788_v21  ;;  %v2008_v59 = vld [vmem:[%s21996_s1 + $0x130] sm:$0xff]  ;;  %v19829_v21 = vcombine.low %v1989_v34, %v1993_v36 }
 0x159   :  { %22403 = vst [vmem:[#allocation42_spill] sm:$0xff] %v19814_v5  ;;  %2859 = vmatprep.mubr.bf16.mxu0 %v19390_v53  ;;  %2900 = vmatprep.mubr.bf16.mxu1 %v19390_v53  ;;  %22406 = vst [vmem:[#allocation45_spill] sm:$0xff] %v19831_v20  ;;  %v2005_v53 = vld [vmem:[%s21996_s1 + $0x118] sm:$0xff]  ;;  %v2012_v34 = vld [vmem:[%s21996_s1 + $0x150] sm:$0xff] }
 0x15a   :  { %22405 = vst [vmem:[#allocation44_spill] sm:$0xff] %v19829_v21  ;;  %v2016_v36 = vld [vmem:[%s21996_s1 + $0x170] sm:$0xff] }
 0x15b   :  { %2830 = vmatpush1.bf16.msra.mxu0 %v19793_v51  ;;  %2871 = vmatpush1.bf16.msra.mxu1 %v19803_v39  ;;  %v19843_v39 = vcombine.low %v1996_v15, %v2000_v50  ;;  %v2013_v50 = vld [vmem:[%s21996_s1 + $0x158] sm:$0xff] }
 0x15c   :  { %2831 = vmatprep.subr.bf16.mxu0 %v19805_v45  ;;  %2872 = vmatprep.subr.bf16.mxu1 %v19814_v5  ;;  %v19853_v45 = vcombine.low %v1997_v7, %v2001_v11  ;;  %v19855_v5 = vcombine.high %v2004_v56, %v2008_v59  ;;  %v2017_v15 = vld [vmem:[%s21996_s1 + $0x178] sm:$0xff]  ;;  %v2020_v7 = vld [vmem:[%s21996_s1 + $0x190] sm:$0xff] }
 0x15d   :  { %22408 = vst [vmem:[#allocation47_spill] sm:$0xff] %v19843_v39  ;;  %v2024_v11 = vld [vmem:[%s21996_s1 + $0x1b0] sm:$0xff] }
 0x15e   :  { %22409 = vst [vmem:[#allocation48_spill] sm:$0xff] %v19853_v45  ;;  %22410 = vst [vmem:[#allocation49_spill] sm:$0xff] %v19855_v5  ;;  %v19915_v62 = vcombine.low %v2020_v7, %v2024_v11 }
 0x15f   :  { %2832 = vmatpush1.bf16.msra.mxu0 %v19819_v55  ;;  %2873 = vmatpush1.bf16.msra.mxu1 %v19829_v21  ;;  %v19864_v55 = vcombine.high %v2005_v53, %v2009_v48  ;;  %v19867_v21 = vcombine.low %v2004_v56, %v2008_v59  ;;  %v2021_v59 = vld [vmem:[%s21996_s1 + $0x198] sm:$0xff] }
 0x160   :  { %2833 = vmatprep.subr.bf16.mxu0 %v19831_v20  ;;  %2874 = vmatprep.subr.bf16.mxu1 %v19840_v14  ;;  %v19877_v20 = vcombine.low %v2005_v53, %v2009_v48  ;;  %v19879_v14 = vcombine.high %v2012_v34, %v2016_v36  ;;  %v2025_v56 = vld [vmem:[%s21996_s1 + $0x1b8] sm:$0xff]  ;;  %v2028_v53 = vld [vmem:[%s21996_s1 + $0x1d0] sm:$0xff] }
 0x161   :  { %22411 = vst [vmem:[#allocation50_spill] sm:$0xff] %v19864_v55  ;;  %22412 = vst [vmem:[#allocation51_spill] sm:$0xff] %v19867_v21  ;;  %v2032_v48 = vld [vmem:[%s21996_s1 + $0x1f0] sm:$0xff]  ;;  %v19912_v51 = vcombine.high %v2021_v59, %v2025_v56 }
 0x162   :  { %22413 = vst [vmem:[#allocation52_spill] sm:$0xff] %v19877_v20  ;;  %22414 = vst [vmem:[#allocation53_spill] sm:$0xff] %v19879_v14 }
 0x163   :  { %2834 = vmatpush1.bf16.msra.mxu0 %v19843_v39  ;;  %2875 = vmatpush1.bf16.msra.mxu1 %v19853_v45  ;;  %v19888_v39 = vcombine.high %v2013_v50, %v2017_v15  ;;  %v19891_v45 = vcombine.low %v2012_v34, %v2016_v36  ;;  %v2029_v34 = vld [vmem:[%s21996_s1 + $0x1d8] sm:$0xff] }
 0x164   :  { %2835 = vmatprep.subr.bf16.mxu0 %v19855_v5  ;;  %2876 = vmatprep.subr.bf16.mxu1 %v19864_v55  ;;  %v19901_v5 = vcombine.low %v2013_v50, %v2017_v15  ;;  %v19903_v55 = vcombine.high %v2020_v7, %v2024_v11  ;;  %v2033_v36 = vld [vmem:[%s21996_s1 + $0x1f8] sm:$0xff] }
 0x165   :  { %22415 = vst [vmem:[#allocation54_spill] sm:$0xff] %v19888_v39  ;;  %v2037_v7 = vld [vmem:[%s21996_s1 + $0x218] sm:$0xff] }
 0x166   :  { %v2041_v11 = vld [vmem:[%s21996_s1 + $0x238] sm:$0xff] }
 0x167   :  { %2836 = vmatpush1.bf16.msra.mxu0 %v19867_v21  ;;  %2877 = vmatpush1.bf16.msra.mxu1 %v19877_v20 }
 0x168   :  { %2837 = vmatprep.subr.bf16.mxu0 %v19879_v14  ;;  %2878 = vmatprep.subr.bf16.mxu1 %v19888_v39 }
 0x169   :  { %v947_v21 = vpop.f32.mrb[4].mxu0  ;;  %v988_v20 = vpop.f32.mrb[4].mxu1 }
 0x16a   :  { %v949_v23 = vpop.f32.mrb[5].mxu0  ;;  %v990_v50 = vpop.f32.mrb[5].mxu1 }
 0x16b   :  { %v1008_v14 = vmax.f32 %v947_v21, %v949_v23  ;;  %v951_v15 = vpop.f32.mrb[6].mxu0  ;;  %2838 = vmatpush1.bf16.msra.mxu0 %v19891_v45  ;;  %v1009_v39 = vmax.f32 %v988_v20, %v990_v50  ;;  %v992_v49 = vpop.f32.mrb[6].mxu1  ;;  %2879 = vmatpush1.bf16.msra.mxu1 %v19901_v5  ;;  %v19925_v23 = vcombine.low %v2021_v59, %v2025_v56  ;;  %v2044_v59 = vld [vmem:[%s21996_s1 + $0x250] sm:$0xff] }
 0x16c   :  { %v952_v43 = vpop.f32.mrb[7].mxu0  ;;  %2839 = vmatprep.subr.bf16.mxu0 %v19903_v55  ;;  %v19927_v21 = vcombine.high %v2028_v53, %v2032_v48  ;;  %v993_v15 = vpop.f32.mrb[7].mxu1  ;;  %2880 = vmatprep.subr.bf16.mxu1 %v19912_v51  ;;  %v19936_v49 = vcombine.high %v2029_v34, %v2033_v36  ;;  %v19939_v20 = vcombine.low %v2028_v53, %v2032_v48  ;;  %v2048_v56 = vld [vmem:[%s21996_s1 + $0x270] sm:$0xff]  ;;  %v2049_v53 = vld [vmem:[%s21996_s1 + $0x278] sm:$0xff] }
 0x16d   :  { %v1010_v43 = vmax.f32 %v1008_v14, %v1009_v39  ;;  %v19950_v15 = vcombine.low %v2029_v34, %v2033_v36  ;;  %v19952_v39 = vcombine.high %v2036_v54, %v2040_v33  ;;  %v2045_v14 = vld [vmem:[%s21996_s1 + $0x258] sm:$0xff]  ;;  %v19961_v48 = vcombine.high %v2037_v7, %v2041_v11  ;;  %v2052_v34 = vld [vmem:[%s21996_s1 + $0x290] sm:$0xff] }
 0x16e   :  { %22416 = vst [vmem:[#allocation55_spill] sm:$0xff] %v19927_v21  ;;  %22417 = vst [vmem:[#allocation56_spill] sm:$0xff] %v19936_v49  ;;  %v2056_v36 = vld [vmem:[%s21996_s1 + $0x2b0] sm:$0xff] }
 0x16f   :  { %2840 = vmatpush1.bf16.msra.mxu0 %v19915_v62  ;;  %22418 = vst [vmem:[#allocation57_spill] sm:$0xff] %v19939_v20  ;;  %v1011_v50 = vadd.f32 %v19519_v44, %v1010_v43  ;;  %2881 = vmatpush1.bf16.msra.mxu1 %v19925_v23  ;;  %22419 = vst [vmem:[#allocation58_spill] sm:$0xff] %v19952_v39  ;;  %v19964_v43 = vcombine.low %v2036_v54, %v2040_v33  ;;  %v2053_v33 = vld [vmem:[%s21996_s1 + $0x298] sm:$0xff] }
 0x170   :  { %2841 = vmatprep.subr.bf16.mxu0 %v19927_v21  ;;  %2882 = vmatprep.subr.bf16.mxu1 %v19936_v49  ;;  %22420 = vst [vmem:[#allocation59_spill] sm:$0xff] %v19961_v48  ;;  %v19974_v49 = vcombine.low %v2037_v7, %v2041_v11  ;;  %v2057_v54 = vld [vmem:[%s21996_s1 + $0x2b8] sm:$0xff]  ;;  %v2060_v7 = vld [vmem:[%s21996_s1 + $0x2d0] sm:$0xff] }
 0x171   :  { %v1012_v44 = vmax.f32 %v1011_v50, 0.0  ;;  %v19976_v50 = vcombine.high %v2044_v59, %v2048_v56  ;;  %v2064_v11 = vld [vmem:[%s21996_s1 + $0x2f0] sm:$0xff] }
 0x172   :  { %22421 = vst [vmem:[#allocation60_spill] sm:$0xff] %v19974_v49 }
 0x173   :  { %2842 = vmatpush1.bf16.msra.mxu0 %v19939_v20  ;;  %v1013_v21 = vpack.c.bf16 %v1012_v44, %v1012_v44  ;;  %2883 = vmatpush1.bf16.msra.mxu1 %v19950_v15  ;;  %22422 = vst [vmem:[#allocation61_spill] sm:$0xff] %v19976_v50  ;;  %v19985_v20 = vcombine.high %v2045_v14, %v2049_v53 }
 0x174   :  { %2843 = vmatprep.subr.bf16.mxu0 %v19952_v39  ;;  %2884 = vmatprep.subr.bf16.mxu1 %v19961_v48  ;;  %v19988_v44 = vcombine.low %v2044_v59, %v2048_v56  ;;  %v19998_v48 = vcombine.low %v2045_v14, %v2049_v53  ;;  %v20000_v39 = vcombine.high %v2052_v34, %v2056_v36  ;;  %v2065_v59 = vld [vmem:[%s21996_s1 + $0x2f8] sm:$0xff]  ;;  %v2068_v14 = vld [vmem:[%s21996_s1 + $0x310] sm:$0xff] }
 0x175   :  { %22423 = vst [vmem:[#allocation62_spill] sm:$0xff] %v19985_v20  ;;  %1014 = vst [vmem:[#allocation2 + $0x4] sm:$0xf] %v1013_v21  ;;  %v2061_v21 = vld [vmem:[%s21996_s1 + $0x2d8] sm:$0xff]  ;;  %v20009_v56 = vcombine.high %v2053_v33, %v2057_v54  ;;  %v2072_v53 = vld [vmem:[%s21996_s1 + $0x330] sm:$0xff] }
 0x176   :  { %22424 = vst [vmem:[#allocation63_spill] sm:$0xff] %v19988_v44  ;;  %22425 = vst [vmem:[#allocation64_spill] sm:$0xff] %v19998_v48 }
 0x177   :  { %2844 = vmatpush1.bf16.msra.mxu0 %v19964_v43  ;;  %2885 = vmatpush1.bf16.msra.mxu1 %v19974_v49  ;;  %22426 = vst [vmem:[#allocation65_spill] sm:$0xff] %v20000_v39  ;;  %22427 = vst [vmem:[#allocation66_spill] sm:$0xff] %v20009_v56  ;;  %v20012_v49 = vcombine.low %v2052_v34, %v2056_v36  ;;  %v2069_v34 = vld [vmem:[%s21996_s1 + $0x318] sm:$0xff]  ;;  %v20030_v36 = vcombine.high %v2061_v21, %v2065_v59 }
 0x178   :  { %2845 = vmatprep.subr.bf16.mxu0 %v19976_v50  ;;  %2886 = vmatprep.subr.bf16.mxu1 %v19985_v20  ;;  %v20022_v50 = vcombine.low %v2053_v33, %v2057_v54  ;;  %v20024_v20 = vcombine.high %v2060_v7, %v2064_v11  ;;  %v2076_v33 = vld [vmem:[%s21996_s1 + $0x350] sm:$0xff] }
 0x179   :  { %22428 = vst [vmem:[#allocation67_spill] sm:$0xff] %v20012_v49  ;;  %22431 = vst [vmem:[#allocation70_spill] sm:$0xff] %v20030_v36  ;;  %v2080_v54 = vld [vmem:[%s21996_s1 + $0x370] sm:$0xff] }
 0x17a   :  { %22429 = vst [vmem:[#allocation68_spill] sm:$0xff] %v20022_v50  ;;  %22430 = vst [vmem:[#allocation69_spill] sm:$0xff] %v20024_v20 }
 0x17b   :  { %2846 = vmatpush1.bf16.msra.mxu0 %v19988_v44  ;;  %2887 = vmatpush1.bf16.msra.mxu1 %v19998_v48  ;;  %v2073_v44 = vld [vmem:[%s21996_s1 + $0x338] sm:$0xff]  ;;  %v20036_v48 = vcombine.low %v2060_v7, %v2064_v11 }
 0x17c   :  { %2847 = vmatprep.subr.bf16.mxu0 %v20000_v39  ;;  %2888 = vmatprep.subr.bf16.mxu1 %v20009_v56  ;;  %v20046_v56 = vcombine.low %v2061_v21, %v2065_v59  ;;  %v20048_v39 = vcombine.high %v2068_v14, %v2072_v53  ;;  %v2077_v7 = vld [vmem:[%s21996_s1 + $0x358] sm:$0xff]  ;;  %v2084_v21 = vld [vmem:[%s21996_s1 + $0x390] sm:$0xff] }
 0x17d   :  { %22432 = vst [vmem:[#allocation71_spill] sm:$0xff] %v20036_v48  ;;  %v2081_v11 = vld [vmem:[%s21996_s1 + $0x378] sm:$0xff]  ;;  %v2088_v59 = vld [vmem:[%s21996_s1 + $0x3b0] sm:$0xff] }
 0x17e   :  { %22433 = vst [vmem:[#allocation72_spill] sm:$0xff] %v20046_v56  ;;  %22434 = vst [vmem:[#allocation73_spill] sm:$0xff] %v20048_v39 }
 0x17f   :  { %2848 = vmatpush1.bf16.msra.mxu0 %v20012_v49  ;;  %2889 = vmatpush1.bf16.msra.mxu1 %v20022_v50  ;;  %v20057_v49 = vcombine.high %v2069_v34, %v2073_v44  ;;  %v20060_v50 = vcombine.low %v2068_v14, %v2072_v53  ;;  %v2085_v14 = vld [vmem:[%s21996_s1 + $0x398] sm:$0xff] }
 0x180   :  { %2849 = vmatprep.subr.bf16.mxu0 %v20024_v20  ;;  %2890 = vmatprep.subr.bf16.mxu1 %v20030_v36  ;;  %v20070_v20 = vcombine.low %v2069_v34, %v2073_v44  ;;  %v20072_v36 = vcombine.high %v2076_v33, %v2080_v54  ;;  %v2089_v53 = vld [vmem:[%s21996_s1 + $0x3b8] sm:$0xff]  ;;  %v2092_v44 = vld [vmem:[%s21996_s1 + $0x3d0] sm:$0xff] }
 0x181   :  { %22435 = vst [vmem:[#allocation74_spill] sm:$0xff] %v20057_v49  ;;  %22436 = vst [vmem:[#allocation75_spill] sm:$0xff] %v20060_v50  ;;  %v2096_v34 = vld [vmem:[%s21996_s1 + $0x3f0] sm:$0xff] }
 0x182   :  { %22437 = vst [vmem:[#allocation76_spill] sm:$0xff] %v20070_v20  ;;  %22438 = vst [vmem:[#allocation77_spill] sm:$0xff] %v20072_v36 }
 0x183   :  { %2850 = vmatpush1.bf16.msra.mxu0 %v20036_v48  ;;  %2891 = vmatpush1.bf16.msra.mxu1 %v20046_v56  ;;  %v20081_v48 = vcombine.high %v2077_v7, %v2081_v11  ;;  %v20084_v56 = vcombine.low %v2076_v33, %v2080_v54  ;;  %v2093_v33 = vld [vmem:[%s21996_s1 + $0x3d8] sm:$0xff] }
 0x184   :  { %2851 = vmatprep.subr.bf16.mxu0 %v20048_v39  ;;  %2892 = vmatprep.subr.bf16.mxu1 %v20057_v49  ;;  %v20094_v39 = vcombine.low %v2077_v7, %v2081_v11  ;;  %v20096_v49 = vcombine.high %v2084_v21, %v2088_v59  ;;  %v2097_v54 = vld [vmem:[%s21996_s1 + $0x3f8] sm:$0xff]  ;;  %v20112_v7 = vcombine.low %v2085_v14, %v2089_v53 }
 0x185   :  { %22439 = vst [vmem:[#allocation78_spill] sm:$0xff] %v20081_v48  ;;  %v20114_v11 = vcombine.high %v2092_v44, %v2096_v34 }
 0x187   :  { %2852 = vmatpush1.bf16.msra.mxu0 %v20060_v50  ;;  %2893 = vmatpush1.bf16.msra.mxu1 %v20070_v20  ;;  %v20105_v50 = vcombine.high %v2085_v14, %v2089_v53  ;;  %v20108_v20 = vcombine.low %v2084_v21, %v2088_v59  ;;  %v20124_v21 = vcombine.low %v2093_v33, %v2097_v54  ;;  %v20129_v59 = vld [vmem:[%s21995_s0 + $0xc] sm:$0xff] }
 0x188   :  { %2853 = vmatprep.subr.bf16.mxu0 %v20072_v36  ;;  %2894 = vmatprep.subr.bf16.mxu1 %v20081_v48  ;;  %v20117_v36 = vcombine.high %v2093_v33, %v2097_v54  ;;  %v20120_v48 = vcombine.low %v2092_v44, %v2096_v34  ;;  %v20138_v14 = vcombine.high %v20129_v59, %v20129_v59  ;;  %v22464_v44 = vld [vmem:[#allocation31_spill] sm:$0xff]  ;;  %v22465_v34 = vld [vmem:[#allocation32_spill] sm:$0xff]  ;;  %v22466_v33 = vld [vmem:[#allocation33_spill] sm:$0xff] }
 0x189   :  { %v20212_v53 = vcombine.low %v20129_v59, %v20129_v59  ;;  %v22467_v54 = vld [vmem:[#allocation34_spill] sm:$0xff] }
 0x18a   :  { %v22471_v59 = vld [vmem:[#allocation38_spill] sm:$0xff] }
 0x18b   :  { %2854 = vmatpush1.bf16.msra.mxu0 %v20084_v56  ;;  %2895 = vmatpush1.bf16.msra.mxu1 %v20094_v39 }
 0x18c   :  { %2855 = vmatprep.subr.bf16.mxu0 %v20096_v49  ;;  %2896 = vmatprep.subr.bf16.mxu1 %v20105_v50 }
 0x18f   :  { %2856 = vmatpush1.bf16.msra.mxu0 %v20108_v20  ;;  %2897 = vmatpush1.bf16.msra.mxu1 %v20112_v7 }
 0x190   :  { %2857 = vmatprep.subr.bf16.mxu0 %v20114_v11  ;;  %2898 = vmatprep.subr.bf16.mxu1 %v20117_v36 }
 0x193   :  { %2858 = vmatpush1.bf16.msra.mxu0 %v20120_v48  ;;  %2899 = vmatpush1.bf16.msra.mxu1 %v20124_v21 }
 0x194   :  { %3699 = vmatprep.subr.bf16.mxu0 %v19345_v16  ;;  %3740 = vmatprep.subr.bf16.mxu1 %v19357_v52 }
 0x196   :  { %2860 = vmatmul.mubr.bf16.vlgmr.msra.gmra.mrb[20].mxu0 %v19764_v46  ;;  %2901 = vmatmul.mubr.bf16.vlgmr.msra.gmra.mrb[20].mxu1 %v19764_v46  ;;  %v22463_v46 = vld [vmem:[#allocation30_spill] sm:$0xff] }
 0x197   :  { %3700 = vmatpush1.bf16.msra.mxu0 %v19365_v1  ;;  %3741 = vmatpush1.bf16.msra.mxu1 %v19375_v2 }
 0x198   :  { %3701 = vmatprep.subr.bf16.mxu0 %v19377_v61  ;;  %3742 = vmatprep.subr.bf16.mxu1 %v19386_v63 }
 0x199   :  { %3731 = vmatprep.mubr.bf16.mxu0 %v20138_v14  ;;  %3772 = vmatprep.mubr.bf16.mxu1 %v20138_v14 }
 0x19b   :  { %3702 = vmatpush1.bf16.msra.mxu0 %v19395_v6  ;;  %3743 = vmatpush1.bf16.msra.mxu1 %v19405_v12 }
 0x19c   :  { %3703 = vmatprep.subr.bf16.mxu0 %v19407_v22  ;;  %3744 = vmatprep.subr.bf16.mxu1 %v19416_v24 }
 0x19f   :  { %3704 = vmatpush1.bf16.msra.mxu0 %v19421_v25  ;;  %3745 = vmatpush1.bf16.msra.mxu1 %v19431_v40  ;;  %v20172_v40 = vld [vmem:[%s21997_s2] ss:$0 sm:$0xff] }
 0x1a0   :  { %3705 = vmatprep.subr.bf16.mxu0 %v19433_v41  ;;  %3746 = vmatprep.subr.bf16.mxu1 %v19442_v58 }
 0x1a3   :  { %3706 = vmatpush1.bf16.msra.mxu0 %v19445_v0  ;;  %3747 = vmatpush1.bf16.msra.mxu1 %v19455_v31  ;;  %v22440_v31 = vld [vmem:[#allocation7_spill] sm:$0xff] }
 0x1a4   :  { %3707 = vmatprep.subr.bf16.mxu0 %v19457_v32  ;;  %3748 = vmatprep.subr.bf16.mxu1 %v19466_v4  ;;  %v22441_v32 = vld [vmem:[#allocation8_spill] sm:$0xff]  ;;  %v22442_v4 = vld [vmem:[#allocation9_spill] sm:$0xff] }
 0x1a7   :  { %3708 = vmatpush1.bf16.msra.mxu0 %v19469_v57  ;;  %3749 = vmatpush1.bf16.msra.mxu1 %v19479_v8  ;;  %v22443_v57 = vld [vmem:[#allocation10_spill] sm:$0xff]  ;;  %v22444_v8 = vld [vmem:[#allocation11_spill] sm:$0xff] }
 0x1a8   :  { %3709 = vmatprep.subr.bf16.mxu0 %v19481_v9  ;;  %3750 = vmatprep.subr.bf16.mxu1 %v19490_v18  ;;  %v22445_v9 = vld [vmem:[#allocation12_spill] sm:$0xff]  ;;  %v22446_v18 = vld [vmem:[#allocation13_spill] sm:$0xff] }
 0x1a9   :  { %v1825_v16 = vpop.f32.mrb[8].mxu0  ;;  %v1866_v52 = vpop.f32.mrb[8].mxu1 }
 0x1aa   :  { %v1827_v1 = vpop.f32.mrb[9].mxu0  ;;  %v1868_v61 = vpop.f32.mrb[9].mxu1 }
 0x1ab   :  { %v1955_v2 = vmax.f32 %v1825_v16, %v1827_v1  ;;  %v1829_v63 = vpop.f32.mrb[10].mxu0  ;;  %3710 = vmatpush1.bf16.msra.mxu0 %v19493_v19  ;;  %v1956_v6 = vmax.f32 %v1866_v52, %v1868_v61  ;;  %v1870_v12 = vpop.f32.mrb[10].mxu1  ;;  %3751 = vmatpush1.bf16.msra.mxu1 %v19503_v26  ;;  %v22447_v19 = vld [vmem:[#allocation14_spill] sm:$0xff]  ;;  %v22448_v26 = vld [vmem:[#allocation15_spill] sm:$0xff]  ;;  %v22469_v52 = vld [vmem:[#allocation36_spill] sm:$0xff] }
 0x1ac   :  { %v1830_v22 = vpop.f32.mrb[11].mxu0  ;;  %3711 = vmatprep.subr.bf16.mxu0 %v19505_v27  ;;  %v1871_v24 = vpop.f32.mrb[11].mxu1  ;;  %3752 = vmatprep.subr.bf16.mxu1 %v19514_v35  ;;  %v22449_v27 = vld [vmem:[#allocation16_spill] sm:$0xff]  ;;  %v22450_v35 = vld [vmem:[#allocation17_spill] sm:$0xff]  ;;  %v22468_v16 = vld [vmem:[#allocation35_spill] sm:$0xff] }
 0x1ad   :  { %v1957_v25 = vmax.f32 %v1955_v2, %v1956_v6  ;;  %v22470_v1 = vld [vmem:[#allocation37_spill] sm:$0xff]  ;;  %v22472_v2 = vld [vmem:[#allocation39_spill] sm:$0xff]  ;;  %v22473_v61 = vld [vmem:[#allocation40_spill] sm:$0xff] }
 0x1ae   :  { %v22474_v63 = vld [vmem:[#allocation41_spill] sm:$0xff]  ;;  %v22475_v6 = vld [vmem:[#allocation42_spill] sm:$0xff]  ;;  %v22476_v12 = vld [vmem:[#allocation43_spill] sm:$0xff] }
 0x1af   :  { %3712 = vmatpush1.bf16.msra.mxu0 %v19522_v17  ;;  %v1958_v41 = vadd.f32 %v20172_v40, %v1957_v25  ;;  %3753 = vmatpush1.bf16.msra.mxu1 %v19532_v60  ;;  %v22451_v17 = vld [vmem:[#allocation18_spill] sm:$0xff]  ;;  %v22452_v60 = vld [vmem:[#allocation19_spill] sm:$0xff]  ;;  %v22477_v22 = vld [vmem:[#allocation44_spill] sm:$0xff] }
 0x1b0   :  { %3713 = vmatprep.subr.bf16.mxu0 %v19534_v30  ;;  %3754 = vmatprep.subr.bf16.mxu1 %v19543_v37  ;;  %v22453_v30 = vld [vmem:[#allocation20_spill] sm:$0xff]  ;;  %v22454_v37 = vld [vmem:[#allocation21_spill] sm:$0xff]  ;;  %v22479_v25 = vld [vmem:[#allocation46_spill] sm:$0xff] }
 0x1b1   :  { %v1959_v58 = vmax.f32 %v1958_v41, 0.0  ;;  %v22478_v24 = vld [vmem:[#allocation45_spill] sm:$0xff]  ;;  %v22480_v41 = vld [vmem:[#allocation47_spill] sm:$0xff] }
 0x1b3   :  { %3714 = vmatpush1.bf16.msra.mxu0 %v19546_v38  ;;  %v1960_v0 = vpack.c.bf16 %v1959_v58, %v1959_v58  ;;  %3755 = vmatpush1.bf16.msra.mxu1 %v19557_v47  ;;  %v22455_v38 = vld [vmem:[#allocation22_spill] sm:$0xff]  ;;  %v22456_v47 = vld [vmem:[#allocation23_spill] sm:$0xff]  ;;  %v22481_v58 = vld [vmem:[#allocation48_spill] sm:$0xff] }
 0x1b4   :  { %3715 = vmatprep.subr.bf16.mxu0 %v19559_v13  ;;  %3756 = vmatprep.subr.bf16.mxu1 %v19568_v3  ;;  %v22457_v13 = vld [vmem:[#allocation24_spill] sm:$0xff]  ;;  %v22458_v3 = vld [vmem:[#allocation25_spill] sm:$0xff] }
 0x1b5   :  { %1961 = vst [vmem:[#allocation2 + $0x8] sm:$0xf] %v1960_v0  ;;  %v22483_v0 = vld [vmem:[#allocation50_spill] sm:$0xff] }
 0x1b7   :  { %3716 = vmatpush1.bf16.msra.mxu0 %v19571_v10  ;;  %3757 = vmatpush1.bf16.msra.mxu1 %v19581_v28  ;;  %v22459_v10 = vld [vmem:[#allocation26_spill] sm:$0xff]  ;;  %v22460_v28 = vld [vmem:[#allocation27_spill] sm:$0xff] }
 0x1b8   :  { %3717 = vmatprep.subr.bf16.mxu0 %v19583_v29  ;;  %3758 = vmatprep.subr.bf16.mxu1 %v19592_v42  ;;  %v22461_v29 = vld [vmem:[#allocation28_spill] sm:$0xff]  ;;  %v22462_v42 = vld [vmem:[#allocation29_spill] sm:$0xff] }
 0x1bb   :  { %3718 = vmatpush1.bf16.msra.mxu0 %v22440_v31  ;;  %3759 = vmatpush1.bf16.msra.mxu1 %v22441_v32  ;;  %v22484_v31 = vld [vmem:[#allocation51_spill] sm:$0xff]  ;;  %v22485_v32 = vld [vmem:[#allocation52_spill] sm:$0xff] }
 0x1bc   :  { %3719 = vmatprep.subr.bf16.mxu0 %v22442_v4  ;;  %3760 = vmatprep.subr.bf16.mxu1 %v22443_v57  ;;  %v22486_v4 = vld [vmem:[#allocation53_spill] sm:$0xff] }
 0x1bf   :  { %3720 = vmatpush1.bf16.msra.mxu0 %v22444_v8  ;;  %3761 = vmatpush1.bf16.msra.mxu1 %v22445_v9  ;;  %v22487_v8 = vld [vmem:[#allocation54_spill] sm:$0xff] }
 0x1c0   :  { %3721 = vmatprep.subr.bf16.mxu0 %v22446_v18  ;;  %3762 = vmatprep.subr.bf16.mxu1 %v22447_v19 }
 0x1c3   :  { %3722 = vmatpush1.bf16.msra.mxu0 %v22448_v26  ;;  %3763 = vmatpush1.bf16.msra.mxu1 %v22449_v27 }
 0x1c4   :  { %3723 = vmatprep.subr.bf16.mxu0 %v22450_v35  ;;  %3764 = vmatprep.subr.bf16.mxu1 %v22451_v17 }
 0x1c7   :  { %3724 = vmatpush1.bf16.msra.mxu0 %v22452_v60  ;;  %3765 = vmatpush1.bf16.msra.mxu1 %v22453_v30 }
 0x1c8   :  { %3725 = vmatprep.subr.bf16.mxu0 %v22454_v37  ;;  %3766 = vmatprep.subr.bf16.mxu1 %v22455_v38 }
 0x1cb   :  { %3726 = vmatpush1.bf16.msra.mxu0 %v22456_v47  ;;  %3767 = vmatpush1.bf16.msra.mxu1 %v22457_v13  ;;  %v22488_v47 = vld [vmem:[#allocation55_spill] sm:$0xff] }
 0x1cc   :  { %3727 = vmatprep.subr.bf16.mxu0 %v22458_v3  ;;  %3768 = vmatprep.subr.bf16.mxu1 %v22459_v10  ;;  %v22490_v3 = vld [vmem:[#allocation57_spill] sm:$0xff]  ;;  %v22495_v10 = vld [vmem:[#allocation62_spill] sm:$0xff] }
 0x1cf   :  { %3728 = vmatpush1.bf16.msra.mxu0 %v22460_v28  ;;  %3769 = vmatpush1.bf16.msra.mxu1 %v22461_v29  ;;  %v22496_v28 = vld [vmem:[#allocation63_spill] sm:$0xff]  ;;  %v22497_v29 = vld [vmem:[#allocation64_spill] sm:$0xff] }
 0x1d0   :  { %3729 = vmatprep.subr.bf16.mxu0 %v22462_v42  ;;  %3770 = vmatprep.subr.bf16.mxu1 %v22463_v46  ;;  %v22498_v42 = vld [vmem:[#allocation65_spill] sm:$0xff]  ;;  %v22500_v46 = vld [vmem:[#allocation67_spill] sm:$0xff] }
 0x1d3   :  { %3730 = vmatpush1.bf16.msra.mxu0 %v22464_v44  ;;  %3771 = vmatpush1.bf16.msra.mxu1 %v22465_v34  ;;  %v22501_v44 = vld [vmem:[#allocation68_spill] sm:$0xff]  ;;  %v22502_v34 = vld [vmem:[#allocation69_spill] sm:$0xff] }
 0x1d4   :  { %3781 = vmatprep.subr.bf16.mxu0 %v22466_v33  ;;  %3822 = vmatprep.subr.bf16.mxu1 %v22467_v54  ;;  %v22504_v33 = vld [vmem:[#allocation71_spill] sm:$0xff]  ;;  %v22505_v54 = vld [vmem:[#allocation72_spill] sm:$0xff] }
 0x1d6   :  { %3732 = vmatmul.mubr.bf16.vlgmr.msra.gmra.mrb[24].mxu0 %v20212_v53  ;;  %3773 = vmatmul.mubr.bf16.vlgmr.msra.gmra.mrb[24].mxu1 %v20212_v53 }
 0x1d7   :  { %3782 = vmatpush1.bf16.msra.mxu0 %v22468_v16  ;;  %3823 = vmatpush1.bf16.msra.mxu1 %v22469_v52  ;;  %v22506_v16 = vld [vmem:[#allocation73_spill] sm:$0xff]  ;;  %v22507_v52 = vld [vmem:[#allocation74_spill] sm:$0xff] }
 0x1d8   :  { %3783 = vmatprep.subr.bf16.mxu0 %v22470_v1  ;;  %3824 = vmatprep.subr.bf16.mxu1 %v22471_v59  ;;  %v22508_v1 = vld [vmem:[#allocation75_spill] sm:$0xff]  ;;  %v22509_v59 = vld [vmem:[#allocation76_spill] sm:$0xff] }
 0x1d9   :  { %3813 = vmatprep.mubr.bf16.mxu0 %v20138_v14  ;;  %3854 = vmatprep.mubr.bf16.mxu1 %v20138_v14  ;;  %v22482_v14 = vld [vmem:[#allocation49_spill] sm:$0xff] }
 0x1db   :  { %3784 = vmatpush1.bf16.msra.mxu0 %v22472_v2  ;;  %3825 = vmatpush1.bf16.msra.mxu1 %v22473_v61  ;;  %v22510_v2 = vld [vmem:[#allocation77_spill] sm:$0xff]  ;;  %v22511_v61 = vld [vmem:[#allocation78_spill] sm:$0xff] }
 0x1dc   :  { %3785 = vmatprep.subr.bf16.mxu0 %v22474_v63  ;;  %3826 = vmatprep.subr.bf16.mxu1 %v22475_v6  ;;  %v3878_v63 = vld [vmem:[%s21996_s1] sm:$0xff] }
 0x1dd   :  { %v3882_v6 = vld [vmem:[%s21996_s1 + $0x20] sm:$0xff] }
 0x1df   :  { %3786 = vmatpush1.bf16.msra.mxu0 %v22476_v12  ;;  %3827 = vmatpush1.bf16.msra.mxu1 %v22477_v22  ;;  %v3879_v12 = vld [vmem:[%s21996_s1 + $0x8] sm:$0xff]  ;;  %v3890_v22 = vld [vmem:[%s21996_s1 + $0x60] sm:$0xff] }
 0x1e0   :  { %3787 = vmatprep.subr.bf16.mxu0 %v22478_v24  ;;  %3828 = vmatprep.subr.bf16.mxu1 %v22479_v25 }
 0x1e3   :  { %3788 = vmatpush1.bf16.msra.mxu0 %v22480_v41  ;;  %3829 = vmatpush1.bf16.msra.mxu1 %v22481_v58  ;;  %v3894_v58 = vld [vmem:[%s21996_s1 + $0x80] sm:$0xff] }
 0x1e4   :  { %3789 = vmatprep.subr.bf16.mxu0 %v22482_v14  ;;  %3830 = vmatprep.subr.bf16.mxu1 %v22483_v0  ;;  %v3895_v14 = vld [vmem:[%s21996_s1 + $0x88] sm:$0xff] }
 0x1e5   :  { %v3899_v0 = vld [vmem:[%s21996_s1 + $0xa8] sm:$0xff] }
 0x1e7   :  { %3790 = vmatpush1.bf16.msra.mxu0 %v22484_v31  ;;  %3831 = vmatpush1.bf16.msra.mxu1 %v22485_v32 }
 0x1e8   :  { %3791 = vmatprep.subr.bf16.mxu0 %v22486_v4  ;;  %3832 = vmatprep.subr.bf16.mxu1 %v22487_v8  ;;  %v3906_v8 = vld [vmem:[%s21996_s1 + $0xe0] sm:$0xff] }
 0x1e9   :  { %v1907_v57 = vpop.f32.mrb[12].mxu0  ;;  %v1948_v9 = vpop.f32.mrb[12].mxu1 }
 0x1ea   :  { %v1909_v18 = vpop.f32.mrb[13].mxu0  ;;  %v1950_v26 = vpop.f32.mrb[13].mxu1 }
 0x1eb   :  { %v1962_v19 = vmax.f32 %v1907_v57, %v1909_v18  ;;  %v1911_v27 = vpop.f32.mrb[14].mxu0  ;;  %3792 = vmatpush1.bf16.msra.mxu0 %v19891_v45  ;;  %v1963_v35 = vmax.f32 %v1948_v9, %v1950_v26  ;;  %v1952_v17 = vpop.f32.mrb[14].mxu1  ;;  %3833 = vmatpush1.bf16.msra.mxu1 %v19901_v5  ;;  %v22489_v45 = vld [vmem:[#allocation56_spill] sm:$0xff]  ;;  %v20356_v57 = vcombine.high %v3895_v14, %v3899_v0  ;;  %v3903_v9 = vld [vmem:[%s21996_s1 + $0xc8] sm:$0xff] }
 0x1ec   :  { %v1912_v60 = vpop.f32.mrb[15].mxu0  ;;  %3793 = vmatprep.subr.bf16.mxu0 %v19903_v55  ;;  %v1953_v30 = vpop.f32.mrb[15].mxu1  ;;  %3834 = vmatprep.subr.bf16.mxu1 %v19912_v51  ;;  %v22491_v55 = vld [vmem:[#allocation58_spill] sm:$0xff]  ;;  %v22492_v51 = vld [vmem:[#allocation59_spill] sm:$0xff]  ;;  %v20377_v26 = vcombine.low %v3895_v14, %v3899_v0 }
 0x1ed   :  { %v1964_v37 = vmax.f32 %v1962_v19, %v1963_v35  ;;  %v3907_v18 = vld [vmem:[%s21996_s1 + $0xe8] sm:$0xff]  ;;  %v3910_v17 = vld [vmem:[%s21996_s1 + $0x100] sm:$0xff] }
 0x1ee   :  { %v20382_v35 = vcombine.high %v3903_v9, %v3907_v18  ;;  %v3914_v60 = vld [vmem:[%s21996_s1 + $0x120] sm:$0xff]  ;;  %v3911_v30 = vld [vmem:[%s21996_s1 + $0x108] sm:$0xff] }
 0x1ef   :  { %3794 = vmatpush1.bf16.msra.mxu0 %v19915_v62  ;;  %v1965_v38 = vadd.f32 %v20172_v40, %v1964_v37  ;;  %3835 = vmatpush1.bf16.msra.mxu1 %v19925_v23  ;;  %v22493_v62 = vld [vmem:[#allocation60_spill] sm:$0xff]  ;;  %v22494_v23 = vld [vmem:[#allocation61_spill] sm:$0xff]  ;;  %v3915_v37 = vld [vmem:[%s21996_s1 + $0x128] sm:$0xff] }
 0x1f0   :  { %3795 = vmatprep.subr.bf16.mxu0 %v22488_v47  ;;  %3836 = vmatprep.subr.bf16.mxu1 %v22489_v45  ;;  %v20401_v47 = vcombine.low %v3903_v9, %v3907_v18  ;;  %v20403_v45 = vcombine.high %v3910_v17, %v3914_v60  ;;  %v3942_v0 = vld [vmem:[%s21996_s1 + $0x200] sm:$0xff]  ;;  %v3943_v9 = vld [vmem:[%s21996_s1 + $0x208] sm:$0xff] }
 0x1f1   :  { %v1966_v13 = vmax.f32 %v1965_v38, 0.0  ;;  %v3947_v18 = vld [vmem:[%s21996_s1 + $0x228] sm:$0xff] }
 0x1f3   :  { %3796 = vmatpush1.bf16.msra.mxu0 %v22490_v3  ;;  %v1967_v5 = vpack.c.bf16 %v1966_v13, %v1966_v13  ;;  %3837 = vmatpush1.bf16.msra.mxu1 %v19950_v15  ;;  %v22499_v15 = vld [vmem:[#allocation66_spill] sm:$0xff]  ;;  %v20406_v13 = vcombine.high %v3911_v30, %v3915_v37 }
 0x1f4   :  { %3797 = vmatprep.subr.bf16.mxu0 %v22491_v55  ;;  %3838 = vmatprep.subr.bf16.mxu1 %v22492_v51  ;;  %v3918_v3 = vld [vmem:[%s21996_s1 + $0x140] sm:$0xff]  ;;  %v3919_v55 = vld [vmem:[%s21996_s1 + $0x148] sm:$0xff] }
 0x1f5   :  { %1968 = vst [vmem:[#allocation2 + $0xc] sm:$0xf] %v1967_v5  ;;  %v3922_v5 = vld [vmem:[%s21996_s1 + $0x160] sm:$0xff]  ;;  %v3923_v51 = vld [vmem:[%s21996_s1 + $0x168] sm:$0xff] }
 0x1f7   :  { %3798 = vmatpush1.bf16.msra.mxu0 %v19964_v43  ;;  %3839 = vmatpush1.bf16.msra.mxu1 %v22493_v62  ;;  %v22503_v43 = vld [vmem:[#allocation70_spill] sm:$0xff]  ;;  %v20421_v62 = vcombine.low %v3910_v17, %v3914_v60 }
 0x1f8   :  { %3799 = vmatprep.subr.bf16.mxu0 %v22494_v23  ;;  %3840 = vmatprep.subr.bf16.mxu1 %v22495_v10  ;;  %v20425_v23 = vcombine.low %v3911_v30, %v3915_v37  ;;  %v20427_v10 = vcombine.high %v3918_v3, %v3922_v5 }
 0x1fb   :  { %3800 = vmatpush1.bf16.msra.mxu0 %v22496_v28  ;;  %3841 = vmatpush1.bf16.msra.mxu1 %v22497_v29  ;;  %v20430_v28 = vcombine.high %v3919_v55, %v3923_v51  ;;  %v3926_v29 = vld [vmem:[%s21996_s1 + $0x180] sm:$0xff] }
 0x1fc   :  { %3801 = vmatprep.subr.bf16.mxu0 %v22498_v42  ;;  %3842 = vmatprep.subr.bf16.mxu1 %v22499_v15  ;;  %v3930_v42 = vld [vmem:[%s21996_s1 + $0x1a0] sm:$0xff]  ;;  %v3927_v15 = vld [vmem:[%s21996_s1 + $0x188] sm:$0xff] }
 0x1ff   :  { %3802 = vmatpush1.bf16.msra.mxu0 %v22500_v46  ;;  %3843 = vmatpush1.bf16.msra.mxu1 %v22501_v44  ;;  %v3931_v46 = vld [vmem:[%s21996_s1 + $0x1a8] sm:$0xff]  ;;  %v20445_v44 = vcombine.low %v3918_v3, %v3922_v5  ;;  %v20503_v3 = vcombine.high %v3943_v9, %v3947_v18  ;;  %v3950_v5 = vld [vmem:[%s21996_s1 + $0x240] sm:$0xff] }
 0x200   :  { %3803 = vmatprep.subr.bf16.mxu0 %v22502_v34  ;;  %3844 = vmatprep.subr.bf16.mxu1 %v22503_v43  ;;  %v20449_v34 = vcombine.low %v3919_v55, %v3923_v51  ;;  %v20451_v43 = vcombine.high %v3926_v29, %v3930_v42  ;;  %v3951_v51 = vld [vmem:[%s21996_s1 + $0x248] sm:$0xff] }
 0x203   :  { %3804 = vmatpush1.bf16.msra.mxu0 %v22504_v33  ;;  %3845 = vmatpush1.bf16.msra.mxu1 %v22505_v54  ;;  %v20454_v54 = vcombine.high %v3927_v15, %v3931_v46 }
 0x204   :  { %3805 = vmatprep.subr.bf16.mxu0 %v22506_v16  ;;  %3846 = vmatprep.subr.bf16.mxu1 %v22507_v52  ;;  %v3934_v16 = vld [vmem:[%s21996_s1 + $0x1c0] sm:$0xff] }
 0x205   :  { %v3938_v52 = vld [vmem:[%s21996_s1 + $0x1e0] sm:$0xff] }
 0x206   :  { %v20493_v17 = vcombine.low %v3934_v16, %v3938_v52 }
 0x207   :  { %3806 = vmatpush1.bf16.msra.mxu0 %v22508_v1  ;;  %3847 = vmatpush1.bf16.msra.mxu1 %v22509_v59 }
 0x208   :  { %3807 = vmatprep.subr.bf16.mxu0 %v22510_v2  ;;  %3848 = vmatprep.subr.bf16.mxu1 %v22511_v61  ;;  %v3935_v2 = vld [vmem:[%s21996_s1 + $0x1c8] sm:$0xff] }
 0x209   :  { %v3939_v61 = vld [vmem:[%s21996_s1 + $0x1e8] sm:$0xff] }
 0x20a   :  { %v20478_v14 = vcombine.high %v3935_v2, %v3939_v61  ;;  %v20498_v30 = vcombine.low %v3935_v2, %v3939_v61  ;;  %v3963_v2 = vld [vmem:[%s21996_s1 + $0x2a8] sm:$0xff] }
 0x20b   :  { %3808 = vmatpush1.bf16.msra.mxu0 %v20084_v56  ;;  %3849 = vmatpush1.bf16.msra.mxu1 %v20094_v39  ;;  %v3883_v39 = vld [vmem:[%s21996_s1 + $0x28] sm:$0xff]  ;;  %v3886_v56 = vld [vmem:[%s21996_s1 + $0x40] sm:$0xff] }
 0x20c   :  { %3809 = vmatprep.subr.bf16.mxu0 %v20096_v49  ;;  %3850 = vmatprep.subr.bf16.mxu1 %v20105_v50  ;;  %v20294_v49 = vcombine.high %v3878_v63, %v3882_v6  ;;  %v20297_v50 = vcombine.high %v3879_v12, %v3883_v39  ;;  %v20321_v24 = vcombine.low %v3879_v12, %v3883_v39 }
 0x20d   :  { %v20323_v25 = vcombine.high %v3886_v56, %v3890_v22  ;;  %v20347_v31 = vcombine.low %v3886_v56, %v3890_v22  ;;  %v20469_v39 = vcombine.low %v3926_v29, %v3930_v42  ;;  %v3955_v29 = vld [vmem:[%s21996_s1 + $0x268] sm:$0xff] }
 0x20f   :  { %3810 = vmatpush1.bf16.msra.mxu0 %v20108_v20  ;;  %3851 = vmatpush1.bf16.msra.mxu1 %v20112_v7  ;;  %v3887_v20 = vld [vmem:[%s21996_s1 + $0x48] sm:$0xff] }
 0x210   :  { %3811 = vmatprep.subr.bf16.mxu0 %v20114_v11  ;;  %3852 = vmatprep.subr.bf16.mxu1 %v20117_v36  ;;  %v3891_v7 = vld [vmem:[%s21996_s1 + $0x68] sm:$0xff]  ;;  %v20314_v36 = vld [vmem:[%s21995_s0 + $0x10] sm:$0xff]  ;;  %v20317_v11 = vcombine.low %v3878_v63, %v3882_v6 }
 0x211   :  { %v20326_v41 = vcombine.high %v3887_v20, %v3891_v7  ;;  %v20351_v32 = vcombine.low %v3887_v20, %v3891_v7  ;;  %v20473_v7 = vcombine.low %v3927_v15, %v3931_v46  ;;  %v20522_v46 = vcombine.low %v3943_v9, %v3947_v18  ;;  %v3974_v18 = vld [vmem:[%s21996_s1 + $0x300] sm:$0xff] }
 0x213   :  { %3812 = vmatpush1.bf16.msra.mxu0 %v20120_v48  ;;  %3853 = vmatpush1.bf16.msra.mxu1 %v20124_v21  ;;  %v3898_v48 = vld [vmem:[%s21996_s1 + $0xa0] sm:$0xff]  ;;  %v20336_v21 = vcombine.high %v20314_v36, %v20314_v36 }
 0x214   :  { %4653 = vmatprep.subr.bf16.mxu0 %v20294_v49  ;;  %4694 = vmatprep.subr.bf16.mxu1 %v20297_v50  ;;  %v20353_v4 = vcombine.high %v3894_v58, %v3898_v48  ;;  %v20373_v19 = vcombine.low %v3894_v58, %v3898_v48  ;;  %v20475_v58 = vcombine.high %v3934_v16, %v3938_v52  ;;  %v3958_v52 = vld [vmem:[%s21996_s1 + $0x280] sm:$0xff] }
 0x215   :  { %v20527_v16 = vcombine.high %v3951_v51, %v3955_v29 }
 0x216   :  { %3814 = vmatmul.mubr.bf16.vlgmr.msra.gmra.mrb[28].mxu0 %v20212_v53  ;;  %3855 = vmatmul.mubr.bf16.vlgmr.msra.gmra.mrb[28].mxu1 %v20212_v53  ;;  %v3902_v53 = vld [vmem:[%s21996_s1 + $0xc0] sm:$0xff] }
 0x217   :  { %4654 = vmatpush1.bf16.msra.mxu0 %v20317_v11  ;;  %4695 = vmatpush1.bf16.msra.mxu1 %v20321_v24  ;;  %v20379_v27 = vcombine.high %v3902_v53, %v3906_v8  ;;  %v20397_v38 = vcombine.low %v3902_v53, %v3906_v8  ;;  %v3946_v53 = vld [vmem:[%s21996_s1 + $0x220] sm:$0xff] }
 0x218   :  { %4655 = vmatprep.subr.bf16.mxu0 %v20323_v25  ;;  %4696 = vmatprep.subr.bf16.mxu1 %v20326_v41  ;;  %v20500_v37 = vcombine.high %v3942_v0, %v3946_v53  ;;  %v20518_v42 = vcombine.low %v3942_v0, %v3946_v53 }
 0x219   :  { %4685 = vmatprep.mubr.bf16.mxu0 %v20336_v21  ;;  %4726 = vmatprep.mubr.bf16.mxu1 %v20336_v21 }
 0x21b   :  { %4656 = vmatpush1.bf16.msra.mxu0 %v20347_v31  ;;  %4697 = vmatpush1.bf16.msra.mxu1 %v20351_v32 }
 0x21c   :  { %4657 = vmatprep.subr.bf16.mxu0 %v20353_v4  ;;  %4698 = vmatprep.subr.bf16.mxu1 %v20356_v57 }
 0x21f   :  { %4658 = vmatpush1.bf16.msra.mxu0 %v20373_v19  ;;  %4699 = vmatpush1.bf16.msra.mxu1 %v20377_v26 }
 0x220   :  { %4659 = vmatprep.subr.bf16.mxu0 %v20379_v27  ;;  %4700 = vmatprep.subr.bf16.mxu1 %v20382_v35 }
 0x223   :  { %4660 = vmatpush1.bf16.msra.mxu0 %v20397_v38  ;;  %4701 = vmatpush1.bf16.msra.mxu1 %v20401_v47 }
 0x224   :  { %4661 = vmatprep.subr.bf16.mxu0 %v20403_v45  ;;  %4702 = vmatprep.subr.bf16.mxu1 %v20406_v13 }
 0x227   :  { %4662 = vmatpush1.bf16.msra.mxu0 %v20421_v62  ;;  %4703 = vmatpush1.bf16.msra.mxu1 %v20425_v23 }
 0x228   :  { %4663 = vmatprep.subr.bf16.mxu0 %v20427_v10  ;;  %4704 = vmatprep.subr.bf16.mxu1 %v20430_v28 }
 0x229   :  { %v2779_v33 = vpop.f32.mrb[16].mxu0  ;;  %v2820_v1 = vpop.f32.mrb[16].mxu1 }
 0x22a   :  { %v2781_v59 = vpop.f32.mrb[17].mxu0  ;;  %v2822_v6 = vpop.f32.mrb[17].mxu1 }
 0x22b   :  { %v2909_v63 = vmax.f32 %v2779_v33, %v2781_v59  ;;  %v2783_v12 = vpop.f32.mrb[18].mxu0  ;;  %4664 = vmatpush1.bf16.msra.mxu0 %v20445_v44  ;;  %v2910_v56 = vmax.f32 %v2820_v1, %v2822_v6  ;;  %v2824_v22 = vpop.f32.mrb[18].mxu1  ;;  %4705 = vmatpush1.bf16.msra.mxu1 %v20449_v34  ;;  %v3962_v1 = vld [vmem:[%s21996_s1 + $0x2a0] sm:$0xff]  ;;  %v3959_v59 = vld [vmem:[%s21996_s1 + $0x288] sm:$0xff] }
 0x22c   :  { %v2784_v20 = vpop.f32.mrb[19].mxu0  ;;  %4665 = vmatprep.subr.bf16.mxu0 %v20451_v43  ;;  %v2825_v48 = vpop.f32.mrb[19].mxu1  ;;  %4706 = vmatprep.subr.bf16.mxu1 %v20454_v54  ;;  %v20548_v6 = vcombine.high %v3958_v52, %v3962_v1  ;;  %v20551_v12 = vcombine.high %v3959_v59, %v3963_v2  ;;  %v3970_v22 = vld [vmem:[%s21996_s1 + $0x2e0] sm:$0xff]  ;;  %v20566_v0 = vcombine.low %v3958_v52, %v3962_v1 }
 0x22d   :  { %v2911_v8 = vmax.f32 %v2909_v63, %v2910_v56  ;;  %v20546_v63 = vcombine.low %v3951_v51, %v3955_v29  ;;  %v3966_v56 = vld [vmem:[%s21996_s1 + $0x2c0] sm:$0xff]  ;;  %v3967_v20 = vld [vmem:[%s21996_s1 + $0x2c8] sm:$0xff]  ;;  %v20570_v53 = vcombine.low %v3959_v59, %v3963_v2 }
 0x22e   :  { %22514 = vst [vmem:[#allocation9_spill] sm:$0xff] %v20548_v6  ;;  %22515 = vst [vmem:[#allocation10_spill] sm:$0xff] %v20551_v12  ;;  %v3971_v48 = vld [vmem:[%s21996_s1 + $0x2e8] sm:$0xff]  ;;  %v3982_v52 = vld [vmem:[%s21996_s1 + $0x340] sm:$0xff] }
 0x22f   :  { %4666 = vmatpush1.bf16.msra.mxu0 %v20469_v39  ;;  %v2912_v60 = vadd.f32 %v20172_v40, %v2911_v8  ;;  %4707 = vmatpush1.bf16.msra.mxu1 %v20473_v7  ;;  %v3954_v40 = vld [vmem:[%s21996_s1 + $0x260] sm:$0xff]  ;;  %22513 = vst [vmem:[#allocation8_spill] sm:$0xff] %v20546_v63  ;;  %22516 = vst [vmem:[#allocation11_spill] sm:$0xff] %v20566_v0  ;;  %v20572_v8 = vcombine.high %v3966_v56, %v3970_v22  ;;  %v3983_v59 = vld [vmem:[%s21996_s1 + $0x348] sm:$0xff] }
 0x230   :  { %4667 = vmatprep.subr.bf16.mxu0 %v20475_v58  ;;  %4708 = vmatprep.subr.bf16.mxu1 %v20478_v14  ;;  %v20524_v33 = vcombine.high %v3950_v5, %v3954_v40  ;;  %v20542_v61 = vcombine.low %v3950_v5, %v3954_v40  ;;  %22517 = vst [vmem:[#allocation12_spill] sm:$0xff] %v20570_v53  ;;  %v3975_v5 = vld [vmem:[%s21996_s1 + $0x308] sm:$0xff]  ;;  %v3986_v1 = vld [vmem:[%s21996_s1 + $0x360] sm:$0xff] }
 0x231   :  { %v2913_v55 = vmax.f32 %v2912_v60, 0.0  ;;  %22518 = vst [vmem:[#allocation13_spill] sm:$0xff] %v20572_v8  ;;  %v20575_v9 = vcombine.high %v3967_v20, %v3971_v48  ;;  %v3978_v60 = vld [vmem:[%s21996_s1 + $0x320] sm:$0xff]  ;;  %v3979_v40 = vld [vmem:[%s21996_s1 + $0x328] sm:$0xff]  ;;  %v20594_v51 = vcombine.low %v3967_v20, %v3971_v48  ;;  %v20620_v20 = vcombine.high %v3982_v52, %v3986_v1 }
 0x232   :  { %22512 = vst [vmem:[#allocation7_spill] sm:$0xff] %v20542_v61  ;;  %v20596_v29 = vcombine.high %v3974_v18, %v3978_v60  ;;  %v3987_v2 = vld [vmem:[%s21996_s1 + $0x368] sm:$0xff] }
 0x233   :  { %4668 = vmatpush1.bf16.msra.mxu0 %v20493_v17  ;;  %v2914_v15 = vpack.c.bf16 %v2913_v55, %v2913_v55  ;;  %4709 = vmatpush1.bf16.msra.mxu1 %v20498_v30  ;;  %22519 = vst [vmem:[#allocation14_spill] sm:$0xff] %v20575_v9  ;;  %v20590_v55 = vcombine.low %v3966_v56, %v3970_v22  ;;  %22521 = vst [vmem:[#allocation16_spill] sm:$0xff] %v20594_v51 }
 0x234   :  { %4669 = vmatprep.subr.bf16.mxu0 %v20500_v37  ;;  %4710 = vmatprep.subr.bf16.mxu1 %v20503_v3  ;;  %22522 = vst [vmem:[#allocation17_spill] sm:$0xff] %v20596_v29  ;;  %v20614_v56 = vcombine.low %v3974_v18, %v3978_v60  ;;  %v20618_v22 = vcombine.low %v3975_v5, %v3979_v40  ;;  %22526 = vst [vmem:[#allocation21_spill] sm:$0xff] %v20620_v20  ;;  %v3994_v18 = vld [vmem:[%s21996_s1 + $0x3a0] sm:$0xff]  ;;  %v3991_v60 = vld [vmem:[%s21996_s1 + $0x388] sm:$0xff] }
 0x235   :  { %2915 = vst [vmem:[#allocation2 + $0x10] sm:$0xf] %v2914_v15  ;;  %22520 = vst [vmem:[#allocation15_spill] sm:$0xff] %v20590_v55  ;;  %v20599_v15 = vcombine.high %v3975_v5, %v3979_v40  ;;  %v20623_v48 = vcombine.high %v3983_v59, %v3987_v2  ;;  %v3995_v5 = vld [vmem:[%s21996_s1 + $0x3a8] sm:$0xff]  ;;  %v20638_v40 = vcombine.low %v3982_v52, %v3986_v1  ;;  %v4002_v52 = vld [vmem:[%s21996_s1 + $0x3e0] sm:$0xff] }
 0x236   :  { %22524 = vst [vmem:[#allocation19_spill] sm:$0xff] %v20614_v56  ;;  %22525 = vst [vmem:[#allocation20_spill] sm:$0xff] %v20618_v22  ;;  %v3999_v1 = vld [vmem:[%s21996_s1 + $0x3c8] sm:$0xff] }
 0x237   :  { %4670 = vmatpush1.bf16.msra.mxu0 %v20518_v42  ;;  %4711 = vmatpush1.bf16.msra.mxu1 %v20522_v46  ;;  %22523 = vst [vmem:[#allocation18_spill] sm:$0xff] %v20599_v15  ;;  %22527 = vst [vmem:[#allocation22_spill] sm:$0xff] %v20623_v48 }
 0x238   :  { %4671 = vmatprep.subr.bf16.mxu0 %v20524_v33  ;;  %4712 = vmatprep.subr.bf16.mxu1 %v20527_v16  ;;  %22528 = vst [vmem:[#allocation23_spill] sm:$0xff] %v20638_v40 }
 0x23b   :  { %4672 = vmatpush1.bf16.msra.mxu0 %v20542_v61  ;;  %4713 = vmatpush1.bf16.msra.mxu1 %v20546_v63 }
 0x23c   :  { %4673 = vmatprep.subr.bf16.mxu0 %v20548_v6  ;;  %4714 = vmatprep.subr.bf16.mxu1 %v20551_v12 }
 0x23f   :  { %4674 = vmatpush1.bf16.msra.mxu0 %v20566_v0  ;;  %4715 = vmatpush1.bf16.msra.mxu1 %v20570_v53 }
 0x240   :  { %4675 = vmatprep.subr.bf16.mxu0 %v20572_v8  ;;  %4716 = vmatprep.subr.bf16.mxu1 %v20575_v9  ;;  %v3990_v9 = vld [vmem:[%s21996_s1 + $0x380] sm:$0xff] }
 0x243   :  { %4676 = vmatpush1.bf16.msra.mxu0 %v20590_v55  ;;  %4717 = vmatpush1.bf16.msra.mxu1 %v20594_v51  ;;  %v20647_v51 = vcombine.high %v3991_v60, %v3995_v5  ;;  %v3998_v55 = vld [vmem:[%s21996_s1 + $0x3c0] sm:$0xff] }
 0x244   :  { %4677 = vmatprep.subr.bf16.mxu0 %v20596_v29  ;;  %4718 = vmatprep.subr.bf16.mxu1 %v20599_v15  ;;  %v20642_v15 = vcombine.low %v3983_v59, %v3987_v2  ;;  %v20644_v29 = vcombine.high %v3990_v9, %v3994_v18  ;;  %v4003_v59 = vld [vmem:[%s21996_s1 + $0x3e8] sm:$0xff]  ;;  %v20662_v2 = vcombine.low %v3990_v9, %v3994_v18  ;;  %v3884_v9 = vld [vmem:[%s21996_s1 + $0x30] sm:$0xff]  ;;  %v3881_v18 = vld [vmem:[%s21996_s1 + $0x18] sm:$0xff] }
 0x245   :  { %22531 = vst [vmem:[#allocation26_spill] sm:$0xff] %v20647_v51 }
 0x246   :  { %22529 = vst [vmem:[#allocation24_spill] sm:$0xff] %v20642_v15  ;;  %22530 = vst [vmem:[#allocation25_spill] sm:$0xff] %v20644_v29 }
 0x247   :  { %4678 = vmatpush1.bf16.msra.mxu0 %v20614_v56  ;;  %4719 = vmatpush1.bf16.msra.mxu1 %v20618_v22  ;;  %22532 = vst [vmem:[#allocation27_spill] sm:$0xff] %v20662_v2  ;;  %v20671_v22 = vcombine.high %v3999_v1, %v4003_v59  ;;  %v3880_v56 = vld [vmem:[%s21996_s1 + $0x10] sm:$0xff] }
 0x248   :  { %4679 = vmatprep.subr.bf16.mxu0 %v20620_v20  ;;  %4720 = vmatprep.subr.bf16.mxu1 %v20623_v48  ;;  %v20666_v48 = vcombine.low %v3991_v60, %v3995_v5  ;;  %v20668_v20 = vcombine.high %v3998_v55, %v4002_v52  ;;  %v3885_v60 = vld [vmem:[%s21996_s1 + $0x38] sm:$0xff]  ;;  %v20686_v5 = vcombine.low %v3998_v55, %v4002_v52  ;;  %v3892_v55 = vld [vmem:[%s21996_s1 + $0x70] sm:$0xff] }
 0x249   :  { %22535 = vst [vmem:[#allocation30_spill] sm:$0xff] %v20671_v22  ;;  %v20705_v52 = vcombine.low %v20314_v36, %v20314_v36 }
 0x24a   :  { %22533 = vst [vmem:[#allocation28_spill] sm:$0xff] %v20666_v48  ;;  %22534 = vst [vmem:[#allocation29_spill] sm:$0xff] %v20668_v20 }
 0x24b   :  { %4680 = vmatpush1.bf16.msra.mxu0 %v20638_v40  ;;  %4721 = vmatpush1.bf16.msra.mxu1 %v20642_v15  ;;  %22536 = vst [vmem:[#allocation31_spill] sm:$0xff] %v20686_v5  ;;  %v20695_v15 = vcombine.high %v3881_v18, %v3885_v60  ;;  %v3888_v40 = vld [vmem:[%s21996_s1 + $0x50] sm:$0xff] }
 0x24c   :  { %4681 = vmatprep.subr.bf16.mxu0 %v20644_v29  ;;  %4722 = vmatprep.subr.bf16.mxu1 %v20647_v51  ;;  %v20690_v51 = vcombine.low %v3999_v1, %v4003_v59  ;;  %v20692_v29 = vcombine.high %v3880_v56, %v3884_v9  ;;  %v3889_v1 = vld [vmem:[%s21996_s1 + $0x58] sm:$0xff]  ;;  %v20720_v36 = vcombine.high %v3888_v40, %v3892_v55 }
 0x24d   :  { %22539 = vst [vmem:[#allocation34_spill] sm:$0xff] %v20695_v15  ;;  %v3893_v59 = vld [vmem:[%s21996_s1 + $0x78] sm:$0xff] }
 0x24e   :  { %22537 = vst [vmem:[#allocation32_spill] sm:$0xff] %v20690_v51  ;;  %22538 = vst [vmem:[#allocation33_spill] sm:$0xff] %v20692_v29 }
 0x24f   :  { %4682 = vmatpush1.bf16.msra.mxu0 %v20662_v2  ;;  %4723 = vmatpush1.bf16.msra.mxu1 %v20666_v48  ;;  %22542 = vst [vmem:[#allocation37_spill] sm:$0xff] %v20720_v36  ;;  %v20723_v48 = vcombine.high %v3889_v1, %v3893_v59  ;;  %v3896_v2 = vld [vmem:[%s21996_s1 + $0x90] sm:$0xff] }
 0x250   :  { %4683 = vmatprep.subr.bf16.mxu0 %v20668_v20  ;;  %4724 = vmatprep.subr.bf16.mxu1 %v20671_v22  ;;  %v20714_v22 = vcombine.low %v3880_v56, %v3884_v9  ;;  %v20718_v20 = vcombine.low %v3881_v18, %v3885_v60  ;;  %v3900_v56 = vld [vmem:[%s21996_s1 + $0xb0] sm:$0xff]  ;;  %v3897_v9 = vld [vmem:[%s21996_s1 + $0x98] sm:$0xff]  ;;  %v20740_v60 = vcombine.low %v3888_v40, %v3892_v55 }
 0x251   :  { %22543 = vst [vmem:[#allocation38_spill] sm:$0xff] %v20723_v48  ;;  %v3901_v18 = vld [vmem:[%s21996_s1 + $0xb8] sm:$0xff]  ;;  %v3908_v40 = vld [vmem:[%s21996_s1 + $0xf0] sm:$0xff] }
 0x252   :  { %22540 = vst [vmem:[#allocation35_spill] sm:$0xff] %v20714_v22  ;;  %22541 = vst [vmem:[#allocation36_spill] sm:$0xff] %v20718_v20  ;;  %v3905_v55 = vld [vmem:[%s21996_s1 + $0xd8] sm:$0xff] }
 0x253   :  { %4684 = vmatpush1.bf16.msra.mxu0 %v20686_v5  ;;  %4725 = vmatpush1.bf16.msra.mxu1 %v20690_v51  ;;  %22544 = vst [vmem:[#allocation39_spill] sm:$0xff] %v20740_v60  ;;  %v20749_v51 = vcombine.high %v3897_v9, %v3901_v18  ;;  %v3904_v5 = vld [vmem:[%s21996_s1 + $0xd0] sm:$0xff] }
 0x254   :  { %4735 = vmatprep.subr.bf16.mxu0 %v20692_v29  ;;  %4776 = vmatprep.subr.bf16.mxu1 %v20695_v15  ;;  %v20744_v15 = vcombine.low %v3889_v1, %v3893_v59  ;;  %v20746_v29 = vcombine.high %v3896_v2, %v3900_v56  ;;  %v3909_v1 = vld [vmem:[%s21996_s1 + $0xf8] sm:$0xff]  ;;  %v20766_v59 = vcombine.low %v3896_v2, %v3900_v56  ;;  %v3916_v2 = vld [vmem:[%s21996_s1 + $0x130] sm:$0xff] }
 0x255   :  { %22547 = vst [vmem:[#allocation42_spill] sm:$0xff] %v20749_v51  ;;  %v3913_v56 = vld [vmem:[%s21996_s1 + $0x118] sm:$0xff] }
 0x256   :  { %4686 = vmatmul.mubr.bf16.vlgmr.msra.gmra.mrb[32].mxu0 %v20705_v52  ;;  %4727 = vmatmul.mubr.bf16.vlgmr.msra.gmra.mrb[32].mxu1 %v20705_v52  ;;  %22545 = vst [vmem:[#allocation40_spill] sm:$0xff] %v20744_v15  ;;  %22546 = vst [vmem:[#allocation41_spill] sm:$0xff] %v20746_v29 }
 0x257   :  { %4736 = vmatpush1.bf16.msra.mxu0 %v20714_v22  ;;  %4777 = vmatpush1.bf16.msra.mxu1 %v20718_v20  ;;  %22548 = vst [vmem:[#allocation43_spill] sm:$0xff] %v20766_v59  ;;  %v20775_v20 = vcombine.high %v3905_v55, %v3909_v1  ;;  %v3936_v22 = vld [vmem:[%s21996_s1 + $0x1d0] sm:$0xff] }
 0x258   :  { %4737 = vmatprep.subr.bf16.mxu0 %v20720_v36  ;;  %4778 = vmatprep.subr.bf16.mxu1 %v20723_v48  ;;  %v20770_v48 = vcombine.low %v3897_v9, %v3901_v18  ;;  %v20772_v36 = vcombine.high %v3904_v5, %v3908_v40  ;;  %v3917_v9 = vld [vmem:[%s21996_s1 + $0x138] sm:$0xff]  ;;  %v20790_v18 = vcombine.low %v3904_v5, %v3908_v40  ;;  %v3924_v5 = vld [vmem:[%s21996_s1 + $0x170] sm:$0xff] }
 0x259   :  { %4767 = vmatprep.mubr.bf16.mxu0 %v20336_v21  ;;  %4808 = vmatprep.mubr.bf16.mxu1 %v20336_v21  ;;  %22551 = vst [vmem:[#allocation46_spill] sm:$0xff] %v20775_v20  ;;  %v3912_v21 = vld [vmem:[%s21996_s1 + $0x110] sm:$0xff]  ;;  %v3921_v40 = vld [vmem:[%s21996_s1 + $0x158] sm:$0xff] }
 0x25a   :  { %22549 = vst [vmem:[#allocation44_spill] sm:$0xff] %v20770_v48  ;;  %22550 = vst [vmem:[#allocation45_spill] sm:$0xff] %v20772_v36 }
 0x25b   :  { %4738 = vmatpush1.bf16.msra.mxu0 %v20740_v60  ;;  %4779 = vmatpush1.bf16.msra.mxu1 %v20744_v15  ;;  %22552 = vst [vmem:[#allocation47_spill] sm:$0xff] %v20790_v18  ;;  %v20799_v15 = vcombine.high %v3913_v56, %v3917_v9  ;;  %v3920_v60 = vld [vmem:[%s21996_s1 + $0x150] sm:$0xff] }
 0x25c   :  { %4739 = vmatprep.subr.bf16.mxu0 %v20746_v29  ;;  %4780 = vmatprep.subr.bf16.mxu1 %v20749_v51  ;;  %v20794_v51 = vcombine.low %v3905_v55, %v3909_v1  ;;  %v20796_v29 = vcombine.high %v3912_v21, %v3916_v2  ;;  %v3925_v55 = vld [vmem:[%s21996_s1 + $0x178] sm:$0xff]  ;;  %v20814_v1 = vcombine.low %v3912_v21, %v3916_v2  ;;  %v3932_v21 = vld [vmem:[%s21996_s1 + $0x1b0] sm:$0xff] }
 0x25d   :  { %22555 = vst [vmem:[#allocation50_spill] sm:$0xff] %v20799_v15  ;;  %v3929_v2 = vld [vmem:[%s21996_s1 + $0x198] sm:$0xff] }
 0x25e   :  { %22553 = vst [vmem:[#allocation48_spill] sm:$0xff] %v20794_v51  ;;  %22554 = vst [vmem:[#allocation49_spill] sm:$0xff] %v20796_v29 }
 0x25f   :  { %4740 = vmatpush1.bf16.msra.mxu0 %v20766_v59  ;;  %4781 = vmatpush1.bf16.msra.mxu1 %v20770_v48  ;;  %22556 = vst [vmem:[#allocation51_spill] sm:$0xff] %v20814_v1  ;;  %v20823_v48 = vcombine.high %v3921_v40, %v3925_v55  ;;  %v3928_v59 = vld [vmem:[%s21996_s1 + $0x190] sm:$0xff] }
 0x260   :  { %4741 = vmatprep.subr.bf16.mxu0 %v20772_v36  ;;  %4782 = vmatprep.subr.bf16.mxu1 %v20775_v20  ;;  %v20818_v20 = vcombine.low %v3913_v56, %v3917_v9  ;;  %v20820_v36 = vcombine.high %v3920_v60, %v3924_v5  ;;  %v3933_v56 = vld [vmem:[%s21996_s1 + $0x1b8] sm:$0xff]  ;;  %v20838_v9 = vcombine.low %v3920_v60, %v3924_v5  ;;  %v3940_v60 = vld [vmem:[%s21996_s1 + $0x1f0] sm:$0xff] }
 0x261   :  { %22559 = vst [vmem:[#allocation54_spill] sm:$0xff] %v20823_v48  ;;  %v20862_v8 = vcombine.low %v3928_v59, %v3932_v21  ;;  %v20866_v6 = vcombine.low %v3929_v2, %v3933_v56  ;;  %v20868_v63 = vcombine.high %v3936_v22, %v3940_v60 }
 0x262   :  { %22557 = vst [vmem:[#allocation52_spill] sm:$0xff] %v20818_v20  ;;  %22558 = vst [vmem:[#allocation53_spill] sm:$0xff] %v20820_v36 }
 0x263   :  { %4742 = vmatpush1.bf16.msra.mxu0 %v20790_v18  ;;  %4783 = vmatpush1.bf16.msra.mxu1 %v20794_v51  ;;  %v20847_v18 = vcombine.high %v3929_v2, %v3933_v56  ;;  %22560 = vst [vmem:[#allocation55_spill] sm:$0xff] %v20866_v6  ;;  %22561 = vst [vmem:[#allocation56_spill] sm:$0xff] %v20868_v63  ;;  %v3956_v56 = vld [vmem:[%s21996_s1 + $0x270] sm:$0xff] }
 0x264   :  { %4743 = vmatprep.subr.bf16.mxu0 %v20796_v29  ;;  %4784 = vmatprep.subr.bf16.mxu1 %v20799_v15  ;;  %v20842_v15 = vcombine.low %v3921_v40, %v3925_v55  ;;  %v20844_v29 = vcombine.high %v3928_v59, %v3932_v21  ;;  %v3937_v40 = vld [vmem:[%s21996_s1 + $0x1d8] sm:$0xff]  ;;  %v20886_v59 = vcombine.low %v3936_v22, %v3940_v60  ;;  %v3952_v22 = vld [vmem:[%s21996_s1 + $0x250] sm:$0xff] }
 0x265   :  { %v3941_v55 = vld [vmem:[%s21996_s1 + $0x1f8] sm:$0xff] }
 0x267   :  { %4744 = vmatpush1.bf16.msra.mxu0 %v20814_v1  ;;  %4785 = vmatpush1.bf16.msra.mxu1 %v20818_v20 }
 0x268   :  { %4745 = vmatprep.subr.bf16.mxu0 %v20820_v36  ;;  %4786 = vmatprep.subr.bf16.mxu1 %v20823_v48 }
 0x269   :  { %v2861_v51 = vpop.f32.mrb[20].mxu0  ;;  %v2902_v5 = vpop.f32.mrb[20].mxu1 }
 0x26a   :  { %v2863_v20 = vpop.f32.mrb[21].mxu0  ;;  %v2904_v36 = vpop.f32.mrb[21].mxu1 }
 0x26b   :  { %v2916_v48 = vmax.f32 %v2861_v51, %v2863_v20  ;;  %v2865_v1 = vpop.f32.mrb[22].mxu0  ;;  %4746 = vmatpush1.bf16.msra.mxu0 %v20838_v9  ;;  %v2917_v53 = vmax.f32 %v2902_v5, %v2904_v36  ;;  %v2906_v0 = vpop.f32.mrb[22].mxu1  ;;  %4787 = vmatpush1.bf16.msra.mxu1 %v20842_v15  ;;  %v20871_v51 = vcombine.high %v3937_v40, %v3941_v55  ;;  %v3944_v20 = vld [vmem:[%s21996_s1 + $0x210] sm:$0xff]  ;;  %v3945_v36 = vld [vmem:[%s21996_s1 + $0x218] sm:$0xff] }
 0x26c   :  { %v2866_v12 = vpop.f32.mrb[23].mxu0  ;;  %4747 = vmatprep.subr.bf16.mxu0 %v20844_v29  ;;  %v2907_v61 = vpop.f32.mrb[23].mxu1  ;;  %4788 = vmatprep.subr.bf16.mxu1 %v20847_v18  ;;  %v3948_v0 = vld [vmem:[%s21996_s1 + $0x230] sm:$0xff]  ;;  %v20891_v1 = vld [vmem:[%s21997_s2] ss:$0 sm:$0xff]  ;;  %v3953_v5 = vld [vmem:[%s21996_s1 + $0x258] sm:$0xff] }
 0x26d   :  { %22562 = vst [vmem:[#allocation57_spill] sm:$0xff] %v20871_v51  ;;  %v2918_v12 = vmax.f32 %v2916_v48, %v2917_v53  ;;  %v3949_v61 = vld [vmem:[%s21996_s1 + $0x238] sm:$0xff]  ;;  %v20896_v53 = vcombine.low %v3937_v40, %v3941_v55  ;;  %v20898_v48 = vcombine.high %v3944_v20, %v3948_v0  ;;  %v20916_v55 = vcombine.low %v3944_v20, %v3948_v0  ;;  %v3964_v20 = vld [vmem:[%s21996_s1 + $0x2b0] sm:$0xff] }
 0x26e   :  { %v20901_v2 = vcombine.high %v3945_v36, %v3949_v61  ;;  %v3957_v40 = vld [vmem:[%s21996_s1 + $0x278] sm:$0xff] }
 0x26f   :  { %4748 = vmatpush1.bf16.msra.mxu0 %v20862_v8  ;;  %v2919_v21 = vadd.f32 %v20891_v1, %v2918_v12  ;;  %4789 = vmatpush1.bf16.msra.mxu1 %v20866_v6  ;;  %22563 = vst [vmem:[#allocation58_spill] sm:$0xff] %v20898_v48  ;;  %22565 = vst [vmem:[#allocation60_spill] sm:$0xff] %v20916_v55  ;;  %v3960_v6 = vld [vmem:[%s21996_s1 + $0x290] sm:$0xff]  ;;  %v3961_v0 = vld [vmem:[%s21996_s1 + $0x298] sm:$0xff] }
 0x270   :  { %4749 = vmatprep.subr.bf16.mxu0 %v20868_v63  ;;  %4790 = vmatprep.subr.bf16.mxu1 %v20871_v51  ;;  %22564 = vst [vmem:[#allocation59_spill] sm:$0xff] %v20901_v2  ;;  %v20920_v51 = vcombine.low %v3945_v36, %v3949_v61  ;;  %v20925_v63 = vcombine.high %v3953_v5, %v3957_v40  ;;  %v3965_v36 = vld [vmem:[%s21996_s1 + $0x2b8] sm:$0xff] }
 0x271   :  { %v2920_v60 = vmax.f32 %v2919_v21, 0.0  ;;  %v20922_v21 = vcombine.high %v3952_v22, %v3956_v56  ;;  %v20940_v61 = vcombine.low %v3952_v22, %v3956_v56  ;;  %v3972_v22 = vld [vmem:[%s21996_s1 + $0x2f0] sm:$0xff]  ;;  %v3969_v56 = vld [vmem:[%s21996_s1 + $0x2d8] sm:$0xff] }
 0x272   :  { %22566 = vst [vmem:[#allocation61_spill] sm:$0xff] %v20920_v51  ;;  %22568 = vst [vmem:[#allocation63_spill] sm:$0xff] %v20925_v63 }
 0x273   :  { %4750 = vmatpush1.bf16.msra.mxu0 %v20886_v59  ;;  %v2921_v12 = vpack.c.bf16 %v2920_v60, %v2920_v60  ;;  %4791 = vmatpush1.bf16.msra.mxu1 %v20896_v53  ;;  %22567 = vst [vmem:[#allocation62_spill] sm:$0xff] %v20922_v21  ;;  %22569 = vst [vmem:[#allocation64_spill] sm:$0xff] %v20940_v61  ;;  %v20944_v60 = vcombine.low %v3953_v5, %v3957_v40  ;;  %v3973_v5 = vld [vmem:[%s21996_s1 + $0x2f8] sm:$0xff] }
 0x274   :  { %4751 = vmatprep.subr.bf16.mxu0 %v20898_v48  ;;  %4792 = vmatprep.subr.bf16.mxu1 %v20901_v2  ;;  %v20946_v2 = vcombine.high %v3960_v6, %v3964_v20  ;;  %v3968_v48 = vld [vmem:[%s21996_s1 + $0x2d0] sm:$0xff]  ;;  %v20964_v40 = vcombine.low %v3960_v6, %v3964_v20  ;;  %v3977_v20 = vld [vmem:[%s21996_s1 + $0x318] sm:$0xff] }
 0x275   :  { %2922 = vst [vmem:[#allocation2 + $0x14] sm:$0xf] %v2921_v12  ;;  %22570 = vst [vmem:[#allocation65_spill] sm:$0xff] %v20944_v60  ;;  %v20949_v12 = vcombine.high %v3961_v0, %v3965_v36  ;;  %v3980_v6 = vld [vmem:[%s21996_s1 + $0x330] sm:$0xff] }
 0x276   :  { %22571 = vst [vmem:[#allocation66_spill] sm:$0xff] %v20946_v2  ;;  %22573 = vst [vmem:[#allocation68_spill] sm:$0xff] %v20964_v40 }
 0x277   :  { %4752 = vmatpush1.bf16.msra.mxu0 %v20916_v55  ;;  %4793 = vmatpush1.bf16.msra.mxu1 %v20920_v51  ;;  %22572 = vst [vmem:[#allocation67_spill] sm:$0xff] %v20949_v12  ;;  %v20973_v51 = vcombine.high %v3969_v56, %v3973_v5  ;;  %v3976_v55 = vld [vmem:[%s21996_s1 + $0x310] sm:$0xff] }
 0x278   :  { %4753 = vmatprep.subr.bf16.mxu0 %v20922_v21  ;;  %4794 = vmatprep.subr.bf16.mxu1 %v20925_v63  ;;  %v20968_v63 = vcombine.low %v3961_v0, %v3965_v36  ;;  %v20970_v21 = vcombine.high %v3968_v48, %v3972_v22  ;;  %v3981_v0 = vld [vmem:[%s21996_s1 + $0x338] sm:$0xff]  ;;  %v20988_v36 = vcombine.low %v3968_v48, %v3972_v22  ;;  %v3988_v48 = vld [vmem:[%s21996_s1 + $0x370] sm:$0xff] }
 0x279   :  { %22576 = vst [vmem:[#allocation71_spill] sm:$0xff] %v20973_v51  ;;  %v3985_v22 = vld [vmem:[%s21996_s1 + $0x358] sm:$0xff] }
 0x27a   :  { %22574 = vst [vmem:[#allocation69_spill] sm:$0xff] %v20968_v63  ;;  %22575 = vst [vmem:[#allocation70_spill] sm:$0xff] %v20970_v21 }
 0x27b   :  { %4754 = vmatpush1.bf16.msra.mxu0 %v20940_v61  ;;  %4795 = vmatpush1.bf16.msra.mxu1 %v20944_v60  ;;  %22577 = vst [vmem:[#allocation72_spill] sm:$0xff] %v20988_v36  ;;  %v20997_v60 = vcombine.high %v3977_v20, %v3981_v0  ;;  %v3984_v61 = vld [vmem:[%s21996_s1 + $0x350] sm:$0xff] }
 0x27c   :  { %4755 = vmatprep.subr.bf16.mxu0 %v20946_v2  ;;  %4796 = vmatprep.subr.bf16.mxu1 %v20949_v12  ;;  %v20992_v12 = vcombine.low %v3969_v56, %v3973_v5  ;;  %v20994_v2 = vcombine.high %v3976_v55, %v3980_v6  ;;  %v3989_v56 = vld [vmem:[%s21996_s1 + $0x378] sm:$0xff]  ;;  %v21012_v5 = vcombine.low %v3976_v55, %v3980_v6  ;;  %v3996_v55 = vld [vmem:[%s21996_s1 + $0x3b0] sm:$0xff] }
 0x27d   :  { %22580 = vst [vmem:[#allocation75_spill] sm:$0xff] %v20997_v60  ;;  %v3993_v6 = vld [vmem:[%s21996_s1 + $0x398] sm:$0xff] }
 0x27e   :  { %22578 = vst [vmem:[#allocation73_spill] sm:$0xff] %v20992_v12  ;;  %22579 = vst [vmem:[#allocation74_spill] sm:$0xff] %v20994_v2 }
 0x27f   :  { %4756 = vmatpush1.bf16.msra.mxu0 %v20964_v40  ;;  %4797 = vmatpush1.bf16.msra.mxu1 %v20968_v63  ;;  %22581 = vst [vmem:[#allocation76_spill] sm:$0xff] %v21012_v5  ;;  %v21021_v63 = vcombine.high %v3985_v22, %v3989_v56  ;;  %v3992_v40 = vld [vmem:[%s21996_s1 + $0x390] sm:$0xff] }
 0x280   :  { %4757 = vmatprep.subr.bf16.mxu0 %v20970_v21  ;;  %4798 = vmatprep.subr.bf16.mxu1 %v20973_v51  ;;  %v21016_v51 = vcombine.low %v3977_v20, %v3981_v0  ;;  %v21018_v21 = vcombine.high %v3984_v61, %v3988_v48  ;;  %v3997_v20 = vld [vmem:[%s21996_s1 + $0x3b8] sm:$0xff]  ;;  %v21036_v0 = vcombine.low %v3984_v61, %v3988_v48  ;;  %v4004_v61 = vld [vmem:[%s21996_s1 + $0x3f0] sm:$0xff] }
 0x281   :  { %22584 = vst [vmem:[#allocation79_spill] sm:$0xff] %v21021_v63  ;;  %v4001_v48 = vld [vmem:[%s21996_s1 + $0x3d8] sm:$0xff] }
 0x282   :  { %22582 = vst [vmem:[#allocation77_spill] sm:$0xff] %v21016_v51  ;;  %22583 = vst [vmem:[#allocation78_spill] sm:$0xff] %v21018_v21 }
 0x283   :  { %4758 = vmatpush1.bf16.msra.mxu0 %v20988_v36  ;;  %4799 = vmatpush1.bf16.msra.mxu1 %v20992_v12  ;;  %v21045_v12 = vcombine.high %v3993_v6, %v3997_v20  ;;  %v4000_v36 = vld [vmem:[%s21996_s1 + $0x3d0] sm:$0xff] }
 0x284   :  { %4759 = vmatprep.subr.bf16.mxu0 %v20994_v2  ;;  %4800 = vmatprep.subr.bf16.mxu1 %v20997_v60  ;;  %v21040_v60 = vcombine.low %v3985_v22, %v3989_v56  ;;  %v21042_v2 = vcombine.high %v3992_v40, %v3996_v55  ;;  %v4005_v22 = vld [vmem:[%s21996_s1 + $0x3f8] sm:$0xff]  ;;  %v21060_v56 = vcombine.low %v3992_v40, %v3996_v55 }
 0x285   :  { %v21076_v40 = vcombine.low %v4001_v48, %v4005_v22  ;;  %v21082_v55 = vld [vmem:[%s21995_s0 + $0x14] sm:$0xff] }
 0x287   :  { %4760 = vmatpush1.bf16.msra.mxu0 %v21012_v5  ;;  %4801 = vmatpush1.bf16.msra.mxu1 %v21016_v51  ;;  %v21069_v51 = vcombine.high %v4001_v48, %v4005_v22  ;;  %v21072_v5 = vcombine.low %v4000_v36, %v4004_v61  ;;  %v22612_v48 = vld [vmem:[#allocation34_spill] sm:$0xff]  ;;  %v22613_v22 = vld [vmem:[#allocation35_spill] sm:$0xff] }
 0x288   :  { %4761 = vmatprep.subr.bf16.mxu0 %v21018_v21  ;;  %4802 = vmatprep.subr.bf16.mxu1 %v21021_v63  ;;  %v21064_v63 = vcombine.low %v3993_v6, %v3997_v20  ;;  %v21066_v21 = vcombine.high %v4000_v36, %v4004_v61  ;;  %v21090_v36 = vcombine.high %v21082_v55, %v21082_v55  ;;  %v22609_v6 = vld [vmem:[#allocation31_spill] sm:$0xff]  ;;  %v22610_v20 = vld [vmem:[#allocation32_spill] sm:$0xff]  ;;  %v22611_v61 = vld [vmem:[#allocation33_spill] sm:$0xff] }
 0x28b   :  { %4762 = vmatpush1.bf16.msra.mxu0 %v21036_v0  ;;  %4803 = vmatpush1.bf16.msra.mxu1 %v21040_v60 }
 0x28c   :  { %4763 = vmatprep.subr.bf16.mxu0 %v21042_v2  ;;  %4804 = vmatprep.subr.bf16.mxu1 %v21045_v12 }
 0x28f   :  { %4764 = vmatpush1.bf16.msra.mxu0 %v21060_v56  ;;  %4805 = vmatpush1.bf16.msra.mxu1 %v21064_v63 }
 0x290   :  { %4765 = vmatprep.subr.bf16.mxu0 %v21066_v21  ;;  %4806 = vmatprep.subr.bf16.mxu1 %v21069_v51 }
 0x293   :  { %4766 = vmatpush1.bf16.msra.mxu0 %v21072_v5  ;;  %4807 = vmatpush1.bf16.msra.mxu1 %v21076_v40 }
 0x294   :  { %5607 = vmatprep.subr.bf16.mxu0 %v20294_v49  ;;  %5648 = vmatprep.subr.bf16.mxu1 %v20297_v50 }
 0x296   :  { %4768 = vmatmul.mubr.bf16.vlgmr.msra.gmra.mrb[36].mxu0 %v20705_v52  ;;  %4809 = vmatmul.mubr.bf16.vlgmr.msra.gmra.mrb[36].mxu1 %v20705_v52  ;;  %v21159_v52 = vcombine.low %v21082_v55, %v21082_v55  ;;  %v22616_v55 = vld [vmem:[#allocation38_spill] sm:$0xff] }
 0x297   :  { %5608 = vmatpush1.bf16.msra.mxu0 %v20317_v11  ;;  %5649 = vmatpush1.bf16.msra.mxu1 %v20321_v24 }
 0x298   :  { %5609 = vmatprep.subr.bf16.mxu0 %v20323_v25  ;;  %5650 = vmatprep.subr.bf16.mxu1 %v20326_v41 }
 0x299   :  { %5639 = vmatprep.mubr.bf16.mxu0 %v21090_v36  ;;  %5680 = vmatprep.mubr.bf16.mxu1 %v21090_v36 }
 0x29b   :  { %5610 = vmatpush1.bf16.msra.mxu0 %v20347_v31  ;;  %5651 = vmatpush1.bf16.msra.mxu1 %v20351_v32 }
 0x29c   :  { %5611 = vmatprep.subr.bf16.mxu0 %v20353_v4  ;;  %5652 = vmatprep.subr.bf16.mxu1 %v20356_v57 }
 0x29f   :  { %5612 = vmatpush1.bf16.msra.mxu0 %v20373_v19  ;;  %5653 = vmatpush1.bf16.msra.mxu1 %v20377_v26 }
 0x2a0   :  { %5613 = vmatprep.subr.bf16.mxu0 %v20379_v27  ;;  %5654 = vmatprep.subr.bf16.mxu1 %v20382_v35 }
 0x2a3   :  { %5614 = vmatpush1.bf16.msra.mxu0 %v20397_v38  ;;  %5655 = vmatpush1.bf16.msra.mxu1 %v20401_v47  ;;  %v22585_v38 = vld [vmem:[#allocation7_spill] sm:$0xff]  ;;  %v22586_v47 = vld [vmem:[#allocation8_spill] sm:$0xff] }
 0x2a4   :  { %5615 = vmatprep.subr.bf16.mxu0 %v20403_v45  ;;  %5656 = vmatprep.subr.bf16.mxu1 %v20406_v13  ;;  %v22587_v45 = vld [vmem:[#allocation9_spill] sm:$0xff]  ;;  %v22588_v13 = vld [vmem:[#allocation10_spill] sm:$0xff] }
 0x2a7   :  { %5616 = vmatpush1.bf16.msra.mxu0 %v20421_v62  ;;  %5657 = vmatpush1.bf16.msra.mxu1 %v20425_v23  ;;  %v22589_v62 = vld [vmem:[#allocation11_spill] sm:$0xff]  ;;  %v22590_v23 = vld [vmem:[#allocation12_spill] sm:$0xff] }
 0x2a8   :  { %5617 = vmatprep.subr.bf16.mxu0 %v20427_v10  ;;  %5658 = vmatprep.subr.bf16.mxu1 %v20430_v28  ;;  %v22591_v10 = vld [vmem:[#allocation13_spill] sm:$0xff]  ;;  %v22592_v28 = vld [vmem:[#allocation14_spill] sm:$0xff] }
 0x2a9   :  { %v3733_v49 = vpop.f32.mrb[24].mxu0  ;;  %v3774_v50 = vpop.f32.mrb[24].mxu1 }
 0x2aa   :  { %v3735_v11 = vpop.f32.mrb[25].mxu0  ;;  %v3776_v25 = vpop.f32.mrb[25].mxu1 }
 0x2ab   :  { %v3863_v24 = vmax.f32 %v3733_v49, %v3735_v11  ;;  %v3737_v41 = vpop.f32.mrb[26].mxu0  ;;  %5618 = vmatpush1.bf16.msra.mxu0 %v20445_v44  ;;  %v3864_v31 = vmax.f32 %v3774_v50, %v3776_v25  ;;  %v3778_v32 = vpop.f32.mrb[26].mxu1  ;;  %5659 = vmatpush1.bf16.msra.mxu1 %v20449_v34  ;;  %v22593_v44 = vld [vmem:[#allocation15_spill] sm:$0xff]  ;;  %v22594_v34 = vld [vmem:[#allocation16_spill] sm:$0xff]  ;;  %v22615_v50 = vld [vmem:[#allocation37_spill] sm:$0xff] }
 0x2ac   :  { %v3738_v4 = vpop.f32.mrb[27].mxu0  ;;  %5619 = vmatprep.subr.bf16.mxu0 %v20451_v43  ;;  %v3779_v57 = vpop.f32.mrb[27].mxu1  ;;  %5660 = vmatprep.subr.bf16.mxu1 %v20454_v54  ;;  %v22595_v43 = vld [vmem:[#allocation17_spill] sm:$0xff]  ;;  %v22596_v54 = vld [vmem:[#allocation18_spill] sm:$0xff]  ;;  %v22614_v49 = vld [vmem:[#allocation36_spill] sm:$0xff] }
 0x2ad   :  { %v3865_v19 = vmax.f32 %v3863_v24, %v3864_v31  ;;  %v22617_v11 = vld [vmem:[#allocation39_spill] sm:$0xff]  ;;  %v22618_v24 = vld [vmem:[#allocation40_spill] sm:$0xff]  ;;  %v22619_v25 = vld [vmem:[#allocation41_spill] sm:$0xff] }
 0x2ae   :  { %v22620_v41 = vld [vmem:[#allocation42_spill] sm:$0xff]  ;;  %v22621_v31 = vld [vmem:[#allocation43_spill] sm:$0xff]  ;;  %v22622_v32 = vld [vmem:[#allocation44_spill] sm:$0xff] }
 0x2af   :  { %5620 = vmatpush1.bf16.msra.mxu0 %v20469_v39  ;;  %v3866_v26 = vadd.f32 %v20891_v1, %v3865_v19  ;;  %5661 = vmatpush1.bf16.msra.mxu1 %v20473_v7  ;;  %v22597_v39 = vld [vmem:[#allocation19_spill] sm:$0xff]  ;;  %v22598_v7 = vld [vmem:[#allocation20_spill] sm:$0xff]  ;;  %v22623_v4 = vld [vmem:[#allocation45_spill] sm:$0xff] }
 0x2b0   :  { %5621 = vmatprep.subr.bf16.mxu0 %v20475_v58  ;;  %5662 = vmatprep.subr.bf16.mxu1 %v20478_v14  ;;  %v22599_v58 = vld [vmem:[#allocation21_spill] sm:$0xff]  ;;  %v22600_v14 = vld [vmem:[#allocation22_spill] sm:$0xff]  ;;  %v22625_v19 = vld [vmem:[#allocation47_spill] sm:$0xff] }
 0x2b1   :  { %v3867_v27 = vmax.f32 %v3866_v26, 0.0  ;;  %v22624_v57 = vld [vmem:[#allocation46_spill] sm:$0xff]  ;;  %v22626_v26 = vld [vmem:[#allocation48_spill] sm:$0xff] }
 0x2b3   :  { %5622 = vmatpush1.bf16.msra.mxu0 %v20493_v17  ;;  %v3868_v35 = vpack.c.bf16 %v3867_v27, %v3867_v27  ;;  %5663 = vmatpush1.bf16.msra.mxu1 %v20498_v30  ;;  %v22601_v17 = vld [vmem:[#allocation23_spill] sm:$0xff]  ;;  %v22602_v30 = vld [vmem:[#allocation24_spill] sm:$0xff]  ;;  %v22628_v27 = vld [vmem:[#allocation50_spill] sm:$0xff] }
 0x2b4   :  { %5623 = vmatprep.subr.bf16.mxu0 %v20500_v37  ;;  %5664 = vmatprep.subr.bf16.mxu1 %v20503_v3  ;;  %v22603_v37 = vld [vmem:[#allocation25_spill] sm:$0xff]  ;;  %v22604_v3 = vld [vmem:[#allocation26_spill] sm:$0xff] }
 0x2b5   :  { %3869 = vst [vmem:[#allocation2 + $0x18] sm:$0xf] %v3868_v35  ;;  %v22629_v35 = vld [vmem:[#allocation51_spill] sm:$0xff] }
 0x2b7   :  { %5624 = vmatpush1.bf16.msra.mxu0 %v20518_v42  ;;  %5665 = vmatpush1.bf16.msra.mxu1 %v20522_v46  ;;  %v22605_v42 = vld [vmem:[#allocation27_spill] sm:$0xff]  ;;  %v22606_v46 = vld [vmem:[#allocation28_spill] sm:$0xff] }
 0x2b8   :  { %5625 = vmatprep.subr.bf16.mxu0 %v20524_v33  ;;  %5666 = vmatprep.subr.bf16.mxu1 %v20527_v16  ;;  %v22607_v33 = vld [vmem:[#allocation29_spill] sm:$0xff]  ;;  %v22608_v16 = vld [vmem:[#allocation30_spill] sm:$0xff] }
 0x2bb   :  { %5626 = vmatpush1.bf16.msra.mxu0 %v22585_v38  ;;  %5667 = vmatpush1.bf16.msra.mxu1 %v22586_v47  ;;  %v22630_v38 = vld [vmem:[#allocation52_spill] sm:$0xff]  ;;  %v22631_v47 = vld [vmem:[#allocation53_spill] sm:$0xff] }
 0x2bc   :  { %5627 = vmatprep.subr.bf16.mxu0 %v22587_v45  ;;  %5668 = vmatprep.subr.bf16.mxu1 %v22588_v13  ;;  %v22632_v13 = vld [vmem:[#allocation54_spill] sm:$0xff] }
 0x2bf   :  { %5628 = vmatpush1.bf16.msra.mxu0 %v22589_v62  ;;  %5669 = vmatpush1.bf16.msra.mxu1 %v22590_v23 }
 0x2c0   :  { %5629 = vmatprep.subr.bf16.mxu0 %v22591_v10  ;;  %5670 = vmatprep.subr.bf16.mxu1 %v22592_v28 }
 0x2c3   :  { %5630 = vmatpush1.bf16.msra.mxu0 %v22593_v44  ;;  %5671 = vmatpush1.bf16.msra.mxu1 %v22594_v34 }
 0x2c4   :  { %5631 = vmatprep.subr.bf16.mxu0 %v22595_v43  ;;  %5672 = vmatprep.subr.bf16.mxu1 %v22596_v54 }
 0x2c7   :  { %5632 = vmatpush1.bf16.msra.mxu0 %v22597_v39  ;;  %5673 = vmatpush1.bf16.msra.mxu1 %v22598_v7 }
 0x2c8   :  { %5633 = vmatprep.subr.bf16.mxu0 %v22599_v58  ;;  %5674 = vmatprep.subr.bf16.mxu1 %v22600_v14  ;;  %v22633_v14 = vld [vmem:[#allocation55_spill] sm:$0xff] }
 0x2cb   :  { %5634 = vmatpush1.bf16.msra.mxu0 %v22601_v17  ;;  %5675 = vmatpush1.bf16.msra.mxu1 %v22602_v30  ;;  %v22634_v17 = vld [vmem:[#allocation56_spill] sm:$0xff] }
 0x2cc   :  { %5635 = vmatprep.subr.bf16.mxu0 %v22603_v37  ;;  %5676 = vmatprep.subr.bf16.mxu1 %v22604_v3  ;;  %v22639_v37 = vld [vmem:[#allocation61_spill] sm:$0xff]  ;;  %v22640_v3 = vld [vmem:[#allocation62_spill] sm:$0xff] }
 0x2cf   :  { %5636 = vmatpush1.bf16.msra.mxu0 %v22605_v42  ;;  %5677 = vmatpush1.bf16.msra.mxu1 %v22606_v46  ;;  %v22641_v42 = vld [vmem:[#allocation63_spill] sm:$0xff]  ;;  %v22642_v46 = vld [vmem:[#allocation64_spill] sm:$0xff] }
 0x2d0   :  { %5637 = vmatprep.subr.bf16.mxu0 %v22607_v33  ;;  %5678 = vmatprep.subr.bf16.mxu1 %v22608_v16  ;;  %v22643_v33 = vld [vmem:[#allocation65_spill] sm:$0xff]  ;;  %v22646_v16 = vld [vmem:[#allocation68_spill] sm:$0xff] }
 0x2d3   :  { %5638 = vmatpush1.bf16.msra.mxu0 %v22609_v6  ;;  %5679 = vmatpush1.bf16.msra.mxu1 %v22610_v20  ;;  %v22647_v6 = vld [vmem:[#allocation69_spill] sm:$0xff]  ;;  %v22648_v20 = vld [vmem:[#allocation70_spill] sm:$0xff] }
 0x2d4   :  { %5689 = vmatprep.subr.bf16.mxu0 %v22611_v61  ;;  %5730 = vmatprep.subr.bf16.mxu1 %v22612_v48  ;;  %v22649_v61 = vld [vmem:[#allocation71_spill] sm:$0xff]  ;;  %v22650_v48 = vld [vmem:[#allocation72_spill] sm:$0xff] }
 0x2d6   :  { %5640 = vmatmul.mubr.bf16.vlgmr.msra.gmra.mrb[40].mxu0 %v21159_v52  ;;  %5681 = vmatmul.mubr.bf16.vlgmr.msra.gmra.mrb[40].mxu1 %v21159_v52 }
 0x2d7   :  { %5690 = vmatpush1.bf16.msra.mxu0 %v22613_v22  ;;  %5731 = vmatpush1.bf16.msra.mxu1 %v22614_v49  ;;  %v22651_v22 = vld [vmem:[#allocation73_spill] sm:$0xff]  ;;  %v22652_v49 = vld [vmem:[#allocation74_spill] sm:$0xff] }
 0x2d8   :  { %5691 = vmatprep.subr.bf16.mxu0 %v22615_v50  ;;  %5732 = vmatprep.subr.bf16.mxu1 %v22616_v55  ;;  %v22653_v50 = vld [vmem:[#allocation75_spill] sm:$0xff]  ;;  %v22654_v55 = vld [vmem:[#allocation76_spill] sm:$0xff] }
 0x2d9   :  { %5721 = vmatprep.mubr.bf16.mxu0 %v21090_v36  ;;  %5762 = vmatprep.mubr.bf16.mxu1 %v21090_v36  ;;  %v22627_v36 = vld [vmem:[#allocation49_spill] sm:$0xff] }
 0x2db   :  { %5692 = vmatpush1.bf16.msra.mxu0 %v22617_v11  ;;  %5733 = vmatpush1.bf16.msra.mxu1 %v22618_v24  ;;  %v22655_v11 = vld [vmem:[#allocation77_spill] sm:$0xff]  ;;  %v22656_v24 = vld [vmem:[#allocation78_spill] sm:$0xff] }
 0x2dc   :  { %5693 = vmatprep.subr.bf16.mxu0 %v22619_v25  ;;  %5734 = vmatprep.subr.bf16.mxu1 %v22620_v41  ;;  %v22657_v25 = vld [vmem:[#allocation79_spill] sm:$0xff]  ;;  %v5786_v41 = vld [vmem:[%s21996_s1] sm:$0xff] }
 0x2df   :  { %5694 = vmatpush1.bf16.msra.mxu0 %v22621_v31  ;;  %5735 = vmatpush1.bf16.msra.mxu1 %v22622_v32  ;;  %v5790_v31 = vld [vmem:[%s21996_s1 + $0x20] sm:$0xff]  ;;  %v5787_v32 = vld [vmem:[%s21996_s1 + $0x8] sm:$0xff] }
 0x2e0   :  { %5695 = vmatprep.subr.bf16.mxu0 %v22623_v4  ;;  %5736 = vmatprep.subr.bf16.mxu1 %v22624_v57  ;;  %v5798_v4 = vld [vmem:[%s21996_s1 + $0x60] sm:$0xff] }
 0x2e3   :  { %5696 = vmatpush1.bf16.msra.mxu0 %v22625_v19  ;;  %5737 = vmatpush1.bf16.msra.mxu1 %v22626_v26 }
 0x2e4   :  { %5697 = vmatprep.subr.bf16.mxu0 %v22627_v36  ;;  %5738 = vmatprep.subr.bf16.mxu1 %v22628_v27  ;;  %v5802_v36 = vld [vmem:[%s21996_s1 + $0x80] sm:$0xff] }
 0x2e5   :  { %v5806_v27 = vld [vmem:[%s21996_s1 + $0xa0] sm:$0xff] }
 0x2e7   :  { %5698 = vmatpush1.bf16.msra.mxu0 %v22629_v35  ;;  %5739 = vmatpush1.bf16.msra.mxu1 %v22630_v38 }
 0x2e8   :  { %5699 = vmatprep.subr.bf16.mxu0 %v22631_v47  ;;  %5740 = vmatprep.subr.bf16.mxu1 %v22632_v13 }
 0x2e9   :  { %v3815_v45 = vpop.f32.mrb[28].mxu0  ;;  %v3856_v62 = vpop.f32.mrb[28].mxu1 }
 0x2ea   :  { %v3817_v23 = vpop.f32.mrb[29].mxu0  ;;  %v3858_v28 = vpop.f32.mrb[29].mxu1 }
 0x2eb   :  { %v3870_v10 = vmax.f32 %v3815_v45, %v3817_v23  ;;  %v3819_v44 = vpop.f32.mrb[30].mxu0  ;;  %5700 = vmatpush1.bf16.msra.mxu0 %v20838_v9  ;;  %v3871_v34 = vmax.f32 %v3856_v62, %v3858_v28  ;;  %v3860_v43 = vpop.f32.mrb[30].mxu1  ;;  %5741 = vmatpush1.bf16.msra.mxu1 %v20842_v15  ;;  %v22635_v9 = vld [vmem:[#allocation57_spill] sm:$0xff]  ;;  %v15382_v45 = vcombine.high %v5802_v36, %v5806_v27 }
 0x2ec   :  { %v3820_v54 = vpop.f32.mrb[31].mxu0  ;;  %5701 = vmatprep.subr.bf16.mxu0 %v20844_v29  ;;  %v3861_v39 = vpop.f32.mrb[31].mxu1  ;;  %5742 = vmatprep.subr.bf16.mxu1 %v20847_v18  ;;  %v22636_v29 = vld [vmem:[#allocation58_spill] sm:$0xff]  ;;  %v22637_v18 = vld [vmem:[#allocation59_spill] sm:$0xff]  ;;  %v15381_v28 = vcombine.low %v5802_v36, %v5806_v27 }
 0x2ed   :  { %v3872_v7 = vmax.f32 %v3870_v10, %v3871_v34  ;;  %v5810_v62 = vld [vmem:[%s21996_s1 + $0xc0] sm:$0xff]  ;;  %v5815_v10 = vld [vmem:[%s21996_s1 + $0xe8] sm:$0xff] }
 0x2ee   :  { %v5814_v23 = vld [vmem:[%s21996_s1 + $0xe0] sm:$0xff]  ;;  %v5851_v36 = vld [vmem:[%s21996_s1 + $0x208] sm:$0xff] }
 0x2ef   :  { %5702 = vmatpush1.bf16.msra.mxu0 %v20862_v8  ;;  %v3873_v58 = vadd.f32 %v20891_v1, %v3872_v7  ;;  %5743 = vmatpush1.bf16.msra.mxu1 %v22633_v14  ;;  %v22638_v8 = vld [vmem:[#allocation60_spill] sm:$0xff]  ;;  %v15390_v34 = vcombine.high %v5810_v62, %v5814_v23  ;;  %v5818_v54 = vld [vmem:[%s21996_s1 + $0x100] sm:$0xff]  ;;  %v5819_v7 = vld [vmem:[%s21996_s1 + $0x108] sm:$0xff]  ;;  %v15389_v14 = vcombine.low %v5810_v62, %v5814_v23 }
 0x2f0   :  { %5703 = vmatprep.subr.bf16.mxu0 %v22634_v17  ;;  %5744 = vmatprep.subr.bf16.mxu1 %v22635_v9  ;;  %v5822_v39 = vld [vmem:[%s21996_s1 + $0x120] sm:$0xff]  ;;  %v5855_v27 = vld [vmem:[%s21996_s1 + $0x228] sm:$0xff] }
 0x2f1   :  { %v3874_v30 = vmax.f32 %v3873_v58, 0.0  ;;  %v5823_v58 = vld [vmem:[%s21996_s1 + $0x128] sm:$0xff]  ;;  %v15398_v9 = vcombine.high %v5818_v54, %v5822_v39  ;;  %v5862_v62 = vld [vmem:[%s21996_s1 + $0x260] sm:$0xff] }
 0x2f3   :  { %5704 = vmatpush1.bf16.msra.mxu0 %v20886_v59  ;;  %v3875_v15 = vpack.c.bf16 %v3874_v30, %v3874_v30  ;;  %5745 = vmatpush1.bf16.msra.mxu1 %v20896_v53  ;;  %v22644_v59 = vld [vmem:[#allocation66_spill] sm:$0xff]  ;;  %v22645_v53 = vld [vmem:[#allocation67_spill] sm:$0xff]  ;;  %v15400_v30 = vcombine.high %v5819_v7, %v5823_v58 }
 0x2f4   :  { %5705 = vmatprep.subr.bf16.mxu0 %v22636_v29  ;;  %5746 = vmatprep.subr.bf16.mxu1 %v22637_v18  ;;  %v5830_v29 = vld [vmem:[%s21996_s1 + $0x160] sm:$0xff]  ;;  %v5827_v18 = vld [vmem:[%s21996_s1 + $0x148] sm:$0xff] }
 0x2f5   :  { %3876 = vst [vmem:[#allocation2 + $0x1c] sm:$0xf] %v3875_v15  ;;  %v5826_v15 = vld [vmem:[%s21996_s1 + $0x140] sm:$0xff] }
 0x2f7   :  { %5706 = vmatpush1.bf16.msra.mxu0 %v22638_v8  ;;  %5747 = vmatpush1.bf16.msra.mxu1 %v22639_v37  ;;  %v5831_v8 = vld [vmem:[%s21996_s1 + $0x168] sm:$0xff]  ;;  %v15397_v37 = vcombine.low %v5818_v54, %v5822_v39  ;;  %v5866_v54 = vld [vmem:[%s21996_s1 + $0x280] sm:$0xff] }
 0x2f8   :  { %5707 = vmatprep.subr.bf16.mxu0 %v22640_v3  ;;  %5748 = vmatprep.subr.bf16.mxu1 %v22641_v42  ;;  %v15399_v3 = vcombine.low %v5819_v7, %v5823_v58  ;;  %v15406_v42 = vcombine.high %v5826_v15, %v5830_v29  ;;  %v5870_v39 = vld [vmem:[%s21996_s1 + $0x2a0] sm:$0xff]  ;;  %v5867_v7 = vld [vmem:[%s21996_s1 + $0x288] sm:$0xff] }
 0x2f9   :  { %v5871_v58 = vld [vmem:[%s21996_s1 + $0x2a8] sm:$0xff] }
 0x2fb   :  { %5708 = vmatpush1.bf16.msra.mxu0 %v22642_v46  ;;  %5749 = vmatpush1.bf16.msra.mxu1 %v22643_v33  ;;  %v15408_v46 = vcombine.high %v5827_v18, %v5831_v8  ;;  %v5834_v33 = vld [vmem:[%s21996_s1 + $0x180] sm:$0xff] }
 0x2fc   :  { %5709 = vmatprep.subr.bf16.mxu0 %v22644_v59  ;;  %5750 = vmatprep.subr.bf16.mxu1 %v22645_v53  ;;  %v5838_v59 = vld [vmem:[%s21996_s1 + $0x1a0] sm:$0xff]  ;;  %v5835_v53 = vld [vmem:[%s21996_s1 + $0x188] sm:$0xff] }
 0x2ff   :  { %5710 = vmatpush1.bf16.msra.mxu0 %v22646_v16  ;;  %5751 = vmatpush1.bf16.msra.mxu1 %v22647_v6  ;;  %v5839_v16 = vld [vmem:[%s21996_s1 + $0x1a8] sm:$0xff]  ;;  %v15405_v6 = vcombine.low %v5826_v15, %v5830_v29  ;;  %v5874_v15 = vld [vmem:[%s21996_s1 + $0x2c0] sm:$0xff] }
 0x300   :  { %5711 = vmatprep.subr.bf16.mxu0 %v22648_v20  ;;  %5752 = vmatprep.subr.bf16.mxu1 %v22649_v61  ;;  %v15407_v20 = vcombine.low %v5827_v18, %v5831_v8  ;;  %v15414_v61 = vcombine.high %v5834_v33, %v5838_v59  ;;  %v5878_v29 = vld [vmem:[%s21996_s1 + $0x2e0] sm:$0xff]  ;;  %v5875_v18 = vld [vmem:[%s21996_s1 + $0x2c8] sm:$0xff] }
 0x301   :  { %v5879_v8 = vld [vmem:[%s21996_s1 + $0x2e8] sm:$0xff] }
 0x303   :  { %5712 = vmatpush1.bf16.msra.mxu0 %v22650_v48  ;;  %5753 = vmatpush1.bf16.msra.mxu1 %v22651_v22  ;;  %v15416_v22 = vcombine.high %v5835_v53, %v5839_v16 }
 0x304   :  { %5713 = vmatprep.subr.bf16.mxu0 %v22652_v49  ;;  %5754 = vmatprep.subr.bf16.mxu1 %v22653_v50  ;;  %v5842_v49 = vld [vmem:[%s21996_s1 + $0x1c0] sm:$0xff] }
 0x305   :  { %v5846_v50 = vld [vmem:[%s21996_s1 + $0x1e0] sm:$0xff] }
 0x307   :  { %5714 = vmatpush1.bf16.msra.mxu0 %v22654_v55  ;;  %5755 = vmatpush1.bf16.msra.mxu1 %v22655_v11 }
 0x308   :  { %5715 = vmatprep.subr.bf16.mxu0 %v22656_v24  ;;  %5756 = vmatprep.subr.bf16.mxu1 %v22657_v25  ;;  %v5843_v24 = vld [vmem:[%s21996_s1 + $0x1c8] sm:$0xff] }
 0x309   :  { %v5847_v25 = vld [vmem:[%s21996_s1 + $0x1e8] sm:$0xff] }
 0x30b   :  { %5716 = vmatpush1.bf16.msra.mxu0 %v21036_v0  ;;  %5757 = vmatpush1.bf16.msra.mxu1 %v21040_v60  ;;  %v5791_v60 = vld [vmem:[%s21996_s1 + $0x28] sm:$0xff]  ;;  %v5794_v0 = vld [vmem:[%s21996_s1 + $0x40] sm:$0xff] }
 0x30c   :  { %5717 = vmatprep.subr.bf16.mxu0 %v21042_v2  ;;  %5758 = vmatprep.subr.bf16.mxu1 %v21045_v12  ;;  %v15366_v2 = vcombine.high %v5786_v41, %v5790_v31  ;;  %v15368_v12 = vcombine.high %v5787_v32, %v5791_v60  ;;  %v15367_v57 = vcombine.low %v5787_v32, %v5791_v60 }
 0x30d   :  { %v15374_v19 = vcombine.high %v5794_v0, %v5798_v4  ;;  %v15373_v38 = vcombine.low %v5794_v0, %v5798_v4  ;;  %v15413_v60 = vcombine.low %v5834_v33, %v5838_v59  ;;  %v15415_v4 = vcombine.low %v5835_v53, %v5839_v16  ;;  %v5882_v33 = vld [vmem:[%s21996_s1 + $0x300] sm:$0xff]  ;;  %v5883_v53 = vld [vmem:[%s21996_s1 + $0x308] sm:$0xff] }
 0x30e   :  { %v5886_v59 = vld [vmem:[%s21996_s1 + $0x320] sm:$0xff]  ;;  %v5887_v16 = vld [vmem:[%s21996_s1 + $0x328] sm:$0xff] }
 0x30f   :  { %5718 = vmatpush1.bf16.msra.mxu0 %v21060_v56  ;;  %5759 = vmatpush1.bf16.msra.mxu1 %v21064_v63  ;;  %v5795_v56 = vld [vmem:[%s21996_s1 + $0x48] sm:$0xff] }
 0x310   :  { %5719 = vmatprep.subr.bf16.mxu0 %v21066_v21  ;;  %5760 = vmatprep.subr.bf16.mxu1 %v21069_v51  ;;  %v5799_v63 = vld [vmem:[%s21996_s1 + $0x68] sm:$0xff]  ;;  %v21257_v51 = vld [vmem:[%s21995_s0 + $0x18] sm:$0xff]  ;;  %v15365_v21 = vcombine.low %v5786_v41, %v5790_v31 }
 0x311   :  { %v15376_v26 = vcombine.high %v5795_v56, %v5799_v63  ;;  %v21269_v35 = vcombine.high %v21257_v51, %v21257_v51  ;;  %v15375_v47 = vcombine.low %v5795_v56, %v5799_v63  ;;  %v15422_v56 = vcombine.high %v5842_v49, %v5846_v50 }
 0x313   :  { %5720 = vmatpush1.bf16.msra.mxu0 %v21072_v5  ;;  %5761 = vmatpush1.bf16.msra.mxu1 %v21076_v40  ;;  %v5803_v5 = vld [vmem:[%s21996_s1 + $0x88] sm:$0xff] }
 0x314   :  { %6561 = vmatprep.subr.bf16.mxu0 %v15366_v2  ;;  %6602 = vmatprep.subr.bf16.mxu1 %v15368_v12  ;;  %v5807_v40 = vld [vmem:[%s21996_s1 + $0xa8] sm:$0xff] }
 0x315   :  { %v15384_v13 = vcombine.high %v5803_v5, %v5807_v40  ;;  %v15383_v44 = vcombine.low %v5803_v5, %v5807_v40  ;;  %v15421_v5 = vcombine.low %v5842_v49, %v5846_v50  ;;  %v5894_v49 = vld [vmem:[%s21996_s1 + $0x360] sm:$0xff]  ;;  %v5891_v50 = vld [vmem:[%s21996_s1 + $0x348] sm:$0xff] }
 0x316   :  { %5722 = vmatmul.mubr.bf16.vlgmr.msra.gmra.mrb[44].mxu0 %v21159_v52  ;;  %5763 = vmatmul.mubr.bf16.vlgmr.msra.gmra.mrb[44].mxu1 %v21159_v52  ;;  %v5811_v52 = vld [vmem:[%s21996_s1 + $0xc8] sm:$0xff] }
 0x317   :  { %6562 = vmatpush1.bf16.msra.mxu0 %v15365_v21  ;;  %6603 = vmatpush1.bf16.msra.mxu1 %v15367_v57  ;;  %v15392_v43 = vcombine.high %v5811_v52, %v5815_v10  ;;  %v15391_v17 = vcombine.low %v5811_v52, %v5815_v10  ;;  %v15424_v21 = vcombine.high %v5843_v24, %v5847_v25  ;;  %v5850_v57 = vld [vmem:[%s21996_s1 + $0x200] sm:$0xff]  ;;  %v5859_v52 = vld [vmem:[%s21996_s1 + $0x248] sm:$0xff] }
 0x318   :  { %6563 = vmatprep.subr.bf16.mxu0 %v15374_v19  ;;  %6604 = vmatprep.subr.bf16.mxu1 %v15376_v26  ;;  %v5854_v19 = vld [vmem:[%s21996_s1 + $0x220] sm:$0xff] }
 0x319   :  { %6593 = vmatprep.mubr.bf16.mxu0 %v21269_v35  ;;  %6634 = vmatprep.mubr.bf16.mxu1 %v21269_v35  ;;  %v15429_v10 = vcombine.low %v5850_v57, %v5854_v19 }
 0x31b   :  { %6564 = vmatpush1.bf16.msra.mxu0 %v15373_v38  ;;  %6605 = vmatpush1.bf16.msra.mxu1 %v15375_v47  ;;  %v15423_v38 = vcombine.low %v5843_v24, %v5847_v25  ;;  %v15430_v47 = vcombine.high %v5850_v57, %v5854_v19  ;;  %v15463_v24 = vcombine.low %v5883_v53, %v5887_v16  ;;  %v5907_v57 = vld [vmem:[%s21996_s1 + $0x3c8] sm:$0xff] }
 0x31c   :  { %6565 = vmatprep.subr.bf16.mxu0 %v15382_v45  ;;  %6606 = vmatprep.subr.bf16.mxu1 %v15384_v13  ;;  %v15432_v45 = vcombine.high %v5851_v36, %v5855_v27  ;;  %v5858_v13 = vld [vmem:[%s21996_s1 + $0x240] sm:$0xff]  ;;  %v5911_v19 = vld [vmem:[%s21996_s1 + $0x3e8] sm:$0xff] }
 0x31f   :  { %6566 = vmatpush1.bf16.msra.mxu0 %v15381_v28  ;;  %6607 = vmatpush1.bf16.msra.mxu1 %v15383_v44  ;;  %v15431_v44 = vcombine.low %v5851_v36, %v5855_v27 }
 0x320   :  { %6567 = vmatprep.subr.bf16.mxu0 %v15390_v34  ;;  %6608 = vmatprep.subr.bf16.mxu1 %v15392_v43  ;;  %v15438_v34 = vcombine.high %v5858_v13, %v5862_v62 }
 0x323   :  { %6568 = vmatpush1.bf16.msra.mxu0 %v15389_v14  ;;  %6609 = vmatpush1.bf16.msra.mxu1 %v15391_v17  ;;  %v15437_v14 = vcombine.low %v5858_v13, %v5862_v62  ;;  %v15487_v62 = vcombine.low %v5907_v57, %v5911_v19 }
 0x324   :  { %6569 = vmatprep.subr.bf16.mxu0 %v15398_v9  ;;  %6610 = vmatprep.subr.bf16.mxu1 %v15400_v30  ;;  %v15446_v9 = vcombine.high %v5866_v54, %v5870_v39  ;;  %v15448_v30 = vcombine.high %v5867_v7, %v5871_v58 }
 0x327   :  { %6570 = vmatpush1.bf16.msra.mxu0 %v15397_v37  ;;  %6611 = vmatpush1.bf16.msra.mxu1 %v15399_v3  ;;  %v15445_v37 = vcombine.low %v5866_v54, %v5870_v39  ;;  %v15447_v3 = vcombine.low %v5867_v7, %v5871_v58  ;;  %v5808_v58 = vld [vmem:[%s21996_s1 + $0xb0] sm:$0xff] }
 0x328   :  { %6571 = vmatprep.subr.bf16.mxu0 %v15406_v42  ;;  %6612 = vmatprep.subr.bf16.mxu1 %v15408_v46  ;;  %v15454_v42 = vcombine.high %v5874_v15, %v5878_v29  ;;  %v15456_v46 = vcombine.high %v5875_v18, %v5879_v8 }
 0x329   :  { %v4687_v48 = vpop.f32.mrb[32].mxu0  ;;  %v4728_v55 = vpop.f32.mrb[32].mxu1 }
 0x32a   :  { %v4689_v11 = vpop.f32.mrb[33].mxu0  ;;  %v4730_v31 = vpop.f32.mrb[33].mxu1 }
 0x32b   :  { %v4817_v41 = vmax.f32 %v4687_v48, %v4689_v11  ;;  %v4691_v32 = vpop.f32.mrb[34].mxu0  ;;  %6572 = vmatpush1.bf16.msra.mxu0 %v15405_v6  ;;  %v4818_v2 = vmax.f32 %v4728_v55, %v4730_v31  ;;  %v4732_v12 = vpop.f32.mrb[34].mxu1  ;;  %6613 = vmatpush1.bf16.msra.mxu1 %v15407_v20  ;;  %v15453_v6 = vcombine.low %v5874_v15, %v5878_v29  ;;  %v5895_v55 = vld [vmem:[%s21996_s1 + $0x368] sm:$0xff]  ;;  %v5898_v31 = vld [vmem:[%s21996_s1 + $0x380] sm:$0xff] }
 0x32c   :  { %v4692_v0 = vpop.f32.mrb[35].mxu0  ;;  %6573 = vmatprep.subr.bf16.mxu0 %v15414_v61  ;;  %v4733_v63 = vpop.f32.mrb[35].mxu1  ;;  %6614 = vmatprep.subr.bf16.mxu1 %v15416_v22  ;;  %v15455_v20 = vcombine.low %v5875_v18, %v5879_v8  ;;  %v15462_v61 = vcombine.high %v5882_v33, %v5886_v59  ;;  %v15464_v48 = vcombine.high %v5883_v53, %v5887_v16  ;;  %v5890_v22 = vld [vmem:[%s21996_s1 + $0x340] sm:$0xff]  ;;  %v5812_v18 = vld [vmem:[%s21996_s1 + $0xd0] sm:$0xff] }
 0x32d   :  { %v4819_v26 = vmax.f32 %v4817_v41, %v4818_v2  ;;  %v15461_v11 = vcombine.low %v5882_v33, %v5886_v59  ;;  %v15470_v25 = vcombine.high %v5890_v22, %v5894_v49  ;;  %v15472_v41 = vcombine.high %v5891_v50, %v5895_v55  ;;  %v5902_v32 = vld [vmem:[%s21996_s1 + $0x3a0] sm:$0xff]  ;;  %v5903_v2 = vld [vmem:[%s21996_s1 + $0x3a8] sm:$0xff]  ;;  %v5816_v8 = vld [vmem:[%s21996_s1 + $0xf0] sm:$0xff] }
 0x32e   :  { %v15469_v12 = vcombine.low %v5890_v22, %v5894_v49  ;;  %v15471_v0 = vcombine.low %v5891_v50, %v5895_v55  ;;  %v5906_v63 = vld [vmem:[%s21996_s1 + $0x3c0] sm:$0xff]  ;;  %v15394_v33 = vcombine.high %v5812_v18, %v5816_v8  ;;  %v5820_v53 = vld [vmem:[%s21996_s1 + $0x110] sm:$0xff]  ;;  %v5829_v55 = vld [vmem:[%s21996_s1 + $0x158] sm:$0xff] }
 0x32f   :  { %6574 = vmatpush1.bf16.msra.mxu0 %v15413_v60  ;;  %v4820_v40 = vadd.f32 %v20891_v1, %v4819_v26  ;;  %6615 = vmatpush1.bf16.msra.mxu1 %v15415_v4  ;;  %v5863_v1 = vld [vmem:[%s21996_s1 + $0x268] sm:$0xff]  ;;  %v15478_v4 = vcombine.high %v5898_v31, %v5902_v32  ;;  %v15477_v26 = vcombine.low %v5898_v31, %v5902_v32  ;;  %v5824_v16 = vld [vmem:[%s21996_s1 + $0x130] sm:$0xff] }
 0x330   :  { %6575 = vmatprep.subr.bf16.mxu0 %v15422_v56  ;;  %6616 = vmatprep.subr.bf16.mxu1 %v15424_v21  ;;  %v15440_v43 = vcombine.high %v5859_v52, %v5863_v1  ;;  %v15439_v17 = vcombine.low %v5859_v52, %v5863_v1  ;;  %v5899_v60 = vld [vmem:[%s21996_s1 + $0x388] sm:$0xff]  ;;  %v5910_v21 = vld [vmem:[%s21996_s1 + $0x3e0] sm:$0xff]  ;;  %v5796_v1 = vld [vmem:[%s21996_s1 + $0x50] sm:$0xff] }
 0x331   :  { %v4821_v23 = vmax.f32 %v4820_v40, 0.0  ;;  %v15480_v56 = vcombine.high %v5899_v60, %v5903_v2  ;;  %v15479_v36 = vcombine.low %v5899_v60, %v5903_v2  ;;  %v15486_v27 = vcombine.high %v5906_v63, %v5910_v21  ;;  %v5788_v40 = vld [vmem:[%s21996_s1 + $0x10] sm:$0xff]  ;;  %v5837_v2 = vld [vmem:[%s21996_s1 + $0x198] sm:$0xff] }
 0x332   :  { %v15485_v13 = vcombine.low %v5906_v63, %v5910_v21  ;;  %v5828_v49 = vld [vmem:[%s21996_s1 + $0x150] sm:$0xff] }
 0x333   :  { %6576 = vmatpush1.bf16.msra.mxu0 %v15421_v5  ;;  %v4822_v28 = vpack.c.bf16 %v4821_v23, %v4821_v23  ;;  %6617 = vmatpush1.bf16.msra.mxu1 %v15423_v38  ;;  %v15488_v5 = vcombine.high %v5907_v57, %v5911_v19  ;;  %v5792_v38 = vld [vmem:[%s21996_s1 + $0x30] sm:$0xff] }
 0x334   :  { %6577 = vmatprep.subr.bf16.mxu0 %v15430_v47  ;;  %6618 = vmatprep.subr.bf16.mxu1 %v15432_v45  ;;  %v5789_v47 = vld [vmem:[%s21996_s1 + $0x18] sm:$0xff]  ;;  %v15370_v23 = vcombine.high %v5788_v40, %v5792_v38  ;;  %v5832_v50 = vld [vmem:[%s21996_s1 + $0x170] sm:$0xff] }
 0x335   :  { %4823 = vst [vmem:[#allocation2 + $0x20] sm:$0xf] %v4822_v28  ;;  %v5793_v45 = vld [vmem:[%s21996_s1 + $0x38] sm:$0xff]  ;;  %v21458_v28 = vcombine.low %v21257_v51, %v21257_v51  ;;  %v5804_v51 = vld [vmem:[%s21996_s1 + $0x90] sm:$0xff] }
 0x336   :  { %v15372_v52 = vcombine.high %v5789_v47, %v5793_v45  ;;  %v15371_v54 = vcombine.low %v5789_v47, %v5793_v45  ;;  %v15386_v15 = vcombine.high %v5804_v51, %v5808_v58  ;;  %v5836_v32 = vld [vmem:[%s21996_s1 + $0x190] sm:$0xff] }
 0x337   :  { %6578 = vmatpush1.bf16.msra.mxu0 %v15429_v10  ;;  %6619 = vmatpush1.bf16.msra.mxu1 %v15431_v44  ;;  %v5800_v10 = vld [vmem:[%s21996_s1 + $0x70] sm:$0xff]  ;;  %v5797_v44 = vld [vmem:[%s21996_s1 + $0x58] sm:$0xff] }
 0x338   :  { %6579 = vmatprep.subr.bf16.mxu0 %v15438_v34  ;;  %6620 = vmatprep.subr.bf16.mxu1 %v15440_v43  ;;  %v5801_v34 = vld [vmem:[%s21996_s1 + $0x78] sm:$0xff]  ;;  %v15369_v43 = vcombine.low %v5788_v40, %v5792_v38  ;;  %v15378_v39 = vcombine.high %v5796_v1, %v5800_v10  ;;  %v5840_v60 = vld [vmem:[%s21996_s1 + $0x1b0] sm:$0xff] }
 0x339   :  { %v15380_v7 = vcombine.high %v5797_v44, %v5801_v34  ;;  %v5844_v57 = vld [vmem:[%s21996_s1 + $0x1d0] sm:$0xff]  ;;  %v15417_v45 = vcombine.low %v5836_v32, %v5840_v60 }
 0x33a   :  { %v5848_v19 = vld [vmem:[%s21996_s1 + $0x1f0] sm:$0xff] }
 0x33b   :  { %6580 = vmatpush1.bf16.msra.mxu0 %v15437_v14  ;;  %6621 = vmatpush1.bf16.msra.mxu1 %v15439_v17  ;;  %v5805_v14 = vld [vmem:[%s21996_s1 + $0x98] sm:$0xff] }
 0x33c   :  { %6581 = vmatprep.subr.bf16.mxu0 %v15446_v9  ;;  %6622 = vmatprep.subr.bf16.mxu1 %v15448_v30  ;;  %v5809_v17 = vld [vmem:[%s21996_s1 + $0xb8] sm:$0xff]  ;;  %v15377_v9 = vcombine.low %v5796_v1, %v5800_v10  ;;  %v15379_v30 = vcombine.low %v5797_v44, %v5801_v34  ;;  %v15426_v1 = vcombine.high %v5844_v57, %v5848_v19  ;;  %v5852_v34 = vld [vmem:[%s21996_s1 + $0x210] sm:$0xff] }
 0x33d   :  { %v15388_v29 = vcombine.high %v5805_v14, %v5809_v17 }
 0x33f   :  { %6582 = vmatpush1.bf16.msra.mxu0 %v15445_v37  ;;  %6623 = vmatpush1.bf16.msra.mxu1 %v15447_v3  ;;  %v5813_v37 = vld [vmem:[%s21996_s1 + $0xd8] sm:$0xff] }
 0x340   :  { %6583 = vmatprep.subr.bf16.mxu0 %v15454_v42  ;;  %6624 = vmatprep.subr.bf16.mxu1 %v15456_v46  ;;  %v5817_v3 = vld [vmem:[%s21996_s1 + $0xf8] sm:$0xff]  ;;  %v15385_v42 = vcombine.low %v5804_v51, %v5808_v58  ;;  %v15387_v46 = vcombine.low %v5805_v14, %v5809_v17  ;;  %v15425_v51 = vcombine.low %v5844_v57, %v5848_v19  ;;  %v21557_v58 = vld [vmem:[%s21997_s2] ss:$0 sm:$0xff]  ;;  %v5896_v57 = vld [vmem:[%s21996_s1 + $0x370] sm:$0xff] }
 0x341   :  { %v15396_v59 = vcombine.high %v5813_v37, %v5817_v3  ;;  %v5893_v19 = vld [vmem:[%s21996_s1 + $0x358] sm:$0xff] }
 0x343   :  { %6584 = vmatpush1.bf16.msra.mxu0 %v15453_v6  ;;  %6625 = vmatpush1.bf16.msra.mxu1 %v15455_v20  ;;  %v5825_v6 = vld [vmem:[%s21996_s1 + $0x138] sm:$0xff]  ;;  %v15393_v20 = vcombine.low %v5812_v18, %v5816_v8 }
 0x344   :  { %6585 = vmatprep.subr.bf16.mxu0 %v15462_v61  ;;  %6626 = vmatprep.subr.bf16.mxu1 %v15464_v48  ;;  %v15395_v61 = vcombine.low %v5813_v37, %v5817_v3  ;;  %v15402_v48 = vcombine.high %v5820_v53, %v5824_v16  ;;  %v5861_v8 = vld [vmem:[%s21996_s1 + $0x258] sm:$0xff] }
 0x345   :  { %v5865_v37 = vld [vmem:[%s21996_s1 + $0x278] sm:$0xff] }
 0x347   :  { %6586 = vmatpush1.bf16.msra.mxu0 %v15461_v11  ;;  %6627 = vmatpush1.bf16.msra.mxu1 %v15463_v24  ;;  %v5833_v11 = vld [vmem:[%s21996_s1 + $0x178] sm:$0xff]  ;;  %v15401_v24 = vcombine.low %v5820_v53, %v5824_v16  ;;  %v5868_v53 = vld [vmem:[%s21996_s1 + $0x290] sm:$0xff] }
 0x348   :  { %6587 = vmatprep.subr.bf16.mxu0 %v15470_v25  ;;  %6628 = vmatprep.subr.bf16.mxu1 %v15472_v41  ;;  %v15410_v41 = vcombine.high %v5828_v49, %v5832_v50  ;;  %v15412_v31 = vcombine.high %v5829_v55, %v5833_v11  ;;  %v5872_v16 = vld [vmem:[%s21996_s1 + $0x2b0] sm:$0xff] }
 0x34b   :  { %6588 = vmatpush1.bf16.msra.mxu0 %v15469_v12  ;;  %6629 = vmatpush1.bf16.msra.mxu1 %v15471_v0  ;;  %v5841_v12 = vld [vmem:[%s21996_s1 + $0x1b8] sm:$0xff]  ;;  %v15409_v0 = vcombine.low %v5828_v49, %v5832_v50  ;;  %v5876_v49 = vld [vmem:[%s21996_s1 + $0x2d0] sm:$0xff] }
 0x34c   :  { %6589 = vmatprep.subr.bf16.mxu0 %v15478_v4  ;;  %6630 = vmatprep.subr.bf16.mxu1 %v15480_v56  ;;  %v15411_v4 = vcombine.low %v5829_v55, %v5833_v11  ;;  %v15418_v56 = vcombine.high %v5836_v32, %v5840_v60  ;;  %v15420_v21 = vcombine.high %v5837_v2, %v5841_v12  ;;  %v5880_v50 = vld [vmem:[%s21996_s1 + $0x2f0] sm:$0xff]  ;;  %v5877_v55 = vld [vmem:[%s21996_s1 + $0x2d8] sm:$0xff] }
 0x34d   :  { %v5881_v11 = vld [vmem:[%s21996_s1 + $0x2f8] sm:$0xff]  ;;  %v5884_v32 = vld [vmem:[%s21996_s1 + $0x310] sm:$0xff] }
 0x34e   :  { %v5888_v60 = vld [vmem:[%s21996_s1 + $0x330] sm:$0xff] }
 0x34f   :  { %6590 = vmatpush1.bf16.msra.mxu0 %v15477_v26  ;;  %6631 = vmatpush1.bf16.msra.mxu1 %v15479_v36 }
 0x350   :  { %6591 = vmatprep.subr.bf16.mxu0 %v15486_v27  ;;  %6632 = vmatprep.subr.bf16.mxu1 %v15488_v5  ;;  %v5845_v27 = vld [vmem:[%s21996_s1 + $0x1d8] sm:$0xff] }
 0x351   :  { %v5849_v5 = vld [vmem:[%s21996_s1 + $0x1f8] sm:$0xff] }
 0x352   :  { %v15428_v44 = vcombine.high %v5845_v27, %v5849_v5  ;;  %v15427_v17 = vcombine.low %v5845_v27, %v5849_v5 }
 0x353   :  { %6592 = vmatpush1.bf16.msra.mxu0 %v15485_v13  ;;  %6633 = vmatpush1.bf16.msra.mxu1 %v15487_v62 }
 0x354   :  { %6643 = vmatprep.subr.bf16.mxu0 %v15370_v23  ;;  %6684 = vmatprep.subr.bf16.mxu1 %v15372_v52  ;;  %v15419_v52 = vcombine.low %v5837_v2, %v5841_v12  ;;  %v5885_v2 = vld [vmem:[%s21996_s1 + $0x318] sm:$0xff] }
 0x355   :  { %v5889_v12 = vld [vmem:[%s21996_s1 + $0x338] sm:$0xff] }
 0x356   :  { %6594 = vmatmul.mubr.bf16.vlgmr.msra.gmra.mrb[48].mxu0 %v21458_v28  ;;  %6635 = vmatmul.mubr.bf16.vlgmr.msra.gmra.mrb[48].mxu1 %v21458_v28  ;;  %v15467_v27 = vcombine.low %v5885_v2, %v5889_v12 }
 0x357   :  { %6644 = vmatpush1.bf16.msra.mxu0 %v15369_v43  ;;  %6685 = vmatpush1.bf16.msra.mxu1 %v15371_v54  ;;  %v5856_v43 = vld [vmem:[%s21996_s1 + $0x230] sm:$0xff] }
 0x358   :  { %6645 = vmatprep.subr.bf16.mxu0 %v15378_v39  ;;  %6686 = vmatprep.subr.bf16.mxu1 %v15380_v7  ;;  %v5853_v39 = vld [vmem:[%s21996_s1 + $0x218] sm:$0xff]  ;;  %v15433_v3 = vcombine.low %v5852_v34, %v5856_v43 }
 0x359   :  { %6675 = vmatprep.mubr.bf16.mxu0 %v21269_v35  ;;  %6716 = vmatprep.mubr.bf16.mxu1 %v21269_v35  ;;  %v5821_v35 = vld [vmem:[%s21996_s1 + $0x118] sm:$0xff] }
 0x35a   :  { %v15404_v22 = vcombine.high %v5821_v35, %v5825_v6  ;;  %v15403_v25 = vcombine.low %v5821_v35, %v5825_v6  ;;  %v5857_v7 = vld [vmem:[%s21996_s1 + $0x238] sm:$0xff] }
 0x35b   :  { %6646 = vmatpush1.bf16.msra.mxu0 %v15377_v9  ;;  %6687 = vmatpush1.bf16.msra.mxu1 %v15379_v30  ;;  %v15434_v9 = vcombine.high %v5852_v34, %v5856_v43  ;;  %v15436_v30 = vcombine.high %v5853_v39, %v5857_v7  ;;  %v5869_v35 = vld [vmem:[%s21996_s1 + $0x298] sm:$0xff] }
 0x35c   :  { %6647 = vmatprep.subr.bf16.mxu0 %v15386_v15  ;;  %6688 = vmatprep.subr.bf16.mxu1 %v15388_v29  ;;  %v5860_v15 = vld [vmem:[%s21996_s1 + $0x250] sm:$0xff]  ;;  %v5873_v6 = vld [vmem:[%s21996_s1 + $0x2b8] sm:$0xff] }
 0x35d   :  { %v5864_v29 = vld [vmem:[%s21996_s1 + $0x270] sm:$0xff]  ;;  %v5909_v34 = vld [vmem:[%s21996_s1 + $0x3d8] sm:$0xff] }
 0x35e   :  { %v5913_v43 = vld [vmem:[%s21996_s1 + $0x3f8] sm:$0xff] }
 0x35f   :  { %6648 = vmatpush1.bf16.msra.mxu0 %v15385_v42  ;;  %6689 = vmatpush1.bf16.msra.mxu1 %v15387_v46  ;;  %v15435_v46 = vcombine.low %v5853_v39, %v5857_v7 }
 0x360   :  { %6649 = vmatprep.subr.bf16.mxu0 %v15394_v33  ;;  %6690 = vmatprep.subr.bf16.mxu1 %v15396_v59  ;;  %v15442_v33 = vcombine.high %v5860_v15, %v5864_v29  ;;  %v15444_v59 = vcombine.high %v5861_v8, %v5865_v37 }
 0x363   :  { %6650 = vmatpush1.bf16.msra.mxu0 %v15393_v20  ;;  %6691 = vmatpush1.bf16.msra.mxu1 %v15395_v61  ;;  %v15441_v20 = vcombine.low %v5860_v15, %v5864_v29  ;;  %v15443_v61 = vcombine.low %v5861_v8, %v5865_v37  ;;  %v16772_v15 = vld [vmem:[#allocation4] ss:$16 sps:$4 sm:$0xff]   ;;  %v21644_v29 = vld [vmem:[#allocation2] sm:$0xff] }
 0x364   :  { %6651 = vmatprep.subr.bf16.mxu0 %v15402_v48  ;;  %6692 = vmatprep.subr.bf16.mxu1 %v15404_v22  ;;  %v15450_v48 = vcombine.high %v5868_v53, %v5872_v16  ;;  %v15452_v22 = vcombine.high %v5869_v35, %v5873_v6  ;;  %v16782_v8 = vld [vmem:[#allocation4 + $0x24] ss:$16 sps:$4 sm:$0xff]   ;;  %v15494_v37 = vcombine.high %v21644_v29, %v21644_v29 }
 0x367   :  { %6652 = vmatpush1.bf16.msra.mxu0 %v15401_v24  ;;  %6693 = vmatpush1.bf16.msra.mxu1 %v15403_v25  ;;  %v15449_v24 = vcombine.low %v5868_v53, %v5872_v16  ;;  %v15451_v25 = vcombine.low %v5869_v35, %v5873_v6  ;;  %v16786_v53 = vld [vmem:[#allocation4 + $0x40] ss:$16 sps:$4 sm:$0xff]   ;;  %v16789_v16 = vld [vmem:[#allocation4 + $0x48] ss:$16 sps:$4 sm:$0xff]   ;;  %v16794_v35 = vld [vmem:[#allocation4 + $0x64] ss:$16 sps:$4 sm:$0xff]  }
 0x368   :  { %6653 = vmatprep.subr.bf16.mxu0 %v15410_v41  ;;  %6694 = vmatprep.subr.bf16.mxu1 %v15412_v31  ;;  %v15458_v41 = vcombine.high %v5876_v49, %v5880_v50  ;;  %v15460_v31 = vcombine.high %v5877_v55, %v5881_v11  ;;  %v16797_v6 = vld [vmem:[#allocation4 + $0x6c] ss:$16 sps:$4 sm:$0xff]  }
 0x369   :  { %v4769_v63 = vpop.f32.mrb[36].mxu0  ;;  %v4810_v26 = vpop.f32.mrb[36].mxu1 }
 0x36a   :  { %v4771_v36 = vpop.f32.mrb[37].mxu0  ;;  %v4812_v38 = vpop.f32.mrb[37].mxu1 }
 0x36b   :  { %v4824_v40 = vmax.f32 %v4769_v63, %v4771_v36  ;;  %v4773_v47 = vpop.f32.mrb[38].mxu0  ;;  %6654 = vmatpush1.bf16.msra.mxu0 %v15409_v0  ;;  %v4825_v13 = vmax.f32 %v4810_v26, %v4812_v38  ;;  %v4814_v62 = vpop.f32.mrb[38].mxu1  ;;  %6695 = vmatpush1.bf16.msra.mxu1 %v15411_v4  ;;  %v15457_v0 = vcombine.low %v5876_v49, %v5880_v50  ;;  %v5897_v26 = vld [vmem:[%s21996_s1 + $0x378] sm:$0xff]  ;;  %v5900_v38 = vld [vmem:[%s21996_s1 + $0x390] sm:$0xff] }
 0x36c   :  { %v4774_v23 = vpop.f32.mrb[39].mxu0  ;;  %6655 = vmatprep.subr.bf16.mxu0 %v15418_v56  ;;  %v4815_v10 = vpop.f32.mrb[39].mxu1  ;;  %6696 = vmatprep.subr.bf16.mxu1 %v15420_v21  ;;  %v15459_v4 = vcombine.low %v5877_v55, %v5881_v11  ;;  %v15466_v56 = vcombine.high %v5884_v32, %v5888_v60  ;;  %v15468_v63 = vcombine.high %v5885_v2, %v5889_v12  ;;  %v5892_v21 = vld [vmem:[%s21996_s1 + $0x350] sm:$0xff]  ;;  %v16809_v55 = vld [vmem:[#allocation4 + $0xac] ss:$16 sps:$4 sm:$0xff]  }
 0x36d   :  { %v4826_v54 = vmax.f32 %v4824_v40, %v4825_v13  ;;  %v15465_v36 = vcombine.low %v5884_v32, %v5888_v60  ;;  %v15474_v5 = vcombine.high %v5892_v21, %v5896_v57  ;;  %v15476_v40 = vcombine.high %v5893_v19, %v5897_v26  ;;  %v5904_v47 = vld [vmem:[%s21996_s1 + $0x3b0] sm:$0xff]  ;;  %v5905_v13 = vld [vmem:[%s21996_s1 + $0x3b8] sm:$0xff] }
 0x36e   :  { %v15473_v62 = vcombine.low %v5892_v21, %v5896_v57  ;;  %v15475_v23 = vcombine.low %v5893_v19, %v5897_v26  ;;  %v5908_v10 = vld [vmem:[%s21996_s1 + $0x3d0] sm:$0xff]  ;;  %v16804_v11 = vld [vmem:[#allocation4 + $0xa0] ss:$16 sps:$4 sm:$0xff]  }
 0x36f   :  { %6656 = vmatpush1.bf16.msra.mxu0 %v15417_v45  ;;  %v4827_v14 = vadd.f32 %v21557_v58, %v4826_v54  ;;  %6697 = vmatpush1.bf16.msra.mxu1 %v15419_v52  ;;  %v5901_v45 = vld [vmem:[%s21996_s1 + $0x398] sm:$0xff]  ;;  %v15482_v52 = vcombine.high %v5900_v38, %v5904_v47  ;;  %v15481_v54 = vcombine.low %v5900_v38, %v5904_v47  ;;  %v16801_v49 = vld [vmem:[#allocation4 + $0x88] ss:$16 sps:$4 sm:$0xff]   ;;  %v16806_v50 = vld [vmem:[#allocation4 + $0xa4] ss:$16 sps:$4 sm:$0xff]  }
 0x370   :  { %6657 = vmatprep.subr.bf16.mxu0 %v15426_v1  ;;  %6698 = vmatprep.subr.bf16.mxu1 %v15428_v44  ;;  %v15484_v1 = vcombine.high %v5901_v45, %v5905_v13  ;;  %v5912_v44 = vld [vmem:[%s21996_s1 + $0x3f0] sm:$0xff]  ;;  %v15483_v39 = vcombine.low %v5901_v45, %v5905_v13  ;;  %v16827_v45 = vld [vmem:[#allocation4 + $0x10c] ss:$16 sps:$4 sm:$0xff]  }
 0x371   :  { %v4828_v18 = vmax.f32 %v4827_v14, 0.0  ;;  %v15490_v7 = vcombine.high %v5908_v10, %v5912_v44  ;;  %v15489_v14 = vcombine.low %v5908_v10, %v5912_v44  ;;  %v16813_v57 = vld [vmem:[#allocation4 + $0xc8] ss:$16 sps:$4 sm:$0xff]   ;;  %v16818_v19 = vld [vmem:[#allocation4 + $0xe4] ss:$16 sps:$4 sm:$0xff]  }
 0x372   :  { %v16819_v38 = vld [vmem:[#allocation4 + $0xe8] ss:$16 sps:$4 sm:$0xff]   ;;  %v16824_v47 = vld [vmem:[#allocation4 + $0x104] ss:$16 sps:$4 sm:$0xff]   ;;  %v16833_v10 = vld [vmem:[#allocation4 + $0x12c] ss:$16 sps:$4 sm:$0xff]  }
 0x373   :  { %6658 = vmatpush1.bf16.msra.mxu0 %v15425_v51  ;;  %v4829_v42 = vpack.c.bf16 %v4828_v18, %v4828_v18  ;;  %6699 = vmatpush1.bf16.msra.mxu1 %v15427_v17  ;;  %v15492_v51 = vcombine.high %v5909_v34, %v5913_v43  ;;  %v15491_v17 = vcombine.low %v5909_v34, %v5913_v43  ;;  %v16775_v18 = vld [vmem:[#allocation4 + $0x8] ss:$16 sps:$4 sm:$0xff]   ;;  %v16828_v44 = vld [vmem:[#allocation4 + $0x120] ss:$16 sps:$4 sm:$0xff]   ;;  %v16836_v43 = vld [vmem:[#allocation4 + $0x144] ss:$16 sps:$4 sm:$0xff]  }
 0x374   :  { %6659 = vmatprep.subr.bf16.mxu0 %v15434_v9  ;;  %6700 = vmatprep.subr.bf16.mxu1 %v15436_v30  ;;  %v16774_v9 = vld [vmem:[#allocation4 + $0x4] ss:$16 sps:$4 sm:$0xff]   ;;  %v16777_v30 = vld [vmem:[#allocation4 + $0xc] ss:$16 sps:$4 sm:$0xff]   ;;  %v16831_v34 = vld [vmem:[#allocation4 + $0x128] ss:$16 sps:$4 sm:$0xff]  }
 0x375   :  { %4830 = vst [vmem:[#allocation2 + $0x24] sm:$0xf] %v4829_v42  ;;  %v16780_v42 = vld [vmem:[#allocation4 + $0x20] ss:$16 sps:$4 sm:$0xff]  }
 0x377   :  { %6660 = vmatpush1.bf16.msra.mxu0 %v15433_v3  ;;  %6701 = vmatpush1.bf16.msra.mxu1 %v15435_v46  ;;  %v16785_v3 = vld [vmem:[#allocation4 + $0x2c] ss:$16 sps:$4 sm:$0xff]   ;;  %v16783_v46 = vld [vmem:[#allocation4 + $0x28] ss:$16 sps:$4 sm:$0xff]  }
 0x378   :  { %6661 = vmatprep.subr.bf16.mxu0 %v15442_v33  ;;  %6702 = vmatprep.subr.bf16.mxu1 %v15444_v59  ;;  %v16788_v33 = vld [vmem:[#allocation4 + $0x44] ss:$16 sps:$4 sm:$0xff]   ;;  %v16791_v59 = vld [vmem:[#allocation4 + $0x4c] ss:$16 sps:$4 sm:$0xff]  }
 0x37b   :  { %6662 = vmatpush1.bf16.msra.mxu0 %v15441_v20  ;;  %6703 = vmatpush1.bf16.msra.mxu1 %v15443_v61  ;;  %v16795_v20 = vld [vmem:[#allocation4 + $0x68] ss:$16 sps:$4 sm:$0xff]   ;;  %v16800_v61 = vld [vmem:[#allocation4 + $0x84] ss:$16 sps:$4 sm:$0xff]  }
 0x37c   :  { %6663 = vmatprep.subr.bf16.mxu0 %v15450_v48  ;;  %6704 = vmatprep.subr.bf16.mxu1 %v15452_v22  ;;  %v16803_v48 = vld [vmem:[#allocation4 + $0x8c] ss:$16 sps:$4 sm:$0xff]   ;;  %v16798_v22 = vld [vmem:[#allocation4 + $0x80] ss:$16 sps:$4 sm:$0xff]  }
 0x37f   :  { %6664 = vmatpush1.bf16.msra.mxu0 %v15449_v24  ;;  %6705 = vmatpush1.bf16.msra.mxu1 %v15451_v25  ;;  %v16807_v24 = vld [vmem:[#allocation4 + $0xa8] ss:$16 sps:$4 sm:$0xff]   ;;  %v16812_v25 = vld [vmem:[#allocation4 + $0xc4] ss:$16 sps:$4 sm:$0xff]  }
 0x380   :  { %6665 = vmatprep.subr.bf16.mxu0 %v15458_v41  ;;  %6706 = vmatprep.subr.bf16.mxu1 %v15460_v31  ;;  %v16815_v31 = vld [vmem:[#allocation4 + $0xcc] ss:$16 sps:$4 sm:$0xff]  }
 0x383   :  { %6666 = vmatpush1.bf16.msra.mxu0 %v15457_v0  ;;  %6707 = vmatpush1.bf16.msra.mxu1 %v15459_v4  ;;  %v16810_v4 = vld [vmem:[#allocation4 + $0xc0] ss:$16 sps:$4 sm:$0xff]  }
 0x384   :  { %6667 = vmatprep.subr.bf16.mxu0 %v15466_v56  ;;  %6708 = vmatprep.subr.bf16.mxu1 %v15468_v63 }
 0x387   :  { %6668 = vmatpush1.bf16.msra.mxu0 %v15465_v36  ;;  %6709 = vmatpush1.bf16.msra.mxu1 %v15467_v27  ;;  %v16821_v36 = vld [vmem:[#allocation4 + $0xec] ss:$16 sps:$4 sm:$0xff]  }
 0x388   :  { %6669 = vmatprep.subr.bf16.mxu0 %v15474_v5  ;;  %6710 = vmatprep.subr.bf16.mxu1 %v15476_v40  ;;  %v16816_v5 = vld [vmem:[#allocation4 + $0xe0] ss:$16 sps:$4 sm:$0xff]  }
 0x38b   :  { %6670 = vmatpush1.bf16.msra.mxu0 %v15473_v62  ;;  %6711 = vmatpush1.bf16.msra.mxu1 %v15475_v23  ;;  %v16822_v62 = vld [vmem:[#allocation4 + $0x100] ss:$16 sps:$4 sm:$0xff]  }
 0x38c   :  { %6671 = vmatprep.subr.bf16.mxu0 %v15482_v52  ;;  %6712 = vmatprep.subr.bf16.mxu1 %v15484_v1  ;;  %v16825_v52 = vld [vmem:[#allocation4 + $0x108] ss:$16 sps:$4 sm:$0xff]   ;;  %v16830_v1 = vld [vmem:[#allocation4 + $0x124] ss:$16 sps:$4 sm:$0xff]  }
 0x38f   :  { %6672 = vmatpush1.bf16.msra.mxu0 %v15481_v54  ;;  %6713 = vmatpush1.bf16.msra.mxu1 %v15483_v39  ;;  %v16839_v54 = vld [vmem:[#allocation4 + $0x14c] ss:$16 sps:$4 sm:$0xff]   ;;  %v16834_v39 = vld [vmem:[#allocation4 + $0x140] ss:$16 sps:$4 sm:$0xff]  }
 0x390   :  { %6673 = vmatprep.subr.bf16.mxu0 %v15490_v7  ;;  %6714 = vmatprep.subr.bf16.mxu1 %v15492_v51  ;;  %v16837_v7 = vld [vmem:[#allocation4 + $0x148] ss:$16 sps:$4 sm:$0xff]   ;;  %v16842_v51 = vld [vmem:[#allocation4 + $0x164] ss:$16 sps:$4 sm:$0xff]  }
 0x393   :  { %6674 = vmatpush1.bf16.msra.mxu0 %v15489_v14  ;;  %6715 = vmatpush1.bf16.msra.mxu1 %v15491_v17  ;;  %v16845_v14 = vld [vmem:[#allocation4 + $0x16c] ss:$16 sps:$4 sm:$0xff]   ;;  %v16840_v17 = vld [vmem:[#allocation4 + $0x160] ss:$16 sps:$4 sm:$0xff]  }
 0x394   :  { %7915 = vmatprep.subr.bf16.mxu0 %v16774_v9  ;;  %8038 = vmatprep.subr.bf16.mxu1 %v16777_v30  ;;  %v16843_v9 = vld [vmem:[#allocation4 + $0x168] ss:$16 sps:$4 sm:$0xff]   ;;  %v16848_v30 = vld [vmem:[#allocation4 + $0x184] ss:$16 sps:$4 sm:$0xff]  }
 0x396   :  { %6676 = vmatmul.mubr.bf16.vlgmr.msra.gmra.mrb[52].mxu0 %v21458_v28  ;;  %6717 = vmatmul.mubr.bf16.vlgmr.msra.gmra.mrb[52].mxu1 %v21458_v28  ;;  %v16792_v28 = vld [vmem:[#allocation4 + $0x60] ss:$16 sps:$4 sm:$0xff]  }
 0x397   :  { %7916 = vmatpush1.bf16.msra.mxu0 %v16772_v15  ;;  %7947 = vmatprep.mubr.bf16.mxu0 %v15494_v37  ;;  %v16851_v15 = vld [vmem:[#allocation4 + $0x18c] ss:$16 sps:$4 sm:$0xff]  }
 0x398   :  { %8039 = vmatpush1.bf16.msra.mxu1 %v16775_v18  ;;  %8070 = vmatprep.mubr.bf16.mxu1 %v15494_v37  ;;  %v16846_v18 = vld [vmem:[#allocation4 + $0x180] ss:$16 sps:$4 sm:$0xff]   ;;  %v16854_v37 = vld [vmem:[#allocation4 + $0x1a4] ss:$16 sps:$4 sm:$0xff]  }
 0x399   :  { %7917 = vmatprep.subr.bf16.mxu0 %v16782_v8  ;;  %8040 = vmatprep.subr.bf16.mxu1 %v16785_v3  ;;  %v16849_v8 = vld [vmem:[#allocation4 + $0x188] ss:$16 sps:$4 sm:$0xff]   ;;  %v16857_v3 = vld [vmem:[#allocation4 + $0x1ac] ss:$16 sps:$4 sm:$0xff]  }
 0x39b   :  { %7918 = vmatpush1.bf16.msra.mxu0 %v16780_v42  ;;  %v16852_v42 = vld [vmem:[#allocation4 + $0x1a0] ss:$16 sps:$4 sm:$0xff]  }
 0x39c   :  { %8041 = vmatpush1.bf16.msra.mxu1 %v16783_v46  ;;  %7919 = vmatprep.subr.bf16.mxu0 %v16788_v33  ;;  %v16855_v46 = vld [vmem:[#allocation4 + $0x1a8] ss:$16 sps:$4 sm:$0xff]   ;;  %v16860_v33 = vld [vmem:[#allocation4 + $0x1c4] ss:$16 sps:$4 sm:$0xff]  }
 0x39d   :  { %8042 = vmatprep.subr.bf16.mxu1 %v16791_v59  ;;  %v16863_v59 = vld [vmem:[#allocation4 + $0x1cc] ss:$16 sps:$4 sm:$0xff]  }
 0x39f   :  { %7920 = vmatpush1.bf16.msra.mxu0 %v16786_v53  ;;  %v16858_v53 = vld [vmem:[#allocation4 + $0x1c0] ss:$16 sps:$4 sm:$0xff]  }
 0x3a0   :  { %8043 = vmatpush1.bf16.msra.mxu1 %v16789_v16  ;;  %7921 = vmatprep.subr.bf16.mxu0 %v16794_v35  ;;  %v16861_v16 = vld [vmem:[#allocation4 + $0x1c8] ss:$16 sps:$4 sm:$0xff]   ;;  %v16866_v35 = vld [vmem:[#allocation4 + $0x1e4] ss:$16 sps:$4 sm:$0xff]  }
 0x3a1   :  { %8044 = vmatprep.subr.bf16.mxu1 %v16797_v6  ;;  %v16869_v6 = vld [vmem:[#allocation4 + $0x1ec] ss:$16 sps:$4 sm:$0xff]  }
 0x3a3   :  { %7922 = vmatpush1.bf16.msra.mxu0 %v16792_v28  ;;  %v16864_v28 = vld [vmem:[#allocation4 + $0x1e0] ss:$16 sps:$4 sm:$0xff]  }
 0x3a4   :  { %8045 = vmatpush1.bf16.msra.mxu1 %v16795_v20  ;;  %7923 = vmatprep.subr.bf16.mxu0 %v16800_v61  ;;  %v16867_v20 = vld [vmem:[#allocation4 + $0x1e8] ss:$16 sps:$4 sm:$0xff]   ;;  %v16872_v61 = vld [vmem:[#allocation4 + $0x204] ss:$16 sps:$4 sm:$0xff]  }
 0x3a5   :  { %8046 = vmatprep.subr.bf16.mxu1 %v16803_v48  ;;  %v16875_v48 = vld [vmem:[#allocation4 + $0x20c] ss:$16 sps:$4 sm:$0xff]  }
 0x3a7   :  { %7924 = vmatpush1.bf16.msra.mxu0 %v16798_v22  ;;  %v16870_v22 = vld [vmem:[#allocation4 + $0x200] ss:$16 sps:$4 sm:$0xff]  }
 0x3a8   :  { %8047 = vmatpush1.bf16.msra.mxu1 %v16801_v49  ;;  %7925 = vmatprep.subr.bf16.mxu0 %v16806_v50  ;;  %v21651_v49 = vld [vmem:[#allocation2 + $0x8] sm:$0xff]  ;;  %v15493_v50 = vcombine.low %v21644_v29, %v21644_v29 }
 0x3a9   :  { %v5641_v41 = vpop.f32.mrb[40].mxu0  ;;  %8048 = vmatprep.subr.bf16.mxu1 %v16809_v55  ;;  %v5682_v32 = vpop.f32.mrb[40].mxu1  ;;  %v16873_v55 = vld [vmem:[#allocation4 + $0x208] ss:$16 sps:$4 sm:$0xff]   ;;  %v16889_v29 = vld [vmem:[#allocation4 + $0x24c] ss:$16 sps:$4 sm:$0xff]  }
 0x3aa   :  { %v5643_v60 = vpop.f32.mrb[41].mxu0  ;;  %v5684_v12 = vpop.f32.mrb[41].mxu1 }
 0x3ab   :  { %v5771_v2 = vmax.f32 %v5641_v41, %v5643_v60  ;;  %v5645_v0 = vpop.f32.mrb[42].mxu0  ;;  %7926 = vmatpush1.bf16.msra.mxu0 %v16804_v11  ;;  %v5772_v56 = vmax.f32 %v5682_v32, %v5684_v12  ;;  %v5686_v63 = vpop.f32.mrb[42].mxu1  ;;  %v16880_v11 = vld [vmem:[#allocation4 + $0x224] ss:$16 sps:$4 sm:$0xff]   ;;  %v16878_v41 = vld [vmem:[#allocation4 + $0x220] ss:$16 sps:$4 sm:$0xff]  }
 0x3ac   :  { %8049 = vmatpush1.bf16.msra.mxu1 %v16807_v24  ;;  %v5646_v21 = vpop.f32.mrb[43].mxu0  ;;  %7927 = vmatprep.subr.bf16.mxu0 %v16812_v25  ;;  %v5687_v26 = vpop.f32.mrb[43].mxu1  ;;  %v21657_v24 = vcombine.high %v21651_v49, %v21651_v49  ;;  %v16883_v25 = vld [vmem:[#allocation4 + $0x22c] ss:$16 sps:$4 sm:$0xff]   ;;  %v16886_v32 = vld [vmem:[#allocation4 + $0x244] ss:$16 sps:$4 sm:$0xff]  }
 0x3ad   :  { %8050 = vmatprep.subr.bf16.mxu1 %v16815_v31  ;;  %v5773_v27 = vmax.f32 %v5771_v2, %v5772_v56  ;;  %v16881_v31 = vld [vmem:[#allocation4 + $0x228] ss:$16 sps:$4 sm:$0xff]   ;;  %v16884_v60 = vld [vmem:[#allocation4 + $0x240] ss:$16 sps:$4 sm:$0xff]   ;;  %v16892_v12 = vld [vmem:[#allocation4 + $0x264] ss:$16 sps:$4 sm:$0xff]  }
 0x3ae   :  { %v16887_v2 = vld [vmem:[#allocation4 + $0x248] ss:$16 sps:$4 sm:$0xff]   ;;  %v16895_v0 = vld [vmem:[#allocation4 + $0x26c] ss:$16 sps:$4 sm:$0xff]   ;;  %v16898_v63 = vld [vmem:[#allocation4 + $0x284] ss:$16 sps:$4 sm:$0xff]  }
 0x3af   :  { %7928 = vmatpush1.bf16.msra.mxu0 %v16810_v4  ;;  %v5774_v40 = vadd.f32 %v21557_v58, %v5773_v27  ;;  %v16890_v4 = vld [vmem:[#allocation4 + $0x260] ss:$16 sps:$4 sm:$0xff]   ;;  %v16893_v56 = vld [vmem:[#allocation4 + $0x268] ss:$16 sps:$4 sm:$0xff]   ;;  %v16901_v21 = vld [vmem:[#allocation4 + $0x28c] ss:$16 sps:$4 sm:$0xff]  }
 0x3b0   :  { %8051 = vmatpush1.bf16.msra.mxu1 %v16813_v57  ;;  %7929 = vmatprep.subr.bf16.mxu0 %v16818_v19  ;;  %v16896_v57 = vld [vmem:[#allocation4 + $0x280] ss:$16 sps:$4 sm:$0xff]   ;;  %v16899_v19 = vld [vmem:[#allocation4 + $0x288] ss:$16 sps:$4 sm:$0xff]   ;;  %v16904_v26 = vld [vmem:[#allocation4 + $0x2a4] ss:$16 sps:$4 sm:$0xff]  }
 0x3b1   :  { %8052 = vmatprep.subr.bf16.mxu1 %v16821_v36  ;;  %v5775_v13 = vmax.f32 %v5774_v40, 0.0  ;;  %v16907_v36 = vld [vmem:[#allocation4 + $0x2ac] ss:$16 sps:$4 sm:$0xff]   ;;  %v16902_v27 = vld [vmem:[#allocation4 + $0x2a0] ss:$16 sps:$4 sm:$0xff]  }
 0x3b2   :  { %v16910_v40 = vld [vmem:[#allocation4 + $0x2c4] ss:$16 sps:$4 sm:$0xff]  }
 0x3b3   :  { %7930 = vmatpush1.bf16.msra.mxu0 %v16816_v5  ;;  %v5776_v23 = vpack.c.bf16 %v5775_v13, %v5775_v13  ;;  %v16905_v5 = vld [vmem:[#allocation4 + $0x2a8] ss:$16 sps:$4 sm:$0xff]  }
 0x3b4   :  { %8053 = vmatpush1.bf16.msra.mxu1 %v16819_v38  ;;  %7931 = vmatprep.subr.bf16.mxu0 %v16824_v47  ;;  %v16913_v47 = vld [vmem:[#allocation4 + $0x2cc] ss:$16 sps:$4 sm:$0xff]  }
 0x3b5   :  { %8054 = vmatprep.subr.bf16.mxu1 %v16827_v45  ;;  %5777 = vst [vmem:[#allocation2 + $0x28] sm:$0xf] %v5776_v23 }
 0x3b7   :  { %7932 = vmatpush1.bf16.msra.mxu0 %v16822_v62 }
 0x3b8   :  { %8055 = vmatpush1.bf16.msra.mxu1 %v16825_v52  ;;  %7933 = vmatprep.subr.bf16.mxu0 %v16830_v1  ;;  %v16908_v1 = vld [vmem:[#allocation4 + $0x2c0] ss:$16 sps:$4 sm:$0xff]  }
 0x3b9   :  { %8056 = vmatprep.subr.bf16.mxu1 %v16833_v10 }
 0x3bb   :  { %7934 = vmatpush1.bf16.msra.mxu0 %v16828_v44 }
 0x3bc   :  { %8057 = vmatpush1.bf16.msra.mxu1 %v16831_v34  ;;  %7935 = vmatprep.subr.bf16.mxu0 %v16836_v43  ;;  %v16911_v43 = vld [vmem:[#allocation4 + $0x2c8] ss:$16 sps:$4 sm:$0xff]  }
 0x3bd   :  { %8058 = vmatprep.subr.bf16.mxu1 %v16839_v54  ;;  %v16916_v54 = vld [vmem:[#allocation4 + $0x2e4] ss:$16 sps:$4 sm:$0xff]  }
 0x3bf   :  { %7936 = vmatpush1.bf16.msra.mxu0 %v16834_v39 }
 0x3c0   :  { %8059 = vmatpush1.bf16.msra.mxu1 %v16837_v7  ;;  %7937 = vmatprep.subr.bf16.mxu0 %v16842_v51  ;;  %v16919_v7 = vld [vmem:[#allocation4 + $0x2ec] ss:$16 sps:$4 sm:$0xff]  }
 0x3c1   :  { %8060 = vmatprep.subr.bf16.mxu1 %v16845_v14  ;;  %v16914_v14 = vld [vmem:[#allocation4 + $0x2e0] ss:$16 sps:$4 sm:$0xff]  }
 0x3c3   :  { %7938 = vmatpush1.bf16.msra.mxu0 %v16840_v17 }
 0x3c4   :  { %8061 = vmatpush1.bf16.msra.mxu1 %v16843_v9  ;;  %7939 = vmatprep.subr.bf16.mxu0 %v16848_v30  ;;  %v16917_v9 = vld [vmem:[#allocation4 + $0x2e8] ss:$16 sps:$4 sm:$0xff]   ;;  %v16922_v30 = vld [vmem:[#allocation4 + $0x304] ss:$16 sps:$4 sm:$0xff]  }
 0x3c5   :  { %8062 = vmatprep.subr.bf16.mxu1 %v16851_v15  ;;  %v16925_v15 = vld [vmem:[#allocation4 + $0x30c] ss:$16 sps:$4 sm:$0xff]  }
 0x3c7   :  { %7940 = vmatpush1.bf16.msra.mxu0 %v16846_v18 }
 0x3c8   :  { %8063 = vmatpush1.bf16.msra.mxu1 %v16849_v8  ;;  %7941 = vmatprep.subr.bf16.mxu0 %v16854_v37  ;;  %v16920_v8 = vld [vmem:[#allocation4 + $0x300] ss:$16 sps:$4 sm:$0xff]  }
 0x3c9   :  { %8064 = vmatprep.subr.bf16.mxu1 %v16857_v3  ;;  %v16923_v3 = vld [vmem:[#allocation4 + $0x308] ss:$16 sps:$4 sm:$0xff]  }
 0x3cb   :  { %7942 = vmatpush1.bf16.msra.mxu0 %v16852_v42  ;;  %v16928_v42 = vld [vmem:[#allocation4 + $0x324] ss:$16 sps:$4 sm:$0xff]  }
 0x3cc   :  { %8065 = vmatpush1.bf16.msra.mxu1 %v16855_v46  ;;  %7943 = vmatprep.subr.bf16.mxu0 %v16860_v33  ;;  %v16931_v46 = vld [vmem:[#allocation4 + $0x32c] ss:$16 sps:$4 sm:$0xff]   ;;  %v16926_v33 = vld [vmem:[#allocation4 + $0x320] ss:$16 sps:$4 sm:$0xff]  }
 0x3cd   :  { %8066 = vmatprep.subr.bf16.mxu1 %v16863_v59  ;;  %v16929_v59 = vld [vmem:[#allocation4 + $0x328] ss:$16 sps:$4 sm:$0xff]  }
 0x3cf   :  { %7944 = vmatpush1.bf16.msra.mxu0 %v16858_v53  ;;  %v16934_v53 = vld [vmem:[#allocation4 + $0x344] ss:$16 sps:$4 sm:$0xff]  }
 0x3d0   :  { %8067 = vmatpush1.bf16.msra.mxu1 %v16861_v16  ;;  %7945 = vmatprep.subr.bf16.mxu0 %v16866_v35  ;;  %v16937_v16 = vld [vmem:[#allocation4 + $0x34c] ss:$16 sps:$4 sm:$0xff]   ;;  %v16932_v35 = vld [vmem:[#allocation4 + $0x340] ss:$16 sps:$4 sm:$0xff]  }
 0x3d1   :  { %8068 = vmatprep.subr.bf16.mxu1 %v16869_v6  ;;  %v16935_v6 = vld [vmem:[#allocation4 + $0x348] ss:$16 sps:$4 sm:$0xff]  }
 0x3d3   :  { %7946 = vmatpush1.bf16.msra.mxu0 %v16864_v28  ;;  %v16940_v28 = vld [vmem:[#allocation4 + $0x364] ss:$16 sps:$4 sm:$0xff]  }
 0x3d4   :  { %8069 = vmatpush1.bf16.msra.mxu1 %v16867_v20  ;;  %7956 = vmatprep.subr.bf16.mxu0 %v16872_v61  ;;  %v16943_v20 = vld [vmem:[#allocation4 + $0x36c] ss:$16 sps:$4 sm:$0xff]   ;;  %v16938_v61 = vld [vmem:[#allocation4 + $0x360] ss:$16 sps:$4 sm:$0xff]  }
 0x3d5   :  { %8079 = vmatprep.subr.bf16.mxu1 %v16875_v48  ;;  %v16941_v48 = vld [vmem:[#allocation4 + $0x368] ss:$16 sps:$4 sm:$0xff]  }
 0x3d6   :  { %7948 = vmatmul.mubr.bf16.vlgmr.msra.gmra.mrb[56].mxu0 %v15493_v50 }
 0x3d7   :  { %8071 = vmatmul.mubr.bf16.vlgmr.msra.gmra.mrb[56].mxu1 %v15493_v50  ;;  %7957 = vmatpush1.bf16.msra.mxu0 %v16870_v22  ;;  %v16946_v22 = vld [vmem:[#allocation4 + $0x384] ss:$16 sps:$4 sm:$0xff]   ;;  %v16949_v50 = vld [vmem:[#allocation4 + $0x38c] ss:$16 sps:$4 sm:$0xff]  }
 0x3d8   :  { %7988 = vmatprep.mubr.bf16.mxu0 %v21657_v24  ;;  %8080 = vmatpush1.bf16.msra.mxu1 %v16873_v55  ;;  %v16944_v55 = vld [vmem:[#allocation4 + $0x380] ss:$16 sps:$4 sm:$0xff]  }
 0x3d9   :  { %8111 = vmatprep.mubr.bf16.mxu1 %v21657_v24  ;;  %7958 = vmatprep.subr.bf16.mxu0 %v16880_v11  ;;  %v16947_v11 = vld [vmem:[#allocation4 + $0x388] ss:$16 sps:$4 sm:$0xff]  }
 0x3da   :  { %8081 = vmatprep.subr.bf16.mxu1 %v16883_v25  ;;  %v16952_v25 = vld [vmem:[#allocation4 + $0x3a4] ss:$16 sps:$4 sm:$0xff]  }
 0x3db   :  { %7959 = vmatpush1.bf16.msra.mxu0 %v16878_v41  ;;  %v16955_v41 = vld [vmem:[#allocation4 + $0x3ac] ss:$16 sps:$4 sm:$0xff]  }
 0x3dc   :  { %8082 = vmatpush1.bf16.msra.mxu1 %v16881_v31  ;;  %7960 = vmatprep.subr.bf16.mxu0 %v16886_v32  ;;  %v16950_v31 = vld [vmem:[#allocation4 + $0x3a0] ss:$16 sps:$4 sm:$0xff]   ;;  %v16953_v32 = vld [vmem:[#allocation4 + $0x3a8] ss:$16 sps:$4 sm:$0xff]  }
 0x3dd   :  { %8083 = vmatprep.subr.bf16.mxu1 %v16889_v29  ;;  %v16958_v29 = vld [vmem:[#allocation4 + $0x3c4] ss:$16 sps:$4 sm:$0xff]  }
 0x3df   :  { %7961 = vmatpush1.bf16.msra.mxu0 %v16884_v60  ;;  %v16961_v60 = vld [vmem:[#allocation4 + $0x3cc] ss:$16 sps:$4 sm:$0xff]  }
 0x3e0   :  { %8084 = vmatpush1.bf16.msra.mxu1 %v16887_v2  ;;  %7962 = vmatprep.subr.bf16.mxu0 %v16892_v12  ;;  %v16956_v2 = vld [vmem:[#allocation4 + $0x3c0] ss:$16 sps:$4 sm:$0xff]   ;;  %v16959_v12 = vld [vmem:[#allocation4 + $0x3c8] ss:$16 sps:$4 sm:$0xff]  }
 0x3e1   :  { %8085 = vmatprep.subr.bf16.mxu1 %v16895_v0  ;;  %v16964_v0 = vld [vmem:[#allocation4 + $0x3e4] ss:$16 sps:$4 sm:$0xff]  }
 0x3e3   :  { %7963 = vmatpush1.bf16.msra.mxu0 %v16890_v4  ;;  %v16967_v4 = vld [vmem:[#allocation4 + $0x3ec] ss:$16 sps:$4 sm:$0xff]  }
 0x3e4   :  { %8086 = vmatpush1.bf16.msra.mxu1 %v16893_v56  ;;  %7964 = vmatprep.subr.bf16.mxu0 %v16898_v63  ;;  %v16962_v56 = vld [vmem:[#allocation4 + $0x3e0] ss:$16 sps:$4 sm:$0xff]   ;;  %v16965_v63 = vld [vmem:[#allocation4 + $0x3e8] ss:$16 sps:$4 sm:$0xff]  }
 0x3e5   :  { %8087 = vmatprep.subr.bf16.mxu1 %v16901_v21  ;;  %v16970_v21 = vld [vmem:[#allocation4 + $0x404] ss:$16 sps:$4 sm:$0xff]  }
 0x3e7   :  { %7965 = vmatpush1.bf16.msra.mxu0 %v16896_v57  ;;  %v16973_v57 = vld [vmem:[#allocation4 + $0x40c] ss:$16 sps:$4 sm:$0xff]  }
 0x3e8   :  { %8088 = vmatpush1.bf16.msra.mxu1 %v16899_v19  ;;  %7966 = vmatprep.subr.bf16.mxu0 %v16904_v26  ;;  %v16968_v19 = vld [vmem:[#allocation4 + $0x400] ss:$16 sps:$4 sm:$0xff]   ;;  %v21662_v26 = vld [vmem:[#allocation2 + $0x10] sm:$0xff] }
 0x3e9   :  { %v5723_v38 = vpop.f32.mrb[44].mxu0  ;;  %8089 = vmatprep.subr.bf16.mxu1 %v16907_v36  ;;  %v5764_v45 = vpop.f32.mrb[44].mxu1  ;;  %v21666_v36 = vcombine.low %v21651_v49, %v21651_v49  ;;  %v16979_v49 = vld [vmem:[#allocation4 + $0x428] ss:$16 sps:$4 sm:$0xff]  }
 0x3ea   :  { %v5725_v13 = vpop.f32.mrb[45].mxu0  ;;  %v5766_v23 = vpop.f32.mrb[45].mxu1 }
 0x3eb   :  { %v5778_v62 = vmax.f32 %v5723_v38, %v5725_v13  ;;  %v5727_v52 = vpop.f32.mrb[46].mxu0  ;;  %7967 = vmatpush1.bf16.msra.mxu0 %v16902_v27  ;;  %v5779_v10 = vmax.f32 %v5764_v45, %v5766_v23  ;;  %v5768_v44 = vpop.f32.mrb[46].mxu1  ;;  %v16971_v27 = vld [vmem:[#allocation4 + $0x408] ss:$16 sps:$4 sm:$0xff]   ;;  %v16981_v38 = vld [vmem:[#allocation4 + $0x42c] ss:$16 sps:$4 sm:$0xff]  }
 0x3ec   :  { %8090 = vmatpush1.bf16.msra.mxu1 %v16905_v5  ;;  %v5728_v34 = vpop.f32.mrb[47].mxu0  ;;  %7968 = vmatprep.subr.bf16.mxu0 %v16910_v40  ;;  %v5769_v39 = vpop.f32.mrb[47].mxu1  ;;  %v16978_v5 = vld [vmem:[#allocation4 + $0x424] ss:$16 sps:$4 sm:$0xff]   ;;  %v21671_v40 = vcombine.high %v21662_v26, %v21662_v26  ;;  %v16987_v13 = vld [vmem:[#allocation4 + $0x44c] ss:$16 sps:$4 sm:$0xff]  }
 0x3ed   :  { %8091 = vmatprep.subr.bf16.mxu1 %v16913_v47  ;;  %v5780_v51 = vmax.f32 %v5778_v62, %v5779_v10  ;;  %v16976_v47 = vld [vmem:[#allocation4 + $0x420] ss:$16 sps:$4 sm:$0xff]   ;;  %v16984_v45 = vld [vmem:[#allocation4 + $0x444] ss:$16 sps:$4 sm:$0xff]   ;;  %v16985_v23 = vld [vmem:[#allocation4 + $0x448] ss:$16 sps:$4 sm:$0xff]  }
 0x3ee   :  { %v16982_v62 = vld [vmem:[#allocation4 + $0x440] ss:$16 sps:$4 sm:$0xff]   ;;  %v16990_v52 = vld [vmem:[#allocation4 + $0x464] ss:$16 sps:$4 sm:$0xff]   ;;  %v16991_v44 = vld [vmem:[#allocation4 + $0x468] ss:$16 sps:$4 sm:$0xff]  }
 0x3ef   :  { %7969 = vmatpush1.bf16.msra.mxu0 %v16908_v1  ;;  %v5781_v17 = vadd.f32 %v21557_v58, %v5780_v51  ;;  %v16993_v1 = vld [vmem:[#allocation4 + $0x46c] ss:$16 sps:$4 sm:$0xff]   ;;  %v16988_v10 = vld [vmem:[#allocation4 + $0x460] ss:$16 sps:$4 sm:$0xff]   ;;  %v16996_v34 = vld [vmem:[#allocation4 + $0x484] ss:$16 sps:$4 sm:$0xff]  }
 0x3f0   :  { %8092 = vmatpush1.bf16.msra.mxu1 %v16911_v43  ;;  %7970 = vmatprep.subr.bf16.mxu0 %v16916_v54  ;;  %v16999_v43 = vld [vmem:[#allocation4 + $0x48c] ss:$16 sps:$4 sm:$0xff]   ;;  %v16994_v54 = vld [vmem:[#allocation4 + $0x480] ss:$16 sps:$4 sm:$0xff]   ;;  %v16997_v39 = vld [vmem:[#allocation4 + $0x488] ss:$16 sps:$4 sm:$0xff]  }
 0x3f1   :  { %8093 = vmatprep.subr.bf16.mxu1 %v16919_v7  ;;  %v5782_v18 = vmax.f32 %v5781_v17, 0.0  ;;  %v17002_v7 = vld [vmem:[#allocation4 + $0x4a4] ss:$16 sps:$4 sm:$0xff]   ;;  %v17005_v51 = vld [vmem:[#allocation4 + $0x4ac] ss:$16 sps:$4 sm:$0xff]  }
 0x3f2   :  { %v17003_v17 = vld [vmem:[#allocation4 + $0x4a8] ss:$16 sps:$4 sm:$0xff]  }
 0x3f3   :  { %7971 = vmatpush1.bf16.msra.mxu0 %v16914_v14  ;;  %v5783_v37 = vpack.c.bf16 %v5782_v18, %v5782_v18  ;;  %v17000_v14 = vld [vmem:[#allocation4 + $0x4a0] ss:$16 sps:$4 sm:$0xff]  }
 0x3f4   :  { %8094 = vmatpush1.bf16.msra.mxu1 %v16917_v9  ;;  %7972 = vmatprep.subr.bf16.mxu0 %v16922_v30  ;;  %v17008_v9 = vld [vmem:[#allocation4 + $0x4c4] ss:$16 sps:$4 sm:$0xff]  }
 0x3f5   :  { %8095 = vmatprep.subr.bf16.mxu1 %v16925_v15  ;;  %5784 = vst [vmem:[#allocation2 + $0x2c] sm:$0xf] %v5783_v37  ;;  %v17011_v15 = vld [vmem:[#allocation4 + $0x4cc] ss:$16 sps:$4 sm:$0xff]  }
 0x3f7   :  { %7973 = vmatpush1.bf16.msra.mxu0 %v16920_v8 }
 0x3f8   :  { %8096 = vmatpush1.bf16.msra.mxu1 %v16923_v3  ;;  %7974 = vmatprep.subr.bf16.mxu0 %v16928_v42 }
 0x3f9   :  { %8097 = vmatprep.subr.bf16.mxu1 %v16931_v46  ;;  %v17006_v46 = vld [vmem:[#allocation4 + $0x4c0] ss:$16 sps:$4 sm:$0xff]  }
 0x3fb   :  { %7975 = vmatpush1.bf16.msra.mxu0 %v16926_v33 }
 0x3fc   :  { %8098 = vmatpush1.bf16.msra.mxu1 %v16929_v59  ;;  %7976 = vmatprep.subr.bf16.mxu0 %v16934_v53 }
 0x3fd   :  { %8099 = vmatprep.subr.bf16.mxu1 %v16937_v16  ;;  %v17009_v16 = vld [vmem:[#allocation4 + $0x4c8] ss:$16 sps:$4 sm:$0xff]  }
 0x3ff   :  { %7977 = vmatpush1.bf16.msra.mxu0 %v16932_v35  ;;  %v17014_v35 = vld [vmem:[#allocation4 + $0x4e4] ss:$16 sps:$4 sm:$0xff]  }
 0x400   :  { %8100 = vmatpush1.bf16.msra.mxu1 %v16935_v6  ;;  %7978 = vmatprep.subr.bf16.mxu0 %v16940_v28  ;;  %v17017_v28 = vld [vmem:[#allocation4 + $0x4ec] ss:$16 sps:$4 sm:$0xff]  }
 0x401   :  { %8101 = vmatprep.subr.bf16.mxu1 %v16943_v20 }
 0x403   :  { %7979 = vmatpush1.bf16.msra.mxu0 %v16938_v61  ;;  %v17012_v61 = vld [vmem:[#allocation4 + $0x4e0] ss:$16 sps:$4 sm:$0xff]  }
 0x404   :  { %8102 = vmatpush1.bf16.msra.mxu1 %v16941_v48  ;;  %7980 = vmatprep.subr.bf16.mxu0 %v16946_v22  ;;  %v17015_v22 = vld [vmem:[#allocation4 + $0x4e8] ss:$16 sps:$4 sm:$0xff]  }
 0x405   :  { %8103 = vmatprep.subr.bf16.mxu1 %v16949_v50  ;;  %v17020_v50 = vld [vmem:[#allocation4 + $0x504] ss:$16 sps:$4 sm:$0xff]  }
 0x407   :  { %7981 = vmatpush1.bf16.msra.mxu0 %v16944_v55  ;;  %v17023_v55 = vld [vmem:[#allocation4 + $0x50c] ss:$16 sps:$4 sm:$0xff]  }
 0x408   :  { %8104 = vmatpush1.bf16.msra.mxu1 %v16947_v11  ;;  %7982 = vmatprep.subr.bf16.mxu0 %v16952_v25  ;;  %v17018_v25 = vld [vmem:[#allocation4 + $0x500] ss:$16 sps:$4 sm:$0xff]  }
 0x409   :  { %8105 = vmatprep.subr.bf16.mxu1 %v16955_v41 }
 0x40b   :  { %7983 = vmatpush1.bf16.msra.mxu0 %v16950_v31  ;;  %v17021_v31 = vld [vmem:[#allocation4 + $0x508] ss:$16 sps:$4 sm:$0xff]  }
 0x40c   :  { %8106 = vmatpush1.bf16.msra.mxu1 %v16953_v32  ;;  %7984 = vmatprep.subr.bf16.mxu0 %v16958_v29  ;;  %v17026_v32 = vld [vmem:[#allocation4 + $0x524] ss:$16 sps:$4 sm:$0xff]   ;;  %v17029_v29 = vld [vmem:[#allocation4 + $0x52c] ss:$16 sps:$4 sm:$0xff]  }
 0x40d   :  { %8107 = vmatprep.subr.bf16.mxu1 %v16961_v60  ;;  %v17024_v60 = vld [vmem:[#allocation4 + $0x520] ss:$16 sps:$4 sm:$0xff]  }
 0x40f   :  { %7985 = vmatpush1.bf16.msra.mxu0 %v16956_v2  ;;  %v17032_v2 = vld [vmem:[#allocation4 + $0x544] ss:$16 sps:$4 sm:$0xff]  }
 0x410   :  { %8108 = vmatpush1.bf16.msra.mxu1 %v16959_v12  ;;  %7986 = vmatprep.subr.bf16.mxu0 %v16964_v0  ;;  %v17035_v12 = vld [vmem:[#allocation4 + $0x54c] ss:$16 sps:$4 sm:$0xff]   ;;  %v17030_v0 = vld [vmem:[#allocation4 + $0x540] ss:$16 sps:$4 sm:$0xff]  }
 0x411   :  { %8109 = vmatprep.subr.bf16.mxu1 %v16967_v4  ;;  %v17033_v4 = vld [vmem:[#allocation4 + $0x548] ss:$16 sps:$4 sm:$0xff]  }
 0x413   :  { %7987 = vmatpush1.bf16.msra.mxu0 %v16962_v56  ;;  %v17038_v56 = vld [vmem:[#allocation4 + $0x564] ss:$16 sps:$4 sm:$0xff]  }
 0x414   :  { %8110 = vmatpush1.bf16.msra.mxu1 %v16965_v63  ;;  %7997 = vmatprep.subr.bf16.mxu0 %v16970_v21  ;;  %v17041_v63 = vld [vmem:[#allocation4 + $0x56c] ss:$16 sps:$4 sm:$0xff]   ;;  %v17036_v21 = vld [vmem:[#allocation4 + $0x560] ss:$16 sps:$4 sm:$0xff]  }
 0x415   :  { %8120 = vmatprep.subr.bf16.mxu1 %v16973_v57  ;;  %v17039_v57 = vld [vmem:[#allocation4 + $0x568] ss:$16 sps:$4 sm:$0xff]  }
 0x416   :  { %7989 = vmatmul.mubr.bf16.vlgmr.msra.gmra.mrb[56].mxu0 %v21666_v36 }
 0x417   :  { %8112 = vmatmul.mubr.bf16.vlgmr.msra.gmra.mrb[56].mxu1 %v21666_v36  ;;  %7998 = vmatpush1.bf16.msra.mxu0 %v16968_v19  ;;  %v17044_v19 = vld [vmem:[#allocation4 + $0x584] ss:$16 sps:$4 sm:$0xff]  }
 0x418   :  { %8029 = vmatprep.mubr.bf16.mxu0 %v21671_v40  ;;  %8121 = vmatpush1.bf16.msra.mxu1 %v16971_v27  ;;  %v17047_v27 = vld [vmem:[#allocation4 + $0x58c] ss:$16 sps:$4 sm:$0xff]  }
 0x419   :  { %8152 = vmatprep.mubr.bf16.mxu1 %v21671_v40  ;;  %7999 = vmatprep.subr.bf16.mxu0 %v16978_v5  ;;  %v17042_v5 = vld [vmem:[#allocation4 + $0x580] ss:$16 sps:$4 sm:$0xff]  }
 0x41a   :  { %8122 = vmatprep.subr.bf16.mxu1 %v16981_v38  ;;  %v17045_v38 = vld [vmem:[#allocation4 + $0x588] ss:$16 sps:$4 sm:$0xff]  }
 0x41b   :  { %8000 = vmatpush1.bf16.msra.mxu0 %v16976_v47  ;;  %v17050_v47 = vld [vmem:[#allocation4 + $0x5a4] ss:$16 sps:$4 sm:$0xff]  }
 0x41c   :  { %8123 = vmatpush1.bf16.msra.mxu1 %v16979_v49  ;;  %8001 = vmatprep.subr.bf16.mxu0 %v16984_v45  ;;  %v17053_v49 = vld [vmem:[#allocation4 + $0x5ac] ss:$16 sps:$4 sm:$0xff]   ;;  %v17048_v45 = vld [vmem:[#allocation4 + $0x5a0] ss:$16 sps:$4 sm:$0xff]  }
 0x41d   :  { %8124 = vmatprep.subr.bf16.mxu1 %v16987_v13  ;;  %v17051_v13 = vld [vmem:[#allocation4 + $0x5a8] ss:$16 sps:$4 sm:$0xff]  }
 0x41f   :  { %8002 = vmatpush1.bf16.msra.mxu0 %v16982_v62  ;;  %v17056_v62 = vld [vmem:[#allocation4 + $0x5c4] ss:$16 sps:$4 sm:$0xff]  }
 0x420   :  { %8125 = vmatpush1.bf16.msra.mxu1 %v16985_v23  ;;  %8003 = vmatprep.subr.bf16.mxu0 %v16990_v52  ;;  %v17059_v23 = vld [vmem:[#allocation4 + $0x5cc] ss:$16 sps:$4 sm:$0xff]   ;;  %v17054_v52 = vld [vmem:[#allocation4 + $0x5c0] ss:$16 sps:$4 sm:$0xff]  }
 0x421   :  { %8126 = vmatprep.subr.bf16.mxu1 %v16993_v1  ;;  %v17057_v1 = vld [vmem:[#allocation4 + $0x5c8] ss:$16 sps:$4 sm:$0xff]  }
 0x423   :  { %8004 = vmatpush1.bf16.msra.mxu0 %v16988_v10  ;;  %v17062_v10 = vld [vmem:[#allocation4 + $0x5e4] ss:$16 sps:$4 sm:$0xff]  }
 0x424   :  { %8127 = vmatpush1.bf16.msra.mxu1 %v16991_v44  ;;  %8005 = vmatprep.subr.bf16.mxu0 %v16996_v34  ;;  %v17065_v44 = vld [vmem:[#allocation4 + $0x5ec] ss:$16 sps:$4 sm:$0xff]   ;;  %v17060_v34 = vld [vmem:[#allocation4 + $0x5e0] ss:$16 sps:$4 sm:$0xff]  }
 0x425   :  { %8128 = vmatprep.subr.bf16.mxu1 %v16999_v43  ;;  %v17063_v43 = vld [vmem:[#allocation4 + $0x5e8] ss:$16 sps:$4 sm:$0xff]  }
 0x427   :  { %8006 = vmatpush1.bf16.msra.mxu0 %v16994_v54  ;;  %v17068_v54 = vld [vmem:[#allocation4 + $0x4] ss:$16 sps:$4 sm:$0xff]  }
 0x428   :  { %8129 = vmatpush1.bf16.msra.mxu1 %v16997_v39  ;;  %8007 = vmatprep.subr.bf16.mxu0 %v17002_v7  ;;  %v17071_v39 = vld [vmem:[#allocation4 + $0xc] ss:$16 sps:$4 sm:$0xff]   ;;  %v17066_v7 = vld [vmem:[#allocation4] ss:$16 sps:$4 sm:$0xff]  }
 0x429   :  { %v6595_v30 = vpop.f32.mrb[48].mxu0  ;;  %8130 = vmatprep.subr.bf16.mxu1 %v17005_v51  ;;  %v6636_v18 = vpop.f32.mrb[48].mxu1  ;;  %v21679_v51 = vcombine.low %v21662_v26, %v21662_v26  ;;  %v17083_v26 = vld [vmem:[#allocation4 + $0x4c] ss:$16 sps:$4 sm:$0xff]  }
 0x42a   :  { %v6597_v8 = vpop.f32.mrb[49].mxu0  ;;  %v6638_v3 = vpop.f32.mrb[49].mxu1 }
 0x42b   :  { %v6725_v37 = vmax.f32 %v6595_v30, %v6597_v8  ;;  %v6599_v42 = vpop.f32.mrb[50].mxu0  ;;  %8008 = vmatpush1.bf16.msra.mxu0 %v17000_v14  ;;  %v6726_v33 = vmax.f32 %v6636_v18, %v6638_v3  ;;  %v6640_v59 = vpop.f32.mrb[50].mxu1  ;;  %v17069_v14 = vld [vmem:[#allocation4 + $0x8] ss:$16 sps:$4 sm:$0xff]   ;;  %v17072_v30 = vld [vmem:[#allocation4 + $0x20] ss:$16 sps:$4 sm:$0xff]  }
 0x42c   :  { %8131 = vmatpush1.bf16.msra.mxu1 %v17003_v17  ;;  %v6600_v53 = vpop.f32.mrb[51].mxu0  ;;  %8009 = vmatprep.subr.bf16.mxu0 %v17008_v9  ;;  %v6641_v6 = vpop.f32.mrb[51].mxu1  ;;  %v17074_v17 = vld [vmem:[#allocation4 + $0x24] ss:$16 sps:$4 sm:$0xff]   ;;  %v17077_v9 = vld [vmem:[#allocation4 + $0x2c] ss:$16 sps:$4 sm:$0xff]  }
 0x42d   :  { %8132 = vmatprep.subr.bf16.mxu1 %v17011_v15  ;;  %v6727_v20 = vmax.f32 %v6725_v37, %v6726_v33  ;;  %v17075_v15 = vld [vmem:[#allocation4 + $0x28] ss:$16 sps:$4 sm:$0xff]   ;;  %v17080_v18 = vld [vmem:[#allocation4 + $0x44] ss:$16 sps:$4 sm:$0xff]   ;;  %v17078_v8 = vld [vmem:[#allocation4 + $0x40] ss:$16 sps:$4 sm:$0xff]  }
 0x42e   :  { %v17081_v37 = vld [vmem:[#allocation4 + $0x48] ss:$16 sps:$4 sm:$0xff]   ;;  %v17086_v3 = vld [vmem:[#allocation4 + $0x64] ss:$16 sps:$4 sm:$0xff]   ;;  %v17089_v42 = vld [vmem:[#allocation4 + $0x6c] ss:$16 sps:$4 sm:$0xff]  }
 0x42f   :  { %8010 = vmatpush1.bf16.msra.mxu0 %v17006_v46  ;;  %v6728_v48 = vadd.f32 %v21557_v58, %v6727_v20  ;;  %v17027_v58 = vld [vmem:[#allocation4 + $0x528] ss:$16 sps:$4 sm:$0xff]   ;;  %v17084_v46 = vld [vmem:[#allocation4 + $0x60] ss:$16 sps:$4 sm:$0xff]   ;;  %v17092_v59 = vld [vmem:[#allocation4 + $0x84] ss:$16 sps:$4 sm:$0xff]  }
 0x430   :  { %8133 = vmatpush1.bf16.msra.mxu1 %v17009_v16  ;;  %8011 = vmatprep.subr.bf16.mxu0 %v17014_v35  ;;  %v17087_v33 = vld [vmem:[#allocation4 + $0x68] ss:$16 sps:$4 sm:$0xff]   ;;  %v17095_v53 = vld [vmem:[#allocation4 + $0x8c] ss:$16 sps:$4 sm:$0xff]   ;;  %v17098_v35 = vld [vmem:[#allocation4 + $0xa4] ss:$16 sps:$4 sm:$0xff]  }
 0x431   :  { %8134 = vmatprep.subr.bf16.mxu1 %v17017_v28  ;;  %v6729_v11 = vmax.f32 %v6728_v48, 0.0  ;;  %v17093_v16 = vld [vmem:[#allocation4 + $0x88] ss:$16 sps:$4 sm:$0xff]   ;;  %v17101_v6 = vld [vmem:[#allocation4 + $0xac] ss:$16 sps:$4 sm:$0xff]  }
 0x432   :  { %v17096_v28 = vld [vmem:[#allocation4 + $0xa0] ss:$16 sps:$4 sm:$0xff]   ;;  %v17099_v20 = vld [vmem:[#allocation4 + $0xa8] ss:$16 sps:$4 sm:$0xff]  }
 0x433   :  { %8012 = vmatpush1.bf16.msra.mxu0 %v17012_v61  ;;  %v6730_v41 = vpack.c.bf16 %v6729_v11, %v6729_v11  ;;  %v17104_v61 = vld [vmem:[#allocation4 + $0xc4] ss:$16 sps:$4 sm:$0xff]  }
 0x434   :  { %8135 = vmatpush1.bf16.msra.mxu1 %v17015_v22  ;;  %8013 = vmatprep.subr.bf16.mxu0 %v17020_v50  ;;  %v17107_v22 = vld [vmem:[#allocation4 + $0xcc] ss:$16 sps:$4 sm:$0xff]  }
 0x435   :  { %8136 = vmatprep.subr.bf16.mxu1 %v17023_v55  ;;  %6731 = vst [vmem:[#allocation2 + $0x30] sm:$0xf] %v6730_v41 }
 0x437   :  { %8014 = vmatpush1.bf16.msra.mxu0 %v17018_v25 }
 0x438   :  { %8137 = vmatpush1.bf16.msra.mxu1 %v17021_v31  ;;  %8015 = vmatprep.subr.bf16.mxu0 %v17026_v32  ;;  %v17102_v31 = vld [vmem:[#allocation4 + $0xc0] ss:$16 sps:$4 sm:$0xff]  }
 0x439   :  { %8138 = vmatprep.subr.bf16.mxu1 %v17029_v29 }
 0x43b   :  { %8016 = vmatpush1.bf16.msra.mxu0 %v17024_v60 }
 0x43c   :  { %8139 = vmatpush1.bf16.msra.mxu1 %v17027_v58  ;;  %8017 = vmatprep.subr.bf16.mxu0 %v17032_v2  ;;  %v17105_v58 = vld [vmem:[#allocation4 + $0xc8] ss:$16 sps:$4 sm:$0xff]   ;;  %v17110_v2 = vld [vmem:[#allocation4 + $0xe4] ss:$16 sps:$4 sm:$0xff]  }
 0x43d   :  { %8140 = vmatprep.subr.bf16.mxu1 %v17035_v12 }
 0x43f   :  { %8018 = vmatpush1.bf16.msra.mxu0 %v17030_v0  ;;  %v17113_v0 = vld [vmem:[#allocation4 + $0xec] ss:$16 sps:$4 sm:$0xff]  }
 0x440   :  { %8141 = vmatpush1.bf16.msra.mxu1 %v17033_v4  ;;  %8019 = vmatprep.subr.bf16.mxu0 %v17038_v56  ;;  %v17108_v56 = vld [vmem:[#allocation4 + $0xe0] ss:$16 sps:$4 sm:$0xff]  }
 0x441   :  { %8142 = vmatprep.subr.bf16.mxu1 %v17041_v63  ;;  %v18294_v63 = vld [vmem:[%s21997_s2] ss:$0 sm:$0xff] }
 0x443   :  { %8020 = vmatpush1.bf16.msra.mxu0 %v17036_v21 }
 0x444   :  { %8143 = vmatpush1.bf16.msra.mxu1 %v17039_v57  ;;  %8021 = vmatprep.subr.bf16.mxu0 %v17044_v19  ;;  %v17111_v57 = vld [vmem:[#allocation4 + $0xe8] ss:$16 sps:$4 sm:$0xff]   ;;  %v17116_v19 = vld [vmem:[#allocation4 + $0x104] ss:$16 sps:$4 sm:$0xff]  }
 0x445   :  { %8144 = vmatprep.subr.bf16.mxu1 %v17047_v27  ;;  %v17119_v27 = vld [vmem:[#allocation4 + $0x10c] ss:$16 sps:$4 sm:$0xff]  }
 0x447   :  { %8022 = vmatpush1.bf16.msra.mxu0 %v17042_v5 }
 0x448   :  { %8145 = vmatpush1.bf16.msra.mxu1 %v17045_v38  ;;  %8023 = vmatprep.subr.bf16.mxu0 %v17050_v47  ;;  %v17114_v38 = vld [vmem:[#allocation4 + $0x100] ss:$16 sps:$4 sm:$0xff]  }
 0x449   :  { %8146 = vmatprep.subr.bf16.mxu1 %v17053_v49  ;;  %v17117_v49 = vld [vmem:[#allocation4 + $0x108] ss:$16 sps:$4 sm:$0xff]  }
 0x44b   :  { %8024 = vmatpush1.bf16.msra.mxu0 %v17048_v45  ;;  %v17122_v45 = vld [vmem:[#allocation4 + $0x124] ss:$16 sps:$4 sm:$0xff]  }
 0x44c   :  { %8147 = vmatpush1.bf16.msra.mxu1 %v17051_v13  ;;  %8025 = vmatprep.subr.bf16.mxu0 %v17056_v62  ;;  %v17125_v13 = vld [vmem:[#allocation4 + $0x12c] ss:$16 sps:$4 sm:$0xff]   ;;  %v17120_v62 = vld [vmem:[#allocation4 + $0x120] ss:$16 sps:$4 sm:$0xff]  }
 0x44d   :  { %8148 = vmatprep.subr.bf16.mxu1 %v17059_v23  ;;  %v17123_v23 = vld [vmem:[#allocation4 + $0x128] ss:$16 sps:$4 sm:$0xff]  }
 0x44f   :  { %8026 = vmatpush1.bf16.msra.mxu0 %v17054_v52  ;;  %v17128_v52 = vld [vmem:[#allocation4 + $0x144] ss:$16 sps:$4 sm:$0xff]  }
 0x450   :  { %8149 = vmatpush1.bf16.msra.mxu1 %v17057_v1  ;;  %8027 = vmatprep.subr.bf16.mxu0 %v17062_v10  ;;  %v17131_v1 = vld [vmem:[#allocation4 + $0x14c] ss:$16 sps:$4 sm:$0xff]   ;;  %v17126_v10 = vld [vmem:[#allocation4 + $0x140] ss:$16 sps:$4 sm:$0xff]  }
 0x451   :  { %8150 = vmatprep.subr.bf16.mxu1 %v17065_v44  ;;  %v17129_v44 = vld [vmem:[#allocation4 + $0x148] ss:$16 sps:$4 sm:$0xff]  }
 0x453   :  { %8028 = vmatpush1.bf16.msra.mxu0 %v17060_v34  ;;  %v17134_v34 = vld [vmem:[#allocation4 + $0x164] ss:$16 sps:$4 sm:$0xff]  }
 0x454   :  { %8151 = vmatpush1.bf16.msra.mxu1 %v17063_v43  ;;  %9350 = vmatprep.subr.bf16.mxu0 %v17068_v54  ;;  %v17137_v43 = vld [vmem:[#allocation4 + $0x16c] ss:$16 sps:$4 sm:$0xff]   ;;  %v17132_v54 = vld [vmem:[#allocation4 + $0x160] ss:$16 sps:$4 sm:$0xff]  }
 0x455   :  { %9473 = vmatprep.subr.bf16.mxu1 %v17071_v39  ;;  %v17135_v39 = vld [vmem:[#allocation4 + $0x168] ss:$16 sps:$4 sm:$0xff]  }
 0x456   :  { %8030 = vmatmul.mubr.bf16.vlgmr.msra.gmra.mrb[56].mxu0 %v21679_v51 }
 0x457   :  { %8153 = vmatmul.mubr.bf16.vlgmr.msra.gmra.mrb[56].mxu1 %v21679_v51  ;;  %9351 = vmatpush1.bf16.msra.mxu0 %v17066_v7  ;;  %v17140_v7 = vld [vmem:[#allocation4 + $0x184] ss:$16 sps:$4 sm:$0xff]  }
 0x458   :  { %9382 = vmatprep.mubr.bf16.mxu0 %v21657_v24  ;;  %9474 = vmatpush1.bf16.msra.mxu1 %v17069_v14  ;;  %v17143_v14 = vld [vmem:[#allocation4 + $0x18c] ss:$16 sps:$4 sm:$0xff]  }
 0x459   :  { %9505 = vmatprep.mubr.bf16.mxu1 %v21657_v24  ;;  %9352 = vmatprep.subr.bf16.mxu0 %v17074_v17  ;;  %v17090_v24 = vld [vmem:[#allocation4 + $0x80] ss:$16 sps:$4 sm:$0xff]  }
 0x45a   :  { %9475 = vmatprep.subr.bf16.mxu1 %v17077_v9  ;;  %v17138_v17 = vld [vmem:[#allocation4 + $0x180] ss:$16 sps:$4 sm:$0xff]   ;;  %v17141_v9 = vld [vmem:[#allocation4 + $0x188] ss:$16 sps:$4 sm:$0xff]  }
 0x45b   :  { %9353 = vmatpush1.bf16.msra.mxu0 %v17072_v30  ;;  %v17146_v30 = vld [vmem:[#allocation4 + $0x1a4] ss:$16 sps:$4 sm:$0xff]  }
 0x45c   :  { %9476 = vmatpush1.bf16.msra.mxu1 %v17075_v15  ;;  %9354 = vmatprep.subr.bf16.mxu0 %v17080_v18  ;;  %v17149_v15 = vld [vmem:[#allocation4 + $0x1ac] ss:$16 sps:$4 sm:$0xff]   ;;  %v17144_v18 = vld [vmem:[#allocation4 + $0x1a0] ss:$16 sps:$4 sm:$0xff]  }
 0x45d   :  { %9477 = vmatprep.subr.bf16.mxu1 %v17083_v26  ;;  %v17147_v26 = vld [vmem:[#allocation4 + $0x1a8] ss:$16 sps:$4 sm:$0xff]  }
 0x45f   :  { %9355 = vmatpush1.bf16.msra.mxu0 %v17078_v8  ;;  %v17152_v8 = vld [vmem:[#allocation4 + $0x1c4] ss:$16 sps:$4 sm:$0xff]  }
 0x460   :  { %9478 = vmatpush1.bf16.msra.mxu1 %v17081_v37  ;;  %9356 = vmatprep.subr.bf16.mxu0 %v17086_v3  ;;  %v17155_v37 = vld [vmem:[#allocation4 + $0x1cc] ss:$16 sps:$4 sm:$0xff]   ;;  %v17150_v3 = vld [vmem:[#allocation4 + $0x1c0] ss:$16 sps:$4 sm:$0xff]  }
 0x461   :  { %9479 = vmatprep.subr.bf16.mxu1 %v17089_v42  ;;  %v17153_v42 = vld [vmem:[#allocation4 + $0x1c8] ss:$16 sps:$4 sm:$0xff]  }
 0x463   :  { %9357 = vmatpush1.bf16.msra.mxu0 %v17084_v46  ;;  %v17158_v46 = vld [vmem:[#allocation4 + $0x1e4] ss:$16 sps:$4 sm:$0xff]  }
 0x464   :  { %9480 = vmatpush1.bf16.msra.mxu1 %v17087_v33  ;;  %9358 = vmatprep.subr.bf16.mxu0 %v17092_v59  ;;  %v17161_v33 = vld [vmem:[#allocation4 + $0x1ec] ss:$16 sps:$4 sm:$0xff]   ;;  %v17156_v59 = vld [vmem:[#allocation4 + $0x1e0] ss:$16 sps:$4 sm:$0xff]  }
 0x465   :  { %9481 = vmatprep.subr.bf16.mxu1 %v17095_v53  ;;  %v17159_v53 = vld [vmem:[#allocation4 + $0x1e8] ss:$16 sps:$4 sm:$0xff]  }
 0x467   :  { %9359 = vmatpush1.bf16.msra.mxu0 %v17090_v24  ;;  %v17164_v24 = vld [vmem:[#allocation4 + $0x204] ss:$16 sps:$4 sm:$0xff]  }
 0x468   :  { %9482 = vmatpush1.bf16.msra.mxu1 %v17093_v16  ;;  %9360 = vmatprep.subr.bf16.mxu0 %v17098_v35  ;;  %v17167_v16 = vld [vmem:[#allocation4 + $0x20c] ss:$16 sps:$4 sm:$0xff]   ;;  %v17162_v35 = vld [vmem:[#allocation4 + $0x200] ss:$16 sps:$4 sm:$0xff]  }
 0x469   :  { %v6677_v48 = vpop.f32.mrb[52].mxu0  ;;  %9483 = vmatprep.subr.bf16.mxu1 %v17101_v6  ;;  %v6718_v50 = vpop.f32.mrb[52].mxu1  ;;  %v17165_v6 = vld [vmem:[#allocation4 + $0x208] ss:$16 sps:$4 sm:$0xff]  }
 0x46a   :  { %v6679_v55 = vpop.f32.mrb[53].mxu0  ;;  %v6720_v25 = vpop.f32.mrb[53].mxu1 }
 0x46b   :  { %v6732_v11 = vmax.f32 %v6677_v48, %v6679_v55  ;;  %v6681_v41 = vpop.f32.mrb[54].mxu0  ;;  %9361 = vmatpush1.bf16.msra.mxu0 %v17096_v28  ;;  %v6733_v32 = vmax.f32 %v6718_v50, %v6720_v25  ;;  %v6722_v29 = vpop.f32.mrb[54].mxu1  ;;  %v17170_v28 = vld [vmem:[#allocation4 + $0x224] ss:$16 sps:$4 sm:$0xff]   ;;  %v17171_v48 = vld [vmem:[#allocation4 + $0x228] ss:$16 sps:$4 sm:$0xff]  }
 0x46c   :  { %9484 = vmatpush1.bf16.msra.mxu1 %v17099_v20  ;;  %v6682_v60 = vpop.f32.mrb[55].mxu0  ;;  %9362 = vmatprep.subr.bf16.mxu0 %v17104_v61  ;;  %v6723_v12 = vpop.f32.mrb[55].mxu1  ;;  %v17173_v20 = vld [vmem:[#allocation4 + $0x22c] ss:$16 sps:$4 sm:$0xff]   ;;  %v17168_v61 = vld [vmem:[#allocation4 + $0x220] ss:$16 sps:$4 sm:$0xff]  }
 0x46d   :  { %9485 = vmatprep.subr.bf16.mxu1 %v17107_v22  ;;  %v6734_v4 = vmax.f32 %v6732_v11, %v6733_v32  ;;  %v17176_v22 = vld [vmem:[#allocation4 + $0x244] ss:$16 sps:$4 sm:$0xff]   ;;  %v17179_v50 = vld [vmem:[#allocation4 + $0x24c] ss:$16 sps:$4 sm:$0xff]   ;;  %v17174_v55 = vld [vmem:[#allocation4 + $0x240] ss:$16 sps:$4 sm:$0xff]  }
 0x46e   :  { %v17177_v11 = vld [vmem:[#allocation4 + $0x248] ss:$16 sps:$4 sm:$0xff]   ;;  %v17182_v25 = vld [vmem:[#allocation4 + $0x264] ss:$16 sps:$4 sm:$0xff]   ;;  %v17180_v41 = vld [vmem:[#allocation4 + $0x260] ss:$16 sps:$4 sm:$0xff]  }
 0x46f   :  { %9363 = vmatpush1.bf16.msra.mxu0 %v17102_v31  ;;  %v6735_v21 = vadd.f32 %v18294_v63, %v6734_v4  ;;  %v17183_v31 = vld [vmem:[#allocation4 + $0x268] ss:$16 sps:$4 sm:$0xff]   ;;  %v17188_v32 = vld [vmem:[#allocation4 + $0x284] ss:$16 sps:$4 sm:$0xff]   ;;  %v17191_v29 = vld [vmem:[#allocation4 + $0x28c] ss:$16 sps:$4 sm:$0xff]  }
 0x470   :  { %9486 = vmatpush1.bf16.msra.mxu1 %v17105_v58  ;;  %9364 = vmatprep.subr.bf16.mxu0 %v17110_v2  ;;  %v17189_v60 = vld [vmem:[#allocation4 + $0x288] ss:$16 sps:$4 sm:$0xff]   ;;  %v17194_v58 = vld [vmem:[#allocation4 + $0x2a4] ss:$16 sps:$4 sm:$0xff]   ;;  %v17197_v2 = vld [vmem:[#allocation4 + $0x2ac] ss:$16 sps:$4 sm:$0xff]  }
 0x471   :  { %9487 = vmatprep.subr.bf16.mxu1 %v17113_v0  ;;  %v6736_v5 = vmax.f32 %v6735_v21, 0.0  ;;  %v17192_v12 = vld [vmem:[#allocation4 + $0x2a0] ss:$16 sps:$4 sm:$0xff]   ;;  %v17195_v0 = vld [vmem:[#allocation4 + $0x2a8] ss:$16 sps:$4 sm:$0xff]  }
 0x472   :  { %v17200_v4 = vld [vmem:[#allocation4 + $0x2c4] ss:$16 sps:$4 sm:$0xff]   ;;  %v17198_v63 = vld [vmem:[#allocation4 + $0x2c0] ss:$16 sps:$4 sm:$0xff]   ;;  %v17201_v21 = vld [vmem:[#allocation4 + $0x2c8] ss:$16 sps:$4 sm:$0xff]  }
 0x473   :  { %9365 = vmatpush1.bf16.msra.mxu0 %v17108_v56  ;;  %v6737_v47 = vpack.c.bf16 %v6736_v5, %v6736_v5  ;;  %v17203_v56 = vld [vmem:[#allocation4 + $0x2cc] ss:$16 sps:$4 sm:$0xff]   ;;  %v17207_v5 = vld [vmem:[#allocation4 + $0x2e8] ss:$16 sps:$4 sm:$0xff]  }
 0x474   :  { %9488 = vmatpush1.bf16.msra.mxu1 %v17111_v57  ;;  %9366 = vmatprep.subr.bf16.mxu0 %v17116_v19  ;;  %v17206_v57 = vld [vmem:[#allocation4 + $0x2e4] ss:$16 sps:$4 sm:$0xff]   ;;  %v17209_v19 = vld [vmem:[#allocation4 + $0x2ec] ss:$16 sps:$4 sm:$0xff]  }
 0x475   :  { %9489 = vmatprep.subr.bf16.mxu1 %v17119_v27  ;;  %6738 = vst [vmem:[#allocation2 + $0x34] sm:$0xf] %v6737_v47  ;;  %v17204_v27 = vld [vmem:[#allocation4 + $0x2e0] ss:$16 sps:$4 sm:$0xff]   ;;  %v17215_v47 = vld [vmem:[#allocation4 + $0x30c] ss:$16 sps:$4 sm:$0xff]  }
 0x477   :  { %9367 = vmatpush1.bf16.msra.mxu0 %v17114_v38  ;;  %v17212_v38 = vld [vmem:[#allocation4 + $0x304] ss:$16 sps:$4 sm:$0xff]  }
 0x478   :  { %9490 = vmatpush1.bf16.msra.mxu1 %v17117_v49  ;;  %9368 = vmatprep.subr.bf16.mxu0 %v17122_v45  ;;  %v17210_v49 = vld [vmem:[#allocation4 + $0x300] ss:$16 sps:$4 sm:$0xff]   ;;  %v17213_v45 = vld [vmem:[#allocation4 + $0x308] ss:$16 sps:$4 sm:$0xff]  }
 0x479   :  { %9491 = vmatprep.subr.bf16.mxu1 %v17125_v13  ;;  %v17218_v13 = vld [vmem:[#allocation4 + $0x324] ss:$16 sps:$4 sm:$0xff]  }
 0x47b   :  { %9369 = vmatpush1.bf16.msra.mxu0 %v17120_v62  ;;  %v17221_v62 = vld [vmem:[#allocation4 + $0x32c] ss:$16 sps:$4 sm:$0xff]  }
 0x47c   :  { %9492 = vmatpush1.bf16.msra.mxu1 %v17123_v23  ;;  %9370 = vmatprep.subr.bf16.mxu0 %v17128_v52  ;;  %v17216_v23 = vld [vmem:[#allocation4 + $0x320] ss:$16 sps:$4 sm:$0xff]   ;;  %v17219_v52 = vld [vmem:[#allocation4 + $0x328] ss:$16 sps:$4 sm:$0xff]  }
 0x47d   :  { %9493 = vmatprep.subr.bf16.mxu1 %v17131_v1  ;;  %v17224_v1 = vld [vmem:[#allocation4 + $0x344] ss:$16 sps:$4 sm:$0xff]  }
 0x47f   :  { %9371 = vmatpush1.bf16.msra.mxu0 %v17126_v10  ;;  %v17227_v10 = vld [vmem:[#allocation4 + $0x34c] ss:$16 sps:$4 sm:$0xff]  }
 0x480   :  { %9494 = vmatpush1.bf16.msra.mxu1 %v17129_v44  ;;  %9372 = vmatprep.subr.bf16.mxu0 %v17134_v34  ;;  %v17222_v44 = vld [vmem:[#allocation4 + $0x340] ss:$16 sps:$4 sm:$0xff]   ;;  %v17225_v34 = vld [vmem:[#allocation4 + $0x348] ss:$16 sps:$4 sm:$0xff]  }
 0x481   :  { %9495 = vmatprep.subr.bf16.mxu1 %v17137_v43  ;;  %v17230_v43 = vld [vmem:[#allocation4 + $0x364] ss:$16 sps:$4 sm:$0xff]  }
 0x483   :  { %9373 = vmatpush1.bf16.msra.mxu0 %v17132_v54  ;;  %v17233_v54 = vld [vmem:[#allocation4 + $0x36c] ss:$16 sps:$4 sm:$0xff]  }
 0x484   :  { %9496 = vmatpush1.bf16.msra.mxu1 %v17135_v39  ;;  %9374 = vmatprep.subr.bf16.mxu0 %v17140_v7  ;;  %v17228_v39 = vld [vmem:[#allocation4 + $0x360] ss:$16 sps:$4 sm:$0xff]   ;;  %v17231_v7 = vld [vmem:[#allocation4 + $0x368] ss:$16 sps:$4 sm:$0xff]  }
 0x485   :  { %9497 = vmatprep.subr.bf16.mxu1 %v17143_v14  ;;  %v17236_v14 = vld [vmem:[#allocation4 + $0x384] ss:$16 sps:$4 sm:$0xff]  }
 0x487   :  { %9375 = vmatpush1.bf16.msra.mxu0 %v17138_v17  ;;  %v17239_v17 = vld [vmem:[#allocation4 + $0x38c] ss:$16 sps:$4 sm:$0xff]  }
 0x488   :  { %9498 = vmatpush1.bf16.msra.mxu1 %v17141_v9  ;;  %9376 = vmatprep.subr.bf16.mxu0 %v17146_v30  ;;  %v17234_v9 = vld [vmem:[#allocation4 + $0x380] ss:$16 sps:$4 sm:$0xff]   ;;  %v17237_v30 = vld [vmem:[#allocation4 + $0x388] ss:$16 sps:$4 sm:$0xff]  }
 0x489   :  { %9499 = vmatprep.subr.bf16.mxu1 %v17149_v15  ;;  %v17242_v15 = vld [vmem:[#allocation4 + $0x3a4] ss:$16 sps:$4 sm:$0xff]  }
 0x48b   :  { %9377 = vmatpush1.bf16.msra.mxu0 %v17144_v18  ;;  %v17245_v18 = vld [vmem:[#allocation4 + $0x3ac] ss:$16 sps:$4 sm:$0xff]  }
 0x48c   :  { %9500 = vmatpush1.bf16.msra.mxu1 %v17147_v26  ;;  %9378 = vmatprep.subr.bf16.mxu0 %v17152_v8  ;;  %v17240_v26 = vld [vmem:[#allocation4 + $0x3a0] ss:$16 sps:$4 sm:$0xff]   ;;  %v17243_v8 = vld [vmem:[#allocation4 + $0x3a8] ss:$16 sps:$4 sm:$0xff]  }
 0x48d   :  { %9501 = vmatprep.subr.bf16.mxu1 %v17155_v37  ;;  %v17248_v37 = vld [vmem:[#allocation4 + $0x3c4] ss:$16 sps:$4 sm:$0xff]  }
 0x48f   :  { %9379 = vmatpush1.bf16.msra.mxu0 %v17150_v3  ;;  %v17251_v3 = vld [vmem:[#allocation4 + $0x3cc] ss:$16 sps:$4 sm:$0xff]  }
 0x490   :  { %9502 = vmatpush1.bf16.msra.mxu1 %v17153_v42  ;;  %9380 = vmatprep.subr.bf16.mxu0 %v17158_v46  ;;  %v17246_v42 = vld [vmem:[#allocation4 + $0x3c0] ss:$16 sps:$4 sm:$0xff]   ;;  %v17249_v46 = vld [vmem:[#allocation4 + $0x3c8] ss:$16 sps:$4 sm:$0xff]  }
 0x491   :  { %9503 = vmatprep.subr.bf16.mxu1 %v17161_v33  ;;  %v17254_v33 = vld [vmem:[#allocation4 + $0x3e4] ss:$16 sps:$4 sm:$0xff]  }
 0x493   :  { %9381 = vmatpush1.bf16.msra.mxu0 %v17156_v59  ;;  %v17257_v59 = vld [vmem:[#allocation4 + $0x3ec] ss:$16 sps:$4 sm:$0xff]  }
 0x494   :  { %9504 = vmatpush1.bf16.msra.mxu1 %v17159_v53  ;;  %9391 = vmatprep.subr.bf16.mxu0 %v17164_v24  ;;  %v17252_v53 = vld [vmem:[#allocation4 + $0x3e0] ss:$16 sps:$4 sm:$0xff]   ;;  %v17255_v24 = vld [vmem:[#allocation4 + $0x3e8] ss:$16 sps:$4 sm:$0xff]  }
 0x495   :  { %9514 = vmatprep.subr.bf16.mxu1 %v17167_v16  ;;  %v17260_v16 = vld [vmem:[#allocation4 + $0x404] ss:$16 sps:$4 sm:$0xff]  }
 0x496   :  { %9383 = vmatmul.mubr.bf16.vlgmr.msra.gmra.mrb[60].mxu0 %v21666_v36 }
 0x497   :  { %9506 = vmatmul.mubr.bf16.vlgmr.msra.gmra.mrb[60].mxu1 %v21666_v36  ;;  %9392 = vmatpush1.bf16.msra.mxu0 %v17162_v35  ;;  %v17185_v36 = vld [vmem:[#allocation4 + $0x26c] ss:$16 sps:$4 sm:$0xff]  }
 0x498   :  { %9423 = vmatprep.mubr.bf16.mxu0 %v21671_v40  ;;  %9515 = vmatpush1.bf16.msra.mxu1 %v17165_v6  ;;  %v17263_v35 = vld [vmem:[#allocation4 + $0x40c] ss:$16 sps:$4 sm:$0xff]   ;;  %v17258_v6 = vld [vmem:[#allocation4 + $0x400] ss:$16 sps:$4 sm:$0xff]  }
 0x499   :  { %9546 = vmatprep.mubr.bf16.mxu1 %v21671_v40  ;;  %9393 = vmatprep.subr.bf16.mxu0 %v17170_v28  ;;  %v17186_v40 = vld [vmem:[#allocation4 + $0x280] ss:$16 sps:$4 sm:$0xff]  }
 0x49a   :  { %9516 = vmatprep.subr.bf16.mxu1 %v17173_v20  ;;  %v21692_v28 = vld [vmem:[#allocation2 + $0x18] sm:$0xff]  ;;  %v17261_v20 = vld [vmem:[#allocation4 + $0x408] ss:$16 sps:$4 sm:$0xff]  }
 0x49b   :  { %9394 = vmatpush1.bf16.msra.mxu0 %v17168_v61  ;;  %v17268_v61 = vld [vmem:[#allocation4 + $0x424] ss:$16 sps:$4 sm:$0xff]  }
 0x49c   :  { %9517 = vmatpush1.bf16.msra.mxu1 %v17171_v48  ;;  %9395 = vmatprep.subr.bf16.mxu0 %v17176_v22  ;;  %v21697_v48 = vcombine.high %v21692_v28, %v21692_v28  ;;  %v17271_v22 = vld [vmem:[#allocation4 + $0x42c] ss:$16 sps:$4 sm:$0xff]  }
 0x49d   :  { %9518 = vmatprep.subr.bf16.mxu1 %v17179_v50  ;;  %v17266_v50 = vld [vmem:[#allocation4 + $0x420] ss:$16 sps:$4 sm:$0xff]  }
 0x49f   :  { %9396 = vmatpush1.bf16.msra.mxu0 %v17174_v55  ;;  %v17269_v55 = vld [vmem:[#allocation4 + $0x428] ss:$16 sps:$4 sm:$0xff]  }
 0x4a0   :  { %9519 = vmatpush1.bf16.msra.mxu1 %v17177_v11  ;;  %9397 = vmatprep.subr.bf16.mxu0 %v17182_v25  ;;  %v17274_v11 = vld [vmem:[#allocation4 + $0x444] ss:$16 sps:$4 sm:$0xff]   ;;  %v17277_v25 = vld [vmem:[#allocation4 + $0x44c] ss:$16 sps:$4 sm:$0xff]  }
 0x4a1   :  { %9520 = vmatprep.subr.bf16.mxu1 %v17185_v36  ;;  %v17272_v36 = vld [vmem:[#allocation4 + $0x440] ss:$16 sps:$4 sm:$0xff]  }
 0x4a3   :  { %9398 = vmatpush1.bf16.msra.mxu0 %v17180_v41  ;;  %v17275_v41 = vld [vmem:[#allocation4 + $0x448] ss:$16 sps:$4 sm:$0xff]  }
 0x4a4   :  { %9521 = vmatpush1.bf16.msra.mxu1 %v17183_v31  ;;  %9399 = vmatprep.subr.bf16.mxu0 %v17188_v32  ;;  %v17280_v31 = vld [vmem:[#allocation4 + $0x464] ss:$16 sps:$4 sm:$0xff]   ;;  %v17278_v32 = vld [vmem:[#allocation4 + $0x460] ss:$16 sps:$4 sm:$0xff]  }
 0x4a5   :  { %9522 = vmatprep.subr.bf16.mxu1 %v17191_v29  ;;  %v17281_v29 = vld [vmem:[#allocation4 + $0x468] ss:$16 sps:$4 sm:$0xff]  }
 0x4a7   :  { %9400 = vmatpush1.bf16.msra.mxu0 %v17186_v40  ;;  %v17286_v40 = vld [vmem:[#allocation4 + $0x484] ss:$16 sps:$4 sm:$0xff]  }
 0x4a8   :  { %9523 = vmatpush1.bf16.msra.mxu1 %v17189_v60  ;;  %9401 = vmatprep.subr.bf16.mxu0 %v17194_v58  ;;  %v17289_v60 = vld [vmem:[#allocation4 + $0x48c] ss:$16 sps:$4 sm:$0xff]   ;;  %v17284_v58 = vld [vmem:[#allocation4 + $0x480] ss:$16 sps:$4 sm:$0xff]  }
 0x4a9   :  { %9524 = vmatprep.subr.bf16.mxu1 %v17197_v2  ;;  %v17287_v2 = vld [vmem:[#allocation4 + $0x488] ss:$16 sps:$4 sm:$0xff]  }
 0x4ab   :  { %9402 = vmatpush1.bf16.msra.mxu0 %v17192_v12  ;;  %v17292_v12 = vld [vmem:[#allocation4 + $0x4a4] ss:$16 sps:$4 sm:$0xff]  }
 0x4ac   :  { %9525 = vmatpush1.bf16.msra.mxu1 %v17195_v0  ;;  %9403 = vmatprep.subr.bf16.mxu0 %v17200_v4  ;;  %v17295_v0 = vld [vmem:[#allocation4 + $0x4ac] ss:$16 sps:$4 sm:$0xff]   ;;  %v17290_v4 = vld [vmem:[#allocation4 + $0x4a0] ss:$16 sps:$4 sm:$0xff]  }
 0x4ad   :  { %9526 = vmatprep.subr.bf16.mxu1 %v17203_v56  ;;  %v17293_v56 = vld [vmem:[#allocation4 + $0x4a8] ss:$16 sps:$4 sm:$0xff]  }
 0x4af   :  { %9404 = vmatpush1.bf16.msra.mxu0 %v17198_v63  ;;  %v17298_v63 = vld [vmem:[#allocation4 + $0x4c4] ss:$16 sps:$4 sm:$0xff]  }
 0x4b0   :  { %9527 = vmatpush1.bf16.msra.mxu1 %v17201_v21  ;;  %9405 = vmatprep.subr.bf16.mxu0 %v17206_v57  ;;  %v17301_v21 = vld [vmem:[#allocation4 + $0x4cc] ss:$16 sps:$4 sm:$0xff]   ;;  %v17296_v57 = vld [vmem:[#allocation4 + $0x4c0] ss:$16 sps:$4 sm:$0xff]  }
 0x4b1   :  { %9528 = vmatprep.subr.bf16.mxu1 %v17209_v19  ;;  %v17299_v19 = vld [vmem:[#allocation4 + $0x4c8] ss:$16 sps:$4 sm:$0xff]  }
 0x4b3   :  { %9406 = vmatpush1.bf16.msra.mxu0 %v17204_v27  ;;  %v17304_v27 = vld [vmem:[#allocation4 + $0x4e4] ss:$16 sps:$4 sm:$0xff]  }
 0x4b4   :  { %9529 = vmatpush1.bf16.msra.mxu1 %v17207_v5  ;;  %9407 = vmatprep.subr.bf16.mxu0 %v17212_v38  ;;  %v17307_v5 = vld [vmem:[#allocation4 + $0x4ec] ss:$16 sps:$4 sm:$0xff]   ;;  %v17302_v38 = vld [vmem:[#allocation4 + $0x4e0] ss:$16 sps:$4 sm:$0xff]  }
 0x4b5   :  { %9530 = vmatprep.subr.bf16.mxu1 %v17215_v47  ;;  %v17305_v47 = vld [vmem:[#allocation4 + $0x4e8] ss:$16 sps:$4 sm:$0xff]  }
 0x4b7   :  { %9408 = vmatpush1.bf16.msra.mxu0 %v17210_v49  ;;  %v17310_v49 = vld [vmem:[#allocation4 + $0x504] ss:$16 sps:$4 sm:$0xff]  }
 0x4b8   :  { %9531 = vmatpush1.bf16.msra.mxu1 %v17213_v45  ;;  %9409 = vmatprep.subr.bf16.mxu0 %v17218_v13  ;;  %v17313_v45 = vld [vmem:[#allocation4 + $0x50c] ss:$16 sps:$4 sm:$0xff]   ;;  %v17308_v13 = vld [vmem:[#allocation4 + $0x500] ss:$16 sps:$4 sm:$0xff]  }
 0x4b9   :  { %9532 = vmatprep.subr.bf16.mxu1 %v17221_v62  ;;  %v17311_v62 = vld [vmem:[#allocation4 + $0x508] ss:$16 sps:$4 sm:$0xff]  }
 0x4bb   :  { %9410 = vmatpush1.bf16.msra.mxu0 %v17216_v23  ;;  %v17316_v23 = vld [vmem:[#allocation4 + $0x524] ss:$16 sps:$4 sm:$0xff]  }
 0x4bc   :  { %9533 = vmatpush1.bf16.msra.mxu1 %v17219_v52  ;;  %9411 = vmatprep.subr.bf16.mxu0 %v17224_v1  ;;  %v17319_v52 = vld [vmem:[#allocation4 + $0x52c] ss:$16 sps:$4 sm:$0xff]   ;;  %v17314_v1 = vld [vmem:[#allocation4 + $0x520] ss:$16 sps:$4 sm:$0xff]  }
 0x4bd   :  { %9534 = vmatprep.subr.bf16.mxu1 %v17227_v10  ;;  %v17317_v10 = vld [vmem:[#allocation4 + $0x528] ss:$16 sps:$4 sm:$0xff]  }
 0x4bf   :  { %9412 = vmatpush1.bf16.msra.mxu0 %v17222_v44  ;;  %v17322_v44 = vld [vmem:[#allocation4 + $0x544] ss:$16 sps:$4 sm:$0xff]  }
 0x4c0   :  { %9535 = vmatpush1.bf16.msra.mxu1 %v17225_v34  ;;  %9413 = vmatprep.subr.bf16.mxu0 %v17230_v43  ;;  %v17325_v34 = vld [vmem:[#allocation4 + $0x54c] ss:$16 sps:$4 sm:$0xff]   ;;  %v17320_v43 = vld [vmem:[#allocation4 + $0x540] ss:$16 sps:$4 sm:$0xff]  }
 0x4c1   :  { %9536 = vmatprep.subr.bf16.mxu1 %v17233_v54  ;;  %v17323_v54 = vld [vmem:[#allocation4 + $0x548] ss:$16 sps:$4 sm:$0xff]  }
 0x4c3   :  { %9414 = vmatpush1.bf16.msra.mxu0 %v17228_v39  ;;  %v17328_v39 = vld [vmem:[#allocation4 + $0x564] ss:$16 sps:$4 sm:$0xff]  }
 0x4c4   :  { %9537 = vmatpush1.bf16.msra.mxu1 %v17231_v7  ;;  %9415 = vmatprep.subr.bf16.mxu0 %v17236_v14  ;;  %v17331_v7 = vld [vmem:[#allocation4 + $0x56c] ss:$16 sps:$4 sm:$0xff]   ;;  %v17326_v14 = vld [vmem:[#allocation4 + $0x560] ss:$16 sps:$4 sm:$0xff]  }
 0x4c5   :  { %9538 = vmatprep.subr.bf16.mxu1 %v17239_v17  ;;  %v17329_v17 = vld [vmem:[#allocation4 + $0x568] ss:$16 sps:$4 sm:$0xff]  }
 0x4c7   :  { %9416 = vmatpush1.bf16.msra.mxu0 %v17234_v9  ;;  %v17334_v9 = vld [vmem:[#allocation4 + $0x584] ss:$16 sps:$4 sm:$0xff]  }
 0x4c8   :  { %9539 = vmatpush1.bf16.msra.mxu1 %v17237_v30  ;;  %9417 = vmatprep.subr.bf16.mxu0 %v17242_v15  ;;  %v17337_v30 = vld [vmem:[#allocation4 + $0x58c] ss:$16 sps:$4 sm:$0xff]   ;;  %v17332_v15 = vld [vmem:[#allocation4 + $0x580] ss:$16 sps:$4 sm:$0xff]  }
 0x4c9   :  { %9540 = vmatprep.subr.bf16.mxu1 %v17245_v18  ;;  %v17335_v18 = vld [vmem:[#allocation4 + $0x588] ss:$16 sps:$4 sm:$0xff]  }
 0x4cb   :  { %9418 = vmatpush1.bf16.msra.mxu0 %v17240_v26  ;;  %v17340_v26 = vld [vmem:[#allocation4 + $0x5a4] ss:$16 sps:$4 sm:$0xff]  }
 0x4cc   :  { %9541 = vmatpush1.bf16.msra.mxu1 %v17243_v8  ;;  %9419 = vmatprep.subr.bf16.mxu0 %v17248_v37  ;;  %v17343_v8 = vld [vmem:[#allocation4 + $0x5ac] ss:$16 sps:$4 sm:$0xff]   ;;  %v17338_v37 = vld [vmem:[#allocation4 + $0x5a0] ss:$16 sps:$4 sm:$0xff]  }
 0x4cd   :  { %9542 = vmatprep.subr.bf16.mxu1 %v17251_v3  ;;  %v17341_v3 = vld [vmem:[#allocation4 + $0x5a8] ss:$16 sps:$4 sm:$0xff]  }
 0x4cf   :  { %9420 = vmatpush1.bf16.msra.mxu0 %v17246_v42  ;;  %v17346_v42 = vld [vmem:[#allocation4 + $0x5c4] ss:$16 sps:$4 sm:$0xff]  }
 0x4d0   :  { %9543 = vmatpush1.bf16.msra.mxu1 %v17249_v46  ;;  %9421 = vmatprep.subr.bf16.mxu0 %v17254_v33  ;;  %v17349_v46 = vld [vmem:[#allocation4 + $0x5cc] ss:$16 sps:$4 sm:$0xff]   ;;  %v17344_v33 = vld [vmem:[#allocation4 + $0x5c0] ss:$16 sps:$4 sm:$0xff]  }
 0x4d1   :  { %9544 = vmatprep.subr.bf16.mxu1 %v17257_v59  ;;  %v17347_v59 = vld [vmem:[#allocation4 + $0x5c8] ss:$16 sps:$4 sm:$0xff]  }
 0x4d3   :  { %9422 = vmatpush1.bf16.msra.mxu0 %v17252_v53  ;;  %v17352_v53 = vld [vmem:[#allocation4 + $0x5e4] ss:$16 sps:$4 sm:$0xff]  }
 0x4d4   :  { %9545 = vmatpush1.bf16.msra.mxu1 %v17255_v24  ;;  %9432 = vmatprep.subr.bf16.mxu0 %v17260_v16  ;;  %v17355_v24 = vld [vmem:[#allocation4 + $0x5ec] ss:$16 sps:$4 sm:$0xff]   ;;  %v17350_v16 = vld [vmem:[#allocation4 + $0x5e0] ss:$16 sps:$4 sm:$0xff]  }
 0x4d5   :  { %9555 = vmatprep.subr.bf16.mxu1 %v17263_v35  ;;  %v17353_v35 = vld [vmem:[#allocation4 + $0x5e8] ss:$16 sps:$4 sm:$0xff]  }
 0x4d6   :  { %9424 = vmatmul.mubr.bf16.vlgmr.msra.gmra.mrb[60].mxu0 %v21679_v51 }
 0x4d7   :  { %9547 = vmatmul.mubr.bf16.vlgmr.msra.gmra.mrb[60].mxu1 %v21679_v51  ;;  %9433 = vmatpush1.bf16.msra.mxu0 %v17258_v6  ;;  %v17283_v51 = vld [vmem:[#allocation4 + $0x46c] ss:$16 sps:$4 sm:$0xff]   ;;  %v17358_v6 = vld [vmem:[#allocation4 + $0x4] ss:$16 sps:$4 sm:$0xff]  }
 0x4d8   :  { %9464 = vmatprep.mubr.bf16.mxu0 %v21697_v48  ;;  %9556 = vmatpush1.bf16.msra.mxu1 %v17261_v20  ;;  %v17361_v20 = vld [vmem:[#allocation4 + $0xc] ss:$16 sps:$4 sm:$0xff]  }
 0x4d9   :  { %9587 = vmatprep.mubr.bf16.mxu1 %v21697_v48  ;;  %9434 = vmatprep.subr.bf16.mxu0 %v17268_v61  ;;  %v17356_v61 = vld [vmem:[#allocation4] ss:$16 sps:$4 sm:$0xff]  }
 0x4da   :  { %9557 = vmatprep.subr.bf16.mxu1 %v17271_v22  ;;  %v21702_v22 = vld [vmem:[#allocation2 + $0x10] sm:$0xff] }
 0x4db   :  { %9435 = vmatpush1.bf16.msra.mxu0 %v17266_v50  ;;  %v21706_v50 = vcombine.low %v21692_v28, %v21692_v28  ;;  %v17372_v28 = vld [vmem:[#allocation4 + $0x44] ss:$16 sps:$4 sm:$0xff]  }
 0x4dc   :  { %9558 = vmatpush1.bf16.msra.mxu1 %v17269_v55  ;;  %9436 = vmatprep.subr.bf16.mxu0 %v17274_v11  ;;  %v17359_v55 = vld [vmem:[#allocation4 + $0x8] ss:$16 sps:$4 sm:$0xff]   ;;  %v17366_v11 = vld [vmem:[#allocation4 + $0x24] ss:$16 sps:$4 sm:$0xff]  }
 0x4dd   :  { %9559 = vmatprep.subr.bf16.mxu1 %v17277_v25  ;;  %v15891_v25 = vcombine.high %v21702_v22, %v21702_v22 }
 0x4df   :  { %9437 = vmatpush1.bf16.msra.mxu0 %v17272_v36  ;;  %v17369_v36 = vld [vmem:[#allocation4 + $0x2c] ss:$16 sps:$4 sm:$0xff]  }
 0x4e0   :  { %9560 = vmatpush1.bf16.msra.mxu1 %v17275_v41  ;;  %9438 = vmatprep.subr.bf16.mxu0 %v17280_v31  ;;  %v17364_v41 = vld [vmem:[#allocation4 + $0x20] ss:$16 sps:$4 sm:$0xff]   ;;  %v17367_v31 = vld [vmem:[#allocation4 + $0x28] ss:$16 sps:$4 sm:$0xff]  }
 0x4e1   :  { %9561 = vmatprep.subr.bf16.mxu1 %v17283_v51  ;;  %v17375_v51 = vld [vmem:[#allocation4 + $0x4c] ss:$16 sps:$4 sm:$0xff]  }
 0x4e3   :  { %9439 = vmatpush1.bf16.msra.mxu0 %v17278_v32  ;;  %v17370_v32 = vld [vmem:[#allocation4 + $0x40] ss:$16 sps:$4 sm:$0xff]  }
 0x4e4   :  { %9562 = vmatpush1.bf16.msra.mxu1 %v17281_v29  ;;  %9440 = vmatprep.subr.bf16.mxu0 %v17286_v40  ;;  %v17373_v29 = vld [vmem:[#allocation4 + $0x48] ss:$16 sps:$4 sm:$0xff]   ;;  %v17378_v40 = vld [vmem:[#allocation4 + $0x64] ss:$16 sps:$4 sm:$0xff]  }
 0x4e5   :  { %9563 = vmatprep.subr.bf16.mxu1 %v17289_v60  ;;  %v17381_v60 = vld [vmem:[#allocation4 + $0x6c] ss:$16 sps:$4 sm:$0xff]  }
 0x4e7   :  { %9441 = vmatpush1.bf16.msra.mxu0 %v17284_v58  ;;  %v17376_v58 = vld [vmem:[#allocation4 + $0x60] ss:$16 sps:$4 sm:$0xff]  }
 0x4e8   :  { %9564 = vmatpush1.bf16.msra.mxu1 %v17287_v2  ;;  %9442 = vmatprep.subr.bf16.mxu0 %v17292_v12  ;;  %v17379_v2 = vld [vmem:[#allocation4 + $0x68] ss:$16 sps:$4 sm:$0xff]   ;;  %v17384_v12 = vld [vmem:[#allocation4 + $0x84] ss:$16 sps:$4 sm:$0xff]  }
 0x4e9   :  { %9565 = vmatprep.subr.bf16.mxu1 %v17295_v0  ;;  %v17387_v0 = vld [vmem:[#allocation4 + $0x8c] ss:$16 sps:$4 sm:$0xff]  }
 0x4eb   :  { %9443 = vmatpush1.bf16.msra.mxu0 %v17290_v4  ;;  %v17382_v4 = vld [vmem:[#allocation4 + $0x80] ss:$16 sps:$4 sm:$0xff]  }
 0x4ec   :  { %9566 = vmatpush1.bf16.msra.mxu1 %v17293_v56  ;;  %9444 = vmatprep.subr.bf16.mxu0 %v17298_v63  ;;  %v17385_v56 = vld [vmem:[#allocation4 + $0x88] ss:$16 sps:$4 sm:$0xff]   ;;  %v17390_v63 = vld [vmem:[#allocation4 + $0xa4] ss:$16 sps:$4 sm:$0xff]  }
 0x4ed   :  { %9567 = vmatprep.subr.bf16.mxu1 %v17301_v21  ;;  %v17393_v21 = vld [vmem:[#allocation4 + $0xac] ss:$16 sps:$4 sm:$0xff]  }
 0x4ef   :  { %9445 = vmatpush1.bf16.msra.mxu0 %v17296_v57  ;;  %v17388_v57 = vld [vmem:[#allocation4 + $0xa0] ss:$16 sps:$4 sm:$0xff]  }
 0x4f0   :  { %9568 = vmatpush1.bf16.msra.mxu1 %v17299_v19  ;;  %9446 = vmatprep.subr.bf16.mxu0 %v17304_v27  ;;  %v17391_v19 = vld [vmem:[#allocation4 + $0xa8] ss:$16 sps:$4 sm:$0xff]   ;;  %v17396_v27 = vld [vmem:[#allocation4 + $0xc4] ss:$16 sps:$4 sm:$0xff]  }
 0x4f1   :  { %9569 = vmatprep.subr.bf16.mxu1 %v17307_v5 }
 0x4f3   :  { %9447 = vmatpush1.bf16.msra.mxu0 %v17302_v38  ;;  %v17399_v38 = vld [vmem:[#allocation4 + $0xcc] ss:$16 sps:$4 sm:$0xff]  }
 0x4f4   :  { %9570 = vmatpush1.bf16.msra.mxu1 %v17305_v47  ;;  %9448 = vmatprep.subr.bf16.mxu0 %v17310_v49 }
 0x4f5   :  { %9571 = vmatprep.subr.bf16.mxu1 %v17313_v45 }
 0x4f7   :  { %9449 = vmatpush1.bf16.msra.mxu0 %v17308_v13 }
 0x4f8   :  { %9572 = vmatpush1.bf16.msra.mxu1 %v17311_v62  ;;  %9450 = vmatprep.subr.bf16.mxu0 %v17316_v23  ;;  %v17394_v23 = vld [vmem:[#allocation4 + $0xc0] ss:$16 sps:$4 sm:$0xff]  }
 0x4f9   :  { %9573 = vmatprep.subr.bf16.mxu1 %v17319_v52 }
 0x4fb   :  { %9451 = vmatpush1.bf16.msra.mxu0 %v17314_v1 }
 0x4fc   :  { %9574 = vmatpush1.bf16.msra.mxu1 %v17317_v10  ;;  %9452 = vmatprep.subr.bf16.mxu0 %v17322_v44  ;;  %v17397_v44 = vld [vmem:[#allocation4 + $0xc8] ss:$16 sps:$4 sm:$0xff]  }
 0x4fd   :  { %9575 = vmatprep.subr.bf16.mxu1 %v17325_v34  ;;  %v17402_v34 = vld [vmem:[#allocation4 + $0xe4] ss:$16 sps:$4 sm:$0xff]  }
 0x4ff   :  { %9453 = vmatpush1.bf16.msra.mxu0 %v17320_v43  ;;  %v21715_v43 = vld [vmem:[%s21999_s4] ss:$0 sm:$0xff] }
 0x500   :  { %9576 = vmatpush1.bf16.msra.mxu1 %v17323_v54  ;;  %9454 = vmatprep.subr.bf16.mxu0 %v17328_v39  ;;  %v17405_v39 = vld [vmem:[#allocation4 + $0xec] ss:$16 sps:$4 sm:$0xff]  }
 0x501   :  { %9577 = vmatprep.subr.bf16.mxu1 %v17331_v7 }
 0x503   :  { %9455 = vmatpush1.bf16.msra.mxu0 %v17326_v14  ;;  %v17400_v14 = vld [vmem:[#allocation4 + $0xe0] ss:$16 sps:$4 sm:$0xff]  }
 0x504   :  { %9578 = vmatpush1.bf16.msra.mxu1 %v17329_v17  ;;  %9456 = vmatprep.subr.bf16.mxu0 %v17334_v9  ;;  %v17403_v9 = vld [vmem:[#allocation4 + $0xe8] ss:$16 sps:$4 sm:$0xff]  }
 0x505   :  { %9579 = vmatprep.subr.bf16.mxu1 %v17337_v30  ;;  %v17408_v30 = vld [vmem:[#allocation4 + $0x104] ss:$16 sps:$4 sm:$0xff]  }
 0x507   :  { %9457 = vmatpush1.bf16.msra.mxu0 %v17332_v15  ;;  %v17411_v15 = vld [vmem:[#allocation4 + $0x10c] ss:$16 sps:$4 sm:$0xff]  }
 0x508   :  { %9580 = vmatpush1.bf16.msra.mxu1 %v17335_v18  ;;  %9458 = vmatprep.subr.bf16.mxu0 %v17340_v26  ;;  %v17406_v26 = vld [vmem:[#allocation4 + $0x100] ss:$16 sps:$4 sm:$0xff]  }
 0x509   :  { %9581 = vmatprep.subr.bf16.mxu1 %v17343_v8 }
 0x50b   :  { %9459 = vmatpush1.bf16.msra.mxu0 %v17338_v37  ;;  %v17409_v37 = vld [vmem:[#allocation4 + $0x108] ss:$16 sps:$4 sm:$0xff]  }
 0x50c   :  { %9582 = vmatpush1.bf16.msra.mxu1 %v17341_v3  ;;  %9460 = vmatprep.subr.bf16.mxu0 %v17346_v42  ;;  %v17414_v3 = vld [vmem:[#allocation4 + $0x124] ss:$16 sps:$4 sm:$0xff]   ;;  %v17417_v42 = vld [vmem:[#allocation4 + $0x12c] ss:$16 sps:$4 sm:$0xff]  }
 0x50d   :  { %9583 = vmatprep.subr.bf16.mxu1 %v17349_v46  ;;  %v17412_v46 = vld [vmem:[#allocation4 + $0x120] ss:$16 sps:$4 sm:$0xff]  }
 0x50f   :  { %9461 = vmatpush1.bf16.msra.mxu0 %v17344_v33  ;;  %v17415_v33 = vld [vmem:[#allocation4 + $0x128] ss:$16 sps:$4 sm:$0xff]  }
 0x510   :  { %9584 = vmatpush1.bf16.msra.mxu1 %v17347_v59  ;;  %9462 = vmatprep.subr.bf16.mxu0 %v17352_v53  ;;  %v17420_v59 = vld [vmem:[#allocation4 + $0x144] ss:$16 sps:$4 sm:$0xff]   ;;  %v17423_v53 = vld [vmem:[#allocation4 + $0x14c] ss:$16 sps:$4 sm:$0xff]  }
 0x511   :  { %9585 = vmatprep.subr.bf16.mxu1 %v17355_v24  ;;  %v17418_v24 = vld [vmem:[#allocation4 + $0x140] ss:$16 sps:$4 sm:$0xff]  }
 0x513   :  { %9463 = vmatpush1.bf16.msra.mxu0 %v17350_v16  ;;  %v17421_v16 = vld [vmem:[#allocation4 + $0x148] ss:$16 sps:$4 sm:$0xff]  }
 0x514   :  { %9586 = vmatpush1.bf16.msra.mxu1 %v17353_v35  ;;  %10779 = vmatprep.subr.bf16.mxu0 %v17358_v6  ;;  %v17426_v35 = vld [vmem:[#allocation4 + $0x164] ss:$16 sps:$4 sm:$0xff]   ;;  %v17429_v6 = vld [vmem:[#allocation4 + $0x16c] ss:$16 sps:$4 sm:$0xff]  }
 0x515   :  { %10902 = vmatprep.subr.bf16.mxu1 %v17361_v20  ;;  %v17424_v20 = vld [vmem:[#allocation4 + $0x160] ss:$16 sps:$4 sm:$0xff]  }
 0x516   :  { %9465 = vmatmul.mubr.bf16.vlgmr.msra.gmra.mrb[60].mxu0 %v21706_v50 }
 0x517   :  { %9588 = vmatmul.mubr.bf16.vlgmr.msra.gmra.mrb[60].mxu1 %v21706_v50  ;;  %10780 = vmatpush1.bf16.msra.mxu0 %v17356_v61  ;;  %v17427_v61 = vld [vmem:[#allocation4 + $0x168] ss:$16 sps:$4 sm:$0xff]  }
 0x518   :  { %10811 = vmatprep.mubr.bf16.mxu0 %v15891_v25  ;;  %10903 = vmatpush1.bf16.msra.mxu1 %v17359_v55  ;;  %v17432_v55 = vld [vmem:[#allocation4 + $0x184] ss:$16 sps:$4 sm:$0xff]  }
 0x519   :  { %10934 = vmatprep.mubr.bf16.mxu1 %v15891_v25  ;;  %10781 = vmatprep.subr.bf16.mxu0 %v17366_v11  ;;  %v17435_v11 = vld [vmem:[#allocation4 + $0x18c] ss:$16 sps:$4 sm:$0xff]   ;;  %v17430_v25 = vld [vmem:[#allocation4 + $0x180] ss:$16 sps:$4 sm:$0xff]  }
 0x51a   :  { %10904 = vmatprep.subr.bf16.mxu1 %v17369_v36  ;;  %v17433_v36 = vld [vmem:[#allocation4 + $0x188] ss:$16 sps:$4 sm:$0xff]  }
 0x51b   :  { %10782 = vmatpush1.bf16.msra.mxu0 %v17364_v41  ;;  %v17438_v41 = vld [vmem:[#allocation4 + $0x1a4] ss:$16 sps:$4 sm:$0xff]  }
 0x51c   :  { %10905 = vmatpush1.bf16.msra.mxu1 %v17367_v31  ;;  %10783 = vmatprep.subr.bf16.mxu0 %v17372_v28  ;;  %v17441_v31 = vld [vmem:[#allocation4 + $0x1ac] ss:$16 sps:$4 sm:$0xff]   ;;  %v17436_v28 = vld [vmem:[#allocation4 + $0x1a0] ss:$16 sps:$4 sm:$0xff]  }
 0x51d   :  { %10906 = vmatprep.subr.bf16.mxu1 %v17375_v51  ;;  %v17439_v51 = vld [vmem:[#allocation4 + $0x1a8] ss:$16 sps:$4 sm:$0xff]  }
 0x51f   :  { %10784 = vmatpush1.bf16.msra.mxu0 %v17370_v32  ;;  %v17444_v32 = vld [vmem:[#allocation4 + $0x1c4] ss:$16 sps:$4 sm:$0xff]  }
 0x520   :  { %10907 = vmatpush1.bf16.msra.mxu1 %v17373_v29  ;;  %10785 = vmatprep.subr.bf16.mxu0 %v17378_v40  ;;  %v17447_v29 = vld [vmem:[#allocation4 + $0x1cc] ss:$16 sps:$4 sm:$0xff]   ;;  %v17442_v40 = vld [vmem:[#allocation4 + $0x1c0] ss:$16 sps:$4 sm:$0xff]  }
 0x521   :  { %10908 = vmatprep.subr.bf16.mxu1 %v17381_v60  ;;  %v17445_v60 = vld [vmem:[#allocation4 + $0x1c8] ss:$16 sps:$4 sm:$0xff]  }
 0x523   :  { %10786 = vmatpush1.bf16.msra.mxu0 %v17376_v58  ;;  %v17450_v58 = vld [vmem:[#allocation4 + $0x1e4] ss:$16 sps:$4 sm:$0xff]  }
 0x524   :  { %10909 = vmatpush1.bf16.msra.mxu1 %v17379_v2  ;;  %10787 = vmatprep.subr.bf16.mxu0 %v17384_v12  ;;  %v17453_v2 = vld [vmem:[#allocation4 + $0x1ec] ss:$16 sps:$4 sm:$0xff]   ;;  %v17448_v12 = vld [vmem:[#allocation4 + $0x1e0] ss:$16 sps:$4 sm:$0xff]  }
 0x525   :  { %10910 = vmatprep.subr.bf16.mxu1 %v17387_v0  ;;  %v17451_v0 = vld [vmem:[#allocation4 + $0x1e8] ss:$16 sps:$4 sm:$0xff]  }
 0x527   :  { %10788 = vmatpush1.bf16.msra.mxu0 %v17382_v4  ;;  %v17456_v4 = vld [vmem:[#allocation4 + $0x204] ss:$16 sps:$4 sm:$0xff]  }
 0x528   :  { %10911 = vmatpush1.bf16.msra.mxu1 %v17385_v56  ;;  %10789 = vmatprep.subr.bf16.mxu0 %v17390_v63  ;;  %v17459_v56 = vld [vmem:[#allocation4 + $0x20c] ss:$16 sps:$4 sm:$0xff]   ;;  %v17454_v63 = vld [vmem:[#allocation4 + $0x200] ss:$16 sps:$4 sm:$0xff]  }
 0x529   :  { %v8031_v5 = vpop.f32.mrb[56].mxu0  ;;  %10912 = vmatprep.subr.bf16.mxu1 %v17393_v21  ;;  %v15890_v21 = vcombine.low %v21702_v22, %v21702_v22  ;;  %v17466_v22 = vld [vmem:[#allocation4 + $0x240] ss:$16 sps:$4 sm:$0xff]  }
 0x52a   :  { %v8154_v47 = vpop.f32.mrb[56].mxu1  ;;  %v8033_v49 = vpop.f32.mrb[57].mxu0 }
 0x52b   :  { %v8161_v45 = vmax.f32 %v8031_v5, %v8033_v49  ;;  %v8156_v13 = vpop.f32.mrb[57].mxu1  ;;  %v8035_v62 = vpop.f32.mrb[58].mxu0  ;;  %10790 = vmatpush1.bf16.msra.mxu0 %v17388_v57  ;;  %v17457_v57 = vld [vmem:[#allocation4 + $0x208] ss:$16 sps:$4 sm:$0xff]   ;;  %v17460_v5 = vld [vmem:[#allocation4 + $0x220] ss:$16 sps:$4 sm:$0xff]  }
 0x52c   :  { %v8162_v52 = vmax.f32 %v8154_v47, %v8156_v13  ;;  %v8158_v1 = vpop.f32.mrb[58].mxu1  ;;  %10913 = vmatpush1.bf16.msra.mxu1 %v17391_v19  ;;  %v8036_v10 = vpop.f32.mrb[59].mxu0  ;;  %10791 = vmatprep.subr.bf16.mxu0 %v17396_v27  ;;  %v17462_v19 = vld [vmem:[#allocation4 + $0x224] ss:$16 sps:$4 sm:$0xff]   ;;  %v17465_v27 = vld [vmem:[#allocation4 + $0x22c] ss:$16 sps:$4 sm:$0xff]  }
 0x52d   :  { %v8159_v54 = vpop.f32.mrb[59].mxu1  ;;  %10914 = vmatprep.subr.bf16.mxu1 %v17399_v38  ;;  %v17463_v38 = vld [vmem:[#allocation4 + $0x228] ss:$16 sps:$4 sm:$0xff]   ;;  %v17468_v47 = vld [vmem:[#allocation4 + $0x244] ss:$16 sps:$4 sm:$0xff]  }
 0x52e   :  { %v8163_v7 = vmax.f32 %v8161_v45, %v8162_v52  ;;  %v17471_v49 = vld [vmem:[#allocation4 + $0x24c] ss:$16 sps:$4 sm:$0xff]   ;;  %v17469_v45 = vld [vmem:[#allocation4 + $0x248] ss:$16 sps:$4 sm:$0xff]   ;;  %v17474_v13 = vld [vmem:[#allocation4 + $0x264] ss:$16 sps:$4 sm:$0xff]  }
 0x52f   :  { %10792 = vmatpush1.bf16.msra.mxu0 %v17394_v23  ;;  %v17477_v62 = vld [vmem:[#allocation4 + $0x26c] ss:$16 sps:$4 sm:$0xff]   ;;  %v17472_v23 = vld [vmem:[#allocation4 + $0x260] ss:$16 sps:$4 sm:$0xff]   ;;  %v17475_v52 = vld [vmem:[#allocation4 + $0x268] ss:$16 sps:$4 sm:$0xff]  }
 0x530   :  { %v8170_v17 = vadd.f32 %v21715_v43, %v8163_v7  ;;  %10915 = vmatpush1.bf16.msra.mxu1 %v17397_v44  ;;  %10793 = vmatprep.subr.bf16.mxu0 %v17402_v34  ;;  %v17480_v1 = vld [vmem:[#allocation4 + $0x284] ss:$16 sps:$4 sm:$0xff]   ;;  %v17483_v10 = vld [vmem:[#allocation4 + $0x28c] ss:$16 sps:$4 sm:$0xff]   ;;  %v17481_v44 = vld [vmem:[#allocation4 + $0x288] ss:$16 sps:$4 sm:$0xff]  }
 0x531   :  { %10916 = vmatprep.subr.bf16.mxu1 %v17405_v39  ;;  %v17486_v34 = vld [vmem:[#allocation4 + $0x2a4] ss:$16 sps:$4 sm:$0xff]   ;;  %v17489_v54 = vld [vmem:[#allocation4 + $0x2ac] ss:$16 sps:$4 sm:$0xff]   ;;  %v17484_v39 = vld [vmem:[#allocation4 + $0x2a0] ss:$16 sps:$4 sm:$0xff]  }
 0x532   :  { %v8171_v18 = vmax.f32 %v8170_v17, 0.0  ;;  %v17487_v7 = vld [vmem:[#allocation4 + $0x2a8] ss:$16 sps:$4 sm:$0xff]   ;;  %v17495_v17 = vld [vmem:[#allocation4 + $0x2cc] ss:$16 sps:$4 sm:$0xff]  }
 0x533   :  { %10794 = vmatpush1.bf16.msra.mxu0 %v17400_v14  ;;  %v17492_v14 = vld [vmem:[#allocation4 + $0x2c4] ss:$16 sps:$4 sm:$0xff]  }
 0x534   :  { %v8172_v8 = vpack.c.bf16 %v8171_v18, %v8171_v18  ;;  %10917 = vmatpush1.bf16.msra.mxu1 %v17403_v9  ;;  %10795 = vmatprep.subr.bf16.mxu0 %v17408_v30  ;;  %v17490_v9 = vld [vmem:[#allocation4 + $0x2c0] ss:$16 sps:$4 sm:$0xff]   ;;  %v17493_v30 = vld [vmem:[#allocation4 + $0x2c8] ss:$16 sps:$4 sm:$0xff]   ;;  %v17501_v18 = vld [vmem:[#allocation4 + $0x2ec] ss:$16 sps:$4 sm:$0xff]  }
 0x535   :  { %10918 = vmatprep.subr.bf16.mxu1 %v17411_v15  ;;  %v17498_v15 = vld [vmem:[#allocation4 + $0x2e4] ss:$16 sps:$4 sm:$0xff]  }
 0x536   :  { %8173 = vst [vmem:[#allocation3] sm:$0xf] %v8172_v8  ;;  %v17499_v8 = vld [vmem:[#allocation4 + $0x2e8] ss:$16 sps:$4 sm:$0xff]  }
 0x537   :  { %10796 = vmatpush1.bf16.msra.mxu0 %v17406_v26  ;;  %v17496_v26 = vld [vmem:[#allocation4 + $0x2e0] ss:$16 sps:$4 sm:$0xff]  }
 0x538   :  { %10919 = vmatpush1.bf16.msra.mxu1 %v17409_v37  ;;  %10797 = vmatprep.subr.bf16.mxu0 %v17414_v3  ;;  %v17504_v37 = vld [vmem:[#allocation4 + $0x304] ss:$16 sps:$4 sm:$0xff]   ;;  %v17507_v3 = vld [vmem:[#allocation4 + $0x30c] ss:$16 sps:$4 sm:$0xff]  }
 0x539   :  { %10920 = vmatprep.subr.bf16.mxu1 %v17417_v42  ;;  %v17502_v42 = vld [vmem:[#allocation4 + $0x300] ss:$16 sps:$4 sm:$0xff]  }
 0x53b   :  { %10798 = vmatpush1.bf16.msra.mxu0 %v17412_v46  ;;  %v17505_v46 = vld [vmem:[#allocation4 + $0x308] ss:$16 sps:$4 sm:$0xff]  }
 0x53c   :  { %10921 = vmatpush1.bf16.msra.mxu1 %v17415_v33  ;;  %10799 = vmatprep.subr.bf16.mxu0 %v17420_v59  ;;  %v17510_v33 = vld [vmem:[#allocation4 + $0x324] ss:$16 sps:$4 sm:$0xff]   ;;  %v17513_v59 = vld [vmem:[#allocation4 + $0x32c] ss:$16 sps:$4 sm:$0xff]  }
 0x53d   :  { %10922 = vmatprep.subr.bf16.mxu1 %v17423_v53  ;;  %v17508_v53 = vld [vmem:[#allocation4 + $0x320] ss:$16 sps:$4 sm:$0xff]  }
 0x53f   :  { %10800 = vmatpush1.bf16.msra.mxu0 %v17418_v24  ;;  %v17511_v24 = vld [vmem:[#allocation4 + $0x328] ss:$16 sps:$4 sm:$0xff]  }
 0x540   :  { %10923 = vmatpush1.bf16.msra.mxu1 %v17421_v16  ;;  %10801 = vmatprep.subr.bf16.mxu0 %v17426_v35  ;;  %v17516_v16 = vld [vmem:[#allocation4 + $0x344] ss:$16 sps:$4 sm:$0xff]   ;;  %v17519_v35 = vld [vmem:[#allocation4 + $0x34c] ss:$16 sps:$4 sm:$0xff]  }
 0x541   :  { %10924 = vmatprep.subr.bf16.mxu1 %v17429_v6  ;;  %v17514_v6 = vld [vmem:[#allocation4 + $0x340] ss:$16 sps:$4 sm:$0xff]  }
 0x543   :  { %10802 = vmatpush1.bf16.msra.mxu0 %v17424_v20  ;;  %v17517_v20 = vld [vmem:[#allocation4 + $0x348] ss:$16 sps:$4 sm:$0xff]  }
 0x544   :  { %10925 = vmatpush1.bf16.msra.mxu1 %v17427_v61  ;;  %10803 = vmatprep.subr.bf16.mxu0 %v17432_v55  ;;  %v17522_v61 = vld [vmem:[#allocation4 + $0x364] ss:$16 sps:$4 sm:$0xff]   ;;  %v17525_v55 = vld [vmem:[#allocation4 + $0x36c] ss:$16 sps:$4 sm:$0xff]  }
 0x545   :  { %10926 = vmatprep.subr.bf16.mxu1 %v17435_v11  ;;  %v17520_v11 = vld [vmem:[#allocation4 + $0x360] ss:$16 sps:$4 sm:$0xff]  }
 0x547   :  { %10804 = vmatpush1.bf16.msra.mxu0 %v17430_v25  ;;  %v17523_v25 = vld [vmem:[#allocation4 + $0x368] ss:$16 sps:$4 sm:$0xff]  }
 0x548   :  { %10927 = vmatpush1.bf16.msra.mxu1 %v17433_v36  ;;  %10805 = vmatprep.subr.bf16.mxu0 %v17438_v41  ;;  %v17528_v36 = vld [vmem:[#allocation4 + $0x384] ss:$16 sps:$4 sm:$0xff]   ;;  %v17531_v41 = vld [vmem:[#allocation4 + $0x38c] ss:$16 sps:$4 sm:$0xff]  }
 0x549   :  { %10928 = vmatprep.subr.bf16.mxu1 %v17441_v31  ;;  %v17526_v31 = vld [vmem:[#allocation4 + $0x380] ss:$16 sps:$4 sm:$0xff]  }
 0x54b   :  { %10806 = vmatpush1.bf16.msra.mxu0 %v17436_v28  ;;  %v17529_v28 = vld [vmem:[#allocation4 + $0x388] ss:$16 sps:$4 sm:$0xff]  }
 0x54c   :  { %10929 = vmatpush1.bf16.msra.mxu1 %v17439_v51  ;;  %10807 = vmatprep.subr.bf16.mxu0 %v17444_v32  ;;  %v17534_v51 = vld [vmem:[#allocation4 + $0x3a4] ss:$16 sps:$4 sm:$0xff]   ;;  %v17537_v32 = vld [vmem:[#allocation4 + $0x3ac] ss:$16 sps:$4 sm:$0xff]  }
 0x54d   :  { %10930 = vmatprep.subr.bf16.mxu1 %v17447_v29  ;;  %v17532_v29 = vld [vmem:[#allocation4 + $0x3a0] ss:$16 sps:$4 sm:$0xff]  }
 0x54f   :  { %10808 = vmatpush1.bf16.msra.mxu0 %v17442_v40  ;;  %v17535_v40 = vld [vmem:[#allocation4 + $0x3a8] ss:$16 sps:$4 sm:$0xff]  }
 0x550   :  { %10931 = vmatpush1.bf16.msra.mxu1 %v17445_v60  ;;  %10809 = vmatprep.subr.bf16.mxu0 %v17450_v58  ;;  %v17540_v60 = vld [vmem:[#allocation4 + $0x3c4] ss:$16 sps:$4 sm:$0xff]   ;;  %v17543_v58 = vld [vmem:[#allocation4 + $0x3cc] ss:$16 sps:$4 sm:$0xff]  }
 0x551   :  { %10932 = vmatprep.subr.bf16.mxu1 %v17453_v2  ;;  %v17538_v2 = vld [vmem:[#allocation4 + $0x3c0] ss:$16 sps:$4 sm:$0xff]  }
 0x553   :  { %10810 = vmatpush1.bf16.msra.mxu0 %v17448_v12  ;;  %v17541_v12 = vld [vmem:[#allocation4 + $0x3c8] ss:$16 sps:$4 sm:$0xff]  }
 0x554   :  { %10933 = vmatpush1.bf16.msra.mxu1 %v17451_v0  ;;  %10820 = vmatprep.subr.bf16.mxu0 %v17456_v4  ;;  %v17546_v0 = vld [vmem:[#allocation4 + $0x3e4] ss:$16 sps:$4 sm:$0xff]   ;;  %v17549_v4 = vld [vmem:[#allocation4 + $0x3ec] ss:$16 sps:$4 sm:$0xff]  }
 0x555   :  { %10943 = vmatprep.subr.bf16.mxu1 %v17459_v56  ;;  %v17544_v56 = vld [vmem:[#allocation4 + $0x3e0] ss:$16 sps:$4 sm:$0xff]  }
 0x556   :  { %10812 = vmatmul.mubr.bf16.vlgmr.msra.gmra.mrb[64].mxu0 %v15890_v21 }
 0x557   :  { %10935 = vmatmul.mubr.bf16.vlgmr.msra.gmra.mrb[64].mxu1 %v15890_v21  ;;  %10821 = vmatpush1.bf16.msra.mxu0 %v17454_v63  ;;  %v17547_v63 = vld [vmem:[#allocation4 + $0x3e8] ss:$16 sps:$4 sm:$0xff]   ;;  %v17552_v21 = vld [vmem:[#allocation4 + $0x404] ss:$16 sps:$4 sm:$0xff]  }
 0x558   :  { %10852 = vmatprep.mubr.bf16.mxu0 %v21697_v48  ;;  %10944 = vmatpush1.bf16.msra.mxu1 %v17457_v57  ;;  %v17555_v57 = vld [vmem:[#allocation4 + $0x40c] ss:$16 sps:$4 sm:$0xff]  }
 0x559   :  { %10975 = vmatprep.mubr.bf16.mxu1 %v21697_v48  ;;  %10822 = vmatprep.subr.bf16.mxu0 %v17462_v19  ;;  %v17478_v48 = vld [vmem:[#allocation4 + $0x280] ss:$16 sps:$4 sm:$0xff]  }
 0x55a   :  { %10945 = vmatprep.subr.bf16.mxu1 %v17465_v27  ;;  %v17550_v19 = vld [vmem:[#allocation4 + $0x400] ss:$16 sps:$4 sm:$0xff]   ;;  %v21722_v27 = vld [vmem:[#allocation2 + $0x20] sm:$0xff] }
 0x55b   :  { %10823 = vmatpush1.bf16.msra.mxu0 %v17460_v5  ;;  %v17553_v5 = vld [vmem:[#allocation4 + $0x408] ss:$16 sps:$4 sm:$0xff]  }
 0x55c   :  { %10946 = vmatpush1.bf16.msra.mxu1 %v17463_v38  ;;  %10824 = vmatprep.subr.bf16.mxu0 %v17468_v47  ;;  %v17560_v38 = vld [vmem:[#allocation4 + $0x424] ss:$16 sps:$4 sm:$0xff]   ;;  %v21727_v47 = vcombine.high %v21722_v27, %v21722_v27 }
 0x55d   :  { %10947 = vmatprep.subr.bf16.mxu1 %v17471_v49  ;;  %v17563_v49 = vld [vmem:[#allocation4 + $0x42c] ss:$16 sps:$4 sm:$0xff]  }
 0x55f   :  { %10825 = vmatpush1.bf16.msra.mxu0 %v17466_v22  ;;  %v17558_v22 = vld [vmem:[#allocation4 + $0x420] ss:$16 sps:$4 sm:$0xff]  }
 0x560   :  { %10948 = vmatpush1.bf16.msra.mxu1 %v17469_v45  ;;  %10826 = vmatprep.subr.bf16.mxu0 %v17474_v13  ;;  %v17561_v45 = vld [vmem:[#allocation4 + $0x428] ss:$16 sps:$4 sm:$0xff]   ;;  %v17566_v13 = vld [vmem:[#allocation4 + $0x444] ss:$16 sps:$4 sm:$0xff]  }
 0x561   :  { %10949 = vmatprep.subr.bf16.mxu1 %v17477_v62  ;;  %v17569_v62 = vld [vmem:[#allocation4 + $0x44c] ss:$16 sps:$4 sm:$0xff]  }
 0x563   :  { %10827 = vmatpush1.bf16.msra.mxu0 %v17472_v23  ;;  %v17564_v23 = vld [vmem:[#allocation4 + $0x440] ss:$16 sps:$4 sm:$0xff]  }
 0x564   :  { %10950 = vmatpush1.bf16.msra.mxu1 %v17475_v52  ;;  %10828 = vmatprep.subr.bf16.mxu0 %v17480_v1  ;;  %v17567_v52 = vld [vmem:[#allocation4 + $0x448] ss:$16 sps:$4 sm:$0xff]   ;;  %v17572_v1 = vld [vmem:[#allocation4 + $0x464] ss:$16 sps:$4 sm:$0xff]  }
 0x565   :  { %10951 = vmatprep.subr.bf16.mxu1 %v17483_v10  ;;  %v17570_v10 = vld [vmem:[#allocation4 + $0x460] ss:$16 sps:$4 sm:$0xff]  }
 0x567   :  { %10829 = vmatpush1.bf16.msra.mxu0 %v17478_v48  ;;  %v17573_v48 = vld [vmem:[#allocation4 + $0x468] ss:$16 sps:$4 sm:$0xff]  }
 0x568   :  { %10952 = vmatpush1.bf16.msra.mxu1 %v17481_v44  ;;  %10830 = vmatprep.subr.bf16.mxu0 %v17486_v34  ;;  %v17578_v44 = vld [vmem:[#allocation4 + $0x484] ss:$16 sps:$4 sm:$0xff]   ;;  %v17581_v34 = vld [vmem:[#allocation4 + $0x48c] ss:$16 sps:$4 sm:$0xff]  }
 0x569   :  { %10953 = vmatprep.subr.bf16.mxu1 %v17489_v54  ;;  %v17576_v54 = vld [vmem:[#allocation4 + $0x480] ss:$16 sps:$4 sm:$0xff]  }
 0x56b   :  { %10831 = vmatpush1.bf16.msra.mxu0 %v17484_v39  ;;  %v17579_v39 = vld [vmem:[#allocation4 + $0x488] ss:$16 sps:$4 sm:$0xff]  }
 0x56c   :  { %10954 = vmatpush1.bf16.msra.mxu1 %v17487_v7  ;;  %10832 = vmatprep.subr.bf16.mxu0 %v17492_v14  ;;  %v17584_v7 = vld [vmem:[#allocation4 + $0x4a4] ss:$16 sps:$4 sm:$0xff]   ;;  %v17587_v14 = vld [vmem:[#allocation4 + $0x4ac] ss:$16 sps:$4 sm:$0xff]  }
 0x56d   :  { %10955 = vmatprep.subr.bf16.mxu1 %v17495_v17  ;;  %v17582_v17 = vld [vmem:[#allocation4 + $0x4a0] ss:$16 sps:$4 sm:$0xff]  }
 0x56f   :  { %10833 = vmatpush1.bf16.msra.mxu0 %v17490_v9  ;;  %v17585_v9 = vld [vmem:[#allocation4 + $0x4a8] ss:$16 sps:$4 sm:$0xff]  }
 0x570   :  { %10956 = vmatpush1.bf16.msra.mxu1 %v17493_v30  ;;  %10834 = vmatprep.subr.bf16.mxu0 %v17498_v15  ;;  %v17590_v30 = vld [vmem:[#allocation4 + $0x4c4] ss:$16 sps:$4 sm:$0xff]   ;;  %v17593_v15 = vld [vmem:[#allocation4 + $0x4cc] ss:$16 sps:$4 sm:$0xff]  }
 0x571   :  { %10957 = vmatprep.subr.bf16.mxu1 %v17501_v18  ;;  %v17588_v18 = vld [vmem:[#allocation4 + $0x4c0] ss:$16 sps:$4 sm:$0xff]  }
 0x573   :  { %10835 = vmatpush1.bf16.msra.mxu0 %v17496_v26  ;;  %v17591_v26 = vld [vmem:[#allocation4 + $0x4c8] ss:$16 sps:$4 sm:$0xff]  }
 0x574   :  { %10958 = vmatpush1.bf16.msra.mxu1 %v17499_v8  ;;  %10836 = vmatprep.subr.bf16.mxu0 %v17504_v37  ;;  %v17596_v8 = vld [vmem:[#allocation4 + $0x4e4] ss:$16 sps:$4 sm:$0xff]   ;;  %v17599_v37 = vld [vmem:[#allocation4 + $0x4ec] ss:$16 sps:$4 sm:$0xff]  }
 0x575   :  { %10959 = vmatprep.subr.bf16.mxu1 %v17507_v3  ;;  %v17594_v3 = vld [vmem:[#allocation4 + $0x4e0] ss:$16 sps:$4 sm:$0xff]  }
 0x577   :  { %10837 = vmatpush1.bf16.msra.mxu0 %v17502_v42  ;;  %v17597_v42 = vld [vmem:[#allocation4 + $0x4e8] ss:$16 sps:$4 sm:$0xff]  }
 0x578   :  { %10960 = vmatpush1.bf16.msra.mxu1 %v17505_v46  ;;  %10838 = vmatprep.subr.bf16.mxu0 %v17510_v33  ;;  %v17602_v46 = vld [vmem:[#allocation4 + $0x504] ss:$16 sps:$4 sm:$0xff]   ;;  %v17605_v33 = vld [vmem:[#allocation4 + $0x50c] ss:$16 sps:$4 sm:$0xff]  }
 0x579   :  { %10961 = vmatprep.subr.bf16.mxu1 %v17513_v59  ;;  %v17600_v59 = vld [vmem:[#allocation4 + $0x500] ss:$16 sps:$4 sm:$0xff]  }
 0x57b   :  { %10839 = vmatpush1.bf16.msra.mxu0 %v17508_v53  ;;  %v17603_v53 = vld [vmem:[#allocation4 + $0x508] ss:$16 sps:$4 sm:$0xff]  }
 0x57c   :  { %10962 = vmatpush1.bf16.msra.mxu1 %v17511_v24  ;;  %10840 = vmatprep.subr.bf16.mxu0 %v17516_v16  ;;  %v17608_v24 = vld [vmem:[#allocation4 + $0x524] ss:$16 sps:$4 sm:$0xff]   ;;  %v17611_v16 = vld [vmem:[#allocation4 + $0x52c] ss:$16 sps:$4 sm:$0xff]  }
 0x57d   :  { %10963 = vmatprep.subr.bf16.mxu1 %v17519_v35  ;;  %v17606_v35 = vld [vmem:[#allocation4 + $0x520] ss:$16 sps:$4 sm:$0xff]  }
 0x57f   :  { %10841 = vmatpush1.bf16.msra.mxu0 %v17514_v6  ;;  %v17609_v6 = vld [vmem:[#allocation4 + $0x528] ss:$16 sps:$4 sm:$0xff]  }
 0x580   :  { %10964 = vmatpush1.bf16.msra.mxu1 %v17517_v20  ;;  %10842 = vmatprep.subr.bf16.mxu0 %v17522_v61  ;;  %v17614_v20 = vld [vmem:[#allocation4 + $0x544] ss:$16 sps:$4 sm:$0xff]   ;;  %v17617_v61 = vld [vmem:[#allocation4 + $0x54c] ss:$16 sps:$4 sm:$0xff]  }
 0x581   :  { %10965 = vmatprep.subr.bf16.mxu1 %v17525_v55  ;;  %v17612_v55 = vld [vmem:[#allocation4 + $0x540] ss:$16 sps:$4 sm:$0xff]  }
 0x583   :  { %10843 = vmatpush1.bf16.msra.mxu0 %v17520_v11  ;;  %v17615_v11 = vld [vmem:[#allocation4 + $0x548] ss:$16 sps:$4 sm:$0xff]  }
 0x584   :  { %10966 = vmatpush1.bf16.msra.mxu1 %v17523_v25  ;;  %10844 = vmatprep.subr.bf16.mxu0 %v17528_v36  ;;  %v17620_v25 = vld [vmem:[#allocation4 + $0x564] ss:$16 sps:$4 sm:$0xff]   ;;  %v17623_v36 = vld [vmem:[#allocation4 + $0x56c] ss:$16 sps:$4 sm:$0xff]  }
 0x585   :  { %10967 = vmatprep.subr.bf16.mxu1 %v17531_v41  ;;  %v17618_v41 = vld [vmem:[#allocation4 + $0x560] ss:$16 sps:$4 sm:$0xff]  }
 0x587   :  { %10845 = vmatpush1.bf16.msra.mxu0 %v17526_v31  ;;  %v17621_v31 = vld [vmem:[#allocation4 + $0x568] ss:$16 sps:$4 sm:$0xff]  }
 0x588   :  { %10968 = vmatpush1.bf16.msra.mxu1 %v17529_v28  ;;  %10846 = vmatprep.subr.bf16.mxu0 %v17534_v51  ;;  %v17626_v28 = vld [vmem:[#allocation4 + $0x584] ss:$16 sps:$4 sm:$0xff]   ;;  %v17629_v51 = vld [vmem:[#allocation4 + $0x58c] ss:$16 sps:$4 sm:$0xff]  }
 0x589   :  { %10969 = vmatprep.subr.bf16.mxu1 %v17537_v32  ;;  %v17624_v32 = vld [vmem:[#allocation4 + $0x580] ss:$16 sps:$4 sm:$0xff]  }
 0x58b   :  { %10847 = vmatpush1.bf16.msra.mxu0 %v17532_v29  ;;  %v17627_v29 = vld [vmem:[#allocation4 + $0x588] ss:$16 sps:$4 sm:$0xff]  }
 0x58c   :  { %10970 = vmatpush1.bf16.msra.mxu1 %v17535_v40  ;;  %10848 = vmatprep.subr.bf16.mxu0 %v17540_v60  ;;  %v17632_v40 = vld [vmem:[#allocation4 + $0x5a4] ss:$16 sps:$4 sm:$0xff]   ;;  %v17635_v60 = vld [vmem:[#allocation4 + $0x5ac] ss:$16 sps:$4 sm:$0xff]  }
 0x58d   :  { %10971 = vmatprep.subr.bf16.mxu1 %v17543_v58  ;;  %v17630_v58 = vld [vmem:[#allocation4 + $0x5a0] ss:$16 sps:$4 sm:$0xff]  }
 0x58f   :  { %10849 = vmatpush1.bf16.msra.mxu0 %v17538_v2  ;;  %v17633_v2 = vld [vmem:[#allocation4 + $0x5a8] ss:$16 sps:$4 sm:$0xff]  }
 0x590   :  { %10972 = vmatpush1.bf16.msra.mxu1 %v17541_v12  ;;  %10850 = vmatprep.subr.bf16.mxu0 %v17546_v0  ;;  %v17638_v12 = vld [vmem:[#allocation4 + $0x5c4] ss:$16 sps:$4 sm:$0xff]   ;;  %v17641_v0 = vld [vmem:[#allocation4 + $0x5cc] ss:$16 sps:$4 sm:$0xff]  }
 0x591   :  { %10973 = vmatprep.subr.bf16.mxu1 %v17549_v4  ;;  %v17636_v4 = vld [vmem:[#allocation4 + $0x5c0] ss:$16 sps:$4 sm:$0xff]  }
 0x593   :  { %10851 = vmatpush1.bf16.msra.mxu0 %v17544_v56  ;;  %v17639_v56 = vld [vmem:[#allocation4 + $0x5c8] ss:$16 sps:$4 sm:$0xff]  }
 0x594   :  { %10974 = vmatpush1.bf16.msra.mxu1 %v17547_v63  ;;  %10861 = vmatprep.subr.bf16.mxu0 %v17552_v21  ;;  %v17644_v63 = vld [vmem:[#allocation4 + $0x5e4] ss:$16 sps:$4 sm:$0xff]   ;;  %v17647_v21 = vld [vmem:[#allocation4 + $0x5ec] ss:$16 sps:$4 sm:$0xff]  }
 0x595   :  { %10984 = vmatprep.subr.bf16.mxu1 %v17555_v57  ;;  %v17642_v57 = vld [vmem:[#allocation4 + $0x5e0] ss:$16 sps:$4 sm:$0xff]  }
 0x596   :  { %10853 = vmatmul.mubr.bf16.vlgmr.msra.gmra.mrb[64].mxu0 %v21706_v50 }
 0x597   :  { %10976 = vmatmul.mubr.bf16.vlgmr.msra.gmra.mrb[64].mxu1 %v21706_v50  ;;  %10862 = vmatpush1.bf16.msra.mxu0 %v17550_v19  ;;  %v17575_v50 = vld [vmem:[#allocation4 + $0x46c] ss:$16 sps:$4 sm:$0xff]   ;;  %v17645_v19 = vld [vmem:[#allocation4 + $0x5e8] ss:$16 sps:$4 sm:$0xff]  }
 0x598   :  { %10893 = vmatprep.mubr.bf16.mxu0 %v21727_v47  ;;  %10985 = vmatpush1.bf16.msra.mxu1 %v17553_v5  ;;  %v17650_v5 = vld [vmem:[#allocation4 + $0x4] ss:$16 sps:$4 sm:$0xff]  }
 0x599   :  { %11016 = vmatprep.mubr.bf16.mxu1 %v21727_v47  ;;  %10863 = vmatprep.subr.bf16.mxu0 %v17560_v38  ;;  %v17653_v38 = vld [vmem:[#allocation4 + $0xc] ss:$16 sps:$4 sm:$0xff]  }
 0x59a   :  { %10986 = vmatprep.subr.bf16.mxu1 %v17563_v49  ;;  %v17648_v49 = vld [vmem:[#allocation4] ss:$16 sps:$4 sm:$0xff]  }
 0x59b   :  { %10864 = vmatpush1.bf16.msra.mxu0 %v17558_v22  ;;  %v21732_v22 = vld [vmem:[#allocation2 + $0x18] sm:$0xff] }
 0x59c   :  { %10987 = vmatpush1.bf16.msra.mxu1 %v17561_v45  ;;  %10865 = vmatprep.subr.bf16.mxu0 %v17566_v13  ;;  %v21736_v45 = vcombine.low %v21722_v27, %v21722_v27  ;;  %v17651_v13 = vld [vmem:[#allocation4 + $0x8] ss:$16 sps:$4 sm:$0xff]   ;;  %v17664_v27 = vld [vmem:[#allocation4 + $0x44] ss:$16 sps:$4 sm:$0xff]  }
 0x59d   :  { %10988 = vmatprep.subr.bf16.mxu1 %v17569_v62  ;;  %v17658_v62 = vld [vmem:[#allocation4 + $0x24] ss:$16 sps:$4 sm:$0xff]  }
 0x59f   :  { %10866 = vmatpush1.bf16.msra.mxu0 %v17564_v23  ;;  %v16089_v23 = vcombine.high %v21732_v22, %v21732_v22 }
 0x5a0   :  { %10989 = vmatpush1.bf16.msra.mxu1 %v17567_v52  ;;  %10867 = vmatprep.subr.bf16.mxu0 %v17572_v1  ;;  %v17661_v52 = vld [vmem:[#allocation4 + $0x2c] ss:$16 sps:$4 sm:$0xff]   ;;  %v17656_v1 = vld [vmem:[#allocation4 + $0x20] ss:$16 sps:$4 sm:$0xff]  }
 0x5a1   :  { %10990 = vmatprep.subr.bf16.mxu1 %v17575_v50  ;;  %v17659_v50 = vld [vmem:[#allocation4 + $0x28] ss:$16 sps:$4 sm:$0xff]  }
 0x5a3   :  { %10868 = vmatpush1.bf16.msra.mxu0 %v17570_v10  ;;  %v17667_v10 = vld [vmem:[#allocation4 + $0x4c] ss:$16 sps:$4 sm:$0xff]  }
 0x5a4   :  { %10991 = vmatpush1.bf16.msra.mxu1 %v17573_v48  ;;  %10869 = vmatprep.subr.bf16.mxu0 %v17578_v44  ;;  %v17662_v48 = vld [vmem:[#allocation4 + $0x40] ss:$16 sps:$4 sm:$0xff]   ;;  %v17665_v44 = vld [vmem:[#allocation4 + $0x48] ss:$16 sps:$4 sm:$0xff]  }
 0x5a5   :  { %10992 = vmatprep.subr.bf16.mxu1 %v17581_v34  ;;  %v17670_v34 = vld [vmem:[#allocation4 + $0x64] ss:$16 sps:$4 sm:$0xff]  }
 0x5a7   :  { %10870 = vmatpush1.bf16.msra.mxu0 %v17576_v54  ;;  %v17673_v54 = vld [vmem:[#allocation4 + $0x6c] ss:$16 sps:$4 sm:$0xff]  }
 0x5a8   :  { %10993 = vmatpush1.bf16.msra.mxu1 %v17579_v39  ;;  %10871 = vmatprep.subr.bf16.mxu0 %v17584_v7  ;;  %v17668_v39 = vld [vmem:[#allocation4 + $0x60] ss:$16 sps:$4 sm:$0xff]   ;;  %v17671_v7 = vld [vmem:[#allocation4 + $0x68] ss:$16 sps:$4 sm:$0xff]  }
 0x5a9   :  { %10994 = vmatprep.subr.bf16.mxu1 %v17587_v14  ;;  %v17676_v14 = vld [vmem:[#allocation4 + $0x84] ss:$16 sps:$4 sm:$0xff]  }
 0x5ab   :  { %10872 = vmatpush1.bf16.msra.mxu0 %v17582_v17  ;;  %v17679_v17 = vld [vmem:[#allocation4 + $0x8c] ss:$16 sps:$4 sm:$0xff]  }
 0x5ac   :  { %10995 = vmatpush1.bf16.msra.mxu1 %v17585_v9  ;;  %10873 = vmatprep.subr.bf16.mxu0 %v17590_v30  ;;  %v17674_v9 = vld [vmem:[#allocation4 + $0x80] ss:$16 sps:$4 sm:$0xff]   ;;  %v17677_v30 = vld [vmem:[#allocation4 + $0x88] ss:$16 sps:$4 sm:$0xff]  }
 0x5ad   :  { %10996 = vmatprep.subr.bf16.mxu1 %v17593_v15  ;;  %v17682_v15 = vld [vmem:[#allocation4 + $0xa4] ss:$16 sps:$4 sm:$0xff]  }
 0x5af   :  { %10874 = vmatpush1.bf16.msra.mxu0 %v17588_v18  ;;  %v17685_v18 = vld [vmem:[#allocation4 + $0xac] ss:$16 sps:$4 sm:$0xff]  }
 0x5b0   :  { %10997 = vmatpush1.bf16.msra.mxu1 %v17591_v26  ;;  %10875 = vmatprep.subr.bf16.mxu0 %v17596_v8  ;;  %v17680_v26 = vld [vmem:[#allocation4 + $0xa0] ss:$16 sps:$4 sm:$0xff]   ;;  %v17683_v8 = vld [vmem:[#allocation4 + $0xa8] ss:$16 sps:$4 sm:$0xff]  }
 0x5b1   :  { %10998 = vmatprep.subr.bf16.mxu1 %v17599_v37  ;;  %v17688_v37 = vld [vmem:[#allocation4 + $0xc4] ss:$16 sps:$4 sm:$0xff]  }
 0x5b3   :  { %10876 = vmatpush1.bf16.msra.mxu0 %v17594_v3 }
 0x5b4   :  { %10999 = vmatpush1.bf16.msra.mxu1 %v17597_v42  ;;  %10877 = vmatprep.subr.bf16.mxu0 %v17602_v46  ;;  %v17691_v42 = vld [vmem:[#allocation4 + $0xcc] ss:$16 sps:$4 sm:$0xff]  }
 0x5b5   :  { %11000 = vmatprep.subr.bf16.mxu1 %v17605_v33 }
 0x5b7   :  { %10878 = vmatpush1.bf16.msra.mxu0 %v17600_v59 }
 0x5b8   :  { %11001 = vmatpush1.bf16.msra.mxu1 %v17603_v53  ;;  %10879 = vmatprep.subr.bf16.mxu0 %v17608_v24 }
 0x5b9   :  { %11002 = vmatprep.subr.bf16.mxu1 %v17611_v16  ;;  %v17686_v16 = vld [vmem:[#allocation4 + $0xc0] ss:$16 sps:$4 sm:$0xff]  }
 0x5bb   :  { %10880 = vmatpush1.bf16.msra.mxu0 %v17606_v35 }
 0x5bc   :  { %11003 = vmatpush1.bf16.msra.mxu1 %v17609_v6  ;;  %10881 = vmatprep.subr.bf16.mxu0 %v17614_v20 }
 0x5bd   :  { %11004 = vmatprep.subr.bf16.mxu1 %v17617_v61  ;;  %v17689_v61 = vld [vmem:[#allocation4 + $0xc8] ss:$16 sps:$4 sm:$0xff]  }
 0x5bf   :  { %10882 = vmatpush1.bf16.msra.mxu0 %v17612_v55  ;;  %v17694_v55 = vld [vmem:[#allocation4 + $0xe4] ss:$16 sps:$4 sm:$0xff]  }
 0x5c0   :  { %11005 = vmatpush1.bf16.msra.mxu1 %v17615_v11  ;;  %10883 = vmatprep.subr.bf16.mxu0 %v17620_v25  ;;  %v17697_v25 = vld [vmem:[#allocation4 + $0xec] ss:$16 sps:$4 sm:$0xff]  }
 0x5c1   :  { %11006 = vmatprep.subr.bf16.mxu1 %v17623_v36 }
 0x5c3   :  { %10884 = vmatpush1.bf16.msra.mxu0 %v17618_v41  ;;  %v17692_v41 = vld [vmem:[#allocation4 + $0xe0] ss:$16 sps:$4 sm:$0xff]  }
 0x5c4   :  { %11007 = vmatpush1.bf16.msra.mxu1 %v17621_v31  ;;  %10885 = vmatprep.subr.bf16.mxu0 %v17626_v28  ;;  %v17695_v28 = vld [vmem:[#allocation4 + $0xe8] ss:$16 sps:$4 sm:$0xff]  }
 0x5c5   :  { %11008 = vmatprep.subr.bf16.mxu1 %v17629_v51  ;;  %v17700_v51 = vld [vmem:[#allocation4 + $0x104] ss:$16 sps:$4 sm:$0xff]  }
 0x5c7   :  { %10886 = vmatpush1.bf16.msra.mxu0 %v17624_v32  ;;  %v17703_v32 = vld [vmem:[#allocation4 + $0x10c] ss:$16 sps:$4 sm:$0xff]  }
 0x5c8   :  { %11009 = vmatpush1.bf16.msra.mxu1 %v17627_v29  ;;  %10887 = vmatprep.subr.bf16.mxu0 %v17632_v40  ;;  %v17698_v40 = vld [vmem:[#allocation4 + $0x100] ss:$16 sps:$4 sm:$0xff]  }
 0x5c9   :  { %11010 = vmatprep.subr.bf16.mxu1 %v17635_v60 }
 0x5cb   :  { %10888 = vmatpush1.bf16.msra.mxu0 %v17630_v58  ;;  %v17701_v58 = vld [vmem:[#allocation4 + $0x108] ss:$16 sps:$4 sm:$0xff]  }
 0x5cc   :  { %11011 = vmatpush1.bf16.msra.mxu1 %v17633_v2  ;;  %10889 = vmatprep.subr.bf16.mxu0 %v17638_v12  ;;  %v17706_v2 = vld [vmem:[#allocation4 + $0x124] ss:$16 sps:$4 sm:$0xff]   ;;  %v17709_v12 = vld [vmem:[#allocation4 + $0x12c] ss:$16 sps:$4 sm:$0xff]  }
 0x5cd   :  { %11012 = vmatprep.subr.bf16.mxu1 %v17641_v0  ;;  %v17704_v0 = vld [vmem:[#allocation4 + $0x120] ss:$16 sps:$4 sm:$0xff]  }
 0x5cf   :  { %10890 = vmatpush1.bf16.msra.mxu0 %v17636_v4  ;;  %v17712_v4 = vld [vmem:[#allocation4 + $0x144] ss:$16 sps:$4 sm:$0xff]  }
 0x5d0   :  { %11013 = vmatpush1.bf16.msra.mxu1 %v17639_v56  ;;  %10891 = vmatprep.subr.bf16.mxu0 %v17644_v63  ;;  %v17715_v56 = vld [vmem:[#allocation4 + $0x14c] ss:$16 sps:$4 sm:$0xff]   ;;  %v17710_v63 = vld [vmem:[#allocation4 + $0x140] ss:$16 sps:$4 sm:$0xff]  }
 0x5d1   :  { %11014 = vmatprep.subr.bf16.mxu1 %v17647_v21  ;;  %v17713_v21 = vld [vmem:[#allocation4 + $0x148] ss:$16 sps:$4 sm:$0xff]  }
 0x5d3   :  { %10892 = vmatpush1.bf16.msra.mxu0 %v17642_v57  ;;  %v17718_v57 = vld [vmem:[#allocation4 + $0x164] ss:$16 sps:$4 sm:$0xff]  }
 0x5d4   :  { %11015 = vmatpush1.bf16.msra.mxu1 %v17645_v19  ;;  %12208 = vmatprep.subr.bf16.mxu0 %v17650_v5  ;;  %v17721_v19 = vld [vmem:[#allocation4 + $0x16c] ss:$16 sps:$4 sm:$0xff]   ;;  %v17716_v5 = vld [vmem:[#allocation4 + $0x160] ss:$16 sps:$4 sm:$0xff]  }
 0x5d5   :  { %12331 = vmatprep.subr.bf16.mxu1 %v17653_v38  ;;  %v17719_v38 = vld [vmem:[#allocation4 + $0x168] ss:$16 sps:$4 sm:$0xff]  }
 0x5d6   :  { %10894 = vmatmul.mubr.bf16.vlgmr.msra.gmra.mrb[64].mxu0 %v21736_v45 }
 0x5d7   :  { %11017 = vmatmul.mubr.bf16.vlgmr.msra.gmra.mrb[64].mxu1 %v21736_v45  ;;  %12209 = vmatpush1.bf16.msra.mxu0 %v17648_v49  ;;  %v17724_v49 = vld [vmem:[#allocation4 + $0x184] ss:$16 sps:$4 sm:$0xff]  }
 0x5d8   :  { %12240 = vmatprep.mubr.bf16.mxu0 %v16089_v23  ;;  %12332 = vmatpush1.bf16.msra.mxu1 %v17651_v13  ;;  %v17727_v13 = vld [vmem:[#allocation4 + $0x18c] ss:$16 sps:$4 sm:$0xff]  }
 0x5d9   :  { %12363 = vmatprep.mubr.bf16.mxu1 %v16089_v23  ;;  %12210 = vmatprep.subr.bf16.mxu0 %v17658_v62  ;;  %v17722_v62 = vld [vmem:[#allocation4 + $0x180] ss:$16 sps:$4 sm:$0xff]   ;;  %v17725_v23 = vld [vmem:[#allocation4 + $0x188] ss:$16 sps:$4 sm:$0xff]  }
 0x5da   :  { %12333 = vmatprep.subr.bf16.mxu1 %v17661_v52  ;;  %v17730_v52 = vld [vmem:[#allocation4 + $0x1a4] ss:$16 sps:$4 sm:$0xff]  }
 0x5db   :  { %12211 = vmatpush1.bf16.msra.mxu0 %v17656_v1  ;;  %v17733_v1 = vld [vmem:[#allocation4 + $0x1ac] ss:$16 sps:$4 sm:$0xff]  }
 0x5dc   :  { %12334 = vmatpush1.bf16.msra.mxu1 %v17659_v50  ;;  %12212 = vmatprep.subr.bf16.mxu0 %v17664_v27  ;;  %v17728_v50 = vld [vmem:[#allocation4 + $0x1a0] ss:$16 sps:$4 sm:$0xff]   ;;  %v17731_v27 = vld [vmem:[#allocation4 + $0x1a8] ss:$16 sps:$4 sm:$0xff]  }
 0x5dd   :  { %12335 = vmatprep.subr.bf16.mxu1 %v17667_v10  ;;  %v17736_v10 = vld [vmem:[#allocation4 + $0x1c4] ss:$16 sps:$4 sm:$0xff]  }
 0x5df   :  { %12213 = vmatpush1.bf16.msra.mxu0 %v17662_v48  ;;  %v17739_v48 = vld [vmem:[#allocation4 + $0x1cc] ss:$16 sps:$4 sm:$0xff]  }
 0x5e0   :  { %12336 = vmatpush1.bf16.msra.mxu1 %v17665_v44  ;;  %12214 = vmatprep.subr.bf16.mxu0 %v17670_v34  ;;  %v17734_v44 = vld [vmem:[#allocation4 + $0x1c0] ss:$16 sps:$4 sm:$0xff]   ;;  %v17737_v34 = vld [vmem:[#allocation4 + $0x1c8] ss:$16 sps:$4 sm:$0xff]  }
 0x5e1   :  { %12337 = vmatprep.subr.bf16.mxu1 %v17673_v54  ;;  %v17742_v54 = vld [vmem:[#allocation4 + $0x1e4] ss:$16 sps:$4 sm:$0xff]  }
 0x5e3   :  { %12215 = vmatpush1.bf16.msra.mxu0 %v17668_v39  ;;  %v17745_v39 = vld [vmem:[#allocation4 + $0x1ec] ss:$16 sps:$4 sm:$0xff]  }
 0x5e4   :  { %12338 = vmatpush1.bf16.msra.mxu1 %v17671_v7  ;;  %12216 = vmatprep.subr.bf16.mxu0 %v17676_v14  ;;  %v17740_v7 = vld [vmem:[#allocation4 + $0x1e0] ss:$16 sps:$4 sm:$0xff]   ;;  %v17743_v14 = vld [vmem:[#allocation4 + $0x1e8] ss:$16 sps:$4 sm:$0xff]  }
 0x5e5   :  { %12339 = vmatprep.subr.bf16.mxu1 %v17679_v17  ;;  %v17748_v17 = vld [vmem:[#allocation4 + $0x204] ss:$16 sps:$4 sm:$0xff]  }
 0x5e7   :  { %12217 = vmatpush1.bf16.msra.mxu0 %v17674_v9  ;;  %v17751_v9 = vld [vmem:[#allocation4 + $0x20c] ss:$16 sps:$4 sm:$0xff]  }
 0x5e8   :  { %12340 = vmatpush1.bf16.msra.mxu1 %v17677_v30  ;;  %12218 = vmatprep.subr.bf16.mxu0 %v17682_v15  ;;  %v17746_v30 = vld [vmem:[#allocation4 + $0x200] ss:$16 sps:$4 sm:$0xff]   ;;  %v16088_v15 = vcombine.low %v21732_v22, %v21732_v22 }
 0x5e9   :  { %v9466_v3 = vpop.f32.mrb[60].mxu0  ;;  %12341 = vmatprep.subr.bf16.mxu1 %v17685_v18  ;;  %v17749_v18 = vld [vmem:[#allocation4 + $0x208] ss:$16 sps:$4 sm:$0xff]   ;;  %v17758_v22 = vld [vmem:[#allocation4 + $0x240] ss:$16 sps:$4 sm:$0xff]  }
 0x5ea   :  { %v9589_v46 = vpop.f32.mrb[60].mxu1  ;;  %v9468_v33 = vpop.f32.mrb[61].mxu0 }
 0x5eb   :  { %v9596_v59 = vmax.f32 %v9466_v3, %v9468_v33  ;;  %v9591_v53 = vpop.f32.mrb[61].mxu1  ;;  %v9470_v24 = vpop.f32.mrb[62].mxu0  ;;  %12219 = vmatpush1.bf16.msra.mxu0 %v17680_v26  ;;  %v17754_v26 = vld [vmem:[#allocation4 + $0x224] ss:$16 sps:$4 sm:$0xff]   ;;  %v17755_v3 = vld [vmem:[#allocation4 + $0x228] ss:$16 sps:$4 sm:$0xff]  }
 0x5ec   :  { %v9597_v35 = vmax.f32 %v9589_v46, %v9591_v53  ;;  %v9593_v6 = vpop.f32.mrb[62].mxu1  ;;  %12342 = vmatpush1.bf16.msra.mxu1 %v17683_v8  ;;  %v9471_v20 = vpop.f32.mrb[63].mxu0  ;;  %12220 = vmatprep.subr.bf16.mxu0 %v17688_v37  ;;  %v17757_v8 = vld [vmem:[#allocation4 + $0x22c] ss:$16 sps:$4 sm:$0xff]   ;;  %v17752_v37 = vld [vmem:[#allocation4 + $0x220] ss:$16 sps:$4 sm:$0xff]  }
 0x5ed   :  { %v9594_v11 = vpop.f32.mrb[63].mxu1  ;;  %12343 = vmatprep.subr.bf16.mxu1 %v17691_v42  ;;  %v17760_v42 = vld [vmem:[#allocation4 + $0x244] ss:$16 sps:$4 sm:$0xff]   ;;  %v17763_v46 = vld [vmem:[#allocation4 + $0x24c] ss:$16 sps:$4 sm:$0xff]  }
 0x5ee   :  { %v9598_v36 = vmax.f32 %v9596_v59, %v9597_v35  ;;  %v17761_v33 = vld [vmem:[#allocation4 + $0x248] ss:$16 sps:$4 sm:$0xff]   ;;  %v17766_v59 = vld [vmem:[#allocation4 + $0x264] ss:$16 sps:$4 sm:$0xff]   ;;  %v17769_v53 = vld [vmem:[#allocation4 + $0x26c] ss:$16 sps:$4 sm:$0xff]  }
 0x5ef   :  { %12221 = vmatpush1.bf16.msra.mxu0 %v17686_v16  ;;  %v17764_v24 = vld [vmem:[#allocation4 + $0x260] ss:$16 sps:$4 sm:$0xff]   ;;  %v17767_v16 = vld [vmem:[#allocation4 + $0x268] ss:$16 sps:$4 sm:$0xff]   ;;  %v17772_v35 = vld [vmem:[#allocation4 + $0x284] ss:$16 sps:$4 sm:$0xff]  }
 0x5f0   :  { %v9599_v31 = vadd.f32 %v21715_v43, %v9598_v36  ;;  %12344 = vmatpush1.bf16.msra.mxu1 %v17689_v61  ;;  %12222 = vmatprep.subr.bf16.mxu0 %v17694_v55  ;;  %v17707_v43 = vld [vmem:[#allocation4 + $0x128] ss:$16 sps:$4 sm:$0xff]   ;;  %v17775_v6 = vld [vmem:[#allocation4 + $0x28c] ss:$16 sps:$4 sm:$0xff]   ;;  %v17778_v61 = vld [vmem:[#allocation4 + $0x2a4] ss:$16 sps:$4 sm:$0xff]  }
 0x5f1   :  { %12345 = vmatprep.subr.bf16.mxu1 %v17697_v25  ;;  %v17773_v20 = vld [vmem:[#allocation4 + $0x288] ss:$16 sps:$4 sm:$0xff]   ;;  %v17781_v55 = vld [vmem:[#allocation4 + $0x2ac] ss:$16 sps:$4 sm:$0xff]   ;;  %v17776_v11 = vld [vmem:[#allocation4 + $0x2a0] ss:$16 sps:$4 sm:$0xff]  }
 0x5f2   :  { %v9600_v29 = vmax.f32 %v9599_v31, 0.0  ;;  %v17779_v25 = vld [vmem:[#allocation4 + $0x2a8] ss:$16 sps:$4 sm:$0xff]   ;;  %v17784_v36 = vld [vmem:[#allocation4 + $0x2c4] ss:$16 sps:$4 sm:$0xff]  }
 0x5f3   :  { %12223 = vmatpush1.bf16.msra.mxu0 %v17692_v41  ;;  %v17787_v41 = vld [vmem:[#allocation4 + $0x2cc] ss:$16 sps:$4 sm:$0xff]   ;;  %v17782_v31 = vld [vmem:[#allocation4 + $0x2c0] ss:$16 sps:$4 sm:$0xff]  }
 0x5f4   :  { %v9601_v60 = vpack.c.bf16 %v9600_v29, %v9600_v29  ;;  %12346 = vmatpush1.bf16.msra.mxu1 %v17695_v28  ;;  %12224 = vmatprep.subr.bf16.mxu0 %v17700_v51  ;;  %v17785_v28 = vld [vmem:[#allocation4 + $0x2c8] ss:$16 sps:$4 sm:$0xff]   ;;  %v17790_v51 = vld [vmem:[#allocation4 + $0x2e4] ss:$16 sps:$4 sm:$0xff]   ;;  %v17788_v29 = vld [vmem:[#allocation4 + $0x2e0] ss:$16 sps:$4 sm:$0xff]  }
 0x5f5   :  { %12347 = vmatprep.subr.bf16.mxu1 %v17703_v32  ;;  %v17793_v32 = vld [vmem:[#allocation4 + $0x2ec] ss:$16 sps:$4 sm:$0xff]  }
 0x5f6   :  { %9602 = vst [vmem:[#allocation3 + $0x4] sm:$0xf] %v9601_v60  ;;  %v17796_v60 = vld [vmem:[#allocation4 + $0x304] ss:$16 sps:$4 sm:$0xff]  }
 0x5f7   :  { %12225 = vmatpush1.bf16.msra.mxu0 %v17698_v40  ;;  %v17791_v40 = vld [vmem:[#allocation4 + $0x2e8] ss:$16 sps:$4 sm:$0xff]  }
 0x5f8   :  { %12348 = vmatpush1.bf16.msra.mxu1 %v17701_v58  ;;  %12226 = vmatprep.subr.bf16.mxu0 %v17706_v2  ;;  %v17799_v58 = vld [vmem:[#allocation4 + $0x30c] ss:$16 sps:$4 sm:$0xff]   ;;  %v17794_v2 = vld [vmem:[#allocation4 + $0x300] ss:$16 sps:$4 sm:$0xff]  }
 0x5f9   :  { %12349 = vmatprep.subr.bf16.mxu1 %v17709_v12  ;;  %v17797_v12 = vld [vmem:[#allocation4 + $0x308] ss:$16 sps:$4 sm:$0xff]  }
 0x5fb   :  { %12227 = vmatpush1.bf16.msra.mxu0 %v17704_v0  ;;  %v17802_v0 = vld [vmem:[#allocation4 + $0x324] ss:$16 sps:$4 sm:$0xff]  }
 0x5fc   :  { %12350 = vmatpush1.bf16.msra.mxu1 %v17707_v43  ;;  %12228 = vmatprep.subr.bf16.mxu0 %v17712_v4  ;;  %v17805_v43 = vld [vmem:[#allocation4 + $0x32c] ss:$16 sps:$4 sm:$0xff]   ;;  %v17800_v4 = vld [vmem:[#allocation4 + $0x320] ss:$16 sps:$4 sm:$0xff]  }
 0x5fd   :  { %12351 = vmatprep.subr.bf16.mxu1 %v17715_v56  ;;  %v17803_v56 = vld [vmem:[#allocation4 + $0x328] ss:$16 sps:$4 sm:$0xff]  }
 0x5ff   :  { %12229 = vmatpush1.bf16.msra.mxu0 %v17710_v63  ;;  %v17808_v63 = vld [vmem:[#allocation4 + $0x344] ss:$16 sps:$4 sm:$0xff]  }
 0x600   :  { %12352 = vmatpush1.bf16.msra.mxu1 %v17713_v21  ;;  %12230 = vmatprep.subr.bf16.mxu0 %v17718_v57  ;;  %v17811_v21 = vld [vmem:[#allocation4 + $0x34c] ss:$16 sps:$4 sm:$0xff]   ;;  %v17806_v57 = vld [vmem:[#allocation4 + $0x340] ss:$16 sps:$4 sm:$0xff]  }
 0x601   :  { %12353 = vmatprep.subr.bf16.mxu1 %v17721_v19  ;;  %v17809_v19 = vld [vmem:[#allocation4 + $0x348] ss:$16 sps:$4 sm:$0xff]  }
 0x603   :  { %12231 = vmatpush1.bf16.msra.mxu0 %v17716_v5  ;;  %v17814_v5 = vld [vmem:[#allocation4 + $0x364] ss:$16 sps:$4 sm:$0xff]  }
 0x604   :  { %12354 = vmatpush1.bf16.msra.mxu1 %v17719_v38  ;;  %12232 = vmatprep.subr.bf16.mxu0 %v17724_v49  ;;  %v17817_v38 = vld [vmem:[#allocation4 + $0x36c] ss:$16 sps:$4 sm:$0xff]   ;;  %v17812_v49 = vld [vmem:[#allocation4 + $0x360] ss:$16 sps:$4 sm:$0xff]  }
 0x605   :  { %12355 = vmatprep.subr.bf16.mxu1 %v17727_v13  ;;  %v17815_v13 = vld [vmem:[#allocation4 + $0x368] ss:$16 sps:$4 sm:$0xff]  }
 0x607   :  { %12233 = vmatpush1.bf16.msra.mxu0 %v17722_v62  ;;  %v17820_v62 = vld [vmem:[#allocation4 + $0x384] ss:$16 sps:$4 sm:$0xff]  }
 0x608   :  { %12356 = vmatpush1.bf16.msra.mxu1 %v17725_v23  ;;  %12234 = vmatprep.subr.bf16.mxu0 %v17730_v52  ;;  %v17823_v23 = vld [vmem:[#allocation4 + $0x38c] ss:$16 sps:$4 sm:$0xff]   ;;  %v17818_v52 = vld [vmem:[#allocation4 + $0x380] ss:$16 sps:$4 sm:$0xff]  }
 0x609   :  { %12357 = vmatprep.subr.bf16.mxu1 %v17733_v1  ;;  %v17821_v1 = vld [vmem:[#allocation4 + $0x388] ss:$16 sps:$4 sm:$0xff]  }
 0x60b   :  { %12235 = vmatpush1.bf16.msra.mxu0 %v17728_v50  ;;  %v17826_v50 = vld [vmem:[#allocation4 + $0x3a4] ss:$16 sps:$4 sm:$0xff]  }
 0x60c   :  { %12358 = vmatpush1.bf16.msra.mxu1 %v17731_v27  ;;  %12236 = vmatprep.subr.bf16.mxu0 %v17736_v10  ;;  %v17829_v27 = vld [vmem:[#allocation4 + $0x3ac] ss:$16 sps:$4 sm:$0xff]   ;;  %v17824_v10 = vld [vmem:[#allocation4 + $0x3a0] ss:$16 sps:$4 sm:$0xff]  }
 0x60d   :  { %12359 = vmatprep.subr.bf16.mxu1 %v17739_v48  ;;  %v17827_v48 = vld [vmem:[#allocation4 + $0x3a8] ss:$16 sps:$4 sm:$0xff]  }
 0x60f   :  { %12237 = vmatpush1.bf16.msra.mxu0 %v17734_v44  ;;  %v17832_v44 = vld [vmem:[#allocation4 + $0x3c4] ss:$16 sps:$4 sm:$0xff]  }
 0x610   :  { %12360 = vmatpush1.bf16.msra.mxu1 %v17737_v34  ;;  %12238 = vmatprep.subr.bf16.mxu0 %v17742_v54  ;;  %v17835_v34 = vld [vmem:[#allocation4 + $0x3cc] ss:$16 sps:$4 sm:$0xff]   ;;  %v17830_v54 = vld [vmem:[#allocation4 + $0x3c0] ss:$16 sps:$4 sm:$0xff]  }
 0x611   :  { %12361 = vmatprep.subr.bf16.mxu1 %v17745_v39  ;;  %v17833_v39 = vld [vmem:[#allocation4 + $0x3c8] ss:$16 sps:$4 sm:$0xff]  }
 0x613   :  { %12239 = vmatpush1.bf16.msra.mxu0 %v17740_v7  ;;  %v17838_v7 = vld [vmem:[#allocation4 + $0x3e4] ss:$16 sps:$4 sm:$0xff]  }
 0x614   :  { %12362 = vmatpush1.bf16.msra.mxu1 %v17743_v14  ;;  %12249 = vmatprep.subr.bf16.mxu0 %v17748_v17  ;;  %v17841_v14 = vld [vmem:[#allocation4 + $0x3ec] ss:$16 sps:$4 sm:$0xff]   ;;  %v17836_v17 = vld [vmem:[#allocation4 + $0x3e0] ss:$16 sps:$4 sm:$0xff]  }
 0x615   :  { %12372 = vmatprep.subr.bf16.mxu1 %v17751_v9  ;;  %v17839_v9 = vld [vmem:[#allocation4 + $0x3e8] ss:$16 sps:$4 sm:$0xff]  }
 0x616   :  { %12241 = vmatmul.mubr.bf16.vlgmr.msra.gmra.mrb[68].mxu0 %v16088_v15 }
 0x617   :  { %12364 = vmatmul.mubr.bf16.vlgmr.msra.gmra.mrb[68].mxu1 %v16088_v15  ;;  %12250 = vmatpush1.bf16.msra.mxu0 %v17746_v30  ;;  %v17844_v30 = vld [vmem:[#allocation4 + $0x404] ss:$16 sps:$4 sm:$0xff]   ;;  %v17847_v15 = vld [vmem:[#allocation4 + $0x40c] ss:$16 sps:$4 sm:$0xff]  }
 0x618   :  { %12281 = vmatprep.mubr.bf16.mxu0 %v21727_v47  ;;  %12373 = vmatpush1.bf16.msra.mxu1 %v17749_v18  ;;  %v17842_v18 = vld [vmem:[#allocation4 + $0x400] ss:$16 sps:$4 sm:$0xff]  }
 0x619   :  { %12404 = vmatprep.mubr.bf16.mxu1 %v21727_v47  ;;  %12251 = vmatprep.subr.bf16.mxu0 %v17754_v26  ;;  %v17770_v47 = vld [vmem:[#allocation4 + $0x280] ss:$16 sps:$4 sm:$0xff]  }
 0x61a   :  { %12374 = vmatprep.subr.bf16.mxu1 %v17757_v8  ;;  %v21747_v26 = vld [vmem:[#allocation2 + $0x28] sm:$0xff]  ;;  %v17845_v8 = vld [vmem:[#allocation4 + $0x408] ss:$16 sps:$4 sm:$0xff]  }
 0x61b   :  { %12252 = vmatpush1.bf16.msra.mxu0 %v17752_v37  ;;  %v17852_v37 = vld [vmem:[#allocation4 + $0x424] ss:$16 sps:$4 sm:$0xff]  }
 0x61c   :  { %12375 = vmatpush1.bf16.msra.mxu1 %v17755_v3  ;;  %12253 = vmatprep.subr.bf16.mxu0 %v17760_v42  ;;  %v21752_v3 = vcombine.high %v21747_v26, %v21747_v26  ;;  %v17855_v42 = vld [vmem:[#allocation4 + $0x42c] ss:$16 sps:$4 sm:$0xff]  }
 0x61d   :  { %12376 = vmatprep.subr.bf16.mxu1 %v17763_v46  ;;  %v17850_v46 = vld [vmem:[#allocation4 + $0x420] ss:$16 sps:$4 sm:$0xff]  }
 0x61f   :  { %12254 = vmatpush1.bf16.msra.mxu0 %v17758_v22  ;;  %v17853_v22 = vld [vmem:[#allocation4 + $0x428] ss:$16 sps:$4 sm:$0xff]  }
 0x620   :  { %12377 = vmatpush1.bf16.msra.mxu1 %v17761_v33  ;;  %12255 = vmatprep.subr.bf16.mxu0 %v17766_v59  ;;  %v17858_v33 = vld [vmem:[#allocation4 + $0x444] ss:$16 sps:$4 sm:$0xff]   ;;  %v17861_v59 = vld [vmem:[#allocation4 + $0x44c] ss:$16 sps:$4 sm:$0xff]  }
 0x621   :  { %12378 = vmatprep.subr.bf16.mxu1 %v17769_v53  ;;  %v17856_v53 = vld [vmem:[#allocation4 + $0x440] ss:$16 sps:$4 sm:$0xff]  }
 0x623   :  { %12256 = vmatpush1.bf16.msra.mxu0 %v17764_v24  ;;  %v17859_v24 = vld [vmem:[#allocation4 + $0x448] ss:$16 sps:$4 sm:$0xff]  }
 0x624   :  { %12379 = vmatpush1.bf16.msra.mxu1 %v17767_v16  ;;  %12257 = vmatprep.subr.bf16.mxu0 %v17772_v35  ;;  %v17864_v16 = vld [vmem:[#allocation4 + $0x464] ss:$16 sps:$4 sm:$0xff]   ;;  %v17862_v35 = vld [vmem:[#allocation4 + $0x460] ss:$16 sps:$4 sm:$0xff]  }
 0x625   :  { %12380 = vmatprep.subr.bf16.mxu1 %v17775_v6  ;;  %v17865_v6 = vld [vmem:[#allocation4 + $0x468] ss:$16 sps:$4 sm:$0xff]  }
 0x627   :  { %12258 = vmatpush1.bf16.msra.mxu0 %v17770_v47  ;;  %v17870_v47 = vld [vmem:[#allocation4 + $0x484] ss:$16 sps:$4 sm:$0xff]  }
 0x628   :  { %12381 = vmatpush1.bf16.msra.mxu1 %v17773_v20  ;;  %12259 = vmatprep.subr.bf16.mxu0 %v17778_v61  ;;  %v17873_v20 = vld [vmem:[#allocation4 + $0x48c] ss:$16 sps:$4 sm:$0xff]   ;;  %v17868_v61 = vld [vmem:[#allocation4 + $0x480] ss:$16 sps:$4 sm:$0xff]  }
 0x629   :  { %12382 = vmatprep.subr.bf16.mxu1 %v17781_v55  ;;  %v17871_v55 = vld [vmem:[#allocation4 + $0x488] ss:$16 sps:$4 sm:$0xff]  }
 0x62b   :  { %12260 = vmatpush1.bf16.msra.mxu0 %v17776_v11  ;;  %v17876_v11 = vld [vmem:[#allocation4 + $0x4a4] ss:$16 sps:$4 sm:$0xff]  }
 0x62c   :  { %12383 = vmatpush1.bf16.msra.mxu1 %v17779_v25  ;;  %12261 = vmatprep.subr.bf16.mxu0 %v17784_v36  ;;  %v17879_v25 = vld [vmem:[#allocation4 + $0x4ac] ss:$16 sps:$4 sm:$0xff]   ;;  %v17874_v36 = vld [vmem:[#allocation4 + $0x4a0] ss:$16 sps:$4 sm:$0xff]  }
 0x62d   :  { %12384 = vmatprep.subr.bf16.mxu1 %v17787_v41  ;;  %v17877_v41 = vld [vmem:[#allocation4 + $0x4a8] ss:$16 sps:$4 sm:$0xff]  }
 0x62f   :  { %12262 = vmatpush1.bf16.msra.mxu0 %v17782_v31  ;;  %v17882_v31 = vld [vmem:[#allocation4 + $0x4c4] ss:$16 sps:$4 sm:$0xff]  }
 0x630   :  { %12385 = vmatpush1.bf16.msra.mxu1 %v17785_v28  ;;  %12263 = vmatprep.subr.bf16.mxu0 %v17790_v51  ;;  %v17885_v28 = vld [vmem:[#allocation4 + $0x4cc] ss:$16 sps:$4 sm:$0xff]   ;;  %v17880_v51 = vld [vmem:[#allocation4 + $0x4c0] ss:$16 sps:$4 sm:$0xff]  }
 0x631   :  { %12386 = vmatprep.subr.bf16.mxu1 %v17793_v32  ;;  %v17883_v32 = vld [vmem:[#allocation4 + $0x4c8] ss:$16 sps:$4 sm:$0xff]  }
 0x633   :  { %12264 = vmatpush1.bf16.msra.mxu0 %v17788_v29  ;;  %v17888_v29 = vld [vmem:[#allocation4 + $0x4e4] ss:$16 sps:$4 sm:$0xff]  }
 0x634   :  { %12387 = vmatpush1.bf16.msra.mxu1 %v17791_v40  ;;  %12265 = vmatprep.subr.bf16.mxu0 %v17796_v60  ;;  %v17891_v40 = vld [vmem:[#allocation4 + $0x4ec] ss:$16 sps:$4 sm:$0xff]   ;;  %v17886_v60 = vld [vmem:[#allocation4 + $0x4e0] ss:$16 sps:$4 sm:$0xff]  }
 0x635   :  { %12388 = vmatprep.subr.bf16.mxu1 %v17799_v58  ;;  %v17889_v58 = vld [vmem:[#allocation4 + $0x4e8] ss:$16 sps:$4 sm:$0xff]  }
 0x637   :  { %12266 = vmatpush1.bf16.msra.mxu0 %v17794_v2  ;;  %v17894_v2 = vld [vmem:[#allocation4 + $0x504] ss:$16 sps:$4 sm:$0xff]  }
 0x638   :  { %12389 = vmatpush1.bf16.msra.mxu1 %v17797_v12  ;;  %12267 = vmatprep.subr.bf16.mxu0 %v17802_v0  ;;  %v17897_v12 = vld [vmem:[#allocation4 + $0x50c] ss:$16 sps:$4 sm:$0xff]   ;;  %v17892_v0 = vld [vmem:[#allocation4 + $0x500] ss:$16 sps:$4 sm:$0xff]  }
 0x639   :  { %12390 = vmatprep.subr.bf16.mxu1 %v17805_v43  ;;  %v17895_v43 = vld [vmem:[#allocation4 + $0x508] ss:$16 sps:$4 sm:$0xff]  }
 0x63b   :  { %12268 = vmatpush1.bf16.msra.mxu0 %v17800_v4  ;;  %v17900_v4 = vld [vmem:[#allocation4 + $0x524] ss:$16 sps:$4 sm:$0xff]  }
 0x63c   :  { %12391 = vmatpush1.bf16.msra.mxu1 %v17803_v56  ;;  %12269 = vmatprep.subr.bf16.mxu0 %v17808_v63  ;;  %v17903_v56 = vld [vmem:[#allocation4 + $0x52c] ss:$16 sps:$4 sm:$0xff]   ;;  %v17898_v63 = vld [vmem:[#allocation4 + $0x520] ss:$16 sps:$4 sm:$0xff]  }
 0x63d   :  { %12392 = vmatprep.subr.bf16.mxu1 %v17811_v21  ;;  %v17901_v21 = vld [vmem:[#allocation4 + $0x528] ss:$16 sps:$4 sm:$0xff]  }
 0x63f   :  { %12270 = vmatpush1.bf16.msra.mxu0 %v17806_v57  ;;  %v17906_v57 = vld [vmem:[#allocation4 + $0x544] ss:$16 sps:$4 sm:$0xff]  }
 0x640   :  { %12393 = vmatpush1.bf16.msra.mxu1 %v17809_v19  ;;  %12271 = vmatprep.subr.bf16.mxu0 %v17814_v5  ;;  %v17909_v19 = vld [vmem:[#allocation4 + $0x54c] ss:$16 sps:$4 sm:$0xff]   ;;  %v17904_v5 = vld [vmem:[#allocation4 + $0x540] ss:$16 sps:$4 sm:$0xff]  }
 0x641   :  { %12394 = vmatprep.subr.bf16.mxu1 %v17817_v38  ;;  %v17907_v38 = vld [vmem:[#allocation4 + $0x548] ss:$16 sps:$4 sm:$0xff]  }
 0x643   :  { %12272 = vmatpush1.bf16.msra.mxu0 %v17812_v49  ;;  %v17912_v49 = vld [vmem:[#allocation4 + $0x564] ss:$16 sps:$4 sm:$0xff]  }
 0x644   :  { %12395 = vmatpush1.bf16.msra.mxu1 %v17815_v13  ;;  %12273 = vmatprep.subr.bf16.mxu0 %v17820_v62  ;;  %v17915_v13 = vld [vmem:[#allocation4 + $0x56c] ss:$16 sps:$4 sm:$0xff]   ;;  %v17910_v62 = vld [vmem:[#allocation4 + $0x560] ss:$16 sps:$4 sm:$0xff]  }
 0x645   :  { %12396 = vmatprep.subr.bf16.mxu1 %v17823_v23  ;;  %v17913_v23 = vld [vmem:[#allocation4 + $0x568] ss:$16 sps:$4 sm:$0xff]  }
 0x647   :  { %12274 = vmatpush1.bf16.msra.mxu0 %v17818_v52  ;;  %v17918_v52 = vld [vmem:[#allocation4 + $0x584] ss:$16 sps:$4 sm:$0xff]  }
 0x648   :  { %12397 = vmatpush1.bf16.msra.mxu1 %v17821_v1  ;;  %12275 = vmatprep.subr.bf16.mxu0 %v17826_v50  ;;  %v17921_v1 = vld [vmem:[#allocation4 + $0x58c] ss:$16 sps:$4 sm:$0xff]   ;;  %v17916_v50 = vld [vmem:[#allocation4 + $0x580] ss:$16 sps:$4 sm:$0xff]  }
 0x649   :  { %12398 = vmatprep.subr.bf16.mxu1 %v17829_v27  ;;  %v17919_v27 = vld [vmem:[#allocation4 + $0x588] ss:$16 sps:$4 sm:$0xff]  }
 0x64b   :  { %12276 = vmatpush1.bf16.msra.mxu0 %v17824_v10  ;;  %v17924_v10 = vld [vmem:[#allocation4 + $0x5a4] ss:$16 sps:$4 sm:$0xff]  }
 0x64c   :  { %12399 = vmatpush1.bf16.msra.mxu1 %v17827_v48  ;;  %12277 = vmatprep.subr.bf16.mxu0 %v17832_v44  ;;  %v17927_v48 = vld [vmem:[#allocation4 + $0x5ac] ss:$16 sps:$4 sm:$0xff]   ;;  %v17922_v44 = vld [vmem:[#allocation4 + $0x5a0] ss:$16 sps:$4 sm:$0xff]  }
 0x64d   :  { %12400 = vmatprep.subr.bf16.mxu1 %v17835_v34  ;;  %v17925_v34 = vld [vmem:[#allocation4 + $0x5a8] ss:$16 sps:$4 sm:$0xff]  }
 0x64f   :  { %12278 = vmatpush1.bf16.msra.mxu0 %v17830_v54  ;;  %v17930_v54 = vld [vmem:[#allocation4 + $0x5c4] ss:$16 sps:$4 sm:$0xff]  }
 0x650   :  { %12401 = vmatpush1.bf16.msra.mxu1 %v17833_v39  ;;  %12279 = vmatprep.subr.bf16.mxu0 %v17838_v7  ;;  %v17933_v39 = vld [vmem:[#allocation4 + $0x5cc] ss:$16 sps:$4 sm:$0xff]   ;;  %v17928_v7 = vld [vmem:[#allocation4 + $0x5c0] ss:$16 sps:$4 sm:$0xff]  }
 0x651   :  { %12402 = vmatprep.subr.bf16.mxu1 %v17841_v14  ;;  %v17931_v14 = vld [vmem:[#allocation4 + $0x5c8] ss:$16 sps:$4 sm:$0xff]  }
 0x653   :  { %12280 = vmatpush1.bf16.msra.mxu0 %v17836_v17  ;;  %v17936_v17 = vld [vmem:[#allocation4 + $0x5e4] ss:$16 sps:$4 sm:$0xff]  }
 0x654   :  { %12403 = vmatpush1.bf16.msra.mxu1 %v17839_v9  ;;  %12290 = vmatprep.subr.bf16.mxu0 %v17844_v30  ;;  %v17939_v9 = vld [vmem:[#allocation4 + $0x5ec] ss:$16 sps:$4 sm:$0xff]   ;;  %v17934_v30 = vld [vmem:[#allocation4 + $0x5e0] ss:$16 sps:$4 sm:$0xff]  }
 0x655   :  { %12413 = vmatprep.subr.bf16.mxu1 %v17847_v15  ;;  %v17937_v15 = vld [vmem:[#allocation4 + $0x5e8] ss:$16 sps:$4 sm:$0xff]  }
 0x656   :  { %12282 = vmatmul.mubr.bf16.vlgmr.msra.gmra.mrb[68].mxu0 %v21736_v45 }
 0x657   :  { %12405 = vmatmul.mubr.bf16.vlgmr.msra.gmra.mrb[68].mxu1 %v21736_v45  ;;  %12291 = vmatpush1.bf16.msra.mxu0 %v17842_v18  ;;  %v17867_v45 = vld [vmem:[#allocation4 + $0x46c] ss:$16 sps:$4 sm:$0xff]   ;;  %v17942_v18 = vld [vmem:[#allocation4 + $0x4] ss:$16 sps:$4 sm:$0xff]  }
 0x658   :  { %12322 = vmatprep.mubr.bf16.mxu0 %v21752_v3  ;;  %12414 = vmatpush1.bf16.msra.mxu1 %v17845_v8  ;;  %v17945_v8 = vld [vmem:[#allocation4 + $0xc] ss:$16 sps:$4 sm:$0xff]  }
 0x659   :  { %12445 = vmatprep.mubr.bf16.mxu1 %v21752_v3  ;;  %12292 = vmatprep.subr.bf16.mxu0 %v17852_v37  ;;  %v17940_v37 = vld [vmem:[#allocation4] ss:$16 sps:$4 sm:$0xff]  }
 0x65a   :  { %12415 = vmatprep.subr.bf16.mxu1 %v17855_v42  ;;  %v21757_v42 = vld [vmem:[#allocation2 + $0x20] sm:$0xff] }
 0x65b   :  { %12293 = vmatpush1.bf16.msra.mxu0 %v17850_v46  ;;  %v21761_v46 = vcombine.low %v21747_v26, %v21747_v26  ;;  %v17956_v26 = vld [vmem:[#allocation4 + $0x44] ss:$16 sps:$4 sm:$0xff]  }
 0x65c   :  { %12416 = vmatpush1.bf16.msra.mxu1 %v17853_v22  ;;  %12294 = vmatprep.subr.bf16.mxu0 %v17858_v33  ;;  %v17943_v22 = vld [vmem:[#allocation4 + $0x8] ss:$16 sps:$4 sm:$0xff]   ;;  %v17950_v33 = vld [vmem:[#allocation4 + $0x24] ss:$16 sps:$4 sm:$0xff]  }
 0x65d   :  { %12417 = vmatprep.subr.bf16.mxu1 %v17861_v59  ;;  %v16287_v59 = vcombine.high %v21757_v42, %v21757_v42 }
 0x65f   :  { %12295 = vmatpush1.bf16.msra.mxu0 %v17856_v53  ;;  %v17953_v53 = vld [vmem:[#allocation4 + $0x2c] ss:$16 sps:$4 sm:$0xff]  }
 0x660   :  { %12418 = vmatpush1.bf16.msra.mxu1 %v17859_v24  ;;  %12296 = vmatprep.subr.bf16.mxu0 %v17864_v16  ;;  %v17948_v24 = vld [vmem:[#allocation4 + $0x20] ss:$16 sps:$4 sm:$0xff]   ;;  %v17951_v16 = vld [vmem:[#allocation4 + $0x28] ss:$16 sps:$4 sm:$0xff]  }
 0x661   :  { %12419 = vmatprep.subr.bf16.mxu1 %v17867_v45  ;;  %v17959_v45 = vld [vmem:[#allocation4 + $0x4c] ss:$16 sps:$4 sm:$0xff]  }
 0x663   :  { %12297 = vmatpush1.bf16.msra.mxu0 %v17862_v35  ;;  %v17954_v35 = vld [vmem:[#allocation4 + $0x40] ss:$16 sps:$4 sm:$0xff]  }
 0x664   :  { %12420 = vmatpush1.bf16.msra.mxu1 %v17865_v6  ;;  %12298 = vmatprep.subr.bf16.mxu0 %v17870_v47  ;;  %v17957_v6 = vld [vmem:[#allocation4 + $0x48] ss:$16 sps:$4 sm:$0xff]   ;;  %v17962_v47 = vld [vmem:[#allocation4 + $0x64] ss:$16 sps:$4 sm:$0xff]  }
 0x665   :  { %12421 = vmatprep.subr.bf16.mxu1 %v17873_v20  ;;  %v17965_v20 = vld [vmem:[#allocation4 + $0x6c] ss:$16 sps:$4 sm:$0xff]  }
 0x667   :  { %12299 = vmatpush1.bf16.msra.mxu0 %v17868_v61  ;;  %v17960_v61 = vld [vmem:[#allocation4 + $0x60] ss:$16 sps:$4 sm:$0xff]  }
 0x668   :  { %12422 = vmatpush1.bf16.msra.mxu1 %v17871_v55  ;;  %12300 = vmatprep.subr.bf16.mxu0 %v17876_v11  ;;  %v17963_v55 = vld [vmem:[#allocation4 + $0x68] ss:$16 sps:$4 sm:$0xff]   ;;  %v17968_v11 = vld [vmem:[#allocation4 + $0x84] ss:$16 sps:$4 sm:$0xff]  }
 0x669   :  { %12423 = vmatprep.subr.bf16.mxu1 %v17879_v25  ;;  %v17971_v25 = vld [vmem:[#allocation4 + $0x8c] ss:$16 sps:$4 sm:$0xff]  }
 0x66b   :  { %12301 = vmatpush1.bf16.msra.mxu0 %v17874_v36  ;;  %v17966_v36 = vld [vmem:[#allocation4 + $0x80] ss:$16 sps:$4 sm:$0xff]  }
 0x66c   :  { %12424 = vmatpush1.bf16.msra.mxu1 %v17877_v41  ;;  %12302 = vmatprep.subr.bf16.mxu0 %v17882_v31  ;;  %v17969_v41 = vld [vmem:[#allocation4 + $0x88] ss:$16 sps:$4 sm:$0xff]   ;;  %v17974_v31 = vld [vmem:[#allocation4 + $0xa4] ss:$16 sps:$4 sm:$0xff]  }
 0x66d   :  { %12425 = vmatprep.subr.bf16.mxu1 %v17885_v28  ;;  %v17977_v28 = vld [vmem:[#allocation4 + $0xac] ss:$16 sps:$4 sm:$0xff]  }
 0x66f   :  { %12303 = vmatpush1.bf16.msra.mxu0 %v17880_v51  ;;  %v17972_v51 = vld [vmem:[#allocation4 + $0xa0] ss:$16 sps:$4 sm:$0xff]  }
 0x670   :  { %12426 = vmatpush1.bf16.msra.mxu1 %v17883_v32  ;;  %12304 = vmatprep.subr.bf16.mxu0 %v17888_v29  ;;  %v17975_v32 = vld [vmem:[#allocation4 + $0xa8] ss:$16 sps:$4 sm:$0xff]   ;;  %v17980_v29 = vld [vmem:[#allocation4 + $0xc4] ss:$16 sps:$4 sm:$0xff]  }
 0x671   :  { %12427 = vmatprep.subr.bf16.mxu1 %v17891_v40 }
 0x673   :  { %12305 = vmatpush1.bf16.msra.mxu0 %v17886_v60  ;;  %v17983_v60 = vld [vmem:[#allocation4 + $0xcc] ss:$16 sps:$4 sm:$0xff]  }
 0x674   :  { %12428 = vmatpush1.bf16.msra.mxu1 %v17889_v58  ;;  %12306 = vmatprep.subr.bf16.mxu0 %v17894_v2 }
 0x675   :  { %12429 = vmatprep.subr.bf16.mxu1 %v17897_v12 }
 0x677   :  { %12307 = vmatpush1.bf16.msra.mxu0 %v17892_v0 }
 0x678   :  { %12430 = vmatpush1.bf16.msra.mxu1 %v17895_v43  ;;  %12308 = vmatprep.subr.bf16.mxu0 %v17900_v4  ;;  %v17978_v4 = vld [vmem:[#allocation4 + $0xc0] ss:$16 sps:$4 sm:$0xff]  }
 0x679   :  { %12431 = vmatprep.subr.bf16.mxu1 %v17903_v56 }
 0x67b   :  { %12309 = vmatpush1.bf16.msra.mxu0 %v17898_v63 }
 0x67c   :  { %12432 = vmatpush1.bf16.msra.mxu1 %v17901_v21  ;;  %12310 = vmatprep.subr.bf16.mxu0 %v17906_v57  ;;  %v17981_v57 = vld [vmem:[#allocation4 + $0xc8] ss:$16 sps:$4 sm:$0xff]  }
 0x67d   :  { %12433 = vmatprep.subr.bf16.mxu1 %v17909_v19  ;;  %v17986_v19 = vld [vmem:[#allocation4 + $0xe4] ss:$16 sps:$4 sm:$0xff]  }
 0x67f   :  { %12311 = vmatpush1.bf16.msra.mxu0 %v17904_v5 }
 0x680   :  { %12434 = vmatpush1.bf16.msra.mxu1 %v17907_v38  ;;  %12312 = vmatprep.subr.bf16.mxu0 %v17912_v49  ;;  %v17989_v38 = vld [vmem:[#allocation4 + $0xec] ss:$16 sps:$4 sm:$0xff]  }
 0x681   :  { %12435 = vmatprep.subr.bf16.mxu1 %v17915_v13  ;;  %v17984_v13 = vld [vmem:[#allocation4 + $0xe0] ss:$16 sps:$4 sm:$0xff]  }
 0x683   :  { %12313 = vmatpush1.bf16.msra.mxu0 %v17910_v62  ;;  %v21770_v62 = vld [vmem:[%s21999_s4] ss:$0 sm:$0xff] }
 0x684   :  { %12436 = vmatpush1.bf16.msra.mxu1 %v17913_v23  ;;  %12314 = vmatprep.subr.bf16.mxu0 %v17918_v52  ;;  %v17987_v52 = vld [vmem:[#allocation4 + $0xe8] ss:$16 sps:$4 sm:$0xff]  }
 0x685   :  { %12437 = vmatprep.subr.bf16.mxu1 %v17921_v1  ;;  %v17992_v1 = vld [vmem:[#allocation4 + $0x104] ss:$16 sps:$4 sm:$0xff]  }
 0x687   :  { %12315 = vmatpush1.bf16.msra.mxu0 %v17916_v50  ;;  %v17995_v50 = vld [vmem:[#allocation4 + $0x10c] ss:$16 sps:$4 sm:$0xff]  }
 0x688   :  { %12438 = vmatpush1.bf16.msra.mxu1 %v17919_v27  ;;  %12316 = vmatprep.subr.bf16.mxu0 %v17924_v10  ;;  %v17990_v10 = vld [vmem:[#allocation4 + $0x100] ss:$16 sps:$4 sm:$0xff]  }
 0x689   :  { %12439 = vmatprep.subr.bf16.mxu1 %v17927_v48 }
 0x68b   :  { %12317 = vmatpush1.bf16.msra.mxu0 %v17922_v44  ;;  %v17993_v44 = vld [vmem:[#allocation4 + $0x108] ss:$16 sps:$4 sm:$0xff]  }
 0x68c   :  { %12440 = vmatpush1.bf16.msra.mxu1 %v17925_v34  ;;  %12318 = vmatprep.subr.bf16.mxu0 %v17930_v54  ;;  %v17998_v34 = vld [vmem:[#allocation4 + $0x124] ss:$16 sps:$4 sm:$0xff]   ;;  %v18001_v54 = vld [vmem:[#allocation4 + $0x12c] ss:$16 sps:$4 sm:$0xff]  }
 0x68d   :  { %12441 = vmatprep.subr.bf16.mxu1 %v17933_v39  ;;  %v17996_v39 = vld [vmem:[#allocation4 + $0x120] ss:$16 sps:$4 sm:$0xff]  }
 0x68f   :  { %12319 = vmatpush1.bf16.msra.mxu0 %v17928_v7  ;;  %v17999_v7 = vld [vmem:[#allocation4 + $0x128] ss:$16 sps:$4 sm:$0xff]  }
 0x690   :  { %12442 = vmatpush1.bf16.msra.mxu1 %v17931_v14  ;;  %12320 = vmatprep.subr.bf16.mxu0 %v17936_v17  ;;  %v18004_v14 = vld [vmem:[#allocation4 + $0x144] ss:$16 sps:$4 sm:$0xff]   ;;  %v18007_v17 = vld [vmem:[#allocation4 + $0x14c] ss:$16 sps:$4 sm:$0xff]  }
 0x691   :  { %12443 = vmatprep.subr.bf16.mxu1 %v17939_v9  ;;  %v18002_v9 = vld [vmem:[#allocation4 + $0x140] ss:$16 sps:$4 sm:$0xff]  }
 0x693   :  { %12321 = vmatpush1.bf16.msra.mxu0 %v17934_v30  ;;  %v18005_v30 = vld [vmem:[#allocation4 + $0x148] ss:$16 sps:$4 sm:$0xff]  }
 0x694   :  { %12444 = vmatpush1.bf16.msra.mxu1 %v17937_v15  ;;  %13637 = vmatprep.subr.bf16.mxu0 %v17942_v18  ;;  %v18010_v15 = vld [vmem:[#allocation4 + $0x164] ss:$16 sps:$4 sm:$0xff]   ;;  %v18013_v18 = vld [vmem:[#allocation4 + $0x16c] ss:$16 sps:$4 sm:$0xff]  }
 0x695   :  { %13760 = vmatprep.subr.bf16.mxu1 %v17945_v8  ;;  %v18008_v8 = vld [vmem:[#allocation4 + $0x160] ss:$16 sps:$4 sm:$0xff]  }
 0x696   :  { %12323 = vmatmul.mubr.bf16.vlgmr.msra.gmra.mrb[68].mxu0 %v21761_v46 }
 0x697   :  { %12446 = vmatmul.mubr.bf16.vlgmr.msra.gmra.mrb[68].mxu1 %v21761_v46  ;;  %13638 = vmatpush1.bf16.msra.mxu0 %v17940_v37  ;;  %v18011_v37 = vld [vmem:[#allocation4 + $0x168] ss:$16 sps:$4 sm:$0xff]  }
 0x698   :  { %13669 = vmatprep.mubr.bf16.mxu0 %v16287_v59  ;;  %13761 = vmatpush1.bf16.msra.mxu1 %v17943_v22  ;;  %v18016_v22 = vld [vmem:[#allocation4 + $0x184] ss:$16 sps:$4 sm:$0xff]  }
 0x699   :  { %13792 = vmatprep.mubr.bf16.mxu1 %v16287_v59  ;;  %13639 = vmatprep.subr.bf16.mxu0 %v17950_v33  ;;  %v18019_v33 = vld [vmem:[#allocation4 + $0x18c] ss:$16 sps:$4 sm:$0xff]   ;;  %v18014_v59 = vld [vmem:[#allocation4 + $0x180] ss:$16 sps:$4 sm:$0xff]  }
 0x69a   :  { %13762 = vmatprep.subr.bf16.mxu1 %v17953_v53  ;;  %v18017_v53 = vld [vmem:[#allocation4 + $0x188] ss:$16 sps:$4 sm:$0xff]  }
 0x69b   :  { %13640 = vmatpush1.bf16.msra.mxu0 %v17948_v24  ;;  %v18022_v24 = vld [vmem:[#allocation4 + $0x1a4] ss:$16 sps:$4 sm:$0xff]  }
 0x69c   :  { %13763 = vmatpush1.bf16.msra.mxu1 %v17951_v16  ;;  %13641 = vmatprep.subr.bf16.mxu0 %v17956_v26  ;;  %v18025_v16 = vld [vmem:[#allocation4 + $0x1ac] ss:$16 sps:$4 sm:$0xff]   ;;  %v18020_v26 = vld [vmem:[#allocation4 + $0x1a0] ss:$16 sps:$4 sm:$0xff]  }
 0x69d   :  { %13764 = vmatprep.subr.bf16.mxu1 %v17959_v45  ;;  %v18023_v45 = vld [vmem:[#allocation4 + $0x1a8] ss:$16 sps:$4 sm:$0xff]  }
 0x69f   :  { %13642 = vmatpush1.bf16.msra.mxu0 %v17954_v35  ;;  %v18028_v35 = vld [vmem:[#allocation4 + $0x1c4] ss:$16 sps:$4 sm:$0xff]  }
 0x6a0   :  { %13765 = vmatpush1.bf16.msra.mxu1 %v17957_v6  ;;  %13643 = vmatprep.subr.bf16.mxu0 %v17962_v47  ;;  %v18031_v6 = vld [vmem:[#allocation4 + $0x1cc] ss:$16 sps:$4 sm:$0xff]   ;;  %v18026_v47 = vld [vmem:[#allocation4 + $0x1c0] ss:$16 sps:$4 sm:$0xff]  }
 0x6a1   :  { %13766 = vmatprep.subr.bf16.mxu1 %v17965_v20  ;;  %v18029_v20 = vld [vmem:[#allocation4 + $0x1c8] ss:$16 sps:$4 sm:$0xff]  }
 0x6a3   :  { %13644 = vmatpush1.bf16.msra.mxu0 %v17960_v61  ;;  %v18034_v61 = vld [vmem:[#allocation4 + $0x1e4] ss:$16 sps:$4 sm:$0xff]  }
 0x6a4   :  { %13767 = vmatpush1.bf16.msra.mxu1 %v17963_v55  ;;  %13645 = vmatprep.subr.bf16.mxu0 %v17968_v11  ;;  %v18037_v55 = vld [vmem:[#allocation4 + $0x1ec] ss:$16 sps:$4 sm:$0xff]   ;;  %v18032_v11 = vld [vmem:[#allocation4 + $0x1e0] ss:$16 sps:$4 sm:$0xff]  }
 0x6a5   :  { %13768 = vmatprep.subr.bf16.mxu1 %v17971_v25  ;;  %v18035_v25 = vld [vmem:[#allocation4 + $0x1e8] ss:$16 sps:$4 sm:$0xff]  }
 0x6a7   :  { %13646 = vmatpush1.bf16.msra.mxu0 %v17966_v36  ;;  %v18040_v36 = vld [vmem:[#allocation4 + $0x204] ss:$16 sps:$4 sm:$0xff]  }
 0x6a8   :  { %13769 = vmatpush1.bf16.msra.mxu1 %v17969_v41  ;;  %13647 = vmatprep.subr.bf16.mxu0 %v17974_v31  ;;  %v18043_v41 = vld [vmem:[#allocation4 + $0x20c] ss:$16 sps:$4 sm:$0xff]   ;;  %v18038_v31 = vld [vmem:[#allocation4 + $0x200] ss:$16 sps:$4 sm:$0xff]  }
 0x6a9   :  { %v10895_v40 = vpop.f32.mrb[64].mxu0  ;;  %13770 = vmatprep.subr.bf16.mxu1 %v17977_v28  ;;  %v16286_v28 = vcombine.low %v21757_v42, %v21757_v42  ;;  %v18050_v42 = vld [vmem:[#allocation4 + $0x240] ss:$16 sps:$4 sm:$0xff]  }
 0x6aa   :  { %v11018_v58 = vpop.f32.mrb[64].mxu1  ;;  %v10897_v2 = vpop.f32.mrb[65].mxu0 }
 0x6ab   :  { %v11025_v12 = vmax.f32 %v10895_v40, %v10897_v2  ;;  %v11020_v0 = vpop.f32.mrb[65].mxu1  ;;  %v10899_v43 = vpop.f32.mrb[66].mxu0  ;;  %13648 = vmatpush1.bf16.msra.mxu0 %v17972_v51  ;;  %v18041_v51 = vld [vmem:[#allocation4 + $0x208] ss:$16 sps:$4 sm:$0xff]   ;;  %v18044_v40 = vld [vmem:[#allocation4 + $0x220] ss:$16 sps:$4 sm:$0xff]  }
 0x6ac   :  { %v11026_v56 = vmax.f32 %v11018_v58, %v11020_v0  ;;  %v11022_v63 = vpop.f32.mrb[66].mxu1  ;;  %13771 = vmatpush1.bf16.msra.mxu1 %v17975_v32  ;;  %v10900_v21 = vpop.f32.mrb[67].mxu0  ;;  %13649 = vmatprep.subr.bf16.mxu0 %v17980_v29  ;;  %v18046_v32 = vld [vmem:[#allocation4 + $0x224] ss:$16 sps:$4 sm:$0xff]   ;;  %v18049_v29 = vld [vmem:[#allocation4 + $0x22c] ss:$16 sps:$4 sm:$0xff]  }
 0x6ad   :  { %v11023_v5 = vpop.f32.mrb[67].mxu1  ;;  %13772 = vmatprep.subr.bf16.mxu1 %v17983_v60  ;;  %v18047_v60 = vld [vmem:[#allocation4 + $0x228] ss:$16 sps:$4 sm:$0xff]   ;;  %v18052_v58 = vld [vmem:[#allocation4 + $0x244] ss:$16 sps:$4 sm:$0xff]  }
 0x6ae   :  { %v11027_v49 = vmax.f32 %v11025_v12, %v11026_v56  ;;  %v18055_v2 = vld [vmem:[#allocation4 + $0x24c] ss:$16 sps:$4 sm:$0xff]   ;;  %v18053_v12 = vld [vmem:[#allocation4 + $0x248] ss:$16 sps:$4 sm:$0xff]   ;;  %v18058_v0 = vld [vmem:[#allocation4 + $0x264] ss:$16 sps:$4 sm:$0xff]  }
 0x6af   :  { %13650 = vmatpush1.bf16.msra.mxu0 %v17978_v4  ;;  %v18061_v43 = vld [vmem:[#allocation4 + $0x26c] ss:$16 sps:$4 sm:$0xff]   ;;  %v18056_v4 = vld [vmem:[#allocation4 + $0x260] ss:$16 sps:$4 sm:$0xff]   ;;  %v18059_v56 = vld [vmem:[#allocation4 + $0x268] ss:$16 sps:$4 sm:$0xff]  }
 0x6b0   :  { %v11028_v23 = vadd.f32 %v21770_v62, %v11027_v49  ;;  %13773 = vmatpush1.bf16.msra.mxu1 %v17981_v57  ;;  %13651 = vmatprep.subr.bf16.mxu0 %v17986_v19  ;;  %v18064_v63 = vld [vmem:[#allocation4 + $0x284] ss:$16 sps:$4 sm:$0xff]   ;;  %v18067_v21 = vld [vmem:[#allocation4 + $0x28c] ss:$16 sps:$4 sm:$0xff]   ;;  %v18065_v57 = vld [vmem:[#allocation4 + $0x288] ss:$16 sps:$4 sm:$0xff]  }
 0x6b1   :  { %13774 = vmatprep.subr.bf16.mxu1 %v17989_v38  ;;  %v18070_v19 = vld [vmem:[#allocation4 + $0x2a4] ss:$16 sps:$4 sm:$0xff]   ;;  %v18073_v5 = vld [vmem:[#allocation4 + $0x2ac] ss:$16 sps:$4 sm:$0xff]   ;;  %v18068_v38 = vld [vmem:[#allocation4 + $0x2a0] ss:$16 sps:$4 sm:$0xff]  }
 0x6b2   :  { %v11029_v27 = vmax.f32 %v11028_v23, 0.0  ;;  %v18071_v49 = vld [vmem:[#allocation4 + $0x2a8] ss:$16 sps:$4 sm:$0xff]   ;;  %v18079_v23 = vld [vmem:[#allocation4 + $0x2cc] ss:$16 sps:$4 sm:$0xff]  }
 0x6b3   :  { %13652 = vmatpush1.bf16.msra.mxu0 %v17984_v13  ;;  %v18076_v13 = vld [vmem:[#allocation4 + $0x2c4] ss:$16 sps:$4 sm:$0xff]  }
 0x6b4   :  { %v11030_v48 = vpack.c.bf16 %v11029_v27, %v11029_v27  ;;  %13775 = vmatpush1.bf16.msra.mxu1 %v17987_v52  ;;  %13653 = vmatprep.subr.bf16.mxu0 %v17992_v1  ;;  %v18074_v52 = vld [vmem:[#allocation4 + $0x2c0] ss:$16 sps:$4 sm:$0xff]   ;;  %v18077_v1 = vld [vmem:[#allocation4 + $0x2c8] ss:$16 sps:$4 sm:$0xff]   ;;  %v18085_v27 = vld [vmem:[#allocation4 + $0x2ec] ss:$16 sps:$4 sm:$0xff]  }
 0x6b5   :  { %13776 = vmatprep.subr.bf16.mxu1 %v17995_v50  ;;  %v18082_v50 = vld [vmem:[#allocation4 + $0x2e4] ss:$16 sps:$4 sm:$0xff]  }
 0x6b6   :  { %11031 = vst [vmem:[#allocation3 + $0x8] sm:$0xf] %v11030_v48  ;;  %v18083_v48 = vld [vmem:[#allocation4 + $0x2e8] ss:$16 sps:$4 sm:$0xff]  }
 0x6b7   :  { %13654 = vmatpush1.bf16.msra.mxu0 %v17990_v10  ;;  %v18080_v10 = vld [vmem:[#allocation4 + $0x2e0] ss:$16 sps:$4 sm:$0xff]  }
 0x6b8   :  { %13777 = vmatpush1.bf16.msra.mxu1 %v17993_v44  ;;  %13655 = vmatprep.subr.bf16.mxu0 %v17998_v34  ;;  %v18088_v44 = vld [vmem:[#allocation4 + $0x304] ss:$16 sps:$4 sm:$0xff]   ;;  %v18091_v34 = vld [vmem:[#allocation4 + $0x30c] ss:$16 sps:$4 sm:$0xff]  }
 0x6b9   :  { %13778 = vmatprep.subr.bf16.mxu1 %v18001_v54  ;;  %v18086_v54 = vld [vmem:[#allocation4 + $0x300] ss:$16 sps:$4 sm:$0xff]  }
 0x6bb   :  { %13656 = vmatpush1.bf16.msra.mxu0 %v17996_v39  ;;  %v18089_v39 = vld [vmem:[#allocation4 + $0x308] ss:$16 sps:$4 sm:$0xff]  }
 0x6bc   :  { %13779 = vmatpush1.bf16.msra.mxu1 %v17999_v7  ;;  %13657 = vmatprep.subr.bf16.mxu0 %v18004_v14  ;;  %v18094_v7 = vld [vmem:[#allocation4 + $0x324] ss:$16 sps:$4 sm:$0xff]   ;;  %v18097_v14 = vld [vmem:[#allocation4 + $0x32c] ss:$16 sps:$4 sm:$0xff]  }
 0x6bd   :  { %13780 = vmatprep.subr.bf16.mxu1 %v18007_v17  ;;  %v18092_v17 = vld [vmem:[#allocation4 + $0x320] ss:$16 sps:$4 sm:$0xff]  }
 0x6bf   :  { %13658 = vmatpush1.bf16.msra.mxu0 %v18002_v9  ;;  %v18095_v9 = vld [vmem:[#allocation4 + $0x328] ss:$16 sps:$4 sm:$0xff]  }
 0x6c0   :  { %13781 = vmatpush1.bf16.msra.mxu1 %v18005_v30  ;;  %13659 = vmatprep.subr.bf16.mxu0 %v18010_v15  ;;  %v18100_v30 = vld [vmem:[#allocation4 + $0x344] ss:$16 sps:$4 sm:$0xff]   ;;  %v18103_v15 = vld [vmem:[#allocation4 + $0x34c] ss:$16 sps:$4 sm:$0xff]  }
 0x6c1   :  { %13782 = vmatprep.subr.bf16.mxu1 %v18013_v18  ;;  %v18098_v18 = vld [vmem:[#allocation4 + $0x340] ss:$16 sps:$4 sm:$0xff]  }
 0x6c3   :  { %13660 = vmatpush1.bf16.msra.mxu0 %v18008_v8  ;;  %v18101_v8 = vld [vmem:[#allocation4 + $0x348] ss:$16 sps:$4 sm:$0xff]  }
 0x6c4   :  { %13783 = vmatpush1.bf16.msra.mxu1 %v18011_v37  ;;  %13661 = vmatprep.subr.bf16.mxu0 %v18016_v22  ;;  %v18106_v37 = vld [vmem:[#allocation4 + $0x364] ss:$16 sps:$4 sm:$0xff]   ;;  %v18109_v22 = vld [vmem:[#allocation4 + $0x36c] ss:$16 sps:$4 sm:$0xff]  }
 0x6c5   :  { %13784 = vmatprep.subr.bf16.mxu1 %v18019_v33  ;;  %v18104_v33 = vld [vmem:[#allocation4 + $0x360] ss:$16 sps:$4 sm:$0xff]  }
 0x6c7   :  { %13662 = vmatpush1.bf16.msra.mxu0 %v18014_v59  ;;  %v18107_v59 = vld [vmem:[#allocation4 + $0x368] ss:$16 sps:$4 sm:$0xff]  }
 0x6c8   :  { %13785 = vmatpush1.bf16.msra.mxu1 %v18017_v53  ;;  %13663 = vmatprep.subr.bf16.mxu0 %v18022_v24  ;;  %v18112_v53 = vld [vmem:[#allocation4 + $0x384] ss:$16 sps:$4 sm:$0xff]   ;;  %v18115_v24 = vld [vmem:[#allocation4 + $0x38c] ss:$16 sps:$4 sm:$0xff]  }
 0x6c9   :  { %13786 = vmatprep.subr.bf16.mxu1 %v18025_v16  ;;  %v18110_v16 = vld [vmem:[#allocation4 + $0x380] ss:$16 sps:$4 sm:$0xff]  }
 0x6cb   :  { %13664 = vmatpush1.bf16.msra.mxu0 %v18020_v26  ;;  %v18113_v26 = vld [vmem:[#allocation4 + $0x388] ss:$16 sps:$4 sm:$0xff]  }
 0x6cc   :  { %13787 = vmatpush1.bf16.msra.mxu1 %v18023_v45  ;;  %13665 = vmatprep.subr.bf16.mxu0 %v18028_v35  ;;  %v18118_v45 = vld [vmem:[#allocation4 + $0x3a4] ss:$16 sps:$4 sm:$0xff]   ;;  %v18121_v35 = vld [vmem:[#allocation4 + $0x3ac] ss:$16 sps:$4 sm:$0xff]  }
 0x6cd   :  { %13788 = vmatprep.subr.bf16.mxu1 %v18031_v6  ;;  %v18116_v6 = vld [vmem:[#allocation4 + $0x3a0] ss:$16 sps:$4 sm:$0xff]  }
 0x6cf   :  { %13666 = vmatpush1.bf16.msra.mxu0 %v18026_v47  ;;  %v18119_v47 = vld [vmem:[#allocation4 + $0x3a8] ss:$16 sps:$4 sm:$0xff]  }
 0x6d0   :  { %13789 = vmatpush1.bf16.msra.mxu1 %v18029_v20  ;;  %13667 = vmatprep.subr.bf16.mxu0 %v18034_v61  ;;  %v18124_v20 = vld [vmem:[#allocation4 + $0x3c4] ss:$16 sps:$4 sm:$0xff]   ;;  %v18127_v61 = vld [vmem:[#allocation4 + $0x3cc] ss:$16 sps:$4 sm:$0xff]  }
 0x6d1   :  { %13790 = vmatprep.subr.bf16.mxu1 %v18037_v55  ;;  %v18122_v55 = vld [vmem:[#allocation4 + $0x3c0] ss:$16 sps:$4 sm:$0xff]  }
 0x6d3   :  { %13668 = vmatpush1.bf16.msra.mxu0 %v18032_v11  ;;  %v18125_v11 = vld [vmem:[#allocation4 + $0x3c8] ss:$16 sps:$4 sm:$0xff]  }
 0x6d4   :  { %13791 = vmatpush1.bf16.msra.mxu1 %v18035_v25  ;;  %13678 = vmatprep.subr.bf16.mxu0 %v18040_v36  ;;  %v18130_v25 = vld [vmem:[#allocation4 + $0x3e4] ss:$16 sps:$4 sm:$0xff]   ;;  %v18133_v36 = vld [vmem:[#allocation4 + $0x3ec] ss:$16 sps:$4 sm:$0xff]  }
 0x6d5   :  { %13801 = vmatprep.subr.bf16.mxu1 %v18043_v41  ;;  %v18128_v41 = vld [vmem:[#allocation4 + $0x3e0] ss:$16 sps:$4 sm:$0xff]  }
 0x6d6   :  { %13670 = vmatmul.mubr.bf16.vlgmr.msra.gmra.mrb[72].mxu0 %v16286_v28 }
 0x6d7   :  { %13793 = vmatmul.mubr.bf16.vlgmr.msra.gmra.mrb[72].mxu1 %v16286_v28  ;;  %13679 = vmatpush1.bf16.msra.mxu0 %v18038_v31  ;;  %v18131_v31 = vld [vmem:[#allocation4 + $0x3e8] ss:$16 sps:$4 sm:$0xff]   ;;  %v18136_v28 = vld [vmem:[#allocation4 + $0x404] ss:$16 sps:$4 sm:$0xff]  }
 0x6d8   :  { %13710 = vmatprep.mubr.bf16.mxu0 %v21752_v3  ;;  %13802 = vmatpush1.bf16.msra.mxu1 %v18041_v51  ;;  %v18139_v51 = vld [vmem:[#allocation4 + $0x40c] ss:$16 sps:$4 sm:$0xff]  }
 0x6d9   :  { %13833 = vmatprep.mubr.bf16.mxu1 %v21752_v3  ;;  %13680 = vmatprep.subr.bf16.mxu0 %v18046_v32  ;;  %v18062_v3 = vld [vmem:[#allocation4 + $0x280] ss:$16 sps:$4 sm:$0xff]  }
 0x6da   :  { %13803 = vmatprep.subr.bf16.mxu1 %v18049_v29  ;;  %v18134_v32 = vld [vmem:[#allocation4 + $0x400] ss:$16 sps:$4 sm:$0xff]   ;;  %v21777_v29 = vld [vmem:[#allocation2 + $0x30] sm:$0xff] }
 0x6db   :  { %13681 = vmatpush1.bf16.msra.mxu0 %v18044_v40  ;;  %v18137_v40 = vld [vmem:[#allocation4 + $0x408] ss:$16 sps:$4 sm:$0xff]  }
 0x6dc   :  { %13804 = vmatpush1.bf16.msra.mxu1 %v18047_v60  ;;  %13682 = vmatprep.subr.bf16.mxu0 %v18052_v58  ;;  %v18144_v60 = vld [vmem:[#allocation4 + $0x424] ss:$16 sps:$4 sm:$0xff]   ;;  %v16291_v58 = vcombine.high %v21777_v29, %v21777_v29 }
 0x6dd   :  { %13805 = vmatprep.subr.bf16.mxu1 %v18055_v2  ;;  %v18147_v2 = vld [vmem:[#allocation4 + $0x42c] ss:$16 sps:$4 sm:$0xff]  }
 0x6df   :  { %13683 = vmatpush1.bf16.msra.mxu0 %v18050_v42  ;;  %v18142_v42 = vld [vmem:[#allocation4 + $0x420] ss:$16 sps:$4 sm:$0xff]  }
 0x6e0   :  { %13806 = vmatpush1.bf16.msra.mxu1 %v18053_v12  ;;  %13684 = vmatprep.subr.bf16.mxu0 %v18058_v0  ;;  %v18145_v12 = vld [vmem:[#allocation4 + $0x428] ss:$16 sps:$4 sm:$0xff]   ;;  %v18150_v0 = vld [vmem:[#allocation4 + $0x444] ss:$16 sps:$4 sm:$0xff]  }
 0x6e1   :  { %13807 = vmatprep.subr.bf16.mxu1 %v18061_v43  ;;  %v18153_v43 = vld [vmem:[#allocation4 + $0x44c] ss:$16 sps:$4 sm:$0xff]  }
 0x6e3   :  { %13685 = vmatpush1.bf16.msra.mxu0 %v18056_v4  ;;  %v18148_v4 = vld [vmem:[#allocation4 + $0x440] ss:$16 sps:$4 sm:$0xff]  }
 0x6e4   :  { %13808 = vmatpush1.bf16.msra.mxu1 %v18059_v56  ;;  %13686 = vmatprep.subr.bf16.mxu0 %v18064_v63  ;;  %v18151_v56 = vld [vmem:[#allocation4 + $0x448] ss:$16 sps:$4 sm:$0xff]   ;;  %v18156_v63 = vld [vmem:[#allocation4 + $0x464] ss:$16 sps:$4 sm:$0xff]  }
 0x6e5   :  { %13809 = vmatprep.subr.bf16.mxu1 %v18067_v21  ;;  %v18159_v21 = vld [vmem:[#allocation4 + $0x46c] ss:$16 sps:$4 sm:$0xff]  }
 0x6e7   :  { %13687 = vmatpush1.bf16.msra.mxu0 %v18062_v3  ;;  %v18157_v3 = vld [vmem:[#allocation4 + $0x468] ss:$16 sps:$4 sm:$0xff]  }
 0x6e8   :  { %13810 = vmatpush1.bf16.msra.mxu1 %v18065_v57  ;;  %13688 = vmatprep.subr.bf16.mxu0 %v18070_v19  ;;  %v18162_v57 = vld [vmem:[#allocation4 + $0x484] ss:$16 sps:$4 sm:$0xff]   ;;  %v18165_v19 = vld [vmem:[#allocation4 + $0x48c] ss:$16 sps:$4 sm:$0xff]  }
 0x6e9   :  { %13811 = vmatprep.subr.bf16.mxu1 %v18073_v5  ;;  %v18160_v5 = vld [vmem:[#allocation4 + $0x480] ss:$16 sps:$4 sm:$0xff]  }
 0x6eb   :  { %13689 = vmatpush1.bf16.msra.mxu0 %v18068_v38  ;;  %v18163_v38 = vld [vmem:[#allocation4 + $0x488] ss:$16 sps:$4 sm:$0xff]  }
 0x6ec   :  { %13812 = vmatpush1.bf16.msra.mxu1 %v18071_v49  ;;  %13690 = vmatprep.subr.bf16.mxu0 %v18076_v13  ;;  %v18168_v49 = vld [vmem:[#allocation4 + $0x4a4] ss:$16 sps:$4 sm:$0xff]   ;;  %v18171_v13 = vld [vmem:[#allocation4 + $0x4ac] ss:$16 sps:$4 sm:$0xff]  }
 0x6ed   :  { %13813 = vmatprep.subr.bf16.mxu1 %v18079_v23  ;;  %v18166_v23 = vld [vmem:[#allocation4 + $0x4a0] ss:$16 sps:$4 sm:$0xff]  }
 0x6ef   :  { %13691 = vmatpush1.bf16.msra.mxu0 %v18074_v52  ;;  %v18169_v52 = vld [vmem:[#allocation4 + $0x4a8] ss:$16 sps:$4 sm:$0xff]  }
 0x6f0   :  { %13814 = vmatpush1.bf16.msra.mxu1 %v18077_v1  ;;  %13692 = vmatprep.subr.bf16.mxu0 %v18082_v50  ;;  %v18174_v1 = vld [vmem:[#allocation4 + $0x4c4] ss:$16 sps:$4 sm:$0xff]   ;;  %v18177_v50 = vld [vmem:[#allocation4 + $0x4cc] ss:$16 sps:$4 sm:$0xff]  }
 0x6f1   :  { %13815 = vmatprep.subr.bf16.mxu1 %v18085_v27  ;;  %v18172_v27 = vld [vmem:[#allocation4 + $0x4c0] ss:$16 sps:$4 sm:$0xff]  }
 0x6f3   :  { %13693 = vmatpush1.bf16.msra.mxu0 %v18080_v10  ;;  %v18175_v10 = vld [vmem:[#allocation4 + $0x4c8] ss:$16 sps:$4 sm:$0xff]  }
 0x6f4   :  { %13816 = vmatpush1.bf16.msra.mxu1 %v18083_v48  ;;  %13694 = vmatprep.subr.bf16.mxu0 %v18088_v44  ;;  %v18180_v48 = vld [vmem:[#allocation4 + $0x4e4] ss:$16 sps:$4 sm:$0xff]   ;;  %v18183_v44 = vld [vmem:[#allocation4 + $0x4ec] ss:$16 sps:$4 sm:$0xff]  }
 0x6f5   :  { %13817 = vmatprep.subr.bf16.mxu1 %v18091_v34  ;;  %v18178_v34 = vld [vmem:[#allocation4 + $0x4e0] ss:$16 sps:$4 sm:$0xff]  }
 0x6f7   :  { %13695 = vmatpush1.bf16.msra.mxu0 %v18086_v54  ;;  %v18181_v54 = vld [vmem:[#allocation4 + $0x4e8] ss:$16 sps:$4 sm:$0xff]  }
 0x6f8   :  { %13818 = vmatpush1.bf16.msra.mxu1 %v18089_v39  ;;  %13696 = vmatprep.subr.bf16.mxu0 %v18094_v7  ;;  %v18186_v39 = vld [vmem:[#allocation4 + $0x504] ss:$16 sps:$4 sm:$0xff]   ;;  %v18189_v7 = vld [vmem:[#allocation4 + $0x50c] ss:$16 sps:$4 sm:$0xff]  }
 0x6f9   :  { %13819 = vmatprep.subr.bf16.mxu1 %v18097_v14  ;;  %v18184_v14 = vld [vmem:[#allocation4 + $0x500] ss:$16 sps:$4 sm:$0xff]  }
 0x6fb   :  { %13697 = vmatpush1.bf16.msra.mxu0 %v18092_v17  ;;  %v18187_v17 = vld [vmem:[#allocation4 + $0x508] ss:$16 sps:$4 sm:$0xff]  }
 0x6fc   :  { %13820 = vmatpush1.bf16.msra.mxu1 %v18095_v9  ;;  %13698 = vmatprep.subr.bf16.mxu0 %v18100_v30  ;;  %v18192_v9 = vld [vmem:[#allocation4 + $0x524] ss:$16 sps:$4 sm:$0xff]   ;;  %v18195_v30 = vld [vmem:[#allocation4 + $0x52c] ss:$16 sps:$4 sm:$0xff]  }
 0x6fd   :  { %13821 = vmatprep.subr.bf16.mxu1 %v18103_v15  ;;  %v18190_v15 = vld [vmem:[#allocation4 + $0x520] ss:$16 sps:$4 sm:$0xff]  }
 0x6ff   :  { %13699 = vmatpush1.bf16.msra.mxu0 %v18098_v18  ;;  %v18193_v18 = vld [vmem:[#allocation4 + $0x528] ss:$16 sps:$4 sm:$0xff]  }
 0x700   :  { %13822 = vmatpush1.bf16.msra.mxu1 %v18101_v8  ;;  %13700 = vmatprep.subr.bf16.mxu0 %v18106_v37  ;;  %v18198_v8 = vld [vmem:[#allocation4 + $0x544] ss:$16 sps:$4 sm:$0xff]   ;;  %v18201_v37 = vld [vmem:[#allocation4 + $0x54c] ss:$16 sps:$4 sm:$0xff]  }
 0x701   :  { %13823 = vmatprep.subr.bf16.mxu1 %v18109_v22  ;;  %v18196_v22 = vld [vmem:[#allocation4 + $0x540] ss:$16 sps:$4 sm:$0xff]  }
 0x703   :  { %13701 = vmatpush1.bf16.msra.mxu0 %v18104_v33  ;;  %v18199_v33 = vld [vmem:[#allocation4 + $0x548] ss:$16 sps:$4 sm:$0xff]  }
 0x704   :  { %13824 = vmatpush1.bf16.msra.mxu1 %v18107_v59  ;;  %13702 = vmatprep.subr.bf16.mxu0 %v18112_v53  ;;  %v18204_v59 = vld [vmem:[#allocation4 + $0x564] ss:$16 sps:$4 sm:$0xff]   ;;  %v18207_v53 = vld [vmem:[#allocation4 + $0x56c] ss:$16 sps:$4 sm:$0xff]  }
 0x705   :  { %13825 = vmatprep.subr.bf16.mxu1 %v18115_v24  ;;  %v18202_v24 = vld [vmem:[#allocation4 + $0x560] ss:$16 sps:$4 sm:$0xff]  }
 0x707   :  { %13703 = vmatpush1.bf16.msra.mxu0 %v18110_v16  ;;  %v18205_v16 = vld [vmem:[#allocation4 + $0x568] ss:$16 sps:$4 sm:$0xff]  }
 0x708   :  { %13826 = vmatpush1.bf16.msra.mxu1 %v18113_v26  ;;  %13704 = vmatprep.subr.bf16.mxu0 %v18118_v45  ;;  %v18210_v26 = vld [vmem:[#allocation4 + $0x584] ss:$16 sps:$4 sm:$0xff]   ;;  %v18213_v45 = vld [vmem:[#allocation4 + $0x58c] ss:$16 sps:$4 sm:$0xff]  }
 0x709   :  { %13827 = vmatprep.subr.bf16.mxu1 %v18121_v35  ;;  %v18208_v35 = vld [vmem:[#allocation4 + $0x580] ss:$16 sps:$4 sm:$0xff]  }
 0x70b   :  { %13705 = vmatpush1.bf16.msra.mxu0 %v18116_v6  ;;  %v18211_v6 = vld [vmem:[#allocation4 + $0x588] ss:$16 sps:$4 sm:$0xff]  }
 0x70c   :  { %13828 = vmatpush1.bf16.msra.mxu1 %v18119_v47  ;;  %13706 = vmatprep.subr.bf16.mxu0 %v18124_v20  ;;  %v18216_v47 = vld [vmem:[#allocation4 + $0x5a4] ss:$16 sps:$4 sm:$0xff]   ;;  %v18219_v20 = vld [vmem:[#allocation4 + $0x5ac] ss:$16 sps:$4 sm:$0xff]  }
 0x70d   :  { %13829 = vmatprep.subr.bf16.mxu1 %v18127_v61  ;;  %v18214_v61 = vld [vmem:[#allocation4 + $0x5a0] ss:$16 sps:$4 sm:$0xff]  }
 0x70f   :  { %13707 = vmatpush1.bf16.msra.mxu0 %v18122_v55  ;;  %v18217_v55 = vld [vmem:[#allocation4 + $0x5a8] ss:$16 sps:$4 sm:$0xff]  }
 0x710   :  { %13830 = vmatpush1.bf16.msra.mxu1 %v18125_v11  ;;  %13708 = vmatprep.subr.bf16.mxu0 %v18130_v25  ;;  %v18222_v11 = vld [vmem:[#allocation4 + $0x5c4] ss:$16 sps:$4 sm:$0xff]   ;;  %v18225_v25 = vld [vmem:[#allocation4 + $0x5cc] ss:$16 sps:$4 sm:$0xff]  }
 0x711   :  { %13831 = vmatprep.subr.bf16.mxu1 %v18133_v36  ;;  %v18220_v36 = vld [vmem:[#allocation4 + $0x5c0] ss:$16 sps:$4 sm:$0xff]  }
 0x713   :  { %13709 = vmatpush1.bf16.msra.mxu0 %v18128_v41  ;;  %v18223_v41 = vld [vmem:[#allocation4 + $0x5c8] ss:$16 sps:$4 sm:$0xff]  }
 0x714   :  { %13832 = vmatpush1.bf16.msra.mxu1 %v18131_v31  ;;  %13719 = vmatprep.subr.bf16.mxu0 %v18136_v28  ;;  %v18228_v31 = vld [vmem:[#allocation4 + $0x5e4] ss:$16 sps:$4 sm:$0xff]   ;;  %v18231_v28 = vld [vmem:[#allocation4 + $0x5ec] ss:$16 sps:$4 sm:$0xff]  }
 0x715   :  { %13842 = vmatprep.subr.bf16.mxu1 %v18139_v51  ;;  %v18226_v51 = vld [vmem:[#allocation4 + $0x5e0] ss:$16 sps:$4 sm:$0xff]  }
 0x716   :  { %13711 = vmatmul.mubr.bf16.vlgmr.msra.gmra.mrb[72].mxu0 %v21761_v46 }
 0x717   :  { %13834 = vmatmul.mubr.bf16.vlgmr.msra.gmra.mrb[72].mxu1 %v21761_v46  ;;  %13720 = vmatpush1.bf16.msra.mxu0 %v18134_v32  ;;  %v18154_v46 = vld [vmem:[#allocation4 + $0x460] ss:$16 sps:$4 sm:$0xff]   ;;  %v18229_v32 = vld [vmem:[#allocation4 + $0x5e8] ss:$16 sps:$4 sm:$0xff]  }
 0x718   :  { %13751 = vmatprep.mubr.bf16.mxu0 %v16291_v58  ;;  %13843 = vmatpush1.bf16.msra.mxu1 %v18137_v40  ;;  %v18232_v40 = vld [vmem:[%s22000_s5 + $0x40] sm:$0xff]  }
 0x719   :  { %13874 = vmatprep.mubr.bf16.mxu1 %v16291_v58  ;;  %13721 = vmatprep.subr.bf16.mxu0 %v18144_v60  ;;  %v18240_v60 = vld [vmem:[%s22000_s5 + $0xc0] sm:$0xff]  }
 0x71a   :  { %13844 = vmatprep.subr.bf16.mxu1 %v18147_v2  ;;  %v18233_v58 = vld [vmem:[%s22000_s5] sm:$0xff]   ;;  %v21792_v2 = vld [vmem:[#allocation3] sm:$0xff] }
 0x71b   :  { %13722 = vmatpush1.bf16.msra.mxu0 %v18142_v42  ;;  %v16290_v42 = vcombine.low %v21777_v29, %v21777_v29  ;;  %v18237_v29 = vld [vmem:[%s22000_s5 + $0x8] sm:$0xff]  }
 0x71c   :  { %13845 = vmatpush1.bf16.msra.mxu1 %v18145_v12  ;;  %13723 = vmatprep.subr.bf16.mxu0 %v18150_v0  ;;  %v18236_v12 = vld [vmem:[%s22000_s5 + $0x48] sm:$0xff]   ;;  %v18241_v0 = vld [vmem:[%s22000_s5 + $0x80] sm:$0xff]  }
 0x71d   :  { %13846 = vmatprep.subr.bf16.mxu1 %v18153_v43  ;;  %v16486_v43 = vcombine.high %v21792_v2, %v21792_v2 }
 0x71f   :  { %13724 = vmatpush1.bf16.msra.mxu0 %v18148_v4  ;;  %v18244_v4 = vld [vmem:[%s22000_s5 + $0xc8] sm:$0xff]  }
 0x720   :  { %13847 = vmatpush1.bf16.msra.mxu1 %v18151_v56  ;;  %13725 = vmatprep.subr.bf16.mxu0 %v18156_v63  ;;  %v18238_v56 = vld [vmem:[%s22000_s5 + $0x50] sm:$0xff]   ;;  %v18245_v63 = vld [vmem:[%s22000_s5 + $0x88] sm:$0xff]  }
 0x721   :  { %13848 = vmatprep.subr.bf16.mxu1 %v18159_v21  ;;  %v18248_v21 = vld [vmem:[%s22000_s5 + $0xd0] sm:$0xff]  }
 0x723   :  { %13726 = vmatpush1.bf16.msra.mxu0 %v18154_v46  ;;  %v18239_v46 = vld [vmem:[%s22000_s5 + $0x10] sm:$0xff]  }
 0x724   :  { %13849 = vmatpush1.bf16.msra.mxu1 %v18157_v3  ;;  %13727 = vmatprep.subr.bf16.mxu0 %v18162_v57  ;;  %v18242_v3 = vld [vmem:[%s22000_s5 + $0x58] sm:$0xff]   ;;  %v18249_v57 = vld [vmem:[%s22000_s5 + $0x90] sm:$0xff]  }
 0x725   :  { %13850 = vmatprep.subr.bf16.mxu1 %v18165_v19  ;;  %v18252_v19 = vld [vmem:[%s22000_s5 + $0xd8] sm:$0xff]  }
 0x727   :  { %13728 = vmatpush1.bf16.msra.mxu0 %v18160_v5  ;;  %v18243_v5 = vld [vmem:[%s22000_s5 + $0x18] sm:$0xff]  }
 0x728   :  { %13851 = vmatpush1.bf16.msra.mxu1 %v18163_v38  ;;  %13729 = vmatprep.subr.bf16.mxu0 %v18168_v49  ;;  %v18246_v38 = vld [vmem:[%s22000_s5 + $0x60] sm:$0xff]   ;;  %v18253_v49 = vld [vmem:[%s22000_s5 + $0x98] sm:$0xff]  }
 0x729   :  { %13852 = vmatprep.subr.bf16.mxu1 %v18171_v13  ;;  %v18256_v13 = vld [vmem:[%s22000_s5 + $0xe0] sm:$0xff]  }
 0x72b   :  { %13730 = vmatpush1.bf16.msra.mxu0 %v18166_v23  ;;  %v18247_v23 = vld [vmem:[%s22000_s5 + $0x20] sm:$0xff]  }
 0x72c   :  { %13853 = vmatpush1.bf16.msra.mxu1 %v18169_v52  ;;  %13731 = vmatprep.subr.bf16.mxu0 %v18174_v1  ;;  %v18250_v52 = vld [vmem:[%s22000_s5 + $0x68] sm:$0xff]   ;;  %v18257_v1 = vld [vmem:[%s22000_s5 + $0xa0] sm:$0xff]  }
 0x72d   :  { %13854 = vmatprep.subr.bf16.mxu1 %v18177_v50  ;;  %v18260_v50 = vld [vmem:[%s22000_s5 + $0xe8] sm:$0xff]  }
 0x72f   :  { %13732 = vmatpush1.bf16.msra.mxu0 %v18172_v27  ;;  %v18251_v27 = vld [vmem:[%s22000_s5 + $0x28] sm:$0xff]  }
 0x730   :  { %13855 = vmatpush1.bf16.msra.mxu1 %v18175_v10  ;;  %13733 = vmatprep.subr.bf16.mxu0 %v18180_v48  ;;  %v18254_v10 = vld [vmem:[%s22000_s5 + $0x70] sm:$0xff]  }
 0x731   :  { %13856 = vmatprep.subr.bf16.mxu1 %v18183_v44  ;;  %v18261_v44 = vld [vmem:[%s22000_s5 + $0xa8] sm:$0xff]  }
 0x733   :  { %13734 = vmatpush1.bf16.msra.mxu0 %v18178_v34 }
 0x734   :  { %13857 = vmatpush1.bf16.msra.mxu1 %v18181_v54  ;;  %13735 = vmatprep.subr.bf16.mxu0 %v18186_v39  ;;  %v18262_v39 = vld [vmem:[%s22000_s5 + $0xf0] sm:$0xff]  }
 0x735   :  { %13858 = vmatprep.subr.bf16.mxu1 %v18189_v7 }
 0x737   :  { %13736 = vmatpush1.bf16.msra.mxu0 %v18184_v14 }
 0x738   :  { %13859 = vmatpush1.bf16.msra.mxu1 %v18187_v17  ;;  %13737 = vmatprep.subr.bf16.mxu0 %v18192_v9  ;;  %v18255_v9 = vld [vmem:[%s22000_s5 + $0x30] sm:$0xff]  }
 0x739   :  { %13860 = vmatprep.subr.bf16.mxu1 %v18195_v30 }
 0x73b   :  { %13738 = vmatpush1.bf16.msra.mxu0 %v18190_v15 }
 0x73c   :  { %13861 = vmatpush1.bf16.msra.mxu1 %v18193_v18  ;;  %13739 = vmatprep.subr.bf16.mxu0 %v18198_v8  ;;  %v18258_v8 = vld [vmem:[%s22000_s5 + $0x78] sm:$0xff]  }
 0x73d   :  { %13862 = vmatprep.subr.bf16.mxu1 %v18201_v37 }
 0x73f   :  { %13740 = vmatpush1.bf16.msra.mxu0 %v18196_v22  ;;  %v18263_v22 = vld [vmem:[%s22000_s5 + $0xb0] sm:$0xff]  }
 0x740   :  { %13863 = vmatpush1.bf16.msra.mxu1 %v18199_v33  ;;  %13741 = vmatprep.subr.bf16.mxu0 %v18204_v59  ;;  %v18264_v59 = vld [vmem:[%s22000_s5 + $0xf8] sm:$0xff]  }
 0x741   :  { %13864 = vmatprep.subr.bf16.mxu1 %v18207_v53  ;;  %v18259_v53 = vld [vmem:[%s22000_s5 + $0x38] sm:$0xff]  }
 0x743   :  { %13742 = vmatpush1.bf16.msra.mxu0 %v18202_v24 }
 0x744   :  { %13865 = vmatpush1.bf16.msra.mxu1 %v18205_v16  ;;  %13743 = vmatprep.subr.bf16.mxu0 %v18210_v26  ;;  %v18265_v16 = vld [vmem:[%s22000_s5 + $0xb8] sm:$0xff]  }
 0x745   :  { %13866 = vmatprep.subr.bf16.mxu1 %v18213_v45  ;;  %v18268_v45 = vld [vmem:[%s22000_s5 + $0x100] sm:$0xff]  }
 0x747   :  { %13744 = vmatpush1.bf16.msra.mxu0 %v18208_v35  ;;  %v16485_v35 = vcombine.low %v21792_v2, %v21792_v2  ;;  %v18281_v2 = vld [vmem:[%s22002_s7 + $0x20] sm:$0xff]  }
 0x748   :  { %13867 = vmatpush1.bf16.msra.mxu1 %v18211_v6  ;;  %13745 = vmatprep.subr.bf16.mxu0 %v18216_v47  ;;  %v18323_v47 = vmov 0.0  }
 0x749   :  { %13868 = vmatprep.subr.bf16.mxu1 %v18219_v20  ;;  %v18269_v20 = vld [vmem:[%s22000_s5 + $0x108] sm:$0xff]  }
 0x74b   :  { %13746 = vmatpush1.bf16.msra.mxu0 %v18214_v61  ;;  %v18270_v61 = vld [vmem:[%s22000_s5 + $0x110] sm:$0xff]  }
 0x74c   :  { %13869 = vmatpush1.bf16.msra.mxu1 %v18217_v55  ;;  %13747 = vmatprep.subr.bf16.mxu0 %v18222_v11 }
 0x74d   :  { %13870 = vmatprep.subr.bf16.mxu1 %v18225_v25 }
 0x74f   :  { %13748 = vmatpush1.bf16.msra.mxu0 %v18220_v36  ;;  %v18271_v36 = vld [vmem:[%s22000_s5 + $0x118] sm:$0xff]  }
 0x750   :  { %13871 = vmatpush1.bf16.msra.mxu1 %v18223_v41  ;;  %13749 = vmatprep.subr.bf16.mxu0 %v18228_v31  ;;  %v18272_v41 = vld [vmem:[%s22000_s5 + $0x120] sm:$0xff]   ;;  %v18273_v31 = vld [vmem:[%s22000_s5 + $0x128] sm:$0xff]  }
 0x751   :  { %13872 = vmatprep.subr.bf16.mxu1 %v18231_v28  ;;  %v18274_v28 = vld [vmem:[%s22000_s5 + $0x130] sm:$0xff]  }
 0x753   :  { %13750 = vmatpush1.bf16.msra.mxu0 %v18226_v51  ;;  %v18275_v51 = vld [vmem:[%s22000_s5 + $0x138] sm:$0xff]  }
 0x754   :  { %13873 = vmatpush1.bf16.msra.mxu1 %v18229_v32  ;;  %16548 = vmatprep.subr.bf16.mxu0 %v18232_v40  ;;  %v18277_v32 = vld [vmem:[%s22002_s7] sm:$0xff]   ;;  %v18278_v40 = vld [vmem:[%s22002_s7 + $0x8] sm:$0xff]  }
 0x755   :  { %16570 = vmatprep.subr.bf16.mxu1 %v18240_v60  ;;  %v18279_v60 = vld [vmem:[%s22002_s7 + $0x10] sm:$0xff]  }
 0x756   :  { %13752 = vmatmul.mubr.bf16.vlgmr.msra.gmra.mrb[72].mxu0 %v16290_v42 }
 0x757   :  { %13875 = vmatmul.mubr.bf16.vlgmr.msra.gmra.mrb[72].mxu1 %v16290_v42  ;;  %16549 = vmatpush3.bf16.msra.mxu0 %v18233_v58  ;;  %v18280_v58 = vld [vmem:[%s22002_s7 + $0x18] sm:$0xff]   ;;  %v18282_v42 = vld [vmem:[%s22002_s7 + $0x28] sm:$0xff]  }
 0x758   :  { %14270 = vmatprep.mubr.bf16.mxu0 %v16486_v43  ;;  %16550 = vmatprep.subr.bf16.mxu0 %v18236_v12 }
 0x759   :  { %16571 = vmatpush3.bf16.msra.mxu1 %v18241_v0 }
 0x75a   :  { %16572 = vmatprep.subr.bf16.mxu1 %v18244_v4 }
 0x75b   :  { %16551 = vmatpush3.bf16.msra.mxu0 %v18237_v29 }
 0x75c   :  { %16552 = vmatprep.subr.bf16.mxu0 %v18238_v56 }
 0x75d   :  { %16573 = vmatpush3.bf16.msra.mxu1 %v18245_v63 }
 0x75e   :  { %16574 = vmatprep.subr.bf16.mxu1 %v18248_v21 }
 0x75f   :  { %16553 = vmatpush3.bf16.msra.mxu0 %v18239_v46 }
 0x760   :  { %16554 = vmatprep.subr.bf16.mxu0 %v18242_v3 }
 0x761   :  { %16575 = vmatpush3.bf16.msra.mxu1 %v18249_v57 }
 0x762   :  { %16576 = vmatprep.subr.bf16.mxu1 %v18252_v19 }
 0x763   :  { %16555 = vmatpush3.bf16.msra.mxu0 %v18243_v5 }
 0x764   :  { %16556 = vmatprep.subr.bf16.mxu0 %v18246_v38 }
 0x765   :  { %16577 = vmatpush3.bf16.msra.mxu1 %v18253_v49 }
 0x766   :  { %16578 = vmatprep.subr.bf16.mxu1 %v18256_v13 }
 0x767   :  { %16557 = vmatpush3.bf16.msra.mxu0 %v18247_v23 }
 0x768   :  { %16558 = vmatprep.subr.bf16.mxu0 %v18250_v52 }
 0x769   :  { %v12324_v48 = vpop.f32.mrb[68].mxu0  ;;  %16579 = vmatpush3.bf16.msra.mxu1 %v18257_v1 }
 0x76a   :  { %v12447_v34 = vpop.f32.mrb[68].mxu1  ;;  %v12326_v54 = vpop.f32.mrb[69].mxu0  ;;  %16580 = vmatprep.subr.bf16.mxu1 %v18260_v50 }
 0x76b   :  { %v12454_v7 = vmax.f32 %v12324_v48, %v12326_v54  ;;  %v12449_v14 = vpop.f32.mrb[69].mxu1  ;;  %v12328_v17 = vpop.f32.mrb[70].mxu0  ;;  %16559 = vmatpush3.bf16.msra.mxu0 %v18251_v27  ;;  %v16484_v27 = vld [vmem:[%s22001_s6] ss:$0 sm:$0xff] }
 0x76c   :  { %v12455_v30 = vmax.f32 %v12447_v34, %v12449_v14  ;;  %v12451_v15 = vpop.f32.mrb[70].mxu1  ;;  %v12329_v18 = vpop.f32.mrb[71].mxu0  ;;  %16560 = vmatprep.subr.bf16.mxu0 %v18254_v10  ;;  %v18284_v14 = vld [vmem:[%s22002_s7 + $0x38] ss:$0 sps:$4 sm:$0xff]  }
 0x76d   :  { %v12452_v37 = vpop.f32.mrb[71].mxu1  ;;  %16581 = vmatpush3.bf16.msra.mxu1 %v18261_v44  ;;  %v14433_v17 = vsel %vm14431_vm1, %v18284_v14, 0  ;;  %v18287_v15 = vld [vmem:[%s22004_s9 + $0x10] sm:$0xff]   ;;  %v18288_v18 = vld [vmem:[%s22004_s9 + $0x18] sm:$0xff]  }
 0x76e   :  { %v12456_v33 = vmax.f32 %v12454_v7, %v12455_v30  ;;  %16582 = vmatprep.subr.bf16.mxu1 %v18262_v39  ;;  %v18283_v7 = vld [vmem:[%s22002_s7 + $0x30] sm:$0xff]   ;;  %v18286_v30 = vld [vmem:[%s22004_s9 + $0x8] sm:$0xff]  }
 0x76f   :  { %16561 = vmatpush3.bf16.msra.mxu0 %v18255_v9  ;;  %v18285_v9 = vld [vmem:[%s22004_s9] sm:$0xff]  }
 0x770   :  { %v12457_v24 = vadd.f32 %v21770_v62, %v12456_v33  ;;  %16562 = vmatprep.subr.bf16.mxu0 %v18258_v8 }
 0x771   :  { %16583 = vmatpush3.bf16.msra.mxu1 %v18263_v22 }
 0x772   :  { %v12458_v26 = vmax.f32 %v12457_v24, 0.0  ;;  %16584 = vmatprep.subr.bf16.mxu1 %v18264_v59 }
 0x773   :  { %16563 = vmatpush3.bf16.msra.mxu0 %v18259_v53 }
 0x774   :  { %v12459_v6 = vpack.c.bf16 %v12458_v26, %v12458_v26  ;;  %16617 = vmatprep.subr.bf16.mxu0 %v18323_v47  ;;  %v18290_v26 = vld [vmem:[%s22004_s9 + $0x28] ss:$0 sps:$4 sm:$0x33]  }
 0x775   :  { %16585 = vmatpush3.bf16.msra.mxu1 %v18265_v16  ;;  %v18289_v16 = vld [vmem:[%s22004_s9 + $0x20] sm:$0xff]  }
 0x776   :  { %12460 = vst [vmem:[#allocation3 + $0xc] sm:$0xf] %v12459_v6  ;;  %14271 = vmatmul.mubr.bf16.vlgmr.msra.gmra.mrb[76].mxu0 %v16485_v35  ;;  %16637 = vmatprep.subr.bf16.mxu1 %v18323_v47  ;;  %v16530_v35 = vld [vmem:[%s22003_s8] ss:$0 sm:$0xff] }
 0x777   :  { %16618 = vmatpush3.bf16.msra.mxu0 %v18268_v45  ;;  %16633 = vmatprep.mubr.msk.bf16.mxu0 %vm18324_vm0, %v18323_v47  ;;  %v14534_v45 = vsel %vm14532_vm3, %v18290_v26, 0 }
 0x778   :  { %16619 = vmatprep.subr.bf16.mxu0 %v18323_v47 }
 0x77b   :  { %16620 = vmatpush3.bf16.msra.mxu0 %v18269_v20 }
 0x77c   :  { %16621 = vmatprep.subr.bf16.mxu0 %v18323_v47 }
 0x77d   :  { %v13891_v55 = vld [vmem:[#allocation3 + $0x8] sm:$0xff] }
 0x77e   :  { %v16487_v11 = vcombine.low %v13891_v55, %v13891_v55  ;;  %v16488_v25 = vcombine.high %v13891_v55, %v13891_v55 }
 0x77f   :  { %16622 = vmatpush3.bf16.msra.mxu0 %v18270_v61 }
 0x780   :  { %14310 = vmatprep.mubr.bf16.mxu1 %v16488_v25  ;;  %16623 = vmatprep.subr.bf16.mxu0 %v18323_v47 }
 0x781   :  { %14311 = vmatmul.mubr.bf16.vlgmr.msra.gmra.mrb[76].mxu1 %v16487_v11 }
 0x782   :  { %16653 = vmatprep.mubr.msk.bf16.mxu1 %vm18324_vm0, %v18323_v47  ;;  %16638 = vmatpush3.bf16.msra.mxu1 %v18277_v32 }
 0x783   :  { %16624 = vmatpush3.bf16.msra.mxu0 %v18271_v36  ;;  %16639 = vmatprep.subr.bf16.mxu1 %v18323_v47 }
 0x784   :  { %16625 = vmatprep.subr.bf16.mxu0 %v18323_v47 }
 0x786   :  { %16640 = vmatpush3.bf16.msra.mxu1 %v18278_v40 }
 0x787   :  { %16626 = vmatpush3.bf16.msra.mxu0 %v18272_v41  ;;  %16641 = vmatprep.subr.bf16.mxu1 %v18323_v47 }
 0x788   :  { %16627 = vmatprep.subr.bf16.mxu0 %v18323_v47 }
 0x78a   :  { %16642 = vmatpush3.bf16.msra.mxu1 %v18279_v60 }
 0x78b   :  { %16628 = vmatpush3.bf16.msra.mxu0 %v18273_v31  ;;  %16643 = vmatprep.subr.bf16.mxu1 %v18323_v47 }
 0x78c   :  { %16629 = vmatprep.subr.bf16.mxu0 %v18323_v47 }
 0x78e   :  { %16644 = vmatpush3.bf16.msra.mxu1 %v18280_v58 }
 0x78f   :  { %16630 = vmatpush3.bf16.msra.mxu0 %v18274_v28  ;;  %16645 = vmatprep.subr.bf16.mxu1 %v18323_v47 }
 0x790   :  { %16631 = vmatprep.subr.bf16.mxu0 %v18323_v47 }
 0x792   :  { %16646 = vmatpush3.bf16.msra.mxu1 %v18281_v2 }
 0x793   :  { %16632 = vmatpush3.bf16.msra.mxu0 %v18275_v51  ;;  %16647 = vmatprep.subr.bf16.mxu1 %v18323_v47 }
 0x794   :  { %16657 = vmatprep.subr.bf16.mxu0 %v18323_v47 }
 0x796   :  { %16648 = vmatpush3.bf16.msra.mxu1 %v18282_v42 }
 0x797   :  { %16649 = vmatprep.subr.bf16.mxu1 %v18323_v47 }
 0x79a   :  { %16650 = vmatpush3.bf16.msra.mxu1 %v18283_v7 }
 0x79b   :  { %16651 = vmatprep.subr.bf16.mxu1 %v18323_v47 }
 0x79e   :  { %16652 = vmatpush3.bf16.msra.mxu1 %v14433_v17 }
 0x829   :  { %v13753_v12 = vpop.f32.mrb[72].mxu0 }
 0x82a   :  { %v13876_v0 = vpop.f32.mrb[72].mxu1  ;;  %v13755_v43 = vpop.f32.mrb[73].mxu0 }
 0x82b   :  { %v13883_v4 = vmax.f32 %v13753_v12, %v13755_v43  ;;  %v13878_v29 = vpop.f32.mrb[73].mxu1  ;;  %v13757_v56 = vpop.f32.mrb[74].mxu0 }
 0x82c   :  { %v13884_v63 = vmax.f32 %v13876_v0, %v13878_v29  ;;  %v13880_v21 = vpop.f32.mrb[74].mxu1  ;;  %v13758_v46 = vpop.f32.mrb[75].mxu0 }
 0x82d   :  { %v13881_v3 = vpop.f32.mrb[75].mxu1 }
 0x82e   :  { %v13885_v57 = vmax.f32 %v13883_v4, %v13884_v63 }
 0x830   :  { %v13886_v19 = vadd.f32 %v21770_v62, %v13885_v57 }
 0x832   :  { %v13887_v5 = vmax.f32 %v13886_v19, 0.0 }
 0x834   :  { %v13888_v38 = vpack.c.bf16 %v13887_v5, %v13887_v5 }
 0x836   :  { %13889 = vst [vmem:[#allocation3 + $0x10] sm:$0xf] %v13888_v38 }
 0x83d   :  { %v18276_v49 = vld [vmem:[#allocation3 + $0x10] ss:$0 sps:$4 sm:$0xff]  }
 0x83e   :  { %16634 = vmatmul.mubr.bf16.vlgmr.msra.gmra.mrb[80].mxu0 %v18276_v49 }
 0x83f   :  { %16669 = vmatprep.mubr.msk.bf16.mxu0 %vm18324_vm0, %v18323_v47  ;;  %16658 = vmatpush3.bf16.msra.mxu0 %v18285_v9 }
 0x840   :  { %16659 = vmatprep.subr.bf16.mxu0 %v18323_v47 }
 0x843   :  { %16660 = vmatpush3.bf16.msra.mxu0 %v18286_v30 }
 0x844   :  { %16661 = vmatprep.subr.bf16.mxu0 %v18323_v47 }
 0x847   :  { %16662 = vmatpush3.bf16.msra.mxu0 %v18287_v15 }
 0x848   :  { %16663 = vmatprep.subr.bf16.mxu0 %v18323_v47 }
 0x849   :  { %v16564_v13 = vpop.f32.mrb[76].mxu0 }
 0x84a   :  { %v16565_v23 = vpop.f32.mrb[77].mxu0 }
 0x84b   :  { %v16566_v52 = vadd.f32 %v16565_v23, %v16564_v13  ;;  %v16567_v1 = vpop.f32.mrb[78].mxu0  ;;  %16664 = vmatpush3.bf16.msra.mxu0 %v18288_v18 }
 0x84c   :  { %v16568_v50 = vpop.f32.mrb[79].mxu0  ;;  %16665 = vmatprep.subr.bf16.mxu0 %v18323_v47 }
 0x84d   :  { %v14273_v62 = vadd.f32 %v16566_v52, %v16484_v27 }
 0x84f   :  { %16666 = vmatpush3.bf16.msra.mxu0 %v18289_v16 }
 0x850   :  { %16667 = vmatprep.subr.bf16.mxu0 %v18323_v47  ;;  %v16540_v47 = vld [vmem:[%s22005_s10] ss:$0 sm:$0xff] }
 0x853   :  { %16668 = vmatpush3.bf16.msra.mxu0 %v14534_v45 }
 0x854   :  { %v16586_v10 = vpop.f32.mrb[76].mxu1 }
 0x855   :  { %v16587_v48 = vpop.f32.mrb[77].mxu1 }
 0x856   :  { %v16588_v44 = vadd.f32 %v16587_v48, %v16586_v10  ;;  %v16589_v34 = vpop.f32.mrb[78].mxu1 }
 0x857   :  { %v16590_v54 = vpop.f32.mrb[79].mxu1 }
 0x858   :  { %v14313_v39 = vadd.f32 %v16588_v44, %v14273_v62 }
 0x911   :  { %v14352_v8 = vpop.f32.mrb[80].mxu0 }
 0x912   :  { %v14353_v37 = vadd.f32 %v14352_v8, %v14313_v39  ;;  %v16635_v22 = vpop.f32.mrb[81].mxu0 }
 0x913   :  { %v14355_v33 = vpop.f32.mrb[82].mxu0 }
 0x914   :  { %v14358_v59 = vmax.f32 %v14353_v37, 0.0  ;;  %v16636_v53 = vpop.f32.mrb[83].mxu0 }
 0x916   :  { %v14359_v24 = vpack.c.bf16 %v14358_v59, %v14358_v59 }
 0x918   :  { %16654 = vmatmul.mubr.msk.bf16.vlgmr.msra.gmra.mrb[80].mxu1 %vm14427_vm2, %v14359_v24 }
 0x9eb   :  { %v14469_v6 = vpop.f32.mrb[80].mxu1 }
 0x9ec   :  { %v14470_v20 = vadd.f32 %v16530_v35, %v14469_v6  ;;  %v16655_v61 = vpop.f32.mrb[81].mxu1 }
 0x9ed   :  { %v14472_v55 = vpop.f32.mrb[82].mxu1 }
 0x9ee   :  { %v14475_v11 = vmax.f32 %v14470_v20, 0.0  ;;  %v16656_v25 = vpop.f32.mrb[83].mxu1 }
 0x9f0   :  { %v14476_v36 = vpack.c.bf16 %v14475_v11, %v14475_v11 }
 0x9f2   :  { %16670 = vmatmul.mubr.msk.bf16.vlgmr.msra.gmra.mrb[84].mxu0 %vm14528_vm4, %v14476_v36 }
 0xac5   :  { %v14570_v41 = vpop.f32.mrb[84].mxu0 }
 0xac6   :  { %v14571_v31 = vadd.f32 %v16540_v47, %v14570_v41  ;;  %v16671_v28 = vpop.f32.mrb[85].mxu0 }
 0xac7   :  { %v14573_v51 = vpop.f32.mrb[86].mxu0 }
 0xac8   :  { %14576 = vst [vmem:[%s22006_s11] sm:$0xff] %v14571_v31  ;;  %v16672_v32 = vpop.f32.mrb[87].mxu0 }
 0xac9   :  { %14581 = vsyncpa [#allocation5], 1 }

</bundles_post_ra>
